<compile_context>
chip_gen: v7x
topology: tpu7x:2x2x1
jax: 0.10.0
libtpu: 0.0.40
codegen_flags: <defaults>
</compile_context>

<pallas_src>
import functools

import jax
import jax.numpy as jnp
from jax.experimental import pallas as pl
from jax.experimental.pallas import tpu as pltpu


def _round_up(x, m):
    return ((x + m - 1) // m) * m


# ---------------------------------------------------------------------------
# Fused matmul + bias (+ ELU) kernel, tiled over M
# ---------------------------------------------------------------------------

def _mm_bias_act_kernel(x_ref, w_ref, b_ref, o_ref, *, act):
    acc = jnp.dot(x_ref[...], w_ref[...], preferred_element_type=jnp.float32)
    acc = acc + b_ref[...]
    if act == "elu":
        # ELU(alpha=1): x if x > 0 else exp(x) - 1.
        # (exp(x)-1 used instead of expm1 for guaranteed Mosaic lowering.)
        acc = jnp.where(acc > 0.0, acc, jnp.exp(jnp.minimum(acc, 0.0)) - 1.0)
    o_ref[...] = acc.astype(o_ref.dtype)


def matmul_bias_act(x, w, b, act="none", out_dtype=jnp.float32, tm=512):
    """out = act(x @ w + b). x:(M,K), w:(K,N), b:(N,) -> (M,N).

    bf16 MXU operands, f32 accumulation / bias / activation.  Grid tiles M
    ("parallel" -> shards across TensorCores); K and N stay whole (N <= 1024
    and K <= 576 in this model, so blocks are small in VMEM on every TPU
    generation including v7x's 64 MiB).
    """
    M, K = x.shape
    N = w.shape[1]
    tm = min(tm, _round_up(M, 16))          # bf16-friendly sublane multiple
    Mp = _round_up(M, tm)
    if Mp != M:
        x = jnp.pad(x, ((0, Mp - M), (0, 0)))
    b2 = jnp.asarray(b, jnp.float32).reshape(1, N)

    out = pl.pallas_call(
        functools.partial(_mm_bias_act_kernel, act=act),
        out_shape=jax.ShapeDtypeStruct((Mp, N), out_dtype),
        grid=(Mp // tm,),
        in_specs=[
            pl.BlockSpec((tm, K), lambda i: (i, 0)),
            pl.BlockSpec((K, N), lambda i: (0, 0)),   # weights resident
            pl.BlockSpec((1, N), lambda i: (0, 0)),   # bias resident
        ],
        out_specs=pl.BlockSpec((tm, N), lambda i: (i, 0)),
        compiler_params=pltpu.CompilerParams(dimension_semantics=("parallel",)),
    )(x.astype(jnp.bfloat16), w.astype(jnp.bfloat16), b2)
    return out[:M]


# ---------------------------------------------------------------------------
# Conv2d(3x3, stride 2, pad 1) + ELU, NHWC, via im2col + fused matmul kernel
# ---------------------------------------------------------------------------

def conv3x3_s2_elu(x, wmat, b):
    """x:(N,H,W,Cin) NHWC, wmat:(9*Cin,Cout) rows ordered (di,dj,ci), b:(Cout,)."""
    N, H, W, Cin = x.shape
    Cout = wmat.shape[1]
    OH = (H + 2 - 3) // 2 + 1
    OW = (W + 2 - 3) // 2 + 1
    xp = jnp.pad(x, ((0, 0), (1, 1), (1, 1), (0, 0)))
    taps = []
    for di in range(3):
        for dj in range(3):
            t = jax.lax.slice(
                xp, (0, di, dj, 0),
                (N, di + 2 * OH - 1, dj + 2 * OW - 1, Cin),
                (1, 2, 2, 1))                       # (N, OH, OW, Cin)
            taps.append(t.reshape(N * OH * OW, Cin))
    patches = jnp.concatenate(taps, axis=1)          # (N*OH*OW, 9*Cin), channel-minor
    out = matmul_bias_act(patches, wmat, b, act="elu", out_dtype=jnp.bfloat16)
    return out.reshape(N, OH, OW, Cout)


# ---------------------------------------------------------------------------
# Fused T-step x 2-layer LSTM recurrence + policy/baseline heads
# (single pallas_call, grid=(T,))
# ---------------------------------------------------------------------------

def _lstm_seq_kernel(nd_ref, gx1_ref, h0_ref, c0_ref, wh1_ref, wxh2_ref, b2_ref,
                     hw_ref, hb_ref,
                     heads_ref, hn_ref, cn_ref,
                     h1_s, c1_s, h2_s, c2_s, *, hidden):
    t = pl.program_id(0)
    H = hidden

    @pl.when(t == 0)
    def _init():
        h1_s[...] = h0_ref[0]
        c1_s[...] = c0_ref[0]
        h2_s[...] = h0_ref[1]
        c2_s[...] = c0_ref[1]

    nd = nd_ref[0]                    # (B, 1) not-done mask (zeros reset state)
    gx = gx1_ref[0]                   # (B, 4H): hoisted x@Wx1 + b1 for this step

    def gates_to_hc(gates, c_prev):
        # PyTorch gate order: i, f, g, o
        i = jax.nn.sigmoid(gates[:, 0:H])
        f = jax.nn.sigmoid(gates[:, H:2 * H])
        g = jnp.tanh(gates[:, 2 * H:3 * H])
        o = jax.nn.sigmoid(gates[:, 3 * H:4 * H])
        c_new = f * c_prev + i * g
        h_new = o * jnp.tanh(c_new)
        return h_new, c_new

    # ---- layer 1 (input projection hoisted out of the recurrence) ----
    h1m = (h1_s[...] * nd).astype(jnp.bfloat16)
    gates1 = gx + jnp.dot(h1m, wh1_ref[...], preferred_element_type=jnp.float32)
    h1_new, c1_new = gates_to_hc(gates1, c1_s[...] * nd)
    h1_s[...] = h1_new
    c1_s[...] = c1_new

    # ---- layer 2 ([x, h] concat -> one MXU dot against [Wx2; Wh2]) ----
    xh = jnp.concatenate(
        [h1_new.astype(jnp.bfloat16), (h2_s[...] * nd).astype(jnp.bfloat16)],
        axis=-1)                                          # (B, 2H)
    gates2 = (jnp.dot(xh, wxh2_ref[...], preferred_element_type=jnp.float32)
              + b2_ref[...])
    h2_new, c2_new = gates_to_hc(gates2, c2_s[...] * nd)
    h2_s[...] = h2_new
    c2_s[...] = c2_new

    # ---- fused policy + baseline heads for this step ----
    heads = (jnp.dot(h2_new.astype(jnp.bfloat16), hw_ref[...],
                     preferred_element_type=jnp.float32) + hb_ref[...])
    heads_ref[0] = heads

    @pl.when(t == pl.num_programs(0) - 1)
    def _finalize():
        hn_ref[0] = h1_s[...]
        hn_ref[1] = h2_s[...]
        cn_ref[0] = c1_s[...]
        cn_ref[1] = c2_s[...]


def lstm_heads_sequence(gx1, notdone, core_state, wh1, wxh2, b2, head_w, head_b):
    """Run the full 2-layer LSTM over T steps + fused heads in one launch.

    gx1:    (T, B, 4H) precomputed layer-1 input gates (x @ Wx1 + b1), f32
    notdone:(T, B, 1)  float mask, 0 where the episode ended
    core_state: (h0, c0) each (2, B, H) f32
    wh1:    (H, 4H), wxh2: (2H, 4H) (= [Wx2; Wh2]), b2: (1, 4H)
    head_w: (H, A+1) fused policy|baseline weight, head_b: (1, A+1)
    Returns (heads (T,B,A+1), h_n (2,B,H), c_n (2,B,H)).
    """
    T, B, G = gx1.shape
    H = G // 4
    A1 = head_w.shape[1]
    h0, c0 = core_state

    return pl.pallas_call(
        functools.partial(_lstm_seq_kernel, hidden=H),
        out_shape=(jax.ShapeDtypeStruct((T, B, A1), jnp.float32),
                   jax.ShapeDtypeStruct((2, B, H), jnp.float32),
                   jax.ShapeDtypeStruct((2, B, H), jnp.float32)),
        grid=(T,),
        in_specs=[
            pl.BlockSpec((1, B, 1), lambda t: (t, 0, 0)),   # notdone[t]
            pl.BlockSpec((1, B, G), lambda t: (t, 0, 0)),   # gx1[t]
            pl.BlockSpec((2, B, H), lambda t: (0, 0, 0)),   # h0 (resident)
            pl.BlockSpec((2, B, H), lambda t: (0, 0, 0)),   # c0 (resident)
            pl.BlockSpec((H, G), lambda t: (0, 0)),         # wh1 (VMEM-resident)
            pl.BlockSpec((2 * H, G), lambda t: (0, 0)),     # wxh2 (VMEM-resident)
            pl.BlockSpec((1, G), lambda t: (0, 0)),         # b2 (resident)
            pl.BlockSpec((H, A1), lambda t: (0, 0)),        # head_w (resident)
            pl.BlockSpec((1, A1), lambda t: (0, 0)),        # head_b (resident)
        ],
        out_specs=(
            pl.BlockSpec((1, B, A1), lambda t: (t, 0, 0)),  # per-step head output
            pl.BlockSpec((2, B, H), lambda t: (0, 0, 0)),   # final h
            pl.BlockSpec((2, B, H), lambda t: (0, 0, 0)),   # final c
        ),
        scratch_shapes=[pltpu.VMEM((B, H), jnp.float32) for _ in range(4)],
        compiler_params=pltpu.CompilerParams(dimension_semantics=("arbitrary",)),
    )(notdone, gx1, h0, c0,
      wh1.astype(jnp.bfloat16), wxh2.astype(jnp.bfloat16), b2,
      head_w.astype(jnp.bfloat16), head_b)


# ---------------------------------------------------------------------------
# Parameters (deterministic, mirrors the module's __init__ shapes)
# ---------------------------------------------------------------------------

def make_params(key, in_channels, num_actions, hidden=256):
    keys = iter(jax.random.split(key, 16))
    orth = jax.nn.initializers.orthogonal
    relu_gain = 2.0 ** 0.5

    params = {"convs": []}
    cin = in_channels
    for _ in range(4):
        w = orth(relu_gain)(next(keys), (32, 9 * cin), jnp.float32)   # (Cout, 9*Cin)
        params["convs"].append((w.T, jnp.zeros((32,), jnp.float32)))  # (9*Cin, Cout)
        cin = 32

    # 2-layer LSTM(288 -> 256), PyTorch-style uniform(-1/sqrt(H), 1/sqrt(H)) init
    lstm_in = 32 * 3 * 3
    k = 1.0 / (hidden ** 0.5)

    def unif(kk, shape):
        return jax.random.uniform(kk, shape, jnp.float32, -k, k)

    w_ih0 = unif(next(keys), (4 * hidden, lstm_in))
    w_hh0 = unif(next(keys), (4 * hidden, hidden))
    b_l0 = unif(next(keys), (4 * hidden,)) + unif(next(keys), (4 * hidden,))
    w_ih1 = unif(next(keys), (4 * hidden, hidden))
    w_hh1 = unif(next(keys), (4 * hidden, hidden))
    b_l1 = unif(next(keys), (4 * hidden,)) + unif(next(keys), (4 * hidden,))

    params["wx1"] = w_ih0.T                                         # (288, 4H)
    params["wh1"] = w_hh0.T                                         # (H, 4H)
    params["b1"] = b_l0                                             # (4H,)
    params["wxh2"] = jnp.concatenate([w_ih1.T, w_hh1.T], axis=0)    # (2H, 4H)
    params["b2"] = b_l1.reshape(1, 4 * hidden)

    pol_w = orth(1.0)(next(keys), (num_actions, hidden), jnp.float32)
    base_w = orth(1.0)(next(keys), (1, hidden), jnp.float32)
    params["head_w"] = jnp.concatenate([pol_w.T, base_w.T], axis=1)  # (H, A+1)
    params["head_b"] = jnp.zeros((1, num_actions + 1), jnp.float32)
    return params


def initial_state(batch_size, num_layers=2, hidden=256):
    return (jnp.zeros((num_layers, batch_size, hidden), jnp.float32),
            jnp.zeros((num_layers, batch_size, hidden), jnp.float32))


# ---------------------------------------------------------------------------
# Forward pass (matches MarioDoomPolicyNet.forward semantics, eval mode)
# ---------------------------------------------------------------------------

def forward(params, frame, done, core_state, num_actions):
    T, B, C, W, H = frame.shape
    hidden = params["wh1"].shape[0]

    # Reproduce the module's .reshape(T,B,W,H,C) memory reinterpret + flatten,
    # then go to NHWC (equivalent to torch's .transpose(1,3) NCHW tensor).
    x = frame.reshape(T * B, W, H, C)                  # torch-style reinterpret
    x = jnp.transpose(x, (0, 2, 1, 3))                 # (TB, H, W, C) NHWC
    x = x.astype(jnp.bfloat16)

    for wmat, b in params["convs"]:
        x = conv3x3_s2_elu(x, wmat, b)                 # NHWC, bf16 activations

    TB, OH, OW, Cf = x.shape
    # Flatten features in torch's NCHW (c, h, w) order for weight-layout fidelity.
    core_input = jnp.transpose(x, (0, 3, 1, 2)).reshape(TB, Cf * OH * OW)

    # Hoisted LSTM layer-1 input projection: one batched matmul over T*B rows.
    gx1 = matmul_bias_act(core_input, params["wx1"], params["b1"])  # (TB, 4H) f32
    gx1 = gx1.reshape(T, B, 4 * hidden)

    notdone = (1.0 - done.astype(jnp.float32)).reshape(T, B, 1)     # (~done).float()

    heads, h_n, c_n = lstm_heads_sequence(
        gx1, notdone, core_state,
        params["wh1"], params["wxh2"], params["b2"],
        params["head_w"], params["head_b"])

    heads2 = heads.reshape(T * B, num_actions + 1)
    policy_logits = heads2[:, :num_actions]
    baseline = heads2[:, num_actions]

    # Eval-mode path: deterministic argmax action.
    # TODO(synk): training-mode multinomial sampling is stochastic; not reproduced.
    action = jnp.argmax(policy_logits, axis=1)

    out = dict(policy_logits=policy_logits.reshape(T, B, num_actions),
               baseline=baseline.reshape(T, B),
               action=action.reshape(T, B))
    return out, (h_n, c_n)


# ---------------------------------------------------------------------------

if __name__ == "__main__":
    key = jax.random.PRNGKey(0)
    # Spatial 36 -> 18 -> 9 -> 5 -> 3 after the 4 stride-2 convs, giving
    # 32*3*3 = 288 features, matching nn.LSTM(288, 256, 2).
    T, B, C, W, H = 4, 2, 4, 36, 36
    num_actions = 6

    pkey, fkey, dkey = jax.random.split(key, 3)
    params = make_params(pkey, C, num_actions)
    frame = jax.random.normal(fkey, (T, B, C, W, H), jnp.float32)
    done = jax.random.bernoulli(dkey, 0.3, (T, B))
    core_state = initial_state(B)

    fwd = jax.jit(lambda p, f, d, cs: forward(p, f, d, cs, num_actions))
    out, new_state = fwd(params, frame, done, core_state)
    jax.block_until_ready((out, new_state))

    assert out["policy_logits"].shape == (T, B, num_actions)
    assert out["baseline"].shape == (T, B)
    assert out["action"].shape == (T, B)
    assert new_state[0].shape == (2, B, 256) and new_state[1].shape == (2, B, 256)
    assert bool(jnp.all(jnp.isfinite(out["policy_logits"])))
    print("KERNEL_OK")
</pallas_src>

<mosaic_0001>
module attributes {stable_mosaic.version = 11 : i64} {
  func.func @_mm_bias_act_kernel(%arg0: i32, %arg1: memref<512x36xbf16, #tpu.memory_space<vmem>>, %arg2: memref<36x32xbf16, #tpu.memory_space<vmem>>, %arg3: memref<1x32xf32, #tpu.memory_space<vmem>>, %arg4: memref<512x32xbf16, #tpu.memory_space<vmem>>) attributes {dimension_semantics = [#tpu.dimension_semantics<parallel>], iteration_bounds = array<i64: 6>, scalar_prefetch = 0 : i64, scratch_operands = 0 : i64, tpu.core_type = #tpu.core_type<tc>, window_params = [{transform_indices = @transform_0, window_bounds = array<i64: 512, 36>}, {pipeline_mode = #tpu.pipeline_mode<synchronous>, transform_indices = @transform_1, window_bounds = array<i64: 36, 32>}, {pipeline_mode = #tpu.pipeline_mode<synchronous>, transform_indices = @transform_2, window_bounds = array<i64: 1, 32>}, {transform_indices = @transform_3, window_bounds = array<i64: 512, 32>}]} {
    %c0 = arith.constant 0 : index
    %c0_0 = arith.constant 0 : index
    %0 = vector.load %arg1[%c0, %c0_0] : memref<512x36xbf16, #tpu.memory_space<vmem>>, vector<512x36xbf16>
    %c0_1 = arith.constant 0 : index
    %c0_2 = arith.constant 0 : index
    %1 = vector.load %arg2[%c0_1, %c0_2] : memref<36x32xbf16, #tpu.memory_space<vmem>>, vector<36x32xbf16>
    %cst = arith.constant dense<0.000000e+00> : vector<512x32xf32>
    %2 = tpu.matmul %0, %1, %cst {dimension_numbers = #tpu.dot_dimension_numbers<[1], [0], [0], [1], [0, 0, 1, 1], [], []>} : vector<512x36xbf16>, vector<36x32xbf16>, vector<512x32xf32> -> vector<512x32xf32>
    %c0_3 = arith.constant 0 : index
    %c0_4 = arith.constant 0 : index
    %3 = vector.load %arg3[%c0_3, %c0_4] : memref<1x32xf32, #tpu.memory_space<vmem>>, vector<1x32xf32>
    %4 = vector.broadcast %3 : vector<1x32xf32> to vector<512x32xf32>
    %5 = arith.addf %2, %4 : vector<512x32xf32>
    %cst_5 = arith.constant 0.000000e+00 : f32
    %6 = vector.broadcast %cst_5 : f32 to vector<512x32xf32>
    %7 = arith.cmpf ogt, %5, %6 : vector<512x32xf32>
    %cst_6 = arith.constant 0.000000e+00 : f32
    %8 = vector.broadcast %cst_6 : f32 to vector<512x32xf32>
    %9 = arith.minimumf %5, %8 : vector<512x32xf32>
    %10 = math.exp %9 : vector<512x32xf32>
    %cst_7 = arith.constant 1.000000e+00 : f32
    %11 = vector.broadcast %cst_7 : f32 to vector<512x32xf32>
    %12 = arith.subf %10, %11 : vector<512x32xf32>
    %13 = arith.select %7, %5, %12 : vector<512x32xi1>, vector<512x32xf32>
    %14 = arith.truncf %13 : vector<512x32xf32> to vector<512x32xbf16>
    %c0_8 = arith.constant 0 : index
    %c0_9 = arith.constant 0 : index
    %15 = vector.load %arg4[%c0_8, %c0_9] : memref<512x32xbf16, #tpu.memory_space<vmem>>, vector<512x32xbf16>
    tpu.vector_store %arg4[%c0_8, %c0_9], %14 {strides = array<i32>} : memref<512x32xbf16, #tpu.memory_space<vmem>>, vector<512x32xbf16>,
    return
  }
  func.func @transform_0(%arg0: i32) -> (i32, i32) {
    %c0_i32 = arith.constant 0 : i32
    %c0_i32_0 = arith.constant 0 : i32
    return %arg0, %c0_i32 : i32, i32
  }
  func.func @transform_1(%arg0: i32) -> (i32, i32) {
    %c0_i32 = arith.constant 0 : i32
    %c0_i32_0 = arith.constant 0 : i32
    %c0_i32_1 = arith.constant 0 : i32
    return %c0_i32, %c0_i32_0 : i32, i32
  }
  func.func @transform_2(%arg0: i32) -> (i32, i32) {
    %c0_i32 = arith.constant 0 : i32
    %c0_i32_0 = arith.constant 0 : i32
    %c0_i32_1 = arith.constant 0 : i32
    return %c0_i32, %c0_i32_0 : i32, i32
  }
  func.func @transform_3(%arg0: i32) -> (i32, i32) {
    %c0_i32 = arith.constant 0 : i32
    %c0_i32_0 = arith.constant 0 : i32
    return %arg0, %c0_i32 : i32, i32
  }
}

module attributes {stable_mosaic.version = 11 : i64} {
  func.func @_mm_bias_act_kernel(%arg0: i32, %arg1: memref<512x288xbf16, #tpu.memory_space<vmem>>, %arg2: memref<288x32xbf16, #tpu.memory_space<vmem>>, %arg3: memref<1x32xf32, #tpu.memory_space<vmem>>, %arg4: memref<512x32xbf16, #tpu.memory_space<vmem>>) attributes {dimension_semantics = [#tpu.dimension_semantics<parallel>], iteration_bounds = array<i64: 2>, scalar_prefetch = 0 : i64, scratch_operands = 0 : i64, tpu.core_type = #tpu.core_type<tc>, window_params = [{transform_indices = @transform_0, window_bounds = array<i64: 512, 288>}, {pipeline_mode = #tpu.pipeline_mode<synchronous>, transform_indices = @transform_1, window_bounds = array<i64: 288, 32>}, {pipeline_mode = #tpu.pipeline_mode<synchronous>, transform_indices = @transform_2, window_bounds = array<i64: 1, 32>}, {transform_indices = @transform_3, window_bounds = array<i64: 512, 32>}]} {
    %c0 = arith.constant 0 : index
    %c0_0 = arith.constant 0 : index
    %0 = vector.load %arg1[%c0, %c0_0] : memref<512x288xbf16, #tpu.memory_space<vmem>>, vector<512x288xbf16>
    %c0_1 = arith.constant 0 : index
    %c0_2 = arith.constant 0 : index
    %1 = vector.load %arg2[%c0_1, %c0_2] : memref<288x32xbf16, #tpu.memory_space<vmem>>, vector<288x32xbf16>
    %cst = arith.constant dense<0.000000e+00> : vector<512x32xf32>
    %2 = tpu.matmul %0, %1, %cst {dimension_numbers = #tpu.dot_dimension_numbers<[1], [0], [0], [1], [0, 0, 1, 1], [], []>} : vector<512x288xbf16>, vector<288x32xbf16>, vector<512x32xf32> -> vector<512x32xf32>
    %c0_3 = arith.constant 0 : index
    %c0_4 = arith.constant 0 : index
    %3 = vector.load %arg3[%c0_3, %c0_4] : memref<1x32xf32, #tpu.memory_space<vmem>>, vector<1x32xf32>
    %4 = vector.broadcast %3 : vector<1x32xf32> to vector<512x32xf32>
    %5 = arith.addf %2, %4 : vector<512x32xf32>
    %cst_5 = arith.constant 0.000000e+00 : f32
    %6 = vector.broadcast %cst_5 : f32 to vector<512x32xf32>
    %7 = arith.cmpf ogt, %5, %6 : vector<512x32xf32>
    %cst_6 = arith.constant 0.000000e+00 : f32
    %8 = vector.broadcast %cst_6 : f32 to vector<512x32xf32>
    %9 = arith.minimumf %5, %8 : vector<512x32xf32>
    %10 = math.exp %9 : vector<512x32xf32>
    %cst_7 = arith.constant 1.000000e+00 : f32
    %11 = vector.broadcast %cst_7 : f32 to vector<512x32xf32>
    %12 = arith.subf %10, %11 : vector<512x32xf32>
    %13 = arith.select %7, %5, %12 : vector<512x32xi1>, vector<512x32xf32>
    %14 = arith.truncf %13 : vector<512x32xf32> to vector<512x32xbf16>
    %c0_8 = arith.constant 0 : index
    %c0_9 = arith.constant 0 : index
    %15 = vector.load %arg4[%c0_8, %c0_9] : memref<512x32xbf16, #tpu.memory_space<vmem>>, vector<512x32xbf16>
    tpu.vector_store %arg4[%c0_8, %c0_9], %14 {strides = array<i32>} : memref<512x32xbf16, #tpu.memory_space<vmem>>, vector<512x32xbf16>,
    return
  }
  func.func @transform_0(%arg0: i32) -> (i32, i32) {
    %c0_i32 = arith.constant 0 : i32
    %c0_i32_0 = arith.constant 0 : i32
    return %arg0, %c0_i32 : i32, i32
  }
  func.func @transform_1(%arg0: i32) -> (i32, i32) {
    %c0_i32 = arith.constant 0 : i32
    %c0_i32_0 = arith.constant 0 : i32
    %c0_i32_1 = arith.constant 0 : i32
    return %c0_i32, %c0_i32_0 : i32, i32
  }
  func.func @transform_2(%arg0: i32) -> (i32, i32) {
    %c0_i32 = arith.constant 0 : i32
    %c0_i32_0 = arith.constant 0 : i32
    %c0_i32_1 = arith.constant 0 : i32
    return %c0_i32, %c0_i32_0 : i32, i32
  }
  func.func @transform_3(%arg0: i32) -> (i32, i32) {
    %c0_i32 = arith.constant 0 : i32
    %c0_i32_0 = arith.constant 0 : i32
    return %arg0, %c0_i32 : i32, i32
  }
}

module attributes {stable_mosaic.version = 11 : i64} {
  func.func @_mm_bias_act_kernel(%arg0: i32, %arg1: memref<208x288xbf16, #tpu.memory_space<vmem>>, %arg2: memref<288x32xbf16, #tpu.memory_space<vmem>>, %arg3: memref<1x32xf32, #tpu.memory_space<vmem>>, %arg4: memref<208x32xbf16, #tpu.memory_space<vmem>>) attributes {dimension_semantics = [#tpu.dimension_semantics<parallel>], iteration_bounds = array<i64: 1>, scalar_prefetch = 0 : i64, scratch_operands = 0 : i64, tpu.core_type = #tpu.core_type<tc>, window_params = [{transform_indices = @transform_0, window_bounds = array<i64: 208, 288>}, {pipeline_mode = #tpu.pipeline_mode<synchronous>, transform_indices = @transform_1, window_bounds = array<i64: 288, 32>}, {pipeline_mode = #tpu.pipeline_mode<synchronous>, transform_indices = @transform_2, window_bounds = array<i64: 1, 32>}, {transform_indices = @transform_3, window_bounds = array<i64: 208, 32>}]} {
    %c0 = arith.constant 0 : index
    %c0_0 = arith.constant 0 : index
    %0 = vector.load %arg1[%c0, %c0_0] : memref<208x288xbf16, #tpu.memory_space<vmem>>, vector<208x288xbf16>
    %c0_1 = arith.constant 0 : index
    %c0_2 = arith.constant 0 : index
    %1 = vector.load %arg2[%c0_1, %c0_2] : memref<288x32xbf16, #tpu.memory_space<vmem>>, vector<288x32xbf16>
    %cst = arith.constant dense<0.000000e+00> : vector<208x32xf32>
    %2 = tpu.matmul %0, %1, %cst {dimension_numbers = #tpu.dot_dimension_numbers<[1], [0], [0], [1], [0, 0, 1, 1], [], []>} : vector<208x288xbf16>, vector<288x32xbf16>, vector<208x32xf32> -> vector<208x32xf32>
    %c0_3 = arith.constant 0 : index
    %c0_4 = arith.constant 0 : index
    %3 = vector.load %arg3[%c0_3, %c0_4] : memref<1x32xf32, #tpu.memory_space<vmem>>, vector<1x32xf32>
    %4 = vector.broadcast %3 : vector<1x32xf32> to vector<208x32xf32>
    %5 = arith.addf %2, %4 : vector<208x32xf32>
    %cst_5 = arith.constant 0.000000e+00 : f32
    %6 = vector.broadcast %cst_5 : f32 to vector<208x32xf32>
    %7 = arith.cmpf ogt, %5, %6 : vector<208x32xf32>
    %cst_6 = arith.constant 0.000000e+00 : f32
    %8 = vector.broadcast %cst_6 : f32 to vector<208x32xf32>
    %9 = arith.minimumf %5, %8 : vector<208x32xf32>
    %10 = math.exp %9 : vector<208x32xf32>
    %cst_7 = arith.constant 1.000000e+00 : f32
    %11 = vector.broadcast %cst_7 : f32 to vector<208x32xf32>
    %12 = arith.subf %10, %11 : vector<208x32xf32>
    %13 = arith.select %7, %5, %12 : vector<208x32xi1>, vector<208x32xf32>
    %14 = arith.truncf %13 : vector<208x32xf32> to vector<208x32xbf16>
    %c0_8 = arith.constant 0 : index
    %c0_9 = arith.constant 0 : index
    %15 = vector.load %arg4[%c0_8, %c0_9] : memref<208x32xbf16, #tpu.memory_space<vmem>>, vector<208x32xbf16>
    tpu.vector_store %arg4[%c0_8, %c0_9], %14 {strides = array<i32>} : memref<208x32xbf16, #tpu.memory_space<vmem>>, vector<208x32xbf16>,
    return
  }
  func.func @transform_0(%arg0: i32) -> (i32, i32) {
    %c0_i32 = arith.constant 0 : i32
    %c0_i32_0 = arith.constant 0 : i32
    return %arg0, %c0_i32 : i32, i32
  }
  func.func @transform_1(%arg0: i32) -> (i32, i32) {
    %c0_i32 = arith.constant 0 : i32
    %c0_i32_0 = arith.constant 0 : i32
    %c0_i32_1 = arith.constant 0 : i32
    return %c0_i32, %c0_i32_0 : i32, i32
  }
  func.func @transform_2(%arg0: i32) -> (i32, i32) {
    %c0_i32 = arith.constant 0 : i32
    %c0_i32_0 = arith.constant 0 : i32
    %c0_i32_1 = arith.constant 0 : i32
    return %c0_i32, %c0_i32_0 : i32, i32
  }
  func.func @transform_3(%arg0: i32) -> (i32, i32) {
    %c0_i32 = arith.constant 0 : i32
    %c0_i32_0 = arith.constant 0 : i32
    return %arg0, %c0_i32 : i32, i32
  }
}

module attributes {stable_mosaic.version = 11 : i64} {
  func.func @_mm_bias_act_kernel(%arg0: i32, %arg1: memref<80x288xbf16, #tpu.memory_space<vmem>>, %arg2: memref<288x32xbf16, #tpu.memory_space<vmem>>, %arg3: memref<1x32xf32, #tpu.memory_space<vmem>>, %arg4: memref<80x32xbf16, #tpu.memory_space<vmem>>) attributes {dimension_semantics = [#tpu.dimension_semantics<parallel>], iteration_bounds = array<i64: 1>, scalar_prefetch = 0 : i64, scratch_operands = 0 : i64, tpu.core_type = #tpu.core_type<tc>, window_params = [{transform_indices = @transform_0, window_bounds = array<i64: 80, 288>}, {pipeline_mode = #tpu.pipeline_mode<synchronous>, transform_indices = @transform_1, window_bounds = array<i64: 288, 32>}, {pipeline_mode = #tpu.pipeline_mode<synchronous>, transform_indices = @transform_2, window_bounds = array<i64: 1, 32>}, {transform_indices = @transform_3, window_bounds = array<i64: 80, 32>}]} {
    %c0 = arith.constant 0 : index
    %c0_0 = arith.constant 0 : index
    %0 = vector.load %arg1[%c0, %c0_0] : memref<80x288xbf16, #tpu.memory_space<vmem>>, vector<80x288xbf16>
    %c0_1 = arith.constant 0 : index
    %c0_2 = arith.constant 0 : index
    %1 = vector.load %arg2[%c0_1, %c0_2] : memref<288x32xbf16, #tpu.memory_space<vmem>>, vector<288x32xbf16>
    %cst = arith.constant dense<0.000000e+00> : vector<80x32xf32>
    %2 = tpu.matmul %0, %1, %cst {dimension_numbers = #tpu.dot_dimension_numbers<[1], [0], [0], [1], [0, 0, 1, 1], [], []>} : vector<80x288xbf16>, vector<288x32xbf16>, vector<80x32xf32> -> vector<80x32xf32>
    %c0_3 = arith.constant 0 : index
    %c0_4 = arith.constant 0 : index
    %3 = vector.load %arg3[%c0_3, %c0_4] : memref<1x32xf32, #tpu.memory_space<vmem>>, vector<1x32xf32>
    %4 = vector.broadcast %3 : vector<1x32xf32> to vector<80x32xf32>
    %5 = arith.addf %2, %4 : vector<80x32xf32>
    %cst_5 = arith.constant 0.000000e+00 : f32
    %6 = vector.broadcast %cst_5 : f32 to vector<80x32xf32>
    %7 = arith.cmpf ogt, %5, %6 : vector<80x32xf32>
    %cst_6 = arith.constant 0.000000e+00 : f32
    %8 = vector.broadcast %cst_6 : f32 to vector<80x32xf32>
    %9 = arith.minimumf %5, %8 : vector<80x32xf32>
    %10 = math.exp %9 : vector<80x32xf32>
    %cst_7 = arith.constant 1.000000e+00 : f32
    %11 = vector.broadcast %cst_7 : f32 to vector<80x32xf32>
    %12 = arith.subf %10, %11 : vector<80x32xf32>
    %13 = arith.select %7, %5, %12 : vector<80x32xi1>, vector<80x32xf32>
    %14 = arith.truncf %13 : vector<80x32xf32> to vector<80x32xbf16>
    %c0_8 = arith.constant 0 : index
    %c0_9 = arith.constant 0 : index
    %15 = vector.load %arg4[%c0_8, %c0_9] : memref<80x32xbf16, #tpu.memory_space<vmem>>, vector<80x32xbf16>
    tpu.vector_store %arg4[%c0_8, %c0_9], %14 {strides = array<i32>} : memref<80x32xbf16, #tpu.memory_space<vmem>>, vector<80x32xbf16>,
    return
  }
  func.func @transform_0(%arg0: i32) -> (i32, i32) {
    %c0_i32 = arith.constant 0 : i32
    %c0_i32_0 = arith.constant 0 : i32
    return %arg0, %c0_i32 : i32, i32
  }
  func.func @transform_1(%arg0: i32) -> (i32, i32) {
    %c0_i32 = arith.constant 0 : i32
    %c0_i32_0 = arith.constant 0 : i32
    %c0_i32_1 = arith.constant 0 : i32
    return %c0_i32, %c0_i32_0 : i32, i32
  }
  func.func @transform_2(%arg0: i32) -> (i32, i32) {
    %c0_i32 = arith.constant 0 : i32
    %c0_i32_0 = arith.constant 0 : i32
    %c0_i32_1 = arith.constant 0 : i32
    return %c0_i32, %c0_i32_0 : i32, i32
  }
  func.func @transform_3(%arg0: i32) -> (i32, i32) {
    %c0_i32 = arith.constant 0 : i32
    %c0_i32_0 = arith.constant 0 : i32
    return %arg0, %c0_i32 : i32, i32
  }
}

module attributes {stable_mosaic.version = 11 : i64} {
  func.func @_mm_bias_act_kernel(%arg0: i32, %arg1: memref<16x288xbf16, #tpu.memory_space<vmem>>, %arg2: memref<288x1024xbf16, #tpu.memory_space<vmem>>, %arg3: memref<1x1024xf32, #tpu.memory_space<vmem>>, %arg4: memref<16x1024xf32, #tpu.memory_space<vmem>>) attributes {dimension_semantics = [#tpu.dimension_semantics<parallel>], iteration_bounds = array<i64: 1>, scalar_prefetch = 0 : i64, scratch_operands = 0 : i64, tpu.core_type = #tpu.core_type<tc>, window_params = [{transform_indices = @transform_0, window_bounds = array<i64: 16, 288>}, {pipeline_mode = #tpu.pipeline_mode<synchronous>, transform_indices = @transform_1, window_bounds = array<i64: 288, 1024>}, {pipeline_mode = #tpu.pipeline_mode<synchronous>, transform_indices = @transform_2, window_bounds = array<i64: 1, 1024>}, {transform_indices = @transform_3, window_bounds = array<i64: 16, 1024>}]} {
    %c0 = arith.constant 0 : index
    %c0_0 = arith.constant 0 : index
    %0 = vector.load %arg1[%c0, %c0_0] : memref<16x288xbf16, #tpu.memory_space<vmem>>, vector<16x288xbf16>
    %c0_1 = arith.constant 0 : index
    %c0_2 = arith.constant 0 : index
    %1 = vector.load %arg2[%c0_1, %c0_2] : memref<288x1024xbf16, #tpu.memory_space<vmem>>, vector<288x1024xbf16>
    %cst = arith.constant dense<0.000000e+00> : vector<16x1024xf32>
    %2 = tpu.matmul %0, %1, %cst {dimension_numbers = #tpu.dot_dimension_numbers<[1], [0], [0], [1], [0, 0, 1, 1], [], []>} : vector<16x288xbf16>, vector<288x1024xbf16>, vector<16x1024xf32> -> vector<16x1024xf32>
    %c0_3 = arith.constant 0 : index
    %c0_4 = arith.constant 0 : index
    %3 = vector.load %arg3[%c0_3, %c0_4] : memref<1x1024xf32, #tpu.memory_space<vmem>>, vector<1x1024xf32>
    %4 = vector.broadcast %3 : vector<1x1024xf32> to vector<16x1024xf32>
    %5 = arith.addf %2, %4 : vector<16x1024xf32>
    %c0_5 = arith.constant 0 : index
    %c0_6 = arith.constant 0 : index
    %6 = vector.load %arg4[%c0_5, %c0_6] : memref<16x1024xf32, #tpu.memory_space<vmem>>, vector<16x1024xf32>
    tpu.vector_store %arg4[%c0_5, %c0_6], %5 {strides = array<i32>} : memref<16x1024xf32, #tpu.memory_space<vmem>>, vector<16x1024xf32>,
    return
  }
  func.func @transform_0(%arg0: i32) -> (i32, i32) {
    %c0_i32 = arith.constant 0 : i32
    %c0_i32_0 = arith.constant 0 : i32
    return %arg0, %c0_i32 : i32, i32
  }
  func.func @transform_1(%arg0: i32) -> (i32, i32) {
    %c0_i32 = arith.constant 0 : i32
    %c0_i32_0 = arith.constant 0 : i32
    %c0_i32_1 = arith.constant 0 : i32
    return %c0_i32, %c0_i32_0 : i32, i32
  }
  func.func @transform_2(%arg0: i32) -> (i32, i32) {
    %c0_i32 = arith.constant 0 : i32
    %c0_i32_0 = arith.constant 0 : i32
    %c0_i32_1 = arith.constant 0 : i32
    return %c0_i32, %c0_i32_0 : i32, i32
  }
  func.func @transform_3(%arg0: i32) -> (i32, i32) {
    %c0_i32 = arith.constant 0 : i32
    %c0_i32_0 = arith.constant 0 : i32
    return %arg0, %c0_i32 : i32, i32
  }
}

module attributes {stable_mosaic.version = 11 : i64} {
  func.func @_lstm_seq_kernel(%arg0: i32, %arg1: memref<1x2x1xf32, #tpu.memory_space<vmem>>, %arg2: memref<1x2x1024xf32, #tpu.memory_space<vmem>>, %arg3: memref<2x2x256xf32, #tpu.memory_space<vmem>>, %arg4: memref<2x2x256xf32, #tpu.memory_space<vmem>>, %arg5: memref<256x1024xbf16, #tpu.memory_space<vmem>>, %arg6: memref<512x1024xbf16, #tpu.memory_space<vmem>>, %arg7: memref<1x1024xf32, #tpu.memory_space<vmem>>, %arg8: memref<256x7xbf16, #tpu.memory_space<vmem>>, %arg9: memref<1x7xf32, #tpu.memory_space<vmem>>, %arg10: memref<1x2x7xf32, #tpu.memory_space<vmem>>, %arg11: memref<2x2x256xf32, #tpu.memory_space<vmem>>, %arg12: memref<2x2x256xf32, #tpu.memory_space<vmem>>, %arg13: memref<2x256xf32, #tpu.memory_space<vmem>>, %arg14: memref<2x256xf32, #tpu.memory_space<vmem>>, %arg15: memref<2x256xf32, #tpu.memory_space<vmem>>, %arg16: memref<2x256xf32, #tpu.memory_space<vmem>>) attributes {dimension_semantics = [#tpu.dimension_semantics<arbitrary>], iteration_bounds = array<i64: 4>, scalar_prefetch = 0 : i64, scratch_operands = 4 : i64, tpu.core_type = #tpu.core_type<tc>, window_params = [{transform_indices = @transform_0, window_bounds = array<i64: 1, 2, 1>}, {transform_indices = @transform_1, window_bounds = array<i64: 1, 2, 1024>}, {pipeline_mode = #tpu.pipeline_mode<synchronous>, transform_indices = @transform_2, window_bounds = array<i64: 2, 2, 256>}, {pipeline_mode = #tpu.pipeline_mode<synchronous>, transform_indices = @transform_3, window_bounds = array<i64: 2, 2, 256>}, {pipeline_mode = #tpu.pipeline_mode<synchronous>, transform_indices = @transform_4, window_bounds = array<i64: 256, 1024>}, {pipeline_mode = #tpu.pipeline_mode<synchronous>, transform_indices = @transform_5, window_bounds = array<i64: 512, 1024>}, {pipeline_mode = #tpu.pipeline_mode<synchronous>, transform_indices = @transform_6, window_bounds = array<i64: 1, 1024>}, {pipeline_mode = #tpu.pipeline_mode<synchronous>, transform_indices = @transform_7, window_bounds = array<i64: 256, 7>}, {pipeline_mode = #tpu.pipeline_mode<synchronous>, transform_indices = @transform_8, window_bounds = array<i64: 1, 7>}, {transform_indices = @transform_9, window_bounds = array<i64: 1, 2, 7>}, {pipeline_mode = #tpu.pipeline_mode<synchronous>, transform_indices = @transform_10, window_bounds = array<i64: 2, 2, 256>}, {pipeline_mode = #tpu.pipeline_mode<synchronous>, transform_indices = @transform_11, window_bounds = array<i64: 2, 2, 256>}]} {
    %c0_i32 = arith.constant 0 : i32
    %0 = arith.cmpi eq, %arg0, %c0_i32 : i32
    %1 = arith.extui %0 : i1 to i32
    %c0_i32_0 = arith.constant 0 : i32
    %2 = arith.cmpi ne, %1, %c0_i32_0 : i32
    scf.if %2 {
      %c0_44 = arith.constant 0 : index
      %c0_45 = arith.constant 0 : index
      %c0_46 = arith.constant 0 : index
      %97 = vector.load %arg3[%c0_44, %c0_45, %c0_46] : memref<2x2x256xf32, #tpu.memory_space<vmem>>, vector<1x2x256xf32>
      %98 = vector.shape_cast %97 : vector<1x2x256xf32> to vector<2x256xf32>
      %c0_47 = arith.constant 0 : index
      %c0_48 = arith.constant 0 : index
      %99 = vector.load %arg13[%c0_47, %c0_48] : memref<2x256xf32, #tpu.memory_space<vmem>>, vector<2x256xf32>
      tpu.vector_store %arg13[%c0_47, %c0_48], %98 {strides = array<i32>} : memref<2x256xf32, #tpu.memory_space<vmem>>, vector<2x256xf32>,
      %c0_49 = arith.constant 0 : index
      %c0_50 = arith.constant 0 : index
      %c0_51 = arith.constant 0 : index
      %100 = vector.load %arg4[%c0_49, %c0_50, %c0_51] : memref<2x2x256xf32, #tpu.memory_space<vmem>>, vector<1x2x256xf32>
      %101 = vector.shape_cast %100 : vector<1x2x256xf32> to vector<2x256xf32>
      %c0_52 = arith.constant 0 : index
      %c0_53 = arith.constant 0 : index
      %102 = vector.load %arg14[%c0_52, %c0_53] : memref<2x256xf32, #tpu.memory_space<vmem>>, vector<2x256xf32>
      tpu.vector_store %arg14[%c0_52, %c0_53], %101 {strides = array<i32>} : memref<2x256xf32, #tpu.memory_space<vmem>>, vector<2x256xf32>,
      %c1 = arith.constant 1 : index
      %c0_54 = arith.constant 0 : index
      %c0_55 = arith.constant 0 : index
      %103 = vector.load %arg3[%c1, %c0_54, %c0_55] : memref<2x2x256xf32, #tpu.memory_space<vmem>>, vector<1x2x256xf32>
      %104 = vector.shape_cast %103 : vector<1x2x256xf32> to vector<2x256xf32>
      %c0_56 = arith.constant 0 : index
      %c0_57 = arith.constant 0 : index
      %105 = vector.load %arg15[%c0_56, %c0_57] : memref<2x256xf32, #tpu.memory_space<vmem>>, vector<2x256xf32>
      tpu.vector_store %arg15[%c0_56, %c0_57], %104 {strides = array<i32>} : memref<2x256xf32, #tpu.memory_space<vmem>>, vector<2x256xf32>,
      %c1_58 = arith.constant 1 : index
      %c0_59 = arith.constant 0 : index
      %c0_60 = arith.constant 0 : index
      %106 = vector.load %arg4[%c1_58, %c0_59, %c0_60] : memref<2x2x256xf32, #tpu.memory_space<vmem>>, vector<1x2x256xf32>
      %107 = vector.shape_cast %106 : vector<1x2x256xf32> to vector<2x256xf32>
      %c0_61 = arith.constant 0 : index
      %c0_62 = arith.constant 0 : index
      %108 = vector.load %arg16[%c0_61, %c0_62] : memref<2x256xf32, #tpu.memory_space<vmem>>, vector<2x256xf32>
      tpu.vector_store %arg16[%c0_61, %c0_62], %107 {strides = array<i32>} : memref<2x256xf32, #tpu.memory_space<vmem>>, vector<2x256xf32>,
    } else {
    }
    %c0 = arith.constant 0 : index
    %c0_1 = arith.constant 0 : index
    %c0_2 = arith.constant 0 : index
    %3 = vector.load %arg1[%c0, %c0_1, %c0_2] : memref<1x2x1xf32, #tpu.memory_space<vmem>>, vector<1x2x1xf32>
    %4 = vector.shape_cast %3 : vector<1x2x1xf32> to vector<2x1xf32>
    %c0_3 = arith.constant 0 : index
    %c0_4 = arith.constant 0 : index
    %c0_5 = arith.constant 0 : index
    %5 = vector.load %arg2[%c0_3, %c0_4, %c0_5] : memref<1x2x1024xf32, #tpu.memory_space<vmem>>, vector<1x2x1024xf32>
    %6 = vector.shape_cast %5 : vector<1x2x1024xf32> to vector<2x1024xf32>
    %c0_6 = arith.constant 0 : index
    %c0_7 = arith.constant 0 : index
    %7 = vector.load %arg13[%c0_6, %c0_7] : memref<2x256xf32, #tpu.memory_space<vmem>>, vector<2x256xf32>
    %8 = vector.broadcast %4 : vector<2x1xf32> to vector<2x256xf32>
    %9 = arith.mulf %7, %8 : vector<2x256xf32>
    %10 = arith.truncf %9 : vector<2x256xf32> to vector<2x256xbf16>
    %c0_8 = arith.constant 0 : index
    %c0_9 = arith.constant 0 : index
    %11 = vector.load %arg5[%c0_8, %c0_9] : memref<256x1024xbf16, #tpu.memory_space<vmem>>, vector<256x1024xbf16>
    %cst = arith.constant dense<0.000000e+00> : vector<2x1024xf32>
    %12 = tpu.matmul %10, %11, %cst {dimension_numbers = #tpu.dot_dimension_numbers<[1], [0], [0], [1], [0, 0, 1, 1], [], []>} : vector<2x256xbf16>, vector<256x1024xbf16>, vector<2x1024xf32> -> vector<2x1024xf32>
    %13 = arith.addf %6, %12 : vector<2x1024xf32>
    %c0_10 = arith.constant 0 : index
    %c0_11 = arith.constant 0 : index
    %14 = vector.load %arg14[%c0_10, %c0_11] : memref<2x256xf32, #tpu.memory_space<vmem>>, vector<2x256xf32>
    %15 = vector.broadcast %4 : vector<2x1xf32> to vector<2x256xf32>
    %16 = arith.mulf %14, %15 : vector<2x256xf32>
    %17 = vector.extract_strided_slice %13 {offsets = [0, 0], sizes = [2, 256], strides = [1, 1]} : vector<2x1024xf32> to vector<2x256xf32>
    %18 = arith.negf %17 : vector<2x256xf32>
    %19 = math.exp %18 : vector<2x256xf32>
    %cst_12 = arith.constant 1.000000e+00 : f32
    %20 = vector.broadcast %cst_12 : f32 to vector<2x256xf32>
    %21 = arith.addf %20, %19 : vector<2x256xf32>
    %22 = arith.divf %20, %21 : vector<2x256xf32>
    %23 = vector.extract_strided_slice %13 {offsets = [0, 256], sizes = [2, 256], strides = [1, 1]} : vector<2x1024xf32> to vector<2x256xf32>
    %24 = arith.negf %23 : vector<2x256xf32>
    %25 = math.exp %24 : vector<2x256xf32>
    %cst_13 = arith.constant 1.000000e+00 : f32
    %26 = vector.broadcast %cst_13 : f32 to vector<2x256xf32>
    %27 = arith.addf %26, %25 : vector<2x256xf32>
    %28 = arith.divf %26, %27 : vector<2x256xf32>
    %29 = vector.extract_strided_slice %13 {offsets = [0, 512], sizes = [2, 256], strides = [1, 1]} : vector<2x1024xf32> to vector<2x256xf32>
    %30 = math.tanh %29 : vector<2x256xf32>
    %31 = vector.extract_strided_slice %13 {offsets = [0, 768], sizes = [2, 256], strides = [1, 1]} : vector<2x1024xf32> to vector<2x256xf32>
    %32 = arith.negf %31 : vector<2x256xf32>
    %33 = math.exp %32 : vector<2x256xf32>
    %cst_14 = arith.constant 1.000000e+00 : f32
    %34 = vector.broadcast %cst_14 : f32 to vector<2x256xf32>
    %35 = arith.addf %34, %33 : vector<2x256xf32>
    %36 = arith.divf %34, %35 : vector<2x256xf32>
    %37 = arith.mulf %28, %16 : vector<2x256xf32>
    %38 = arith.mulf %22, %30 : vector<2x256xf32>
    %39 = arith.addf %37, %38 : vector<2x256xf32>
    %40 = math.tanh %39 : vector<2x256xf32>
    %41 = arith.mulf %36, %40 : vector<2x256xf32>
    %c0_15 = arith.constant 0 : index
    %c0_16 = arith.constant 0 : index
    %42 = vector.load %arg13[%c0_15, %c0_16] : memref<2x256xf32, #tpu.memory_space<vmem>>, vector<2x256xf32>
    tpu.vector_store %arg13[%c0_15, %c0_16], %41 {strides = array<i32>} : memref<2x256xf32, #tpu.memory_space<vmem>>, vector<2x256xf32>,
    %c0_17 = arith.constant 0 : index
    %c0_18 = arith.constant 0 : index
    %43 = vector.load %arg14[%c0_17, %c0_18] : memref<2x256xf32, #tpu.memory_space<vmem>>, vector<2x256xf32>
    tpu.vector_store %arg14[%c0_17, %c0_18], %39 {strides = array<i32>} : memref<2x256xf32, #tpu.memory_space<vmem>>, vector<2x256xf32>,
    %44 = arith.truncf %41 : vector<2x256xf32> to vector<2x256xbf16>
    %c0_19 = arith.constant 0 : index
    %c0_20 = arith.constant 0 : index
    %45 = vector.load %arg15[%c0_19, %c0_20] : memref<2x256xf32, #tpu.memory_space<vmem>>, vector<2x256xf32>
    %46 = vector.broadcast %4 : vector<2x1xf32> to vector<2x256xf32>
    %47 = arith.mulf %45, %46 : vector<2x256xf32>
    %48 = arith.truncf %47 : vector<2x256xf32> to vector<2x256xbf16>
    %49 = tpu.concatenate %44, %48 in 1 : vector<2x256xbf16>, vector<2x256xbf16> -> vector<2x512xbf16>
    %c0_21 = arith.constant 0 : index
    %c0_22 = arith.constant 0 : index
    %50 = vector.load %arg6[%c0_21, %c0_22] : memref<512x1024xbf16, #tpu.memory_space<vmem>>, vector<512x1024xbf16>
    %cst_23 = arith.constant dense<0.000000e+00> : vector<2x1024xf32>
    %51 = tpu.matmul %49, %50, %cst_23 {dimension_numbers = #tpu.dot_dimension_numbers<[1], [0], [0], [1], [0, 0, 1, 1], [], []>} : vector<2x512xbf16>, vector<512x1024xbf16>, vector<2x1024xf32> -> vector<2x1024xf32>
    %c0_24 = arith.constant 0 : index
    %c0_25 = arith.constant 0 : index
    %52 = vector.load %arg7[%c0_24, %c0_25] : memref<1x1024xf32, #tpu.memory_space<vmem>>, vector<1x1024xf32>
    %53 = vector.broadcast %52 : vector<1x1024xf32> to vector<2x1024xf32>
    %54 = arith.addf %51, %53 : vector<2x1024xf32>
    %c0_26 = arith.constant 0 : index
    %c0_27 = arith.constant 0 : index
    %55 = vector.load %arg16[%c0_26, %c0_27] : memref<2x256xf32, #tpu.memory_space<vmem>>, vector<2x256xf32>
    %56 = vector.broadcast %4 : vector<2x1xf32> to vector<2x256xf32>
    %57 = arith.mulf %55, %56 : vector<2x256xf32>
    %58 = vector.extract_strided_slice %54 {offsets = [0, 0], sizes = [2, 256], strides = [1, 1]} : vector<2x1024xf32> to vector<2x256xf32>
    %59 = arith.negf %58 : vector<2x256xf32>
    %60 = math.exp %59 : vector<2x256xf32>
    %cst_28 = arith.constant 1.000000e+00 : f32
    %61 = vector.broadcast %cst_28 : f32 to vector<2x256xf32>
    %62 = arith.addf %61, %60 : vector<2x256xf32>
    %63 = arith.divf %61, %62 : vector<2x256xf32>
    %64 = vector.extract_strided_slice %54 {offsets = [0, 256], sizes = [2, 256], strides = [1, 1]} : vector<2x1024xf32> to vector<2x256xf32>
    %65 = arith.negf %64 : vector<2x256xf32>
    %66 = math.exp %65 : vector<2x256xf32>
    %cst_29 = arith.constant 1.000000e+00 : f32
    %67 = vector.broadcast %cst_29 : f32 to vector<2x256xf32>
    %68 = arith.addf %67, %66 : vector<2x256xf32>
    %69 = arith.divf %67, %68 : vector<2x256xf32>
    %70 = vector.extract_strided_slice %54 {offsets = [0, 512], sizes = [2, 256], strides = [1, 1]} : vector<2x1024xf32> to vector<2x256xf32>
    %71 = math.tanh %70 : vector<2x256xf32>
    %72 = vector.extract_strided_slice %54 {offsets = [0, 768], sizes = [2, 256], strides = [1, 1]} : vector<2x1024xf32> to vector<2x256xf32>
    %73 = arith.negf %72 : vector<2x256xf32>
    %74 = math.exp %73 : vector<2x256xf32>
    %cst_30 = arith.constant 1.000000e+00 : f32
    %75 = vector.broadcast %cst_30 : f32 to vector<2x256xf32>
    %76 = arith.addf %75, %74 : vector<2x256xf32>
    %77 = arith.divf %75, %76 : vector<2x256xf32>
    %78 = arith.mulf %69, %57 : vector<2x256xf32>
    %79 = arith.mulf %63, %71 : vector<2x256xf32>
    %80 = arith.addf %78, %79 : vector<2x256xf32>
    %81 = math.tanh %80 : vector<2x256xf32>
    %82 = arith.mulf %77, %81 : vector<2x256xf32>
    %c0_31 = arith.constant 0 : index
    %c0_32 = arith.constant 0 : index
    %83 = vector.load %arg15[%c0_31, %c0_32] : memref<2x256xf32, #tpu.memory_space<vmem>>, vector<2x256xf32>
    tpu.vector_store %arg15[%c0_31, %c0_32], %82 {strides = array<i32>} : memref<2x256xf32, #tpu.memory_space<vmem>>, vector<2x256xf32>,
    %c0_33 = arith.constant 0 : index
    %c0_34 = arith.constant 0 : index
    %84 = vector.load %arg16[%c0_33, %c0_34] : memref<2x256xf32, #tpu.memory_space<vmem>>, vector<2x256xf32>
    tpu.vector_store %arg16[%c0_33, %c0_34], %80 {strides = array<i32>} : memref<2x256xf32, #tpu.memory_space<vmem>>, vector<2x256xf32>,
    %85 = arith.truncf %82 : vector<2x256xf32> to vector<2x256xbf16>
    %c0_35 = arith.constant 0 : index
    %c0_36 = arith.constant 0 : index
    %86 = vector.load %arg8[%c0_35, %c0_36] : memref<256x7xbf16, #tpu.memory_space<vmem>>, vector<256x7xbf16>
    %cst_37 = arith.constant dense<0.000000e+00> : vector<2x7xf32>
    %87 = tpu.matmul %85, %86, %cst_37 {dimension_numbers = #tpu.dot_dimension_numbers<[1], [0], [0], [1], [0, 0, 1, 1], [], []>} : vector<2x256xbf16>, vector<256x7xbf16>, vector<2x7xf32> -> vector<2x7xf32>
    %c0_38 = arith.constant 0 : index
    %c0_39 = arith.constant 0 : index
    %88 = vector.load %arg9[%c0_38, %c0_39] : memref<1x7xf32, #tpu.memory_space<vmem>>, vector<1x7xf32>
    %89 = vector.broadcast %88 : vector<1x7xf32> to vector<2x7xf32>
    %90 = arith.addf %87, %89 : vector<2x7xf32>
    %c0_40 = arith.constant 0 : index
    %c0_41 = arith.constant 0 : index
    %c0_42 = arith.constant 0 : index
    %91 = vector.load %arg10[%c0_40, %c0_41, %c0_42] : memref<1x2x7xf32, #tpu.memory_space<vmem>>, vector<1x2x7xf32>
    %92 = vector.shape_cast %91 : vector<1x2x7xf32> to vector<2x7xf32>
    %93 = vector.shape_cast %90 : vector<2x7xf32> to vector<1x2x7xf32>
    tpu.vector_store %arg10[%c0_40, %c0_41, %c0_42], %93 {strides = array<i32>} : memref<1x2x7xf32, #tpu.memory_space<vmem>>, vector<1x2x7xf32>,
    %c3_i32 = arith.constant 3 : i32
    %94 = arith.cmpi eq, %arg0, %c3_i32 : i32
    %95 = arith.extui %94 : i1 to i32
    %c0_i32_43 = arith.constant 0 : i32
    %96 = arith.cmpi ne, %95, %c0_i32_43 : i32
    scf.if %96 {
      %c0_44 = arith.constant 0 : index
      %c0_45 = arith.constant 0 : index
      %97 = vector.load %arg13[%c0_44, %c0_45] : memref<2x256xf32, #tpu.memory_space<vmem>>, vector<2x256xf32>
      %c0_46 = arith.constant 0 : index
      %c0_47 = arith.constant 0 : index
      %c0_48 = arith.constant 0 : index
      %98 = vector.load %arg11[%c0_46, %c0_47, %c0_48] : memref<2x2x256xf32, #tpu.memory_space<vmem>>, vector<1x2x256xf32>
      %99 = vector.shape_cast %98 : vector<1x2x256xf32> to vector<2x256xf32>
      %100 = vector.shape_cast %97 : vector<2x256xf32> to vector<1x2x256xf32>
      tpu.vector_store %arg11[%c0_46, %c0_47, %c0_48], %100 {strides = array<i32>} : memref<2x2x256xf32, #tpu.memory_space<vmem>>, vector<1x2x256xf32>,
      %c0_49 = arith.constant 0 : index
      %c0_50 = arith.constant 0 : index
      %101 = vector.load %arg15[%c0_49, %c0_50] : memref<2x256xf32, #tpu.memory_space<vmem>>, vector<2x256xf32>
      %c1 = arith.constant 1 : index
      %c0_51 = arith.constant 0 : index
      %c0_52 = arith.constant 0 : index
      %102 = vector.load %arg11[%c1, %c0_51, %c0_52] : memref<2x2x256xf32, #tpu.memory_space<vmem>>, vector<1x2x256xf32>
      %103 = vector.shape_cast %102 : vector<1x2x256xf32> to vector<2x256xf32>
      %104 = vector.shape_cast %101 : vector<2x256xf32> to vector<1x2x256xf32>
      tpu.vector_store %arg11[%c1, %c0_51, %c0_52], %104 {strides = array<i32>} : memref<2x2x256xf32, #tpu.memory_space<vmem>>, vector<1x2x256xf32>,
      %c0_53 = arith.constant 0 : index
      %c0_54 = arith.constant 0 : index
      %105 = vector.load %arg14[%c0_53, %c0_54] : memref<2x256xf32, #tpu.memory_space<vmem>>, vector<2x256xf32>
      %c0_55 = arith.constant 0 : index
      %c0_56 = arith.constant 0 : index
      %c0_57 = arith.constant 0 : index
      %106 = vector.load %arg12[%c0_55, %c0_56, %c0_57] : memref<2x2x256xf32, #tpu.memory_space<vmem>>, vector<1x2x256xf32>
      %107 = vector.shape_cast %106 : vector<1x2x256xf32> to vector<2x256xf32>
      %108 = vector.shape_cast %105 : vector<2x256xf32> to vector<1x2x256xf32>
      tpu.vector_store %arg12[%c0_55, %c0_56, %c0_57], %108 {strides = array<i32>} : memref<2x2x256xf32, #tpu.memory_space<vmem>>, vector<1x2x256xf32>,
      %c0_58 = arith.constant 0 : index
      %c0_59 = arith.constant 0 : index
      %109 = vector.load %arg16[%c0_58, %c0_59] : memref<2x256xf32, #tpu.memory_space<vmem>>, vector<2x256xf32>
      %c1_60 = arith.constant 1 : index
      %c0_61 = arith.constant 0 : index
      %c0_62 = arith.constant 0 : index
      %110 = vector.load %arg12[%c1_60, %c0_61, %c0_62] : memref<2x2x256xf32, #tpu.memory_space<vmem>>, vector<1x2x256xf32>
      %111 = vector.shape_cast %110 : vector<1x2x256xf32> to vector<2x256xf32>
      %112 = vector.shape_cast %109 : vector<2x256xf32> to vector<1x2x256xf32>
      tpu.vector_store %arg12[%c1_60, %c0_61, %c0_62], %112 {strides = array<i32>} : memref<2x2x256xf32, #tpu.memory_space<vmem>>, vector<1x2x256xf32>,
    } else {
    }
    return
  }
  func.func @transform_0(%arg0: i32) -> (i32, i32, i32) {
    %c0_i32 = arith.constant 0 : i32
    %c0_i32_0 = arith.constant 0 : i32
    %c0_i32_1 = arith.constant 0 : i32
    return %arg0, %c0_i32, %c0_i32_0 : i32, i32, i32
  }
  func.func @transform_1(%arg0: i32) -> (i32, i32, i32) {
    %c0_i32 = arith.constant 0 : i32
    %c0_i32_0 = arith.constant 0 : i32
    %c0_i32_1 = arith.constant 0 : i32
    return %arg0, %c0_i32, %c0_i32_0 : i32, i32, i32
  }
  func.func @transform_2(%arg0: i32) -> (i32, i32, i32) {
    %c0_i32 = arith.constant 0 : i32
    %c0_i32_0 = arith.constant 0 : i32
    %c0_i32_1 = arith.constant 0 : i32
    %c0_i32_2 = arith.constant 0 : i32
    return %c0_i32, %c0_i32_0, %c0_i32_1 : i32, i32, i32
  }
  func.func @transform_3(%arg0: i32) -> (i32, i32, i32) {
    %c0_i32 = arith.constant 0 : i32
    %c0_i32_0 = arith.constant 0 : i32
    %c0_i32_1 = arith.constant 0 : i32
    %c0_i32_2 = arith.constant 0 : i32
    return %c0_i32, %c0_i32_0, %c0_i32_1 : i32, i32, i32
  }
  func.func @transform_4(%arg0: i32) -> (i32, i32) {
    %c0_i32 = arith.constant 0 : i32
    %c0_i32_0 = arith.constant 0 : i32
    %c0_i32_1 = arith.constant 0 : i32
    return %c0_i32, %c0_i32_0 : i32, i32
  }
  func.func @transform_5(%arg0: i32) -> (i32, i32) {
    %c0_i32 = arith.constant 0 : i32
    %c0_i32_0 = arith.constant 0 : i32
    %c0_i32_1 = arith.constant 0 : i32
    return %c0_i32, %c0_i32_0 : i32, i32
  }
  func.func @transform_6(%arg0: i32) -> (i32, i32) {
    %c0_i32 = arith.constant 0 : i32
    %c0_i32_0 = arith.constant 0 : i32
    %c0_i32_1 = arith.constant 0 : i32
    return %c0_i32, %c0_i32_0 : i32, i32
  }
  func.func @transform_7(%arg0: i32) -> (i32, i32) {
    %c0_i32 = arith.constant 0 : i32
    %c0_i32_0 = arith.constant 0 : i32
    %c0_i32_1 = arith.constant 0 : i32
    return %c0_i32, %c0_i32_0 : i32, i32
  }
  func.func @transform_8(%arg0: i32) -> (i32, i32) {
    %c0_i32 = arith.constant 0 : i32
    %c0_i32_0 = arith.constant 0 : i32
    %c0_i32_1 = arith.constant 0 : i32
    return %c0_i32, %c0_i32_0 : i32, i32
  }
  func.func @transform_9(%arg0: i32) -> (i32, i32, i32) {
    %c0_i32 = arith.constant 0 : i32
    %c0_i32_0 = arith.constant 0 : i32
    %c0_i32_1 = arith.constant 0 : i32
    return %arg0, %c0_i32, %c0_i32_0 : i32, i32, i32
  }
  func.func @transform_10(%arg0: i32) -> (i32, i32, i32) {
    %c0_i32 = arith.constant 0 : i32
    %c0_i32_0 = arith.constant 0 : i32
    %c0_i32_1 = arith.constant 0 : i32
    %c0_i32_2 = arith.constant 0 : i32
    return %c0_i32, %c0_i32_0, %c0_i32_1 : i32, i32, i32
  }
  func.func @transform_11(%arg0: i32) -> (i32, i32, i32) {
    %c0_i32 = arith.constant 0 : i32
    %c0_i32_0 = arith.constant 0 : i32
    %c0_i32_1 = arith.constant 0 : i32
    %c0_i32_2 = arith.constant 0 : i32
    return %c0_i32, %c0_i32_0, %c0_i32_1 : i32, i32, i32
  }
}

</mosaic_0001>

<bundles_post_ra>
// kernel: _lambda_.6
= control target key start
LH: loop header
LB: loop body
LE: loop exit
PB: predicated region body
PF: predicated region fallthrough
CT: control target
= control target key end

     0   :  { %s2161_s12 = smov 0   ;;  %s3005_s0 = inlined_call_operand.vmem [shape: bf16[3072,36], index: 0, kind: input, shape index: {}]   ;;  %s3006_s1 = inlined_call_operand.vmem [shape: bf16[36,32], index: 1, kind: input, shape index: {}]   ;;  %s3007_s2 = inlined_call_operand.vmem [shape: f32[1,32], index: 2, kind: input, shape index: {}]   ;;  %s3008_s3 = inlined_call_operand.vmem [shape: bf16[3072,32], index: 3, kind: output, shape index: {}]  }
   0x1 LB: > { %s1577_s13 = sadd.s32 4294967295, %s2139_s12   ;;  %p1581_p0 = scmp.ge.s32.totalorder %s2139_s12, 1  ;;  %s2139_s12 = sphi %s2161_s12, %s13_s12  }
   0x2   : > { %p138_p1 = scmp.lt.s32.totalorder %s2139_s12, 7 }
   0x4   : > { %p139_p2 = pnand %p1581_p0, %p138_p1 }
   0x5   : > { %v1969_v0 = vld [vmem:[%s3006_s1] sm:$0xff] (!%p139_p2)   ;;  %v1970_v1 = vld [vmem:[%s3006_s1 + $0x8] sm:$0xff] (!%p139_p2)   ;;  %s1582_s18 = sshll.u32 (!%p139_p2), %s1577_s13, 6  ;;  %v1971_v2 = vld [vmem:[%s3006_s1 + $0x10] ss:$0 sps:$4 sm:$0x33] (!%p139_p2)  }
   0x6   : > { %142 = sbr.rel (%p139_p2) target bundleno = 371 (0x173), region = 32  ;;  %1883 = vmatprep.subr.bf16.mxu0 (!%p139_p2), %v1969_v0  ;;  %1953 = vmatprep.subr.bf16.mxu1 (!%p139_p2), %v1969_v0  ;;  %p163_p3 = scmp.lt.s32.totalorder (!%p139_p2), %s1582_s18, 383  ;;  %vm523_vm0 = vcmask (!%p139_p2), 1041408   ;;  %vm426_vm1 = vcmask (!%p139_p2), 293888   ;;  %v2255_v36 = vld [vmem:[%s3007_s2] ss:$0 sm:$0xff] (!%p139_p2) }
   0x7   : > { %1884 = vmatpush3.bf16.msra.mxu0 (!%p139_p2), %v1969_v0  ;;  %1956 = vmatpush3.bf16.msra.mxu1 (!%p139_p2), %v1969_v0  ;;  %v525_v3 = vsel (!%p139_p2), %vm523_vm0, %v1971_v2, 0  ;;  %vm1456_vm3 = vcmask (!%p139_p2), 257024  }
   0x8   : > { %1885 = vmatprep.subr.bf16.mxu0 (!%p139_p2), %v1970_v1  ;;  %1954 = vmatprep.subr.bf16.mxu1 (!%p139_p2), %v1970_v1 }
   0xb   : > { %1886 = vmatpush3.bf16.msra.mxu0 (!%p139_p2), %v1970_v1  ;;  %1957 = vmatpush3.bf16.msra.mxu1 (!%p139_p2), %v1970_v1 }
   0xc   : > { %1959 = vmatprep.subr.msk.bf16.mxu0 (!%p139_p2), %vm523_vm0, %v1971_v2  ;;  %1960 = vmatprep.subr.msk.bf16.mxu1 (!%p139_p2), %vm523_vm0, %v1971_v2 }
   0xd   : > { %s3010_s18 = smov (!%p163_p3, %s1582_s18), 383 }
   0xe   : > { %s1583_s21 = sshll.u32 %s3010_s18, 2 }
   0xf   : > { %s2186_s24 = scalar_lea.vmem %s3005_s0, %s1583_s21  ;;  %1888 = vmatpush3.bf16.msra.mxu0 %v525_v3  ;;  %1958 = vmatpush3.bf16.msra.mxu1 %v525_v3  ;;  %s2348_s29 = scalar_lea.vmem %s3008_s3, %s1583_s21 }
  0x10   : > { %v1972_v4 = vld [vmem:[%s2186_s24] sm:$0xff]   ;;  %v1974_v6 = vld [vmem:[%s2186_s24 + $0x8] sm:$0xff]   ;;  %v1976_v8 = vld [vmem:[%s2186_s24 + $0x10] sm:$0xff]  }
  0x11   : > { %v1973_v5 = vld [vmem:[%s2186_s24 + $0x80] sm:$0xff]   ;;  %1889 = vmatprep.mubr.msk.bf16.mxu0 %vm426_vm1, %v1972_v4  ;;  %v1975_v7 = vld [vmem:[%s2186_s24 + $0x88] sm:$0xff]   ;;  %v1977_v9 = vld [vmem:[%s2186_s24 + $0x90] sm:$0xff]  }
  0x12   : > { %1921 = vmatprep.mubr.msk.bf16.mxu1 %vm426_vm1, %v1973_v5  ;;  %1890 = vmatmul.mubr.msk.bf16.vlgmr.msra.gmra.mrb[0].mxu0 %vm426_vm1, %v1974_v6  ;;  %v1978_v10 = vld [vmem:[%s2186_s24 + $0x18] sm:$0xff]   ;;  %v1980_v12 = vld [vmem:[%s2186_s24 + $0x20] sm:$0xff]   ;;  %v1982_v14 = vld [vmem:[%s2186_s24 + $0x28] sm:$0xff]  }
  0x13   : > { %1922 = vmatmul.mubr.msk.bf16.vlgmr.msra.gmra.mrb[0].mxu1 %vm426_vm1, %v1975_v7  ;;  %1893 = vmatprep.mubr.msk.bf16.mxu0 %vm426_vm1, %v1976_v8  ;;  %v1979_v11 = vld [vmem:[%s2186_s24 + $0x98] sm:$0xff]   ;;  %v1981_v13 = vld [vmem:[%s2186_s24 + $0xa0] sm:$0xff]   ;;  %v1983_v15 = vld [vmem:[%s2186_s24 + $0xa8] sm:$0xff]  }
  0x14   : > { %1925 = vmatprep.mubr.msk.bf16.mxu1 %vm426_vm1, %v1977_v9  ;;  %v1984_v16 = vld [vmem:[%s2186_s24 + $0x30] sm:$0xff]   ;;  %v1986_v18 = vld [vmem:[%s2186_s24 + $0x38] sm:$0xff]   ;;  %v1988_v20 = vld [vmem:[%s2186_s24 + $0x40] sm:$0xff]  }
  0x15   : > { %v1985_v17 = vld [vmem:[%s2186_s24 + $0xb0] sm:$0xff]   ;;  %v1987_v19 = vld [vmem:[%s2186_s24 + $0xb8] sm:$0xff]   ;;  %v1989_v21 = vld [vmem:[%s2186_s24 + $0xc0] sm:$0xff]  }
  0x16   : > { %v1990_v22 = vld [vmem:[%s2186_s24 + $0x48] sm:$0xff]   ;;  %v1992_v24 = vld [vmem:[%s2186_s24 + $0x50] sm:$0xff]   ;;  %v1994_v26 = vld [vmem:[%s2186_s24 + $0x58] sm:$0xff]  }
  0x17   : > { %v1991_v23 = vld [vmem:[%s2186_s24 + $0xc8] sm:$0xff]   ;;  %v1993_v25 = vld [vmem:[%s2186_s24 + $0xd0] sm:$0xff]   ;;  %v1995_v27 = vld [vmem:[%s2186_s24 + $0xd8] sm:$0xff]  }
  0x18   : > { %v1996_v28 = vld [vmem:[%s2186_s24 + $0x60] sm:$0xff]   ;;  %v1998_v30 = vld [vmem:[%s2186_s24 + $0x68] sm:$0xff]   ;;  %v2000_v32 = vld [vmem:[%s2186_s24 + $0x70] sm:$0xff]  }
  0x19   : > { %v1997_v29 = vld [vmem:[%s2186_s24 + $0xe0] sm:$0xff]   ;;  %v1999_v31 = vld [vmem:[%s2186_s24 + $0xe8] sm:$0xff]   ;;  %v2001_v33 = vld [vmem:[%s2186_s24 + $0xf0] sm:$0xff]  }
  0x1a   : > { %1894 = vmatmul.mubr.msk.bf16.gmra.mrb[4].mxu0 %vm426_vm1, %v1978_v10  ;;  %v2002_v34 = vld [vmem:[%s2186_s24 + $0x78] sm:$0xff]  }
  0x1b   : > { %1926 = vmatmul.mubr.msk.bf16.gmra.mrb[4].mxu1 %vm426_vm1, %v1979_v11  ;;  %1897 = vmatprep.mubr.msk.bf16.mxu0 %vm426_vm1, %v1980_v12  ;;  %v2003_v35 = vld [vmem:[%s2186_s24 + $0xf8] sm:$0xff]  }
  0x1c   : > { %1929 = vmatprep.mubr.msk.bf16.mxu1 %vm426_vm1, %v1981_v13 }
  0x22   : > { %1898 = vmatmul.mubr.msk.bf16.gmra.mrb[8].mxu0 %vm426_vm1, %v1982_v14 }
  0x23   : > { %1930 = vmatmul.mubr.msk.bf16.gmra.mrb[8].mxu1 %vm426_vm1, %v1983_v15  ;;  %1901 = vmatprep.mubr.msk.bf16.mxu0 %vm426_vm1, %v1984_v16 }
  0x24   : > { %1933 = vmatprep.mubr.msk.bf16.mxu1 %vm426_vm1, %v1985_v17 }
  0x2a   : > { %1902 = vmatmul.mubr.msk.bf16.gmra.mrb[12].mxu0 %vm426_vm1, %v1986_v18 }
  0x2b   : > { %1934 = vmatmul.mubr.msk.bf16.gmra.mrb[12].mxu1 %vm426_vm1, %v1987_v19  ;;  %1905 = vmatprep.mubr.msk.bf16.mxu0 %vm426_vm1, %v1988_v20 }
  0x2c   : > { %1937 = vmatprep.mubr.msk.bf16.mxu1 %vm426_vm1, %v1989_v21 }
  0x32   : > { %1906 = vmatmul.mubr.msk.bf16.gmra.mrb[16].mxu0 %vm426_vm1, %v1990_v22 }
  0x33   : > { %1938 = vmatmul.mubr.msk.bf16.gmra.mrb[16].mxu1 %vm426_vm1, %v1991_v23  ;;  %1909 = vmatprep.mubr.msk.bf16.mxu0 %vm426_vm1, %v1992_v24 }
  0x34   : > { %1941 = vmatprep.mubr.msk.bf16.mxu1 %vm426_vm1, %v1993_v25 }
  0x3a   : > { %1910 = vmatmul.mubr.msk.bf16.gmra.mrb[20].mxu0 %vm426_vm1, %v1994_v26 }
  0x3b   : > { %1942 = vmatmul.mubr.msk.bf16.gmra.mrb[20].mxu1 %vm426_vm1, %v1995_v27  ;;  %1913 = vmatprep.mubr.msk.bf16.mxu0 %vm426_vm1, %v1996_v28 }
  0x3c   : > { %1945 = vmatprep.mubr.msk.bf16.mxu1 %vm426_vm1, %v1997_v29 }
  0x42   : > { %1914 = vmatmul.mubr.msk.bf16.gmra.mrb[24].mxu0 %vm426_vm1, %v1998_v30 }
  0x43   : > { %1946 = vmatmul.mubr.msk.bf16.gmra.mrb[24].mxu1 %vm426_vm1, %v1999_v31  ;;  %1917 = vmatprep.mubr.msk.bf16.mxu0 %vm426_vm1, %v2000_v32 }
  0x44   : > { %1949 = vmatprep.mubr.msk.bf16.mxu1 %vm426_vm1, %v2001_v33 }
  0x4a   : > { %1918 = vmatmul.mubr.msk.bf16.gmra.mrb[28].mxu0 %vm426_vm1, %v2002_v34 }
  0x4b   : > { %1950 = vmatmul.mubr.msk.bf16.gmra.mrb[28].mxu1 %vm426_vm1, %v2003_v35 }
  0xe5   : > { %v1891_v37 = vpop.f32.mrb[0].mxu0 }
  0xe6   : > { %v1923_v38 = vpop.f32.mrb[0].mxu1  ;;  %v2258_v39 = vadd.f32 %v1891_v37, %v2255_v36  ;;  %v561_v41 = vpop.f32.mrb[1].mxu0 }
  0xe7   : > { %v2261_v40 = vadd.f32 %v1923_v38, %v2255_v36  ;;  %v689_v42 = vpop.f32.mrb[1].mxu1  ;;  %v2264_v43 = vadd.f32 %v2255_v36, %v561_v41  ;;  %v1892_v45 = vpop.f32.mrb[2].mxu0 }
  0xe8   : > { %v2267_v44 = vadd.f32 %v2255_v36, %v689_v42  ;;  %v1924_v46 = vpop.f32.mrb[2].mxu1  ;;  %v882_v47 = vmin.f32 %v2258_v39, 0.0  ;;  %v564_v49 = vpop.f32.mrb[3].mxu0  ;;  %v2274_v55 = vadd.f32 %v1892_v45, %v2255_v36  ;;  %vm818_vm2 = vcmp.gt.f32.partialorder %v2258_v39, 0.0 }
  0xe9   : > { %v914_v48 = vmin.f32 %v2261_v40, 0.0  ;;  %v692_v50 = vpop.f32.mrb[3].mxu1  ;;  %v880_v51 = vmin.f32 %v2264_v43, 0.0  ;;  %v2277_v56 = vadd.f32 %v1924_v46, %v2255_v36  ;;  %v2280_v59 = vadd.f32 %v2255_v36, %v564_v49 }
  0xea   : > { %v912_v52 = vmin.f32 %v2267_v44, 0.0  ;;  %v948_v53 = vmul.f32 1.442695, %v882_v47  ;;  %v2283_v60 = vadd.f32 %v2255_v36, %v692_v50  ;;  %v883_v61 = vmin.f32 %v2274_v55, 0.0 }
  0xeb   : > { %v1012_v54 = vmul.f32 1.442695, %v914_v48  ;;  %v944_v57 = vmul.f32 1.442695, %v880_v51  ;;  %v915_v62 = vmin.f32 %v2277_v56, 0.0  ;;  %v881_v63 = vmin.f32 %v2280_v59, 0.0 }
  0xec   : > { %v1008_v58 = vmul.f32 1.442695, %v912_v52  ;;  %2004 = vpow2.f32 %v948_v53  ;;  %v950_v2 = vmul.f32 1.442695, %v883_v61  ;;  %v913_v3 = vmin.f32 %v2283_v60, 0.0 }
  0xed   : > { %2006 = vpow2.f32 %v1012_v54  ;;  %v1895_v0 = vpop.f32.mrb[4].mxu0  ;;  %v1014_v6 = vmul.f32 1.442695, %v915_v62  ;;  %v946_v7 = vmul.f32 1.442695, %v881_v63  ;;  %vm850_vm4 = vcmp.gt.f32.partialorder %v2261_v40, 0.0 }
  0xee   : > { %v1927_v1 = vpop.f32.mrb[4].mxu1  ;;  %2008 = vpow2.f32 %v944_v57  ;;  %v577_v4 = vpop.f32.mrb[5].mxu0  ;;  %v2290_v8 = vadd.f32 %v1895_v0, %v2255_v36  ;;  %v1010_v11 = vmul.f32 1.442695, %v913_v3  ;;  %vm816_vm5 = vcmp.gt.f32.partialorder %v2264_v43, 0.0 }
  0xef   : > { %v705_v5 = vpop.f32.mrb[5].mxu1  ;;  %2010 = vpow2.f32 %v1008_v58  ;;  %v1896_v9 = vpop.f32.mrb[6].mxu0  ;;  %v2293_v12 = vadd.f32 %v1927_v1, %v2255_v36  ;;  %v2296_v13 = vadd.f32 %v2255_v36, %v577_v4  ;;  %vm848_vm6 = vcmp.gt.f32.partialorder %v2267_v44, 0.0 }
  0xf0   : > { %v1928_v10 = vpop.f32.mrb[6].mxu1  ;;  %2012 = vpow2.f32 %v950_v2  ;;  %v580_v14 = vpop.f32.mrb[7].mxu0  ;;  %v886_v16 = vmin.f32 %v2290_v8, 0.0  ;;  %v2301_v17 = vadd.f32 %v2255_v36, %v705_v5  ;;  %vm819_vm7 = vcmp.gt.f32.partialorder %v2274_v55, 0.0 }
  0xf1   : > { %v708_v15 = vpop.f32.mrb[7].mxu1  ;;  %2014 = vpow2.f32 %v1014_v6  ;;  %v918_v18 = vmin.f32 %v2293_v12, 0.0  ;;  %v884_v20 = vmin.f32 %v2296_v13, 0.0  ;;  %v2311_v23 = vadd.f32 %v1896_v9, %v2255_v36 }
  0xf2   : > { %2016 = vpow2.f32 %v946_v7  ;;  %v956_v19 = vmul.f32 1.442695, %v886_v16  ;;  %v916_v22 = vmin.f32 %v2301_v17, 0.0  ;;  %v2314_v24 = vadd.f32 %v1928_v10, %v2255_v36 }
  0xf3   : > { %2018 = vpow2.f32 %v1010_v11  ;;  %v1020_v21 = vmul.f32 1.442695, %v918_v18  ;;  %vm851_vm8 = vcmp.gt.f32.partialorder %v2277_v56, 0.0  ;;  %v952_v25 = vmul.f32 1.442695, %v884_v20 }
  0xf4   : > { %2020 = vpow2.f32 %v956_v19  ;;  %v2318_v26 = vadd.f32 %v2255_v36, %v580_v14  ;;  %vm817_vm9 = vcmp.gt.f32.partialorder %v2280_v59, 0.0  ;;  %v1016_v30 = vmul.f32 1.442695, %v916_v22 }
  0xf5   : > { %v2320_v27 = vpop.f32.mrb[8].mxu0  ;;  %2022 = vpow2.f32 %v1020_v21  ;;  %v887_v31 = vmin.f32 %v2311_v23, 0.0  ;;  %vm849_vm10 = vcmp.gt.f32.partialorder %v2283_v60, 0.0  ;;  %v919_v37 = vmin.f32 %v2314_v24, 0.0 }
  0xf6   : > { %v2322_v28 = vpop.f32.mrb[8].mxu1  ;;  %v2005_v29 = vpop.eup %2004  ;;  %2024 = vpow2.f32 %v952_v25  ;;  %v2337_v47 = vadd.f32 %v2255_v36, %v708_v15  ;;  %vm822_vm11 = vcmp.gt.f32.partialorder %v2290_v8, 0.0  ;;  %v885_v54 = vmin.f32 %v2318_v26, 0.0 }
  0xf7   : > { %v2326_v32 = vpop.f32.mrb[9].mxu0  ;;  %v2328_v33 = vpop.f32.mrb[9].mxu1  ;;  %v1656_v35 = vadd.f32 -1.0, %v2005_v29  ;;  %2026 = vpow2.f32 %v1016_v30  ;;  %v958_v46 = vmul.f32 1.442695, %v887_v31  ;;  %vm854_vm12 = vcmp.gt.f32.partialorder %v2293_v12, 0.0 }
  0xf8   : > { %v2007_v34 = vpop.eup %2006  ;;  %v2332_v38 = vpop.f32.mrb[10].mxu0  ;;  %v1022_v53 = vmul.f32 1.442695, %v919_v37  ;;  %v954_v5 = vmul.f32 1.442695, %v885_v54  ;;  %vm820_vm13 = vcmp.gt.f32.partialorder %v2296_v13, 0.0 }
  0xf9   : > { %v2334_v41 = vpop.f32.mrb[10].mxu1  ;;  %v2009_v42 = vpop.eup %2008  ;;  %v1688_v45 = vadd.f32 -1.0, %v2007_v34  ;;  %v1138_v51 = vsel %vm818_vm2, %v2258_v39, %v1656_v35  ;;  %2028 = vpow2.f32 %v958_v46  ;;  %v917_v21 = vmin.f32 %v2337_v47, 0.0 }
  0xfa   : > { %v2339_v48 = vpop.f32.mrb[11].mxu0  ;;  %v2341_v49 = vpop.f32.mrb[11].mxu1  ;;  %v1654_v52 = vadd.f32 -1.0, %v2009_v42  ;;  %v1786_v58 = vpack.c.bf16 %v1138_v51, %v1138_v51  ;;  %2030 = vpow2.f32 %v1022_v53  ;;  %v2407_v34 = vadd.f32 %v2322_v28, %v2255_v36 }
  0xfb   : > { %v2011_v50 = vpop.eup %2010  ;;  %v1170_v61 = vsel %vm850_vm4, %v2261_v40, %v1688_v45  ;;  %2032 = vpow2.f32 %v954_v5  ;;  %vm852_vm14 = vcmp.gt.f32.partialorder %v2301_v17, 0.0  ;;  %v1018_v46 = vmul.f32 1.442695, %v917_v21 }
  0xfc   : > { %v2013_v57 = vpop.eup %2012  ;;  %v1686_v62 = vadd.f32 -1.0, %v2011_v50  ;;  %v1818_v39 = vpack.c.bf16 %v1170_v61, %v1170_v61  ;;  %v1136_v0 = vsel %vm816_vm5, %v2264_v43, %v1654_v52  ;;  %1459 = vst.msk [vmem:[%s2348_s29 + $0x8] sm:$0xf] %vm1456_vm3, %v1786_v58  ;;  %vm823_vm15 = vcmp.gt.f32.partialorder %v2311_v23, 0.0 }
  0xfd   : > { %v2015_v63 = vpop.eup %2014  ;;  %v1657_v1 = vadd.f32 -1.0, %v2013_v57  ;;  %v1784_v3 = vpack.c.bf16 %v1136_v0, %v1136_v0  ;;  %v2373_v10 = vpop.f32.mrb[12].mxu0  ;;  %2034 = vpow2.f32 %v1018_v46  ;;  %vm855_vm0 = vcmp.gt.f32.partialorder %v2314_v24, 0.0 }
  0xfe   : > { %v2017_v2 = vpop.eup %2016  ;;  %v1168_v40 = vsel %vm848_vm6, %v2267_v44, %v1686_v62  ;;  %v1689_v4 = vadd.f32 -1.0, %v2015_v63  ;;  %1491 = vst.msk [vmem:[%s2348_s29 + $0x88] sm:$0xf] %vm1456_vm3, %v1818_v39  ;;  %v2375_v11 = vpop.f32.mrb[12].mxu1  ;;  %v922_v62 = vmin.f32 %v2407_v34, 0.0  ;;  %vm821_vm1 = vcmp.gt.f32.partialorder %v2318_v26, 0.0 }
  0xff   : > { %v2019_v6 = vpop.eup %2018  ;;  %v1816_v7 = vpack.c.bf16 %v1168_v40, %v1168_v40  ;;  %v1139_v43 = vsel %vm819_vm7, %v2274_v55, %v1657_v1  ;;  %v1655_v9 = vadd.f32 -1.0, %v2017_v2  ;;  %1457 = vst.msk [vmem:[%s2348_s29] sm:$0xf] %vm1456_vm3, %v1784_v3  ;;  %v2382_v16 = vpop.f32.mrb[13].mxu0  ;;  %v2439_v1 = vadd.f32 %v2255_v36, %v2326_v32 }
 0x100   : > { %v1787_v44 = vpack.c.bf16 %v1139_v43, %v1139_v43  ;;  %v1171_v14 = vsel %vm851_vm8, %v2277_v56, %v1689_v4  ;;  %v1687_v15 = vadd.f32 -1.0, %v2019_v6  ;;  %v2384_v55 = vpop.f32.mrb[13].mxu1  ;;  %v2021_v18 = vpop.eup %2020  ;;  %v2394_v56 = vadd.f32 %v2320_v27, %v2255_v36 }
 0x101   : > { %1489 = vst.msk [vmem:[%s2348_s29 + $0x80] sm:$0xf] %vm1456_vm3, %v1816_v7  ;;  %v1819_v19 = vpack.c.bf16 %v1171_v14, %v1171_v14  ;;  %v1137_v20 = vsel %vm817_vm9, %v2280_v59, %v1655_v9  ;;  %v2396_v22 = vpop.f32.mrb[14].mxu0  ;;  %v2398_v25 = vpop.f32.mrb[14].mxu1  ;;  %v1660_v59 = vadd.f32 -1.0, %v2021_v18  ;;  %v888_v32 = vmin.f32 %v2439_v1, 0.0 }
 0x102   : > { %v2023_v29 = vpop.eup %2022  ;;  %1460 = vst.msk [vmem:[%s2348_s29 + $0xc] sm:$0xf] %vm1456_vm3, %v1787_v44  ;;  %v1785_v30 = vpack.c.bf16 %v1137_v20, %v1137_v20  ;;  %v1169_v31 = vsel %vm849_vm10, %v2283_v60, %v1687_v15  ;;  %v2409_v27 = vpop.f32.mrb[15].mxu0  ;;  %v890_v51 = vmin.f32 %v2394_v56, 0.0  ;;  %v1028_v4 = vmul.f32 1.442695, %v922_v62 }
 0x103   : > { %v2411_v35 = vpop.f32.mrb[15].mxu1  ;;  %v2025_v37 = vpop.eup %2024  ;;  %1492 = vst.msk [vmem:[%s2348_s29 + $0x8c] sm:$0xf] %vm1456_vm3, %v1819_v19  ;;  %v1817_v42 = vpack.c.bf16 %v1169_v31, %v1169_v31  ;;  %v1692_v45 = vadd.f32 -1.0, %v2023_v29  ;;  %v1142_v60 = vsel %vm822_vm11, %v2290_v8, %v1660_v59  ;;  %v2460_v7 = vadd.f32 %v2255_v36, %v2328_v33 }
 0x104   : > { %v2027_v50 = vpop.eup %2026  ;;  %1458 = vst.msk [vmem:[%s2348_s29 + $0x4] sm:$0xf] %vm1456_vm3, %v1785_v30  ;;  %v1658_v28 = vadd.f32 -1.0, %v2025_v37  ;;  %v1790_v52 = vpack.c.bf16 %v1142_v60, %v1142_v60  ;;  %v964_v61 = vmul.f32 1.442695, %v890_v51  ;;  %v2471_v15 = vadd.f32 %v2332_v38, %v2255_v36 }
 0x105   : > { %1490 = vst.msk [vmem:[%s2348_s29 + $0x84] sm:$0xf] %vm1456_vm3, %v1817_v42  ;;  %v1174_v53 = vsel %vm854_vm12, %v2293_v12, %v1692_v45  ;;  %v1690_v54 = vadd.f32 -1.0, %v2027_v50  ;;  %v2029_v57 = vpop.eup %2028  ;;  %v2441_v2 = vpop.f32.mrb[16].mxu0  ;;  %v960_v21 = vmul.f32 1.442695, %v888_v32  ;;  %v2484_v30 = vadd.f32 %v2334_v41, %v2255_v36 }
 0x106   : > { %v1822_v58 = vpack.c.bf16 %v1174_v53, %v1174_v53  ;;  %v1140_v8 = vsel %vm820_vm13, %v2296_v13, %v1658_v28  ;;  %v2031_v63 = vpop.eup %2030  ;;  %1463 = vst.msk [vmem:[%s2348_s29 + $0x18] sm:$0xf] %vm1456_vm3, %v1790_v52  ;;  %v1661_v0 = vadd.f32 -1.0, %v2029_v57  ;;  %v2443_v13 = vpop.f32.mrb[16].mxu1  ;;  %2036 = vpow2.f32 %v964_v61 }
 0x107   : > { %v1788_v39 = vpack.c.bf16 %v1140_v8, %v1140_v8  ;;  %v1172_v12 = vsel %vm852_vm14, %v2301_v17, %v1690_v54  ;;  %v1693_v40 = vadd.f32 -1.0, %v2031_v63  ;;  %v2447_v5 = vpop.f32.mrb[17].mxu0  ;;  %v2449_v6 = vpop.f32.mrb[17].mxu1  ;;  %2038 = vpow2.f32 %v1028_v4 }
 0x108   : > { %1495 = vst.msk [vmem:[%s2348_s29 + $0x98] sm:$0xf] %vm1456_vm3, %v1822_v58  ;;  %v1820_v3 = vpack.c.bf16 %v1172_v12, %v1172_v12  ;;  %v1143_v17 = vsel %vm823_vm15, %v2311_v23, %v1661_v0  ;;  %v2462_v43 = vpop.f32.mrb[18].mxu0  ;;  %v2464_v9 = vpop.f32.mrb[18].mxu1  ;;  %v920_v29 = vmin.f32 %v2460_v7, 0.0  ;;  %2040 = vpow2.f32 %v960_v21 }
 0x109   : > { %1461 = vst.msk [vmem:[%s2348_s29 + $0x10] sm:$0xf] %vm1456_vm3, %v1788_v39  ;;  %v2033_v44 = vpop.eup %2032  ;;  %v1791_v14 = vpack.c.bf16 %v1143_v17, %v1143_v17  ;;  %v1175_v23 = vsel %vm855_vm0, %v2314_v24, %v1693_v40  ;;  %v2473_v18 = vpop.f32.mrb[19].mxu0  ;;  %v891_v24 = vmin.f32 %v2471_v15, 0.0  ;;  %v2491_v31 = vadd.f32 %v2255_v36, %v2339_v48 }
 0x10a   : > { %1493 = vst.msk [vmem:[%s2348_s29 + $0x90] sm:$0xf] %vm1456_vm3, %v1820_v3  ;;  %v2475_v33 = vpop.f32.mrb[19].mxu1  ;;  %v1823_v19 = vpack.c.bf16 %v1175_v23, %v1175_v23  ;;  %v1659_v20 = vadd.f32 -1.0, %v2033_v44  ;;  %v2495_v59 = vadd.f32 %v2255_v36, %v2341_v49  ;;  %v1024_v42 = vmul.f32 1.442695, %v920_v29  ;;  %v2035_v46 = vpop.eup %2034 }
 0x10b   : > { %1464 = vst.msk [vmem:[%s2348_s29 + $0x1c] sm:$0xf] %vm1456_vm3, %v1791_v14  ;;  %v966_v45 = vmul.f32 1.442695, %v891_v24  ;;  %vm853_vm2 = vcmp.gt.f32.partialorder %v2337_v47, 0.0  ;;  %vm826_vm4 = vcmp.gt.f32.partialorder %v2394_v56, 0.0  ;;  %v2510_v28 = vadd.f32 %v2373_v10, %v2255_v36 }
 0x10c   : > { %1496 = vst.msk [vmem:[%s2348_s29 + $0x9c] sm:$0xf] %vm1456_vm3, %v1823_v19  ;;  %v1141_v38 = vsel %vm821_vm1, %v2318_v26, %v1659_v20  ;;  %v923_v41 = vmin.f32 %v2484_v30, 0.0  ;;  %v889_v26 = vmin.f32 %v2491_v31, 0.0  ;;  %v1691_v49 = vadd.f32 -1.0, %v2035_v46 }
 0x10d   : > { %v1789_v37 = vpack.c.bf16 %v1141_v38, %v1141_v38  ;;  %v2501_v50 = vpop.f32.mrb[20].mxu0  ;;  %2042 = vpow2.f32 %v1024_v42  ;;  %v921_v60 = vmin.f32 %v2495_v59, 0.0  ;;  %v2518_v57 = vadd.f32 %v2375_v11, %v2255_v36 }
 0x10e   : > { %v2503_v48 = vpop.f32.mrb[20].mxu1  ;;  %v2512_v51 = vpop.f32.mrb[21].mxu0  ;;  %2044 = vpow2.f32 %v966_v45  ;;  %v1030_v53 = vmul.f32 1.442695, %v923_v41  ;;  %v962_v54 = vmul.f32 1.442695, %v889_v26  ;;  %v1173_v10 = vsel %vm853_vm2, %v2337_v47, %v1691_v49 }
 0x10f   : > { %1462 = vst.msk [vmem:[%s2348_s29 + $0x14] sm:$0xf] %vm1456_vm3, %v1789_v37  ;;  %v2514_v52 = vpop.f32.mrb[21].mxu1  ;;  %v2520_v58 = vpop.f32.mrb[22].mxu0  ;;  %vm858_vm5 = vcmp.gt.f32.partialorder %v2407_v34, 0.0  ;;  %v894_v63 = vmin.f32 %v2510_v28, 0.0  ;;  %v1821_v11 = vpack.c.bf16 %v1173_v10, %v1173_v10  ;;  %v2537_v47 = vadd.f32 %v2255_v36, %v2382_v16 }
 0x110   : > { %v2522_v8 = vpop.f32.mrb[22].mxu1  ;;  %v2037_v61 = vpop.eup %2036  ;;  %v1026_v62 = vmul.f32 1.442695, %v921_v60  ;;  %vm824_vm6 = vcmp.gt.f32.partialorder %v2439_v1, 0.0  ;;  %2046 = vpow2.f32 %v1030_v53  ;;  %v926_v4 = vmin.f32 %v2518_v57, 0.0 }
 0x111   : > { %v2529_v39 = vpop.f32.mrb[23].mxu0  ;;  %v2531_v12 = vpop.f32.mrb[23].mxu1  ;;  %v1664_v0 = vadd.f32 -1.0, %v2037_v61  ;;  %2048 = vpow2.f32 %v962_v54  ;;  %v972_v40 = vmul.f32 1.442695, %v894_v63  ;;  %v2546_v44 = vadd.f32 %v2255_v36, %v2384_v55 }
 0x112   : > { %v2039_v3 = vpop.eup %2038  ;;  %1494 = vst.msk [vmem:[%s2348_s29 + $0x94] sm:$0xf] %vm1456_vm3, %v1821_v11  ;;  %2050 = vpow2.f32 %v1026_v62  ;;  %vm856_vm7 = vcmp.gt.f32.partialorder %v2460_v7, 0.0  ;;  %v1036_v23 = vmul.f32 1.442695, %v926_v4  ;;  %vm827_vm8 = vcmp.gt.f32.partialorder %v2471_v15, 0.0 }
 0x113   : > { %v1146_v17 = vsel %vm826_vm4, %v2394_v56, %v1664_v0  ;;  %v1696_v32 = vadd.f32 -1.0, %v2039_v3  ;;  %2052 = vpow2.f32 %v972_v40  ;;  %v2041_v16 = vpop.eup %2040  ;;  %v892_v56 = vmin.f32 %v2537_v47, 0.0 }
 0x114   : > { %v1794_v14 = vpack.c.bf16 %v1146_v17, %v1146_v17  ;;  %v924_v20 = vmin.f32 %v2546_v44, 0.0  ;;  %v1662_v24 = vadd.f32 -1.0, %v2041_v16  ;;  %2054 = vpow2.f32 %v1036_v23 }
 0x115   : > { %v1178_v19 = vsel %vm858_vm5, %v2407_v34, %v1696_v32  ;;  %v2555_v21 = vpop.f32.mrb[24].mxu0  ;;  %v2563_v38 = vadd.f32 %v2396_v22, %v2255_v36  ;;  %v968_v42 = vmul.f32 1.442695, %v892_v56  ;;  %v2571_v46 = vadd.f32 %v2398_v25, %v2255_v36 }
 0x116   : > { %v2557_v55 = vpop.f32.mrb[24].mxu1  ;;  %1467 = vst.msk [vmem:[%s2348_s29 + $0x28] sm:$0xf] %vm1456_vm3, %v1794_v14  ;;  %v1826_v29 = vpack.c.bf16 %v1178_v19, %v1178_v19  ;;  %v2565_v34 = vpop.f32.mrb[25].mxu0  ;;  %v1032_v45 = vmul.f32 1.442695, %v924_v20  ;;  %v2575_v41 = vadd.f32 %v2255_v36, %v2409_v27  ;;  %v1144_v60 = vsel %vm824_vm6, %v2439_v1, %v1662_v24 }
 0x117   : > { %v2567_v37 = vpop.f32.mrb[25].mxu1  ;;  %v2577_v26 = vpop.f32.mrb[26].mxu0  ;;  %vm859_vm9 = vcmp.gt.f32.partialorder %v2484_v30, 0.0  ;;  %vm825_vm10 = vcmp.gt.f32.partialorder %v2491_v31, 0.0  ;;  %v895_v25 = vmin.f32 %v2563_v38, 0.0  ;;  %v1792_v61 = vpack.c.bf16 %v1144_v60, %v1144_v60 }
 0x118   : > { %v2579_v49 = vpop.f32.mrb[26].mxu1  ;;  %v2043_v22 = vpop.eup %2042  ;;  %1499 = vst.msk [vmem:[%s2348_s29 + $0xa8] sm:$0xf] %vm1456_vm3, %v1826_v29  ;;  %2056 = vpow2.f32 %v968_v42  ;;  %v2595_v62 = vadd.f32 %v2255_v36, %v2411_v35  ;;  %v927_v11 = vmin.f32 %v2571_v46, 0.0  ;;  %vm857_vm11 = vcmp.gt.f32.partialorder %v2495_v59, 0.0 }
 0x119   : > { %v2589_v27 = vpop.f32.mrb[27].mxu0  ;;  %v2591_v53 = vpop.f32.mrb[27].mxu1  ;;  %v1694_v10 = vadd.f32 -1.0, %v2043_v22  ;;  %2058 = vpow2.f32 %v1032_v45  ;;  %v974_v63 = vmul.f32 1.442695, %v895_v25  ;;  %vm830_vm12 = vcmp.gt.f32.partialorder %v2510_v28, 0.0 }
 0x11a   : > { %v2045_v54 = vpop.eup %2044  ;;  %1465 = vst.msk [vmem:[%s2348_s29 + $0x20] sm:$0xf] %vm1456_vm3, %v1792_v61  ;;  %v893_v35 = vmin.f32 %v2575_v41, 0.0  ;;  %v2619_v42 = vadd.f32 %v2441_v2, %v2255_v36  ;;  %vm862_vm13 = vcmp.gt.f32.partialorder %v2518_v57, 0.0  ;;  %vm828_vm14 = vcmp.gt.f32.partialorder %v2537_v47, 0.0 }
 0x11b   : > { %v1665_v1 = vadd.f32 -1.0, %v2045_v54  ;;  %v2047_v0 = vpop.eup %2046  ;;  %v1176_v3 = vsel %vm856_vm7, %v2460_v7, %v1694_v10  ;;  %2060 = vpow2.f32 %v974_v63  ;;  %v1038_v7 = vmul.f32 1.442695, %v927_v11 }
 0x11c   : > { %v2049_v40 = vpop.eup %2048  ;;  %v1824_v4 = vpack.c.bf16 %v1176_v3, %v1176_v3  ;;  %v1697_v32 = vadd.f32 -1.0, %v2047_v0  ;;  %v970_v19 = vmul.f32 1.442695, %v893_v35  ;;  %vm860_vm15 = vcmp.gt.f32.partialorder %v2546_v44, 0.0 }
 0x11d   : > { %v1147_v17 = vsel %vm827_vm8, %v2471_v15, %v1665_v1  ;;  %v2051_v14 = vpop.eup %2050  ;;  %v1663_v16 = vadd.f32 -1.0, %v2049_v40  ;;  %v2609_v56 = vpop.f32.mrb[28].mxu0  ;;  %v925_v15 = vmin.f32 %v2595_v62, 0.0  ;;  %2062 = vpow2.f32 %v1038_v7 }
 0x11e   : > { %v1795_v23 = vpack.c.bf16 %v1147_v17, %v1147_v17  ;;  %v2053_v20 = vpop.eup %2052  ;;  %1497 = vst.msk [vmem:[%s2348_s29 + $0xa0] sm:$0xf] %vm1456_vm3, %v1824_v4  ;;  %v1179_v29 = vsel %vm859_vm9, %v2484_v30, %v1697_v32  ;;  %v1695_v24 = vadd.f32 -1.0, %v2051_v14  ;;  %v2621_v45 = vpop.f32.mrb[28].mxu1  ;;  %2064 = vpow2.f32 %v970_v19 }
 0x11f   : > { %v2623_v22 = vpop.f32.mrb[29].mxu0  ;;  %v1827_v60 = vpack.c.bf16 %v1179_v29, %v1179_v29  ;;  %v1145_v25 = vsel %vm825_vm10, %v2491_v31, %v1663_v16  ;;  %v1668_v30 = vadd.f32 -1.0, %v2053_v20  ;;  %v2630_v54 = vpop.f32.mrb[29].mxu1  ;;  %v1034_v63 = vmul.f32 1.442695, %v925_v15 }
 0x120   : > { %1468 = vst.msk [vmem:[%s2348_s29 + $0x2c] sm:$0xf] %vm1456_vm3, %v1795_v23  ;;  %v2632_v61 = vpop.f32.mrb[30].mxu0  ;;  %v2055_v2 = vpop.eup %2054  ;;  %v1793_v10 = vpack.c.bf16 %v1145_v25, %v1145_v25  ;;  %v1177_v1 = vsel %vm857_vm11, %v2495_v59, %v1695_v24  ;;  %v898_v4 = vmin.f32 %v2619_v42, 0.0  ;;  %v2654_v17 = vadd.f32 %v2443_v13, %v2255_v36 }
 0x121   : > { %v2637_v11 = vpop.f32.mrb[30].mxu1  ;;  %v2639_v0 = vpop.f32.mrb[31].mxu0  ;;  %1500 = vst.msk [vmem:[%s2348_s29 + $0xac] sm:$0xf] %vm1456_vm3, %v1827_v60  ;;  %v1825_v31 = vpack.c.bf16 %v1177_v1, %v1177_v1  ;;  %v1150_v3 = vsel %vm830_vm12, %v2510_v28, %v1668_v30  ;;  %v1700_v35 = vadd.f32 -1.0, %v2055_v2  ;;  %2066 = vpow2.f32 %v1034_v63 }
 0x122   : > { %v2647_v40 = vpop.f32.mrb[31].mxu1  ;;  %1466 = vst.msk [vmem:[%s2348_s29 + $0x24] sm:$0xf] %vm1456_vm3, %v1793_v10  ;;  %v1798_v59 = vpack.c.bf16 %v1150_v3, %v1150_v3  ;;  %v2057_v32 = vpop.eup %2056  ;;  %v2662_v14 = vadd.f32 %v2255_v36, %v2447_v5  ;;  %v2666_v23 = vadd.f32 %v2255_v36, %v2449_v6  ;;  %v980_v19 = vmul.f32 1.442695, %v898_v4 }
 0x123   : > { %1498 = vst.msk [vmem:[%s2348_s29 + $0xa4] sm:$0xf] %vm1456_vm3, %v1825_v31  ;;  %v1182_v28 = vsel %vm862_vm13, %v2518_v57, %v1700_v35  ;;  %v2059_v16 = vpop.eup %2058  ;;  %v1666_v7 = vadd.f32 -1.0, %v2057_v32  ;;  %v930_v57 = vmin.f32 %v2654_v17, 0.0  ;;  %v2675_v5 = vadd.f32 %v2462_v43, %v2255_v36 }
 0x124   : > { %1471 = vst.msk [vmem:[%s2348_s29 + $0x38] sm:$0xf] %vm1456_vm3, %v1798_v59  ;;  %v1830_v13 = vpack.c.bf16 %v1182_v28, %v1182_v28  ;;  %v1698_v20 = vadd.f32 -1.0, %v2059_v16  ;;  %v896_v29 = vmin.f32 %v2662_v14, 0.0  ;;  %vm831_vm0 = vcmp.gt.f32.partialorder %v2563_v38, 0.0 }
 0x125   : > { %v2061_v6 = vpop.eup %2060  ;;  %v1148_v24 = vsel %vm828_vm14, %v2537_v47, %v1666_v7  ;;  %2068 = vpow2.f32 %v980_v19  ;;  %v928_v15 = vmin.f32 %v2666_v23, 0.0  ;;  %v1044_v2 = vmul.f32 1.442695, %v930_v57 }
 0x126   : > { %1503 = vst.msk [vmem:[%s2348_s29 + $0xb8] sm:$0xf] %vm1456_vm3, %v1830_v13  ;;  %v1796_v60 = vpack.c.bf16 %v1148_v24, %v1148_v24  ;;  %v1180_v25 = vsel %vm860_vm15, %v2546_v44, %v1698_v20  ;;  %v1669_v30 = vadd.f32 -1.0, %v2061_v6  ;;  %vm863_vm1 = vcmp.gt.f32.partialorder %v2571_v46, 0.0 }
 0x127   : > { %v1828_v10 = vpack.c.bf16 %v1180_v25, %v1180_v25  ;;  %v976_v43 = vmul.f32 1.442695, %v896_v29  ;;  %v1040_v1 = vmul.f32 1.442695, %v928_v15  ;;  %v2063_v63 = vpop.eup %2062  ;;  %2070 = vpow2.f32 %v1044_v2 }
 0x128   : > { %1469 = vst.msk [vmem:[%s2348_s29 + $0x30] sm:$0xf] %vm1456_vm3, %v1796_v60  ;;  %v1151_v47 = vsel %vm831_vm0, %v2563_v38, %v1669_v30  ;;  %v899_v31 = vmin.f32 %v2675_v5, 0.0  ;;  %v2690_v3 = vadd.f32 %v2464_v9, %v2255_v36  ;;  %v2065_v44 = vpop.eup %2064  ;;  %v1701_v59 = vadd.f32 -1.0, %v2063_v63 }
 0x129   : > { %1501 = vst.msk [vmem:[%s2348_s29 + $0xb0] sm:$0xf] %vm1456_vm3, %v1828_v10  ;;  %v1799_v35 = vpack.c.bf16 %v1151_v47, %v1151_v47  ;;  %2072 = vpow2.f32 %v976_v43  ;;  %v2696_v4 = vadd.f32 %v2255_v36, %v2473_v18  ;;  %vm829_vm2 = vcmp.gt.f32.partialorder %v2575_v41, 0.0 }
 0x12a   : > { %v1667_v38 = vadd.f32 -1.0, %v2065_v44  ;;  %2074 = vpow2.f32 %v1040_v1  ;;  %v982_v32 = vmul.f32 1.442695, %v899_v31  ;;  %v1183_v9 = vsel %vm863_vm1, %v2571_v46, %v1701_v59 }
 0x12b   : > { %v2067_v28 = vpop.eup %2066  ;;  %1472 = vst.msk [vmem:[%s2348_s29 + $0x3c] sm:$0xf] %vm1456_vm3, %v1799_v35  ;;  %vm861_vm4 = vcmp.gt.f32.partialorder %v2595_v62, 0.0  ;;  %v931_v16 = vmin.f32 %v2690_v3, 0.0  ;;  %v897_v18 = vmin.f32 %v2696_v4, 0.0  ;;  %v1831_v13 = vpack.c.bf16 %v1183_v9, %v1183_v9 }
 0x12c   : > { %v1149_v7 = vsel %vm829_vm2, %v2575_v41, %v1667_v38  ;;  %v1699_v19 = vadd.f32 -1.0, %v2067_v28  ;;  %2076 = vpow2.f32 %v982_v32  ;;  %v2710_v6 = vadd.f32 %v2255_v36, %v2475_v33 }
 0x12d   : > { %v1797_v20 = vpack.c.bf16 %v1149_v7, %v1149_v7  ;;  %v1046_v57 = vmul.f32 1.442695, %v931_v16  ;;  %v978_v29 = vmul.f32 1.442695, %v897_v18  ;;  %1504 = vst.msk [vmem:[%s2348_s29 + $0xbc] sm:$0xf] %vm1456_vm3, %v1831_v13  ;;  %v2717_v24 = vadd.f32 %v2501_v50, %v2255_v36 }
 0x12e   : > { %v1181_v46 = vsel %vm861_vm4, %v2595_v62, %v1699_v19  ;;  %v2721_v41 = vadd.f32 %v2503_v48, %v2255_v36  ;;  %v2725_v15 = vadd.f32 %v2255_v36, %v2512_v51  ;;  %vm834_vm5 = vcmp.gt.f32.partialorder %v2619_v42, 0.0 }
 0x12f   : > { %v2069_v60 = vpop.eup %2068  ;;  %1470 = vst.msk [vmem:[%s2348_s29 + $0x34] sm:$0xf] %vm1456_vm3, %v1797_v20  ;;  %v1829_v33 = vpack.c.bf16 %v1181_v46, %v1181_v46  ;;  %2078 = vpow2.f32 %v1046_v57  ;;  %v929_v62 = vmin.f32 %v2710_v6, 0.0  ;;  %vm866_vm6 = vcmp.gt.f32.partialorder %v2654_v17, 0.0 }
 0x130   : > { %v1672_v25 = vadd.f32 -1.0, %v2069_v60  ;;  %2080 = vpow2.f32 %v978_v29  ;;  %v902_v50 = vmin.f32 %v2717_v24, 0.0  ;;  %vm832_vm7 = vcmp.gt.f32.partialorder %v2662_v14, 0.0 }
 0x131   : > { %1502 = vst.msk [vmem:[%s2348_s29 + $0xb4] sm:$0xf] %vm1456_vm3, %v1829_v33  ;;  %vm864_vm8 = vcmp.gt.f32.partialorder %v2666_v23, 0.0  ;;  %v1042_v48 = vmul.f32 1.442695, %v929_v62  ;;  %v934_v51 = vmin.f32 %v2721_v41, 0.0  ;;  %v2071_v30 = vpop.eup %2070  ;;  %v2742_v1 = vadd.f32 %v2255_v36, %v2514_v52 }
 0x132   : > { %v1154_v2 = vsel %vm834_vm5, %v2619_v42, %v1672_v25  ;;  %v988_v10 = vmul.f32 1.442695, %v902_v50  ;;  %v900_v43 = vmin.f32 %v2725_v15, 0.0  ;;  %v1704_v31 = vadd.f32 -1.0, %v2071_v30 }
 0x133   : > { %v2073_v63 = vpop.eup %2072  ;;  %v1802_v47 = vpack.c.bf16 %v1154_v2, %v1154_v2  ;;  %2082 = vpow2.f32 %v1042_v48  ;;  %v1052_v44 = vmul.f32 1.442695, %v934_v51  ;;  %vm835_vm9 = vcmp.gt.f32.partialorder %v2675_v5, 0.0 }
 0x134   : > { %v2075_v35 = vpop.eup %2074  ;;  %v1670_v59 = vadd.f32 -1.0, %v2073_v63  ;;  %2084 = vpow2.f32 %v988_v10  ;;  %v984_v38 = vmul.f32 1.442695, %v900_v43  ;;  %v1186_v42 = vsel %vm866_vm6, %v2654_v17, %v1704_v31 }
 0x135   : > { %1475 = vst.msk [vmem:[%s2348_s29 + $0x48] sm:$0xf] %vm1456_vm3, %v1802_v47  ;;  %v1702_v52 = vadd.f32 -1.0, %v2075_v35  ;;  %2086 = vpow2.f32 %v1052_v44  ;;  %v932_v32 = vmin.f32 %v2742_v1, 0.0  ;;  %v1834_v9 = vpack.c.bf16 %v1186_v42, %v1186_v42 }
 0x136   : > { %v2077_v28 = vpop.eup %2076  ;;  %v1152_v16 = vsel %vm832_vm7, %v2662_v14, %v1670_v59  ;;  %2088 = vpow2.f32 %v984_v38  ;;  %v2756_v18 = vadd.f32 %v2520_v58, %v2255_v36  ;;  %vm867_vm10 = vcmp.gt.f32.partialorder %v2690_v3, 0.0 }
 0x137   : > { %v1800_v13 = vpack.c.bf16 %v1152_v16, %v1152_v16  ;;  %v1184_v17 = vsel %vm864_vm8, %v2666_v23, %v1702_v52  ;;  %v1673_v7 = vadd.f32 -1.0, %v2077_v28  ;;  %v1048_v19 = vmul.f32 1.442695, %v932_v32  ;;  %1507 = vst.msk [vmem:[%s2348_s29 + $0xc8] sm:$0xf] %vm1456_vm3, %v1834_v9 }
 0x138   : > { %v1832_v20 = vpack.c.bf16 %v1184_v17, %v1184_v17  ;;  %v903_v14 = vmin.f32 %v2756_v18, 0.0  ;;  %v2767_v57 = vadd.f32 %v2522_v8, %v2255_v36  ;;  %v2776_v29 = vadd.f32 %v2255_v36, %v2529_v39 }
 0x139   : > { %v2079_v58 = vpop.eup %2078  ;;  %1473 = vst.msk [vmem:[%s2348_s29 + $0x40] sm:$0xf] %vm1456_vm3, %v1800_v13  ;;  %v1155_v23 = vsel %vm835_vm9, %v2675_v5, %v1673_v7  ;;  %2090 = vpow2.f32 %v1048_v19  ;;  %v2780_v46 = vadd.f32 %v2255_v36, %v2531_v12  ;;  %vm833_vm11 = vcmp.gt.f32.partialorder %v2696_v4, 0.0 }
 0x13a   : > { %v2081_v60 = vpop.eup %2080  ;;  %1505 = vst.msk [vmem:[%s2348_s29 + $0xc0] sm:$0xf] %vm1456_vm3, %v1832_v20  ;;  %v1803_v8 = vpack.c.bf16 %v1155_v23, %v1155_v23  ;;  %v1705_v33 = vadd.f32 -1.0, %v2079_v58  ;;  %v990_v62 = vmul.f32 1.442695, %v903_v14  ;;  %vm865_vm12 = vcmp.gt.f32.partialorder %v2710_v6, 0.0 }
 0x13b   : > { %v1671_v25 = vadd.f32 -1.0, %v2081_v60  ;;  %v935_v5 = vmin.f32 %v2767_v57, 0.0  ;;  %v901_v39 = vmin.f32 %v2776_v29, 0.0  ;;  %vm838_vm13 = vcmp.gt.f32.partialorder %v2717_v24, 0.0  ;;  %v2835_v20 = vld [vmem:[%s3007_s2] ss:$0 sm:$0xff] }
 0x13c   : > { %1476 = vst.msk [vmem:[%s2348_s29 + $0x4c] sm:$0xf] %vm1456_vm3, %v1803_v8  ;;  %v1187_v12 = vsel %vm867_vm10, %v2690_v3, %v1705_v33  ;;  %2092 = vpow2.f32 %v990_v62  ;;  %v933_v50 = vmin.f32 %v2780_v46, 0.0  ;;  %v2798_v44 = vadd.f32 %v2555_v21, %v2255_v36 }
 0x13d   : > { %v2083_v48 = vpop.eup %2082  ;;  %v1835_v51 = vpack.c.bf16 %v1187_v12, %v1187_v12  ;;  %v1153_v30 = vsel %vm833_vm11, %v2696_v4, %v1671_v25  ;;  %v1054_v2 = vmul.f32 1.442695, %v935_v5  ;;  %v986_v10 = vmul.f32 1.442695, %v901_v39 }
 0x13e   : > { %v2085_v43 = vpop.eup %2084  ;;  %v1801_v63 = vpack.c.bf16 %v1153_v30, %v1153_v30  ;;  %v1703_v47 = vadd.f32 -1.0, %v2083_v48  ;;  %v1050_v31 = vmul.f32 1.442695, %v933_v50  ;;  %vm870_vm14 = vcmp.gt.f32.partialorder %v2721_v41, 0.0 }
 0x13f   : > { %v2087_v3 = vpop.eup %2086  ;;  %1508 = vst.msk [vmem:[%s2348_s29 + $0xcc] sm:$0xf] %vm1456_vm3, %v1835_v51  ;;  %v1676_v35 = vadd.f32 -1.0, %v2085_v43  ;;  %2094 = vpow2.f32 %v1054_v2  ;;  %v2805_v4 = vadd.f32 %v2557_v55, %v2255_v36  ;;  %v2814_v42 = vadd.f32 %v2255_v36, %v2565_v34 }
 0x140   : > { %v2089_v59 = vpop.eup %2088  ;;  %1474 = vst.msk [vmem:[%s2348_s29 + $0x44] sm:$0xf] %vm1456_vm3, %v1801_v63  ;;  %v1185_v21 = vsel %vm865_vm12, %v2710_v6, %v1703_v47  ;;  %v1708_v38 = vadd.f32 -1.0, %v2087_v3  ;;  %2096 = vpow2.f32 %v986_v10  ;;  %vm836_vm15 = vcmp.gt.f32.partialorder %v2725_v15, 0.0 }
 0x141   : > { %v1833_v52 = vpack.c.bf16 %v1185_v21, %v1185_v21  ;;  %v1158_v55 = vsel %vm838_vm13, %v2717_v24, %v1676_v35  ;;  %v1674_v32 = vadd.f32 -1.0, %v2089_v59  ;;  %2098 = vpow2.f32 %v1050_v31 }
 0x142   : > { %v1806_v28 = vpack.c.bf16 %v1158_v55, %v1158_v55  ;;  %v1190_v9 = vsel %vm870_vm14, %v2721_v41, %v1708_v38  ;;  %v906_v6 = vmin.f32 %v2798_v44, 0.0  ;;  %vm868_vm0 = vcmp.gt.f32.partialorder %v2742_v1, 0.0 }
 0x143   : > { %v2091_v16 = vpop.eup %2090  ;;  %1506 = vst.msk [vmem:[%s2348_s29 + $0xc4] sm:$0xf] %vm1456_vm3, %v1833_v52  ;;  %v1838_v36 = vpack.c.bf16 %v1190_v9, %v1190_v9  ;;  %v1156_v34 = vsel %vm836_vm15, %v2725_v15, %v1674_v32  ;;  %v938_v24 = vmin.f32 %v2805_v4, 0.0  ;;  %v904_v7 = vmin.f32 %v2814_v42, 0.0 }
 0x144   : > { %1479 = vst.msk [vmem:[%s2348_s29 + $0x58] sm:$0xf] %vm1456_vm3, %v1806_v28  ;;  %v1804_v13 = vpack.c.bf16 %v1156_v34, %v1156_v34  ;;  %v1706_v17 = vadd.f32 -1.0, %v2091_v16  ;;  %v996_v41 = vmul.f32 1.442695, %v906_v6  ;;  %v2839_v15 = vadd.f32 %v2835_v20, %v2567_v37 }
 0x145   : > { %1511 = vst.msk [vmem:[%s2348_s29 + $0xd8] sm:$0xf] %vm1456_vm3, %v1838_v36  ;;  %v1060_v19 = vmul.f32 1.442695, %v938_v24  ;;  %v2843_v14 = vadd.f32 %v2835_v20, %v2577_v26  ;;  %v2847_v58 = vadd.f32 %v2835_v20, %v2579_v49  ;;  %vm839_vm1 = vcmp.gt.f32.partialorder %v2756_v18, 0.0 }
 0x146   : > { %v2093_v23 = vpop.eup %2092  ;;  %1477 = vst.msk [vmem:[%s2348_s29 + $0x50] sm:$0xf] %vm1456_vm3, %v1804_v13  ;;  %v1188_v60 = vsel %vm868_vm0, %v2742_v1, %v1706_v17  ;;  %2100 = vpow2.f32 %v996_v41  ;;  %v992_v8 = vmul.f32 1.442695, %v904_v7  ;;  %v2855_v26 = vadd.f32 %v2835_v20, %v2589_v27 }
 0x147   : > { %v1836_v37 = vpack.c.bf16 %v1188_v60, %v1188_v60  ;;  %v1677_v33 = vadd.f32 -1.0, %v2093_v23  ;;  %2102 = vpow2.f32 %v1060_v19  ;;  %vm871_vm2 = vcmp.gt.f32.partialorder %v2767_v57, 0.0 }
 0x148   : > { %2104 = vpow2.f32 %v992_v8  ;;  %v936_v49 = vmin.f32 %v2839_v15, 0.0  ;;  %v907_v62 = vmin.f32 %v2843_v14, 0.0  ;;  %vm837_vm4 = vcmp.gt.f32.partialorder %v2776_v29, 0.0 }
 0x149   : > { %v2095_v25 = vpop.eup %2094  ;;  %1509 = vst.msk [vmem:[%s2348_s29 + $0xd0] sm:$0xf] %vm1456_vm3, %v1836_v37  ;;  %v1159_v1 = vsel %vm839_vm1, %v2756_v18, %v1677_v33  ;;  %vm869_vm5 = vcmp.gt.f32.partialorder %v2780_v46, 0.0  ;;  %v939_v27 = vmin.f32 %v2847_v58, 0.0  ;;  %v905_v10 = vmin.f32 %v2855_v26, 0.0 }
 0x14a   : > { %v2097_v5 = vpop.eup %2096  ;;  %v1807_v39 = vpack.c.bf16 %v1159_v1, %v1159_v1  ;;  %v1709_v12 = vadd.f32 -1.0, %v2095_v25  ;;  %v1056_v50 = vmul.f32 1.442695, %v936_v49  ;;  %v998_v48 = vmul.f32 1.442695, %v907_v62 }
 0x14b   : > { %v2099_v51 = vpop.eup %2098  ;;  %v1675_v30 = vadd.f32 -1.0, %v2097_v5  ;;  %v1062_v2 = vmul.f32 1.442695, %v939_v27  ;;  %v2869_v18 = vadd.f32 %v2835_v20, %v2591_v53  ;;  %v2878_v47 = vadd.f32 %v2835_v20, %v2609_v56 }
 0x14c   : > { %1480 = vst.msk [vmem:[%s2348_s29 + $0x5c] sm:$0xf] %vm1456_vm3, %v1807_v39  ;;  %v1191_v43 = vsel %vm871_vm2, %v2767_v57, %v1709_v12  ;;  %v1707_v63 = vadd.f32 -1.0, %v2099_v51  ;;  %2106 = vpow2.f32 %v1056_v50  ;;  %v994_v53 = vmul.f32 1.442695, %v905_v10 }
 0x14d   : > { %v1839_v31 = vpack.c.bf16 %v1191_v43, %v1191_v43  ;;  %v1157_v3 = vsel %vm837_vm4, %v2776_v29, %v1675_v30  ;;  %2108 = vpow2.f32 %v998_v48  ;;  %vm842_vm6 = vcmp.gt.f32.partialorder %v2798_v44, 0.0 }
 0x14e   : > { %v1805_v35 = vpack.c.bf16 %v1157_v3, %v1157_v3  ;;  %v1189_v57 = vsel %vm869_vm5, %v2780_v46, %v1707_v63  ;;  %2110 = vpow2.f32 %v1062_v2  ;;  %vm874_vm7 = vcmp.gt.f32.partialorder %v2805_v4, 0.0 }
 0x14f   : > { %1512 = vst.msk [vmem:[%s2348_s29 + $0xdc] sm:$0xf] %vm1456_vm3, %v1839_v31  ;;  %v1837_v56 = vpack.c.bf16 %v1189_v57, %v1189_v57  ;;  %2112 = vpow2.f32 %v994_v53  ;;  %v937_v59 = vmin.f32 %v2869_v18, 0.0  ;;  %vm840_vm8 = vcmp.gt.f32.partialorder %v2814_v42, 0.0 }
 0x150   : > { %v2101_v29 = vpop.eup %2100  ;;  %1478 = vst.msk [vmem:[%s2348_s29 + $0x54] sm:$0xf] %vm1456_vm3, %v1805_v35  ;;  %vm872_vm9 = vcmp.gt.f32.partialorder %v2839_v15, 0.0  ;;  %v910_v46 = vmin.f32 %v2878_v47, 0.0  ;;  %v2898_v21 = vadd.f32 %v2835_v20, %v2621_v45  ;;  %v2904_v32 = vadd.f32 %v2835_v20, %v2623_v22 }
 0x151   : > { %v2103_v38 = vpop.eup %2102  ;;  %1510 = vst.msk [vmem:[%s2348_s29 + $0xd4] sm:$0xf] %vm1456_vm3, %v1837_v56  ;;  %v1680_v52 = vadd.f32 -1.0, %v2101_v29  ;;  %v1058_v55 = vmul.f32 1.442695, %v937_v59  ;;  %v2908_v28 = vadd.f32 %v2835_v20, %v2630_v54  ;;  %v2913_v36 = vadd.f32 %v2835_v20, %v2632_v61 }
 0x152   : > { %v2105_v9 = vpop.eup %2104  ;;  %v1712_v6 = vadd.f32 -1.0, %v2103_v38  ;;  %v1004_v16 = vmul.f32 1.442695, %v910_v46  ;;  %v942_v45 = vmin.f32 %v2898_v21, 0.0  ;;  %v2920_v54 = vadd.f32 %v2835_v20, %v2637_v11 }
 0x153   : > { %v1162_v34 = vsel %vm842_vm6, %v2798_v44, %v1680_v52  ;;  %v1678_v22 = vadd.f32 -1.0, %v2105_v9  ;;  %2114 = vpow2.f32 %v1058_v55  ;;  %vm843_vm10 = vcmp.gt.f32.partialorder %v2843_v14, 0.0 }
 0x154   : > { %v1810_v24 = vpack.c.bf16 %v1162_v34, %v1162_v34  ;;  %v1194_v13 = vsel %vm874_vm7, %v2805_v4, %v1712_v6  ;;  %2116 = vpow2.f32 %v1004_v16  ;;  %v1068_v17 = vmul.f32 1.442695, %v942_v45 }
 0x155   : > { %v1842_v61 = vpack.c.bf16 %v1194_v13, %v1194_v13  ;;  %v1160_v41 = vsel %vm840_vm8, %v2814_v42, %v1678_v22  ;;  %v908_v44 = vmin.f32 %v2904_v32, 0.0  ;;  %vm875_vm11 = vcmp.gt.f32.partialorder %v2847_v58, 0.0 }
 0x156   : > { %v2107_v11 = vpop.eup %2106  ;;  %1483 = vst.msk [vmem:[%s2348_s29 + $0x68] sm:$0xf] %vm1456_vm3, %v1810_v24  ;;  %v1808_v7 = vpack.c.bf16 %v1160_v41, %v1160_v41  ;;  %2118 = vpow2.f32 %v1068_v17  ;;  %v940_v4 = vmin.f32 %v2908_v28, 0.0  ;;  %vm841_vm12 = vcmp.gt.f32.partialorder %v2855_v26, 0.0 }
 0x157   : > { %v2109_v19 = vpop.eup %2108  ;;  %1515 = vst.msk [vmem:[%s2348_s29 + $0xe8] sm:$0xf] %vm1456_vm3, %v1842_v61  ;;  %v1710_v23 = vadd.f32 -1.0, %v2107_v11  ;;  %v1000_v42 = vmul.f32 1.442695, %v908_v44  ;;  %v911_v60 = vmin.f32 %v2913_v36, 0.0  ;;  %v2943_v62 = vadd.f32 %v2835_v20, %v2639_v0 }
 0x158   : > { %v2111_v8 = vpop.eup %2110  ;;  %1481 = vst.msk [vmem:[%s2348_s29 + $0x60] sm:$0xf] %vm1456_vm3, %v1808_v7  ;;  %v1681_v37 = vadd.f32 -1.0, %v2109_v19  ;;  %v1064_v33 = vmul.f32 1.442695, %v940_v4  ;;  %v943_v49 = vmin.f32 %v2920_v54, 0.0 }
 0x159   : > { %v2113_v25 = vpop.eup %2112  ;;  %v1192_v1 = vsel %vm872_vm9, %v2839_v15, %v1710_v23  ;;  %v1713_v27 = vadd.f32 -1.0, %v2111_v8  ;;  %2120 = vpow2.f32 %v1000_v42  ;;  %v1006_v5 = vmul.f32 1.442695, %v911_v60 }
 0x15a   : > { %v1840_v39 = vpack.c.bf16 %v1192_v1, %v1192_v1  ;;  %v1163_v12 = vsel %vm843_vm10, %v2843_v14, %v1681_v37  ;;  %v1679_v50 = vadd.f32 -1.0, %v2113_v25  ;;  %2122 = vpow2.f32 %v1064_v33 }
 0x15b   : > { %v1811_v48 = vpack.c.bf16 %v1163_v12, %v1163_v12  ;;  %v1195_v0 = vsel %vm875_vm11, %v2847_v58, %v1713_v27  ;;  %2124 = vpow2.f32 %v1006_v5  ;;  %v1070_v15 = vmul.f32 1.442695, %v943_v49 }
 0x15c   : > { %1513 = vst.msk [vmem:[%s2348_s29 + $0xe0] sm:$0xf] %vm1456_vm3, %v1840_v39  ;;  %v1843_v51 = vpack.c.bf16 %v1195_v0, %v1195_v0  ;;  %v1161_v30 = vsel %vm841_vm12, %v2855_v26, %v1679_v50  ;;  %v909_v14 = vmin.f32 %v2943_v62, 0.0  ;;  %v805_v58 = vadd.f32 %v2835_v20, %v2647_v40 }
 0x15d   : > { %v2115_v2 = vpop.eup %2114  ;;  %1484 = vst.msk [vmem:[%s2348_s29 + $0x6c] sm:$0xf] %vm1456_vm3, %v1811_v48  ;;  %v1809_v10 = vpack.c.bf16 %v1161_v30, %v1161_v30  ;;  %2126 = vpow2.f32 %v1070_v15  ;;  %vm873_vm13 = vcmp.gt.f32.partialorder %v2869_v18, 0.0  ;;  %vm846_vm14 = vcmp.gt.f32.partialorder %v2878_v47, 0.0 }
 0x15e   : > { %v2117_v43 = vpop.eup %2116  ;;  %1516 = vst.msk [vmem:[%s2348_s29 + $0xec] sm:$0xf] %vm1456_vm3, %v1843_v51  ;;  %v1711_v63 = vadd.f32 -1.0, %v2115_v2  ;;  %v1002_v31 = vmul.f32 1.442695, %v909_v14  ;;  %v941_v3 = vmin.f32 %v805_v58, 0.0 }
 0x15f   : > { %1482 = vst.msk [vmem:[%s2348_s29 + $0x64] sm:$0xf] %vm1456_vm3, %v1809_v10  ;;  %v1684_v26 = vadd.f32 -1.0, %v2117_v43  ;;  %vm878_vm15 = vcmp.gt.f32.partialorder %v2898_v21, 0.0  ;;  %vm844_vm0 = vcmp.gt.f32.partialorder %v2904_v32, 0.0  ;;  %vm876_vm1 = vcmp.gt.f32.partialorder %v2908_v28, 0.0 }
 0x160   : > { %v2119_v53 = vpop.eup %2118  ;;  %v1193_v35 = vsel %vm873_vm13, %v2869_v18, %v1711_v63  ;;  %2128 = vpow2.f32 %v1002_v31  ;;  %v1066_v56 = vmul.f32 1.442695, %v941_v3  ;;  %vm847_vm2 = vcmp.gt.f32.partialorder %v2913_v36, 0.0 }
 0x161   : > { %v1841_v40 = vpack.c.bf16 %v1193_v35, %v1193_v35  ;;  %v1166_v20 = vsel %vm846_vm14, %v2878_v47, %v1684_v26  ;;  %v1716_v57 = vadd.f32 -1.0, %v2119_v53  ;;  %vm879_vm4 = vcmp.gt.f32.partialorder %v2920_v54, 0.0 }
 0x162   : > { %v1814_v59 = vpack.c.bf16 %v1166_v20, %v1166_v20  ;;  %2130 = vpow2.f32 %v1066_v56  ;;  %vm845_vm5 = vcmp.gt.f32.partialorder %v2943_v62, 0.0  ;;  %vm877_vm6 = vcmp.gt.f32.partialorder %v805_v58, 0.0 }
 0x163   : > { %v2121_v29 = vpop.eup %2120  ;;  %1514 = vst.msk [vmem:[%s2348_s29 + $0xe4] sm:$0xf] %vm1456_vm3, %v1841_v40  ;;  %v1198_v46 = vsel %vm878_vm15, %v2898_v21, %v1716_v57 }
 0x164   : > { %v2123_v38 = vpop.eup %2122  ;;  %1487 = vst.msk [vmem:[%s2348_s29 + $0x78] sm:$0xf] %vm1456_vm3, %v1814_v59  ;;  %v1846_v18 = vpack.c.bf16 %v1198_v46, %v1198_v46  ;;  %v1682_v52 = vadd.f32 -1.0, %v2121_v29 }
 0x165   : > { %v2125_v55 = vpop.eup %2124  ;;  %v1714_v47 = vadd.f32 -1.0, %v2123_v38 }
 0x166   : > { %1519 = vst.msk [vmem:[%s2348_s29 + $0xf8] sm:$0xf] %vm1456_vm3, %v1846_v18  ;;  %v1164_v9 = vsel %vm844_vm0, %v2904_v32, %v1682_v52  ;;  %v1685_v21 = vadd.f32 -1.0, %v2125_v55 }
 0x167   : > { %v2127_v6 = vpop.eup %2126  ;;  %v1812_v16 = vpack.c.bf16 %v1164_v9, %v1164_v9  ;;  %v1196_v45 = vsel %vm876_vm1, %v2908_v28, %v1714_v47 }
 0x168   : > { %v1844_v34 = vpack.c.bf16 %v1196_v45, %v1196_v45  ;;  %v1167_v22 = vsel %vm847_vm2, %v2913_v36, %v1685_v21  ;;  %v1717_v24 = vadd.f32 -1.0, %v2127_v6 }
 0x169   : > { %1485 = vst.msk [vmem:[%s2348_s29 + $0x70] sm:$0xf] %vm1456_vm3, %v1812_v16  ;;  %v1815_v13 = vpack.c.bf16 %v1167_v22, %v1167_v22 }
 0x16a   : > { %v2129_v32 = vpop.eup %2128  ;;  %1517 = vst.msk [vmem:[%s2348_s29 + $0xf0] sm:$0xf] %vm1456_vm3, %v1844_v34  ;;  %v1199_v17 = vsel %vm879_vm4, %v2920_v54, %v1717_v24 }
 0x16b   : > { %1488 = vst.msk [vmem:[%s2348_s29 + $0x7c] sm:$0xf] %vm1456_vm3, %v1815_v13  ;;  %v1847_v28 = vpack.c.bf16 %v1199_v17, %v1199_v17  ;;  %v1683_v61 = vadd.f32 -1.0, %v2129_v32 }
 0x16c   : > { %v2131_v36 = vpop.eup %2130 }
 0x16d   : > { %1520 = vst.msk [vmem:[%s2348_s29 + $0xfc] sm:$0xf] %vm1456_vm3, %v1847_v28  ;;  %v1165_v41 = vsel %vm845_vm5, %v2943_v62, %v1683_v61  ;;  %v1715_v11 = vadd.f32 -1.0, %v2131_v36 }
 0x16e   : > { %v1813_v44 = vpack.c.bf16 %v1165_v41, %v1165_v41 }
 0x16f   : > { %v1197_v7 = vsel %vm877_vm6, %v805_v58, %v1715_v11 }
 0x170   : > { %1486 = vst.msk [vmem:[%s2348_s29 + $0x74] sm:$0xf] %vm1456_vm3, %v1813_v44  ;;  %v1845_v4 = vpack.c.bf16 %v1197_v7, %v1197_v7 }
 0x172   : > { %1518 = vst.msk [vmem:[%s2348_s29 + $0xf4] sm:$0xf] %vm1456_vm3, %v1845_v4 }
 0x173 PF: > { %s13_s12 = sadd.s32 1, %s2139_s12  }
 0x174   : > { %p10_p4 = scmp.ge.s32.totalorder %s13_s12, 8  }
 0x176   :  { %12 = sbr.rel (!%p10_p4) target bundleno = 1 (0x1), region = 62 }

// kernel: _lambda_.7
= control target key start
LH: loop header
LB: loop body
LE: loop exit
PB: predicated region body
PF: predicated region fallthrough
CT: control target
= control target key end

     0   :  { %s3171_s12 = smov 0   ;;  %s4223_s0 = inlined_call_operand.vmem [shape: bf16[1024,288], index: 0, kind: input, shape index: {}]   ;;  %s4224_s1 = inlined_call_operand.vmem [shape: bf16[288,32], index: 1, kind: input, shape index: {}]   ;;  %s4225_s2 = inlined_call_operand.vmem [shape: f32[1,32], index: 2, kind: input, shape index: {}]   ;;  %s4226_s3 = inlined_call_operand.vmem [shape: bf16[1024,32], index: 3, kind: output, shape index: {}]  }
   0x1 LB: > { %s2373_s13 = sadd.s32 4294967295, %s3148_s12   ;;  %p2377_p0 = scmp.ge.s32.totalorder %s3148_s12, 1  ;;  %s3148_s12 = sphi %s3171_s12, %s13_s12  }
   0x2   : > { %p139_p1 = scmp.lt.s32.totalorder %s3148_s12, 3 }
   0x4   : > { %p140_p2 = pnand %p2377_p0, %p139_p1 }
   0x5   : > { %v2867_v0 = vld [vmem:[%s4224_s1] sm:$0xff] (!%p140_p2)   ;;  %v3150_v1 = vmov (!%p140_p2), 0   ;;  %s2378_s16 = sshll.u32 (!%p140_p2), %s2373_s13, 6  ;;  %v2868_v2 = vld [vmem:[%s4224_s1 + $0x8] sm:$0xff] (!%p140_p2)   ;;  %v2869_v3 = vld [vmem:[%s4224_s1 + $0x10] sm:$0xff] (!%p140_p2)   ;;  %vm937_vm0 = vcmask (!%p140_p2), 261120  }
   0x6   : > { %143 = sbr.rel (%p140_p2) target bundleno = 507 (0x1fb), region = 32  ;;  %1034 = vmatprep.subr.bf16.mxu0 (!%p140_p2), %v3150_v1  ;;  %2825 = vmatprep.subr.bf16.mxu1 (!%p140_p2), %v3150_v1  ;;  %p165_p3 = scmp.lt.s32.totalorder (!%p140_p2), %s2378_s16, 127  ;;  %v2870_v4 = vld [vmem:[%s4224_s1 + $0x18] sm:$0xff] (!%p140_p2)   ;;  %v2871_v5 = vld [vmem:[%s4224_s1 + $0x20] sm:$0xff] (!%p140_p2)   ;;  %v2872_v7 = vld [vmem:[%s4224_s1 + $0x28] sm:$0xff] (!%p140_p2)   ;;  %vm2252_vm1 = vcmask (!%p140_p2), 257024  }
   0x7   : > { %1035 = vmatpush1.bf16.msra.mxu0 (!%p140_p2), %v2867_v0  ;;  %2841 = vmatpush1.bf16.msra.mxu1 (!%p140_p2), %v2867_v0  ;;  %v2873_v9 = vld [vmem:[%s4224_s1 + $0x30] sm:$0xff] (!%p140_p2)   ;;  %v2874_v10 = vld [vmem:[%s4224_s1 + $0x38] sm:$0xff] (!%p140_p2)   ;;  %v2875_v11 = vld [vmem:[%s4224_s1 + $0x40] sm:$0xff] (!%p140_p2)  }
   0x8   : > { %1036 = vmatprep.subr.bf16.mxu0 (!%p140_p2), %v3150_v1  ;;  %2826 = vmatprep.subr.bf16.mxu1 (!%p140_p2), %v3150_v1  ;;  %v2876_v12 = vld [vmem:[%s4224_s1 + $0x48] sm:$0xff] (!%p140_p2)   ;;  %v2877_v13 = vld [vmem:[%s4224_s1 + $0x50] sm:$0xff] (!%p140_p2)   ;;  %v2878_v14 = vld [vmem:[%s4224_s1 + $0x58] sm:$0xff] (!%p140_p2)  }
   0x9   : > { %v2879_v15 = vld [vmem:[%s4224_s1 + $0x60] sm:$0xff] (!%p140_p2)   ;;  %v2880_v16 = vld [vmem:[%s4224_s1 + $0x68] sm:$0xff] (!%p140_p2)   ;;  %v2881_v17 = vld [vmem:[%s4224_s1 + $0x70] sm:$0xff] (!%p140_p2)  }
   0xa   : > { %v2882_v18 = vld [vmem:[%s4224_s1 + $0x78] sm:$0xff] (!%p140_p2)   ;;  %v2889_v19 = vld [vmem:[%s4224_s1 + $0x80] sm:$0xff] (!%p140_p2)   ;;  %v2914_v24 = vld [vmem:[%s4224_s1 + $0x88] sm:$0xff] (!%p140_p2)  }
   0xb   : > { %1037 = vmatpush1.bf16.msra.mxu0 (!%p140_p2), %v2868_v2  ;;  %2842 = vmatpush1.bf16.msra.mxu1 (!%p140_p2), %v2868_v2 }
   0xc   : > { %1038 = vmatprep.subr.bf16.mxu0 (!%p140_p2), %v3150_v1  ;;  %2827 = vmatprep.subr.bf16.mxu1 (!%p140_p2), %v3150_v1 }
   0xd   : > { %s4228_s16 = smov (!%p165_p3, %s2378_s16), 127 }
   0xe   : > { %s2857_s23 = smul.u32 12, %s4228_s16  ;;  %s2381_s5 = sshll.u32 %s4228_s16, 2 }
   0xf   : > { %1039 = vmatpush1.bf16.msra.mxu0 %v2869_v3  ;;  %2843 = vmatpush1.bf16.msra.mxu1 %v2869_v3  ;;  %s3558_s7 = scalar_lea.vmem %s4226_s3, %s2381_s5 }
  0x10   : > { %1040 = vmatprep.subr.bf16.mxu0 %v3150_v1  ;;  %2828 = vmatprep.subr.bf16.mxu1 %v3150_v1  ;;  %s3208_s28 = scalar_lea.vmem %s4223_s0, %s2857_s23 }
  0x11   : > { %v2885_v6 = vld [vmem:[%s3208_s28 + $0x4] ss:$12 sps:$4 sm:$0xff]   ;;  %v2883_v20 = vld [vmem:[%s3208_s28] ss:$12 sps:$4 sm:$0xff]   ;;  %v2890_v22 = vld [vmem:[%s3208_s28 + $0x1c] ss:$12 sps:$4 sm:$0xff]  }
  0x12   : > { %v2888_v8 = vld [vmem:[%s3208_s28 + $0x244] ss:$12 sps:$4 sm:$0xff]   ;;  %1066 = vmatprep.mubr.bf16.mxu0 %v2885_v6  ;;  %v2886_v21 = vld [vmem:[%s3208_s28 + $0x240] ss:$12 sps:$4 sm:$0xff]   ;;  %v2892_v23 = vld [vmem:[%s3208_s28 + $0x25c] ss:$12 sps:$4 sm:$0xff]  }
  0x13   : > { %1041 = vmatpush1.bf16.msra.mxu0 %v2870_v4  ;;  %2844 = vmatpush1.bf16.msra.mxu1 %v2870_v4  ;;  %v2894_v25 = vld [vmem:[%s3208_s28 + $0x18] ss:$12 sps:$4 sm:$0xff]   ;;  %v2896_v27 = vld [vmem:[%s3208_s28 + $0x34] ss:$12 sps:$4 sm:$0xff]   ;;  %v2900_v29 = vld [vmem:[%s3208_s28 + $0x30] ss:$12 sps:$4 sm:$0xff]  }
  0x14   : > { %1042 = vmatprep.subr.bf16.mxu0 %v3150_v1  ;;  %2829 = vmatprep.subr.bf16.mxu1 %v3150_v1  ;;  %v2895_v26 = vld [vmem:[%s3208_s28 + $0x258] ss:$12 sps:$4 sm:$0xff]   ;;  %v2898_v28 = vld [vmem:[%s3208_s28 + $0x274] ss:$12 sps:$4 sm:$0xff]   ;;  %v2901_v30 = vld [vmem:[%s3208_s28 + $0x270] ss:$12 sps:$4 sm:$0xff]  }
  0x15   : > { %1258 = vmatprep.mubr.bf16.mxu1 %v2888_v8  ;;  %v2902_v31 = vld [vmem:[%s3208_s28 + $0x4c] ss:$12 sps:$4 sm:$0xff]   ;;  %v2906_v33 = vld [vmem:[%s3208_s28 + $0x48] ss:$12 sps:$4 sm:$0xff]   ;;  %v2908_v35 = vld [vmem:[%s3208_s28 + $0x64] ss:$12 sps:$4 sm:$0xff]  }
  0x16   : > { %v2904_v32 = vld [vmem:[%s3208_s28 + $0x28c] ss:$12 sps:$4 sm:$0xff]   ;;  %v2907_v34 = vld [vmem:[%s3208_s28 + $0x288] ss:$12 sps:$4 sm:$0xff]   ;;  %v2910_v36 = vld [vmem:[%s3208_s28 + $0x2a4] ss:$12 sps:$4 sm:$0xff]  }
  0x17   : > { %1043 = vmatpush1.bf16.msra.mxu0 %v2871_v5  ;;  %2845 = vmatpush1.bf16.msra.mxu1 %v2871_v5  ;;  %v2912_v37 = vld [vmem:[%s3208_s28 + $0x60] ss:$12 sps:$4 sm:$0xff]   ;;  %v2915_v39 = vld [vmem:[%s3208_s28 + $0x7c] ss:$12 sps:$4 sm:$0xff]   ;;  %v2919_v41 = vld [vmem:[%s3208_s28 + $0x78] ss:$12 sps:$4 sm:$0xff]  }
  0x18   : > { %1044 = vmatprep.subr.bf16.mxu0 %v3150_v1  ;;  %2830 = vmatprep.subr.bf16.mxu1 %v3150_v1  ;;  %v2913_v38 = vld [vmem:[%s3208_s28 + $0x2a0] ss:$12 sps:$4 sm:$0xff]   ;;  %v2917_v40 = vld [vmem:[%s3208_s28 + $0x2bc] ss:$12 sps:$4 sm:$0xff]   ;;  %v2920_v42 = vld [vmem:[%s3208_s28 + $0x2b8] ss:$12 sps:$4 sm:$0xff]  }
  0x19   : > { %v2921_v43 = vld [vmem:[%s3208_s28 + $0x94] ss:$12 sps:$4 sm:$0xff]   ;;  %v2925_v45 = vld [vmem:[%s3208_s28 + $0x90] ss:$12 sps:$4 sm:$0xff]   ;;  %v2927_v47 = vld [vmem:[%s3208_s28 + $0xac] ss:$12 sps:$4 sm:$0xff]  }
  0x1a   : > { %v2923_v44 = vld [vmem:[%s3208_s28 + $0x2d4] ss:$12 sps:$4 sm:$0xff]   ;;  %v2926_v46 = vld [vmem:[%s3208_s28 + $0x2d0] ss:$12 sps:$4 sm:$0xff]   ;;  %v2929_v48 = vld [vmem:[%s3208_s28 + $0x2ec] ss:$12 sps:$4 sm:$0xff]  }
  0x1b   : > { %1045 = vmatpush1.bf16.msra.mxu0 %v2872_v7  ;;  %2846 = vmatpush1.bf16.msra.mxu1 %v2872_v7  ;;  %v2931_v49 = vld [vmem:[%s3208_s28 + $0xa8] ss:$12 sps:$4 sm:$0xff]   ;;  %v2933_v51 = vld [vmem:[%s3208_s28 + $0xc4] ss:$12 sps:$4 sm:$0xff]   ;;  %v2936_v53 = vld [vmem:[%s3208_s28 + $0xc0] ss:$12 sps:$4 sm:$0xff]  }
  0x1c   : > { %1046 = vmatprep.subr.bf16.mxu0 %v3150_v1  ;;  %2831 = vmatprep.subr.bf16.mxu1 %v3150_v1  ;;  %v2932_v50 = vld [vmem:[%s3208_s28 + $0x2e8] ss:$12 sps:$4 sm:$0xff]   ;;  %v2937_v54 = vld [vmem:[%s3208_s28 + $0x20] ss:$12 sps:$4 sm:$0xff]   ;;  %v2940_v56 = vld [vmem:[%s3208_s28 + $0x38] ss:$12 sps:$4 sm:$0xff]  }
  0x1d   : > { %v2935_v52 = vld [vmem:[%s3208_s28 + $0x8] ss:$12 sps:$4 sm:$0xff]   ;;  %v2941_v57 = vld [vmem:[%s3208_s28 + $0xd8] ss:$12 sps:$4 sm:$0xff]   ;;  %v2942_v58 = vld [vmem:[%s3208_s28 + $0x50] ss:$12 sps:$4 sm:$0xff]  }
  0x1e   : > { %v2938_v55 = vld [vmem:[%s3208_s28 + $0xdc] ss:$12 sps:$4 sm:$0xff]   ;;  %v2943_v59 = vld [vmem:[%s3208_s28 + $0xf4] ss:$12 sps:$4 sm:$0xff]   ;;  %v2948_v63 = vld [vmem:[%s3208_s28 + $0x10c] ss:$12 sps:$4 sm:$0xff]  }
  0x1f   : > { %1047 = vmatpush1.bf16.msra.mxu0 %v2873_v9  ;;  %2847 = vmatpush1.bf16.msra.mxu1 %v2873_v9  ;;  %v2945_v60 = vld [vmem:[%s3208_s28 + $0x68] ss:$12 sps:$4 sm:$0xff]   ;;  %v2946_v61 = vld [vmem:[%s3208_s28 + $0xf0] ss:$12 sps:$4 sm:$0xff]   ;;  %v2947_v62 = vld [vmem:[%s3208_s28 + $0x80] ss:$12 sps:$4 sm:$0xff]  }
  0x20   : > { %1048 = vmatprep.subr.bf16.mxu0 %v3150_v1  ;;  %2832 = vmatprep.subr.bf16.mxu1 %v3150_v1  ;;  %v2950_v0 = vld [vmem:[%s3208_s28 + $0x98] ss:$12 sps:$4 sm:$0xff]   ;;  %v2952_v2 = vld [vmem:[%s3208_s28 + $0xb0] ss:$12 sps:$4 sm:$0xff]   ;;  %v2955_v4 = vld [vmem:[%s3208_s28 + $0xc8] ss:$12 sps:$4 sm:$0xff]  }
  0x21   : > { %v2953_v3 = vld [vmem:[%s3208_s28 + $0x124] ss:$12 sps:$4 sm:$0xff]   ;;  %v2956_v5 = vld [vmem:[%s3208_s28 + $0x120] ss:$12 sps:$4 sm:$0xff]   ;;  %v2958_v7 = vld [vmem:[%s3208_s28 + $0x13c] ss:$12 sps:$4 sm:$0xff]  }
  0x22   : > { %v2957_v6 = vld [vmem:[%s3208_s28 + $0xe0] ss:$12 sps:$4 sm:$0xff]   ;;  %v2960_v8 = vld [vmem:[%s3208_s28 + $0xf8] ss:$12 sps:$4 sm:$0xff]  }
  0x23   : > { %1049 = vmatpush1.bf16.msra.mxu0 %v2874_v10  ;;  %2848 = vmatpush1.bf16.msra.mxu1 %v2874_v10  ;;  %v2961_v9 = vld [vmem:[%s3208_s28 + $0x138] ss:$12 sps:$4 sm:$0xff]   ;;  %v2962_v10 = vld [vmem:[%s3208_s28 + $0x110] ss:$12 sps:$4 sm:$0xff]  }
  0x24   : > { %1050 = vmatprep.subr.bf16.mxu0 %v3150_v1  ;;  %2833 = vmatprep.subr.bf16.mxu1 %v3150_v1 }
  0x27   : > { %1051 = vmatpush1.bf16.msra.mxu0 %v2875_v11  ;;  %2849 = vmatpush1.bf16.msra.mxu1 %v2875_v11  ;;  %v2963_v11 = vld [vmem:[%s3208_s28 + $0x154] ss:$12 sps:$4 sm:$0xff]  }
  0x28   : > { %1052 = vmatprep.subr.bf16.mxu0 %v3150_v1  ;;  %2834 = vmatprep.subr.bf16.mxu1 %v3150_v1 }
  0x2b   : > { %1053 = vmatpush1.bf16.msra.mxu0 %v2876_v12  ;;  %2850 = vmatpush1.bf16.msra.mxu1 %v2876_v12  ;;  %v2965_v12 = vld [vmem:[%s3208_s28 + $0x128] ss:$12 sps:$4 sm:$0xff]  }
  0x2c   : > { %1054 = vmatprep.subr.bf16.mxu0 %v3150_v1  ;;  %2835 = vmatprep.subr.bf16.mxu1 %v3150_v1 }
  0x2f   : > { %1055 = vmatpush1.bf16.msra.mxu0 %v2877_v13  ;;  %2851 = vmatpush1.bf16.msra.mxu1 %v2877_v13  ;;  %v2966_v13 = vld [vmem:[%s3208_s28 + $0x150] ss:$12 sps:$4 sm:$0xff]  }
  0x30   : > { %1056 = vmatprep.subr.bf16.mxu0 %v3150_v1  ;;  %2836 = vmatprep.subr.bf16.mxu1 %v3150_v1 }
  0x33   : > { %1057 = vmatpush1.bf16.msra.mxu0 %v2878_v14  ;;  %2852 = vmatpush1.bf16.msra.mxu1 %v2878_v14  ;;  %v2967_v14 = vld [vmem:[%s3208_s28 + $0x140] ss:$12 sps:$4 sm:$0xff]  }
  0x34   : > { %1058 = vmatprep.subr.bf16.mxu0 %v3150_v1  ;;  %2837 = vmatprep.subr.bf16.mxu1 %v3150_v1 }
  0x37   : > { %1059 = vmatpush1.bf16.msra.mxu0 %v2879_v15  ;;  %2853 = vmatpush1.bf16.msra.mxu1 %v2879_v15  ;;  %v2968_v15 = vld [vmem:[%s3208_s28 + $0x16c] ss:$12 sps:$4 sm:$0xff]  }
  0x38   : > { %1060 = vmatprep.subr.bf16.mxu0 %v3150_v1  ;;  %2838 = vmatprep.subr.bf16.mxu1 %v3150_v1 }
  0x3b   : > { %1061 = vmatpush1.bf16.msra.mxu0 %v2880_v16  ;;  %2854 = vmatpush1.bf16.msra.mxu1 %v2880_v16  ;;  %v2970_v16 = vld [vmem:[%s3208_s28 + $0x158] ss:$12 sps:$4 sm:$0xff]  }
  0x3c   : > { %1062 = vmatprep.subr.bf16.mxu0 %v3150_v1  ;;  %2839 = vmatprep.subr.bf16.mxu1 %v3150_v1 }
  0x3f   : > { %1063 = vmatpush1.bf16.msra.mxu0 %v2881_v17  ;;  %2855 = vmatpush1.bf16.msra.mxu1 %v2881_v17  ;;  %v2971_v17 = vld [vmem:[%s3208_s28 + $0x168] ss:$12 sps:$4 sm:$0xff]  }
  0x40   : > { %1064 = vmatprep.subr.bf16.mxu0 %v3150_v1  ;;  %2840 = vmatprep.subr.bf16.mxu1 %v3150_v1  ;;  %v2951_v1 = vld [vmem:[%s3208_s28 + $0x108] ss:$12 sps:$4 sm:$0xff]  }
  0x43   : > { %1065 = vmatpush1.bf16.msra.mxu0 %v2882_v18  ;;  %2856 = vmatpush1.bf16.msra.mxu1 %v2882_v18  ;;  %v2972_v18 = vld [vmem:[%s3208_s28 + $0x170] ss:$12 sps:$4 sm:$0xff]  }
  0x44   : > { %2757 = vmatprep.subr.bf16.mxu1 %v2889_v19 }
  0x46   : > { %1067 = vmatmul.mubr.bf16.vlgmr.msra.gmra.mrb[0].mxu0 %v2883_v20  ;;  %1259 = vmatmul.mubr.bf16.vlgmr.msra.gmra.mrb[0].mxu1 %v2886_v21  ;;  %v2975_v20 = vld [vmem:[%s3208_s28 + $0x188] ss:$12 sps:$4 sm:$0xff]   ;;  %v2976_v21 = vld [vmem:[%s3208_s28 + $0x180] ss:$12 sps:$4 sm:$0xff]  }
  0x47   : > { %2758 = vmatpush3.bf16.msra.mxu1 %v2889_v19  ;;  %1074 = vmatprep.mubr.bf16.mxu0 %v2890_v22  ;;  %v2973_v19 = vld [vmem:[%s3208_s28 + $0x184] ss:$12 sps:$4 sm:$0xff]   ;;  %v2977_v22 = vld [vmem:[%s3208_s28 + $0x1a0] ss:$12 sps:$4 sm:$0xff]  }
  0x48   : > { %1266 = vmatprep.mubr.bf16.mxu1 %v2892_v23  ;;  %2759 = vmatprep.subr.bf16.mxu1 %v2914_v24  ;;  %v2978_v23 = vld [vmem:[%s3208_s28 + $0x19c] ss:$12 sps:$4 sm:$0xff]  }
  0x4b   : > { %2760 = vmatpush3.bf16.msra.mxu1 %v2914_v24  ;;  %v2980_v24 = vld [vmem:[%s3208_s28 + $0x1b8] ss:$12 sps:$4 sm:$0xff]  }
  0x4e   : > { %1075 = vmatmul.mubr.bf16.gmra.mrb[4].mxu0 %v2894_v25  ;;  %1267 = vmatmul.mubr.bf16.gmra.mrb[4].mxu1 %v2895_v26  ;;  %v2981_v25 = vld [vmem:[%s3208_s28 + $0x198] ss:$12 sps:$4 sm:$0xff]   ;;  %v2982_v26 = vld [vmem:[%s3208_s28 + $0x1d0] ss:$12 sps:$4 sm:$0xff]  }
  0x4f   : > { %1082 = vmatprep.mubr.bf16.mxu0 %v2896_v27  ;;  %1274 = vmatprep.mubr.bf16.mxu1 %v2898_v28  ;;  %v2983_v27 = vld [vmem:[%s3208_s28 + $0x1b4] ss:$12 sps:$4 sm:$0xff]  }
  0x50   : > { %v2985_v28 = vld [vmem:[%s3208_s28 + $0x1e8] ss:$12 sps:$4 sm:$0xff]  }
  0x56   : > { %1083 = vmatmul.mubr.bf16.gmra.mrb[8].mxu0 %v2900_v29  ;;  %1275 = vmatmul.mubr.bf16.gmra.mrb[8].mxu1 %v2901_v30  ;;  %v2986_v29 = vld [vmem:[%s3208_s28 + $0x1b0] ss:$12 sps:$4 sm:$0xff]   ;;  %v2987_v30 = vld [vmem:[%s3208_s28 + $0x200] ss:$12 sps:$4 sm:$0xff]  }
  0x57   : > { %1090 = vmatprep.mubr.bf16.mxu0 %v2902_v31  ;;  %1282 = vmatprep.mubr.bf16.mxu1 %v2904_v32  ;;  %v2988_v31 = vld [vmem:[%s3208_s28 + $0x1cc] ss:$12 sps:$4 sm:$0xff]  }
  0x58   : > { %v2990_v32 = vld [vmem:[%s3208_s28 + $0x218] ss:$12 sps:$4 sm:$0xff]  }
  0x5e   : > { %1091 = vmatmul.mubr.bf16.gmra.mrb[12].mxu0 %v2906_v33  ;;  %1283 = vmatmul.mubr.bf16.gmra.mrb[12].mxu1 %v2907_v34  ;;  %v2991_v33 = vld [vmem:[%s3208_s28 + $0x1c8] ss:$12 sps:$4 sm:$0xff]   ;;  %v2992_v34 = vld [vmem:[%s3208_s28 + $0x230] ss:$12 sps:$4 sm:$0xff]  }
  0x5f   : > { %1098 = vmatprep.mubr.bf16.mxu0 %v2908_v35  ;;  %1290 = vmatprep.mubr.bf16.mxu1 %v2910_v36  ;;  %v2993_v35 = vld [vmem:[%s3208_s28 + $0x1e4] ss:$12 sps:$4 sm:$0xff]   ;;  %v2995_v36 = vld [vmem:[%s3208_s28 + $0x248] ss:$12 sps:$4 sm:$0xff]  }
  0x66   : > { %1099 = vmatmul.mubr.bf16.gmra.mrb[16].mxu0 %v2912_v37  ;;  %1291 = vmatmul.mubr.bf16.gmra.mrb[16].mxu1 %v2913_v38  ;;  %v2996_v37 = vld [vmem:[%s3208_s28 + $0x1e0] ss:$12 sps:$4 sm:$0xff]  }
  0x67   : > { %1106 = vmatprep.mubr.bf16.mxu0 %v2915_v39  ;;  %1298 = vmatprep.mubr.bf16.mxu1 %v2917_v40  ;;  %v2997_v38 = vld [vmem:[%s3208_s28 + $0x260] ss:$12 sps:$4 sm:$0xff]   ;;  %v2998_v39 = vld [vmem:[%s3208_s28 + $0x1fc] ss:$12 sps:$4 sm:$0xff]   ;;  %v3000_v40 = vld [vmem:[%s3208_s28 + $0x278] ss:$12 sps:$4 sm:$0xff]  }
  0x6e   : > { %1107 = vmatmul.mubr.bf16.gmra.mrb[20].mxu0 %v2919_v41  ;;  %1299 = vmatmul.mubr.bf16.gmra.mrb[20].mxu1 %v2920_v42  ;;  %v3001_v41 = vld [vmem:[%s3208_s28 + $0x1f8] ss:$12 sps:$4 sm:$0xff]   ;;  %v3002_v42 = vld [vmem:[%s3208_s28 + $0x290] ss:$12 sps:$4 sm:$0xff]  }
  0x6f   : > { %1114 = vmatprep.mubr.bf16.mxu0 %v2921_v43  ;;  %1306 = vmatprep.mubr.bf16.mxu1 %v2923_v44  ;;  %v3003_v43 = vld [vmem:[%s3208_s28 + $0x214] ss:$12 sps:$4 sm:$0xff]  }
  0x70   : > { %v3005_v44 = vld [vmem:[%s3208_s28 + $0x2a8] ss:$12 sps:$4 sm:$0xff]  }
  0x76   : > { %1115 = vmatmul.mubr.bf16.gmra.mrb[24].mxu0 %v2925_v45  ;;  %1307 = vmatmul.mubr.bf16.gmra.mrb[24].mxu1 %v2926_v46  ;;  %v3006_v45 = vld [vmem:[%s3208_s28 + $0x210] ss:$12 sps:$4 sm:$0xff]   ;;  %v3007_v46 = vld [vmem:[%s3208_s28 + $0x2c0] ss:$12 sps:$4 sm:$0xff]  }
  0x77   : > { %1122 = vmatprep.mubr.bf16.mxu0 %v2927_v47  ;;  %1314 = vmatprep.mubr.bf16.mxu1 %v2929_v48  ;;  %v3008_v47 = vld [vmem:[%s3208_s28 + $0x22c] ss:$12 sps:$4 sm:$0xff]  }
  0x78   : > { %v3010_v48 = vld [vmem:[%s3208_s28 + $0x2d8] ss:$12 sps:$4 sm:$0xff]  }
  0x7e   : > { %1123 = vmatmul.mubr.bf16.gmra.mrb[28].mxu0 %v2931_v49  ;;  %1315 = vmatmul.mubr.bf16.gmra.mrb[28].mxu1 %v2932_v50  ;;  %v3011_v49 = vld [vmem:[%s3208_s28 + $0x228] ss:$12 sps:$4 sm:$0xff]   ;;  %v3012_v50 = vld [vmem:[%s3208_s28 + $0x2f0] ss:$12 sps:$4 sm:$0xff]  }
  0x7f   : > { %1130 = vmatprep.mubr.bf16.mxu0 %v2933_v51  ;;  %2761 = vmatprep.mubr.msk.bf16.mxu1 %vm937_vm0, %v2935_v52 }
  0x86   : > { %1131 = vmatmul.mubr.bf16.gmra.mrb[32].mxu0 %v2936_v53  ;;  %2762 = vmatmul.mubr.msk.bf16.vlgmr.msra.gmra.mrb[32].mxu1 %vm937_vm0, %v2937_v54 }
  0x87   : > { %1138 = vmatprep.mubr.bf16.mxu0 %v2938_v55  ;;  %2765 = vmatprep.mubr.msk.bf16.mxu1 %vm937_vm0, %v2940_v56 }
  0x8e   : > { %1139 = vmatmul.mubr.bf16.gmra.mrb[36].mxu0 %v2941_v57  ;;  %2766 = vmatmul.mubr.msk.bf16.gmra.mrb[36].mxu1 %vm937_vm0, %v2942_v58 }
  0x8f   : > { %1146 = vmatprep.mubr.bf16.mxu0 %v2943_v59  ;;  %2769 = vmatprep.mubr.msk.bf16.mxu1 %vm937_vm0, %v2945_v60 }
  0x96   : > { %1147 = vmatmul.mubr.bf16.gmra.mrb[40].mxu0 %v2946_v61  ;;  %2770 = vmatmul.mubr.msk.bf16.gmra.mrb[40].mxu1 %vm937_vm0, %v2947_v62 }
  0x97   : > { %1154 = vmatprep.mubr.bf16.mxu0 %v2948_v63  ;;  %2773 = vmatprep.mubr.msk.bf16.mxu1 %vm937_vm0, %v2950_v0 }
  0x9e   : > { %1155 = vmatmul.mubr.bf16.gmra.mrb[44].mxu0 %v2951_v1  ;;  %2774 = vmatmul.mubr.msk.bf16.gmra.mrb[44].mxu1 %vm937_vm0, %v2952_v2 }
  0x9f   : > { %1162 = vmatprep.mubr.bf16.mxu0 %v2953_v3  ;;  %2777 = vmatprep.mubr.msk.bf16.mxu1 %vm937_vm0, %v2955_v4 }
  0xa6   : > { %1163 = vmatmul.mubr.bf16.gmra.mrb[48].mxu0 %v2956_v5  ;;  %2778 = vmatmul.mubr.msk.bf16.gmra.mrb[48].mxu1 %vm937_vm0, %v2957_v6 }
  0xa7   : > { %1170 = vmatprep.mubr.bf16.mxu0 %v2958_v7  ;;  %2781 = vmatprep.mubr.msk.bf16.mxu1 %vm937_vm0, %v2960_v8 }
  0xae   : > { %1171 = vmatmul.mubr.bf16.gmra.mrb[52].mxu0 %v2961_v9  ;;  %2782 = vmatmul.mubr.msk.bf16.gmra.mrb[52].mxu1 %vm937_vm0, %v2962_v10 }
  0xaf   : > { %1178 = vmatprep.mubr.bf16.mxu0 %v2963_v11  ;;  %2785 = vmatprep.mubr.msk.bf16.mxu1 %vm937_vm0, %v2965_v12 }
  0xb6   : > { %1179 = vmatmul.mubr.bf16.gmra.mrb[56].mxu0 %v2966_v13  ;;  %2786 = vmatmul.mubr.msk.bf16.gmra.mrb[56].mxu1 %vm937_vm0, %v2967_v14 }
  0xb7   : > { %1186 = vmatprep.mubr.bf16.mxu0 %v2968_v15  ;;  %2789 = vmatprep.mubr.msk.bf16.mxu1 %vm937_vm0, %v2970_v16 }
  0xbe   : > { %1187 = vmatmul.mubr.bf16.gmra.mrb[60].mxu0 %v2971_v17  ;;  %2790 = vmatmul.mubr.msk.bf16.gmra.mrb[60].mxu1 %vm937_vm0, %v2972_v18 }
  0xbf   : > { %1194 = vmatprep.mubr.bf16.mxu0 %v2973_v19  ;;  %2793 = vmatprep.mubr.msk.bf16.mxu1 %vm937_vm0, %v2975_v20 }
  0xc6   : > { %1195 = vmatmul.mubr.bf16.gmra.mrb[64].mxu0 %v2976_v21  ;;  %2794 = vmatmul.mubr.msk.bf16.gmra.mrb[64].mxu1 %vm937_vm0, %v2977_v22 }
  0xc7   : > { %1202 = vmatprep.mubr.bf16.mxu0 %v2978_v23  ;;  %2797 = vmatprep.mubr.msk.bf16.mxu1 %vm937_vm0, %v2980_v24 }
  0xce   : > { %1203 = vmatmul.mubr.bf16.gmra.mrb[68].mxu0 %v2981_v25  ;;  %2798 = vmatmul.mubr.msk.bf16.gmra.mrb[68].mxu1 %vm937_vm0, %v2982_v26 }
  0xcf   : > { %1210 = vmatprep.mubr.bf16.mxu0 %v2983_v27  ;;  %2801 = vmatprep.mubr.msk.bf16.mxu1 %vm937_vm0, %v2985_v28 }
  0xd6   : > { %1211 = vmatmul.mubr.bf16.gmra.mrb[72].mxu0 %v2986_v29  ;;  %2802 = vmatmul.mubr.msk.bf16.gmra.mrb[72].mxu1 %vm937_vm0, %v2987_v30 }
  0xd7   : > { %1218 = vmatprep.mubr.bf16.mxu0 %v2988_v31  ;;  %2805 = vmatprep.mubr.msk.bf16.mxu1 %vm937_vm0, %v2990_v32 }
  0xde   : > { %1219 = vmatmul.mubr.bf16.gmra.mrb[76].mxu0 %v2991_v33  ;;  %2806 = vmatmul.mubr.msk.bf16.gmra.mrb[76].mxu1 %vm937_vm0, %v2992_v34 }
  0xdf   : > { %1226 = vmatprep.mubr.bf16.mxu0 %v2993_v35  ;;  %2809 = vmatprep.mubr.msk.bf16.mxu1 %vm937_vm0, %v2995_v36 }
  0xe6   : > { %1227 = vmatmul.mubr.bf16.gmra.mrb[80].mxu0 %v2996_v37  ;;  %2810 = vmatmul.mubr.msk.bf16.gmra.mrb[80].mxu1 %vm937_vm0, %v2997_v38 }
  0xe7   : > { %1234 = vmatprep.mubr.bf16.mxu0 %v2998_v39  ;;  %2813 = vmatprep.mubr.msk.bf16.mxu1 %vm937_vm0, %v3000_v40 }
  0xee   : > { %1235 = vmatmul.mubr.bf16.gmra.mrb[84].mxu0 %v3001_v41  ;;  %2814 = vmatmul.mubr.msk.bf16.gmra.mrb[84].mxu1 %vm937_vm0, %v3002_v42 }
  0xef   : > { %1242 = vmatprep.mubr.bf16.mxu0 %v3003_v43  ;;  %2817 = vmatprep.mubr.msk.bf16.mxu1 %vm937_vm0, %v3005_v44 }
  0xf6   : > { %1243 = vmatmul.mubr.bf16.gmra.mrb[88].mxu0 %v3006_v45  ;;  %2818 = vmatmul.mubr.msk.bf16.gmra.mrb[88].mxu1 %vm937_vm0, %v3007_v46 }
  0xf7   : > { %1250 = vmatprep.mubr.bf16.mxu0 %v3008_v47  ;;  %2821 = vmatprep.mubr.msk.bf16.mxu1 %vm937_vm0, %v3010_v48 }
  0xfe   : > { %1251 = vmatmul.mubr.bf16.gmra.mrb[92].mxu0 %v3011_v49  ;;  %2822 = vmatmul.mubr.msk.bf16.gmra.mrb[92].mxu1 %vm937_vm0, %v3012_v50 }
 0x119   : > { %v3401_v51 = vpop.f32.mrb[0].mxu0  ;;  %v3403_v52 = vpop.f32.mrb[0].mxu1 }
 0x11a   : > { %v1070_v53 = vpop.f32.mrb[1].mxu0  ;;  %v1262_v54 = vpop.f32.mrb[1].mxu1 }
 0x11b   : > { %v3405_v55 = vpop.f32.mrb[2].mxu0  ;;  %v3407_v56 = vpop.f32.mrb[2].mxu1  ;;  %v3464_v53 = vld [vmem:[%s4225_s2] ss:$0 sm:$0xff] }
 0x11c   : > { %v1073_v57 = vpop.f32.mrb[3].mxu0  ;;  %v1265_v58 = vpop.f32.mrb[3].mxu1 }
 0x11d   : > { %v1069_v57 = vadd.f32 %v3464_v53, %v3401_v51 }
 0x121   : > { %v1076_v59 = vpop.f32.mrb[4].mxu0  ;;  %v3409_v60 = vpop.f32.mrb[4].mxu1 }
 0x122   : > { %v1078_v61 = vpop.f32.mrb[5].mxu0  ;;  %v1270_v62 = vpop.f32.mrb[5].mxu1  ;;  %v1077_v54 = vadd.f32 %v3464_v53, %v1076_v59 }
 0x123   : > { %v1079_v63 = vpop.f32.mrb[6].mxu0  ;;  %v3411_v0 = vpop.f32.mrb[6].mxu1 }
 0x124   : > { %v1081_v1 = vpop.f32.mrb[7].mxu0  ;;  %v1273_v2 = vpop.f32.mrb[7].mxu1  ;;  %v1080_v62 = vadd.f32 %v3464_v53, %v1079_v63 }
 0x129   : > { %v3413_v3 = vpop.f32.mrb[8].mxu0  ;;  %v3415_v4 = vpop.f32.mrb[8].mxu1 }
 0x12a   : > { %v1086_v5 = vpop.f32.mrb[9].mxu0  ;;  %v1278_v6 = vpop.f32.mrb[9].mxu1 }
 0x12b   : > { %v3417_v7 = vpop.f32.mrb[10].mxu0  ;;  %v3419_v8 = vpop.f32.mrb[10].mxu1  ;;  %v1072_v6 = vadd.f32 %v3464_v53, %v3405_v55 }
 0x12c   : > { %v1089_v9 = vpop.f32.mrb[11].mxu0  ;;  %v1281_v10 = vpop.f32.mrb[11].mxu1 }
 0x131   : > { %v3421_v11 = vpop.f32.mrb[12].mxu0  ;;  %v3423_v12 = vpop.f32.mrb[12].mxu1 }
 0x132   : > { %v1094_v13 = vpop.f32.mrb[13].mxu0  ;;  %v1286_v14 = vpop.f32.mrb[13].mxu1 }
 0x133   : > { %v3425_v15 = vpop.f32.mrb[14].mxu0  ;;  %v3427_v16 = vpop.f32.mrb[14].mxu1 }
 0x134   : > { %v1097_v17 = vpop.f32.mrb[15].mxu0  ;;  %v1289_v18 = vpop.f32.mrb[15].mxu1 }
 0x139   : > { %v3429_v19 = vpop.f32.mrb[16].mxu0  ;;  %v3431_v20 = vpop.f32.mrb[16].mxu1 }
 0x13a   : > { %v1102_v21 = vpop.f32.mrb[17].mxu0  ;;  %v1294_v22 = vpop.f32.mrb[17].mxu1 }
 0x13b   : > { %v3433_v23 = vpop.f32.mrb[18].mxu0  ;;  %v3435_v24 = vpop.f32.mrb[18].mxu1 }
 0x13c   : > { %v1105_v25 = vpop.f32.mrb[19].mxu0  ;;  %v1297_v26 = vpop.f32.mrb[19].mxu1 }
 0x13d   : > { %v1093_v26 = vadd.f32 %v3464_v53, %v3421_v11  ;;  %v1088_v11 = vadd.f32 %v3464_v53, %v3417_v7  ;;  %v1101_v7 = vadd.f32 %v3464_v53, %v3429_v19 }
 0x141   : > { %v3437_v27 = vpop.f32.mrb[20].mxu0  ;;  %v3439_v28 = vpop.f32.mrb[20].mxu1 }
 0x142   : > { %v1110_v29 = vpop.f32.mrb[21].mxu0  ;;  %v1302_v30 = vpop.f32.mrb[21].mxu1 }
 0x143   : > { %v3441_v31 = vpop.f32.mrb[22].mxu0  ;;  %v3443_v32 = vpop.f32.mrb[22].mxu1  ;;  %v1085_v30 = vadd.f32 %v3464_v53, %v3413_v3 }
 0x144   : > { %v1113_v33 = vpop.f32.mrb[23].mxu0  ;;  %v1305_v34 = vpop.f32.mrb[23].mxu1 }
 0x149   : > { %v3445_v35 = vpop.f32.mrb[24].mxu0  ;;  %v3447_v36 = vpop.f32.mrb[24].mxu1 }
 0x14a   : > { %v1118_v37 = vpop.f32.mrb[25].mxu0  ;;  %v1310_v38 = vpop.f32.mrb[25].mxu1 }
 0x14b   : > { %v3449_v39 = vpop.f32.mrb[26].mxu0  ;;  %v3451_v40 = vpop.f32.mrb[26].mxu1  ;;  %v1096_v38 = vadd.f32 %v3464_v53, %v3425_v15 }
 0x14c   : > { %v1121_v41 = vpop.f32.mrb[27].mxu0  ;;  %v1313_v42 = vpop.f32.mrb[27].mxu1  ;;  %v3526_v19 = vadd.f32 %v3464_v53, %v3449_v39 }
 0x151   : > { %v3453_v43 = vpop.f32.mrb[28].mxu0  ;;  %v3455_v44 = vpop.f32.mrb[28].mxu1 }
 0x152   : > { %v1126_v45 = vpop.f32.mrb[29].mxu0  ;;  %v1318_v46 = vpop.f32.mrb[29].mxu1 }
 0x153   : > { %v3457_v47 = vpop.f32.mrb[30].mxu0  ;;  %v3459_v48 = vpop.f32.mrb[30].mxu1 }
 0x154   : > { %v1129_v49 = vpop.f32.mrb[31].mxu0  ;;  %v1321_v50 = vpop.f32.mrb[31].mxu1 }
 0x159   : > { %v3469_v58 = vpop.f32.mrb[32].mxu0  ;;  %v2763_v61 = vpop.f32.mrb[32].mxu1 }
 0x15a   : > { %v3472_v1 = vadd.f32 %v2763_v61, %v1077_v54  ;;  %v1134_v2 = vpop.f32.mrb[33].mxu0  ;;  %v1357_v5 = vpop.f32.mrb[33].mxu1 }
 0x15b   : > { %v3476_v9 = vadd.f32 %v1357_v5, %v1069_v57  ;;  %v3478_v10 = vpop.f32.mrb[34].mxu0  ;;  %v2764_v59 = vpop.f32.mrb[34].mxu1  ;;  %v1104_v2 = vadd.f32 %v3464_v53, %v3433_v23 }
 0x15c   : > { %v1678_v13 = vmin.f32 %v3472_v1, 0.0  ;;  %v3481_v51 = vadd.f32 %v2764_v59, %v1080_v62  ;;  %v1137_v14 = vpop.f32.mrb[35].mxu0  ;;  %v1360_v17 = vpop.f32.mrb[35].mxu1  ;;  %v1109_v59 = vadd.f32 %v3464_v53, %v3437_v27  ;;  %v1125_v27 = vadd.f32 %v3464_v53, %v3453_v43 }
 0x15d   : > { %v1676_v63 = vmin.f32 %v3476_v9, 0.0  ;;  %v3484_v18 = vadd.f32 %v1360_v17, %v1072_v6  ;;  %vm1614_vm2 = vcmp.gt.f32.partialorder %v3472_v1, 0.0  ;;  %vm1612_vm3 = vcmp.gt.f32.partialorder %v3476_v9, 0.0 }
 0x15e   : > { %v1744_v21 = vmul.f32 1.442695, %v1678_v13  ;;  %v1679_v22 = vmin.f32 %v3481_v51, 0.0  ;;  %v1112_v13 = vadd.f32 %v3464_v53, %v3441_v31  ;;  %vm1615_vm4 = vcmp.gt.f32.partialorder %v3481_v51, 0.0 }
 0x15f   : > { %v1740_v25 = vmul.f32 1.442695, %v1676_v63  ;;  %v1677_v55 = vmin.f32 %v3484_v18, 0.0  ;;  %v3522_v63 = vadd.f32 %v3464_v53, %v3445_v35  ;;  %vm1613_vm5 = vcmp.gt.f32.partialorder %v3484_v18, 0.0 }
 0x160   : > { %3013 = vpow2.f32 %v1744_v21  ;;  %v1746_v29 = vmul.f32 1.442695, %v1679_v22  ;;  %v3532_v21 = vadd.f32 %v3464_v53, %v3457_v47 }
 0x161   : > { %3015 = vpow2.f32 %v1740_v25  ;;  %v1742_v33 = vmul.f32 1.442695, %v1677_v55  ;;  %v3492_v34 = vpop.f32.mrb[36].mxu0  ;;  %v2767_v37 = vpop.f32.mrb[36].mxu1  ;;  %v3538_v55 = vadd.f32 %v3464_v53, %v3469_v58 }
 0x162   : > { %3017 = vpow2.f32 %v1746_v29  ;;  %v3496_v41 = vadd.f32 %v2767_v37, %v1093_v26  ;;  %v1142_v42 = vpop.f32.mrb[37].mxu0  ;;  %v1373_v45 = vpop.f32.mrb[37].mxu1 }
 0x163   : > { %3019 = vpow2.f32 %v1742_v33  ;;  %v3500_v46 = vadd.f32 %v1373_v45, %v1085_v30  ;;  %v3502_v3 = vpop.f32.mrb[38].mxu0  ;;  %v2768_v49 = vpop.f32.mrb[38].mxu1  ;;  %v3546_v30 = vadd.f32 %v3464_v53, %v3478_v10 }
 0x164   : > { %v1682_v50 = vmin.f32 %v3496_v41, 0.0  ;;  %v3505_v54 = vadd.f32 %v2768_v49, %v1096_v38  ;;  %v1145_v57 = vpop.f32.mrb[39].mxu0  ;;  %v1376_v15 = vpop.f32.mrb[39].mxu1  ;;  %vm1618_vm6 = vcmp.gt.f32.partialorder %v3496_v41, 0.0 }
 0x165   : > { %v1680_v61 = vmin.f32 %v3500_v46, 0.0  ;;  %v3508_v62 = vadd.f32 %v1376_v15, %v1088_v11  ;;  %vm1616_vm7 = vcmp.gt.f32.partialorder %v3500_v46, 0.0 }
 0x166   : > { %v1752_v5 = vmul.f32 1.442695, %v1682_v50  ;;  %v1683_v6 = vmin.f32 %v3505_v54, 0.0  ;;  %vm1619_vm8 = vcmp.gt.f32.partialorder %v3505_v54, 0.0 }
 0x167   : > { %v1748_v14 = vmul.f32 1.442695, %v1680_v61  ;;  %v1681_v17 = vmin.f32 %v3508_v62, 0.0  ;;  %vm1617_vm9 = vcmp.gt.f32.partialorder %v3508_v62, 0.0 }
 0x168   : > { %3021 = vpow2.f32 %v1752_v5  ;;  %v1754_v23 = vmul.f32 1.442695, %v1683_v6 }
 0x169   : > { %3023 = vpow2.f32 %v1748_v14  ;;  %v1750_v31 = vmul.f32 1.442695, %v1681_v17  ;;  %v3534_v22 = vpop.f32.mrb[40].mxu0  ;;  %v2771_v25 = vpop.f32.mrb[40].mxu1 }
 0x16a   : > { %v3014_v35 = vpop.eup %3013  ;;  %3025 = vpow2.f32 %v1754_v23  ;;  %v3542_v39 = vadd.f32 %v2771_v25, %v1109_v59  ;;  %v1150_v43 = vpop.f32.mrb[41].mxu0 }
 0x16b   : > { %v1389_v26 = vpop.f32.mrb[41].mxu1  ;;  %v3016_v47 = vpop.eup %3015  ;;  %v2531_v29 = vadd.f32 -1.0, %v3014_v35  ;;  %3027 = vpow2.f32 %v1750_v31  ;;  %v1141_v35 = vadd.f32 %v3464_v53, %v3492_v34 }
 0x16c   : > { %v3548_v33 = vadd.f32 %v1389_v26, %v1101_v7  ;;  %v3550_v37 = vpop.f32.mrb[42].mxu0  ;;  %v2772_v58 = vpop.f32.mrb[42].mxu1  ;;  %v2529_v42 = vadd.f32 -1.0, %v3016_v47  ;;  %v1686_v45 = vmin.f32 %v3542_v39, 0.0  ;;  %vm1622_vm10 = vcmp.gt.f32.partialorder %v3542_v39, 0.0 }
 0x16d   : > { %v3018_v38 = vpop.eup %3017  ;;  %v1153_v11 = vpop.f32.mrb[43].mxu0  ;;  %v1934_v10 = vsel %vm1614_vm2, %v3472_v1, %v2531_v29  ;;  %v3567_v23 = vadd.f32 %v2772_v58, %v1112_v13 }
 0x16e   : > { %v1392_v49 = vpop.f32.mrb[43].mxu1  ;;  %v3020_v50 = vpop.eup %3019  ;;  %v2532_v57 = vadd.f32 -1.0, %v3018_v38  ;;  %v1684_v15 = vmin.f32 %v3548_v33, 0.0  ;;  %v2661_v61 = vpack.c.bf16 %v1934_v10, %v1934_v10  ;;  %v1932_v7 = vsel %vm1612_vm3, %v3476_v9, %v2529_v42 }
 0x16f   : > { %v2530_v5 = vadd.f32 -1.0, %v3020_v50  ;;  %v1760_v6 = vmul.f32 1.442695, %v1686_v45  ;;  %v2659_v59 = vpack.c.bf16 %v1932_v7, %v1932_v7  ;;  %v3572_v25 = vadd.f32 %v1392_v49, %v1104_v2 }
 0x170   : > { %v1935_v14 = vsel %vm1615_vm4, %v3481_v51, %v2532_v57  ;;  %v1756_v17 = vmul.f32 1.442695, %v1684_v15  ;;  %2255 = vst.msk [vmem:[%s3558_s7 + $0x8] sm:$0xf] %vm2252_vm1, %v2661_v61  ;;  %v1687_v51 = vmin.f32 %v3567_v23, 0.0  ;;  %vm1620_vm11 = vcmp.gt.f32.partialorder %v3548_v33, 0.0 }
 0x171   : > { %v2662_v1 = vpack.c.bf16 %v1935_v14, %v1935_v14  ;;  %v1933_v31 = vsel %vm1613_vm5, %v3484_v18, %v2530_v5  ;;  %3029 = vpow2.f32 %v1760_v6  ;;  %2253 = vst.msk [vmem:[%s3558_s7] sm:$0xf] %vm2252_vm1, %v2659_v59  ;;  %v3579_v13 = vpop.f32.mrb[44].mxu0  ;;  %v2775_v43 = vpop.f32.mrb[44].mxu1  ;;  %v3586_v18 = vadd.f32 %v3464_v53, %v3502_v3 }
 0x172   : > { %v2660_v9 = vpack.c.bf16 %v1933_v31, %v1933_v31  ;;  %3031 = vpow2.f32 %v1756_v17  ;;  %v3022_v26 = vpop.eup %3021  ;;  %v1685_v2 = vmin.f32 %v3572_v25, 0.0  ;;  %v3589_v47 = vadd.f32 %v2775_v43, %v1125_v27  ;;  %v1158_v34 = vpop.f32.mrb[45].mxu0 }
 0x173   : > { %2256 = vst.msk [vmem:[%s3558_s7 + $0xc] sm:$0xf] %vm2252_vm1, %v2662_v1  ;;  %v1405_v29 = vpop.f32.mrb[45].mxu1  ;;  %v3024_v58 = vpop.eup %3023  ;;  %v2535_v38 = vadd.f32 -1.0, %v3022_v26  ;;  %v1762_v42 = vmul.f32 1.442695, %v1687_v51  ;;  %v3615_v51 = vadd.f32 %v3464_v53, %v3534_v22 }
 0x174   : > { %2254 = vst.msk [vmem:[%s3558_s7 + $0x4] sm:$0xf] %vm2252_vm1, %v2660_v9  ;;  %v3595_v45 = vadd.f32 %v1405_v29, %v3522_v63  ;;  %v3597_v11 = vpop.f32.mrb[46].mxu0  ;;  %v2776_v3 = vpop.f32.mrb[46].mxu1  ;;  %v2533_v50 = vadd.f32 -1.0, %v3024_v58  ;;  %v1690_v10 = vmin.f32 %v3589_v47, 0.0 }
 0x175   : > { %v3026_v49 = vpop.eup %3025  ;;  %v1758_v27 = vmul.f32 1.442695, %v1685_v2  ;;  %v1161_v57 = vpop.f32.mrb[47].mxu0  ;;  %v1938_v61 = vsel %vm1618_vm6, %v3496_v41, %v2535_v38  ;;  %3033 = vpow2.f32 %v1762_v42  ;;  %vm1623_vm12 = vcmp.gt.f32.partialorder %v3567_v23, 0.0 }
 0x176   : > { %v3028_v15 = vpop.eup %3027  ;;  %v2536_v7 = vadd.f32 -1.0, %v3026_v49  ;;  %v1408_v63 = vpop.f32.mrb[47].mxu1  ;;  %v2665_v5 = vpack.c.bf16 %v1938_v61, %v1938_v61  ;;  %v1936_v6 = vsel %vm1616_vm7, %v3500_v46, %v2533_v50  ;;  %v1768_v1 = vmul.f32 1.442695, %v1690_v10 }
 0x177   : > { %v2534_v59 = vadd.f32 -1.0, %v3028_v15  ;;  %3035 = vpow2.f32 %v1758_v27  ;;  %v2663_v14 = vpack.c.bf16 %v1936_v6, %v1936_v6  ;;  %v1688_v41 = vmin.f32 %v3595_v45, 0.0 }
 0x178   : > { %v1939_v17 = vsel %vm1619_vm8, %v3505_v54, %v2536_v7  ;;  %2259 = vst.msk [vmem:[%s3558_s7 + $0x18] sm:$0xf] %vm2252_vm1, %v2665_v5  ;;  %v3618_v46 = vadd.f32 %v2776_v3, %v3532_v21  ;;  %3037 = vpow2.f32 %v1768_v1  ;;  %v3623_v26 = vadd.f32 %v1408_v63, %v3526_v19 }
 0x179   : > { %v2666_v31 = vpack.c.bf16 %v1939_v17, %v1939_v17  ;;  %v1937_v9 = vsel %vm1617_vm9, %v3508_v62, %v2534_v59  ;;  %2257 = vst.msk [vmem:[%s3558_s7 + $0x10] sm:$0xf] %vm2252_vm1, %v2663_v14  ;;  %v1764_v43 = vmul.f32 1.442695, %v1688_v41  ;;  %v3625_v2 = vpop.f32.mrb[48].mxu0  ;;  %v2779_v34 = vpop.f32.mrb[48].mxu1  ;;  %v3632_v21 = vadd.f32 %v3464_v53, %v3550_v37 }
 0x17a   : > { %v2664_v54 = vpack.c.bf16 %v1937_v9, %v1937_v9  ;;  %v1691_v22 = vmin.f32 %v3618_v46, 0.0  ;;  %v3635_v29 = vadd.f32 %v2779_v34, %v1141_v35  ;;  %v1166_v58 = vpop.f32.mrb[49].mxu0  ;;  %v1421_v38 = vpop.f32.mrb[49].mxu1  ;;  %v1689_v3 = vmin.f32 %v3623_v26, 0.0 }
 0x17b   : > { %v3030_v62 = vpop.eup %3029  ;;  %2260 = vst.msk [vmem:[%s3558_s7 + $0x1c] sm:$0xf] %vm2252_vm1, %v2666_v31  ;;  %3039 = vpow2.f32 %v1764_v43  ;;  %v3641_v49 = vpop.f32.mrb[50].mxu0  ;;  %vm1621_vm13 = vcmp.gt.f32.partialorder %v3572_v25, 0.0  ;;  %v3650_v61 = vadd.f32 %v1421_v38, %v3538_v55  ;;  %vm1626_vm14 = vcmp.gt.f32.partialorder %v3589_v47, 0.0 }
 0x17c   : > { %v3032_v19 = vpop.eup %3031  ;;  %2258 = vst.msk [vmem:[%s3558_s7 + $0x14] sm:$0xf] %vm2252_vm1, %v2664_v54  ;;  %v2539_v42 = vadd.f32 -1.0, %v3030_v62  ;;  %v2780_v50 = vpop.f32.mrb[50].mxu1  ;;  %v1770_v27 = vmul.f32 1.442695, %v1691_v22  ;;  %v1157_v31 = vadd.f32 %v3464_v53, %v3579_v13 }
 0x17d   : > { %v2537_v37 = vadd.f32 -1.0, %v3032_v19  ;;  %v1694_v35 = vmin.f32 %v3635_v29, 0.0  ;;  %v1169_v10 = vpop.f32.mrb[51].mxu0  ;;  %v1766_v15 = vmul.f32 1.442695, %v1689_v3  ;;  %v1424_v7 = vpop.f32.mrb[51].mxu1  ;;  %v3660_v1 = vadd.f32 %v2780_v50, %v3586_v18 }
 0x17e   : > { %v1942_v57 = vsel %vm1622_vm10, %v3542_v39, %v2539_v42  ;;  %3041 = vpow2.f32 %v1770_v27  ;;  %v1692_v39 = vmin.f32 %v3650_v61, 0.0  ;;  %v3663_v41 = vadd.f32 %v1424_v7, %v3546_v30 }
 0x17f   : > { %v2669_v63 = vpack.c.bf16 %v1942_v57, %v1942_v57  ;;  %v1940_v5 = vsel %vm1620_vm11, %v3548_v33, %v2537_v37  ;;  %v1776_v6 = vmul.f32 1.442695, %v1694_v35  ;;  %v3034_v59 = vpop.eup %3033  ;;  %3043 = vpow2.f32 %v1766_v15 }
 0x180   : > { %v2667_v14 = vpack.c.bf16 %v1940_v5, %v1940_v5  ;;  %v2540_v55 = vadd.f32 -1.0, %v3034_v59  ;;  %vm1624_vm15 = vcmp.gt.f32.partialorder %v3595_v45, 0.0  ;;  %v1772_v9 = vmul.f32 1.442695, %v1692_v39 }
 0x181   : > { %v3036_v17 = vpop.eup %3035  ;;  %2263 = vst.msk [vmem:[%s3558_s7 + $0x28] sm:$0xf] %vm2252_vm1, %v2669_v63  ;;  %3045 = vpow2.f32 %v1776_v6  ;;  %v1172_v54 = vpop.f32.mrb[52].mxu0  ;;  %v1160_v18 = vadd.f32 %v3464_v53, %v3597_v11  ;;  %vm1627_vm0 = vcmp.gt.f32.partialorder %v3618_v46, 0.0  ;;  %v1695_v30 = vmin.f32 %v3660_v1, 0.0 }
 0x182   : > { %2261 = vst.msk [vmem:[%s3558_s7 + $0x20] sm:$0xf] %vm2252_vm1, %v2667_v14  ;;  %v2538_v33 = vadd.f32 -1.0, %v3036_v17  ;;  %v2783_v43 = vpop.f32.mrb[52].mxu1  ;;  %v1943_v34 = vsel %vm1623_vm12, %v3567_v23, %v2540_v55  ;;  %v1174_v62 = vpop.f32.mrb[53].mxu0  ;;  %3047 = vpow2.f32 %v1772_v9  ;;  %v1693_v23 = vmin.f32 %v3663_v41, 0.0 }
 0x183   : > { %v1437_v22 = vpop.f32.mrb[53].mxu1  ;;  %v3038_v13 = vpop.eup %3037  ;;  %v2670_v58 = vpack.c.bf16 %v1943_v34, %v1943_v34  ;;  %v1165_v50 = vadd.f32 %v3464_v53, %v3625_v2  ;;  %v1778_v37 = vmul.f32 1.442695, %v1695_v30  ;;  %vm1625_vm2 = vcmp.gt.f32.partialorder %v3623_v26, 0.0 }
 0x184   : > { %v1941_v38 = vsel %vm1621_vm13, %v3572_v25, %v2538_v33  ;;  %v1175_v19 = vpop.f32.mrb[54].mxu0  ;;  %v2784_v42 = vpop.f32.mrb[54].mxu1  ;;  %v2543_v3 = vadd.f32 -1.0, %v3038_v13  ;;  %v1774_v25 = vmul.f32 1.442695, %v1693_v23  ;;  %v3686_v57 = vadd.f32 %v2783_v43, %v1157_v31 }
 0x185   : > { %v2668_v11 = vpack.c.bf16 %v1941_v38, %v1941_v38  ;;  %v1177_v27 = vpop.f32.mrb[55].mxu0  ;;  %v1440_v35 = vpop.f32.mrb[55].mxu1  ;;  %2264 = vst.msk [vmem:[%s3558_s7 + $0x2c] sm:$0xf] %vm2252_vm1, %v2670_v58  ;;  %v3689_v15 = vadd.f32 %v1437_v22, %v3615_v51  ;;  %3049 = vpow2.f32 %v1778_v37  ;;  %v3696_v63 = vadd.f32 %v2784_v42, %v1160_v18 }
 0x186   : > { %v3040_v10 = vpop.eup %3039  ;;  %v1946_v2 = vsel %vm1626_vm14, %v3589_v47, %v2543_v3  ;;  %vm1630_vm3 = vcmp.gt.f32.partialorder %v3635_v29, 0.0  ;;  %3051 = vpow2.f32 %v1774_v25  ;;  %v1698_v6 = vmin.f32 %v3686_v57, 0.0 }
 0x187   : > { %2262 = vst.msk [vmem:[%s3558_s7 + $0x24] sm:$0xf] %vm2252_vm1, %v2668_v11  ;;  %v2541_v7 = vadd.f32 -1.0, %v3040_v10  ;;  %v2673_v5 = vpack.c.bf16 %v1946_v2, %v1946_v2  ;;  %vm1628_vm4 = vcmp.gt.f32.partialorder %v3650_v61, 0.0  ;;  %v1168_v47 = vadd.f32 %v3464_v53, %v3641_v49 }
 0x188   : > { %v3042_v59 = vpop.eup %3041  ;;  %v1696_v14 = vmin.f32 %v3689_v15, 0.0  ;;  %v1784_v33 = vmul.f32 1.442695, %v1698_v6  ;;  %v1699_v31 = vmin.f32 %v3696_v63, 0.0  ;;  %v1173_v18 = vadd.f32 %v3464_v53, %v1172_v54 }
 0x189   : > { %v1944_v51 = vsel %vm1624_vm15, %v3595_v45, %v2541_v7  ;;  %v3044_v39 = vpop.eup %3043  ;;  %2267 = vst.msk [vmem:[%s3558_s7 + $0x38] sm:$0xf] %vm2252_vm1, %v2673_v5  ;;  %v2544_v55 = vadd.f32 -1.0, %v3042_v59  ;;  %v1180_v9 = vpop.f32.mrb[56].mxu0  ;;  %v3712_v49 = vadd.f32 %v1440_v35, %v3632_v21  ;;  %v1176_v54 = vadd.f32 %v3464_v53, %v1175_v19 }
 0x18a   : > { %v2671_v17 = vpack.c.bf16 %v1944_v51, %v1944_v51  ;;  %v2787_v43 = vpop.f32.mrb[56].mxu1  ;;  %v2542_v45 = vadd.f32 -1.0, %v3044_v39  ;;  %v1780_v30 = vmul.f32 1.442695, %v1696_v14  ;;  %v1182_v62 = vpop.f32.mrb[57].mxu0  ;;  %3053 = vpow2.f32 %v1784_v33 }
 0x18b   : > { %v3046_v34 = vpop.eup %3045  ;;  %v1453_v22 = vpop.f32.mrb[57].mxu1  ;;  %v1947_v13 = vsel %vm1627_vm0, %v3618_v46, %v2544_v55  ;;  %v1786_v38 = vmul.f32 1.442695, %v1699_v31  ;;  %v1697_v10 = vmin.f32 %v3712_v49, 0.0  ;;  %vm1631_vm5 = vcmp.gt.f32.partialorder %v3660_v1, 0.0 }
 0x18c   : > { %2265 = vst.msk [vmem:[%s3558_s7 + $0x30] sm:$0xf] %vm2252_vm1, %v2671_v17  ;;  %v2547_v58 = vadd.f32 -1.0, %v3046_v34  ;;  %v1183_v23 = vpop.f32.mrb[58].mxu0  ;;  %v2788_v42 = vpop.f32.mrb[58].mxu1  ;;  %v2674_v11 = vpack.c.bf16 %v1947_v13, %v1947_v13  ;;  %v1945_v21 = vsel %vm1625_vm2, %v3623_v26, %v2542_v45  ;;  %3055 = vpow2.f32 %v1780_v30 }
 0x18d   : > { %v1185_v3 = vpop.f32.mrb[59].mxu0  ;;  %v1456_v37 = vpop.f32.mrb[59].mxu1  ;;  %v2672_v46 = vpack.c.bf16 %v1945_v21, %v1945_v21  ;;  %3057 = vpow2.f32 %v1786_v38  ;;  %v3729_v26 = vadd.f32 %v2787_v43, %v1173_v18  ;;  %v3731_v7 = vadd.f32 %v1453_v22, %v1165_v50 }
 0x18e   : > { %v3048_v27 = vpop.eup %3047  ;;  %v1950_v35 = vsel %vm1630_vm3, %v3635_v29, %v2547_v58  ;;  %2268 = vst.msk [vmem:[%s3558_s7 + $0x3c] sm:$0xf] %vm2252_vm1, %v2674_v11  ;;  %v1782_v19 = vmul.f32 1.442695, %v1697_v10  ;;  %v3736_v5 = vadd.f32 %v2788_v42, %v1176_v54  ;;  %v3738_v6 = vadd.f32 %v1456_v37, %v1168_v47 }
 0x18f   : > { %v2677_v25 = vpack.c.bf16 %v1950_v35, %v1950_v35  ;;  %v2545_v2 = vadd.f32 -1.0, %v3048_v27  ;;  %2266 = vst.msk [vmem:[%s3558_s7 + $0x34] sm:$0xf] %vm2252_vm1, %v2672_v46  ;;  %v3050_v29 = vpop.eup %3049  ;;  %vm1629_vm6 = vcmp.gt.f32.partialorder %v3663_v41, 0.0  ;;  %vm1634_vm7 = vcmp.gt.f32.partialorder %v3686_v57, 0.0 }
 0x190   : > { %v1702_v50 = vmin.f32 %v3729_v26, 0.0  ;;  %v3052_v51 = vpop.eup %3051  ;;  %v2548_v39 = vadd.f32 -1.0, %v3050_v29  ;;  %3059 = vpow2.f32 %v1782_v19  ;;  %v1700_v47 = vmin.f32 %v3731_v7, 0.0 }
 0x191   : > { %2271 = vst.msk [vmem:[%s3558_s7 + $0x48] sm:$0xf] %vm2252_vm1, %v2677_v25  ;;  %v1948_v59 = vsel %vm1628_vm4, %v3650_v61, %v2545_v2  ;;  %v1188_v17 = vpop.f32.mrb[60].mxu0  ;;  %v2791_v55 = vpop.f32.mrb[60].mxu1  ;;  %v2546_v33 = vadd.f32 -1.0, %v3052_v51  ;;  %v1181_v31 = vadd.f32 %v3464_v53, %v1180_v9  ;;  %v1703_v61 = vmin.f32 %v3736_v5, 0.0 }
 0x192   : > { %v2675_v14 = vpack.c.bf16 %v1948_v59, %v1948_v59  ;;  %v1792_v43 = vmul.f32 1.442695, %v1702_v50  ;;  %v1190_v34 = vpop.f32.mrb[61].mxu0  ;;  %v1951_v45 = vsel %vm1631_vm5, %v3660_v1, %v2548_v39  ;;  %v1788_v18 = vmul.f32 1.442695, %v1700_v47  ;;  %v1469_v22 = vpop.f32.mrb[61].mxu1 }
 0x193   : > { %v1184_v30 = vadd.f32 %v3464_v53, %v1183_v23  ;;  %v1701_v62 = vmin.f32 %v3738_v6, 0.0  ;;  %v1191_v13 = vpop.f32.mrb[62].mxu0  ;;  %v2678_v58 = vpack.c.bf16 %v1951_v45, %v1951_v45  ;;  %v1949_v9 = vsel %vm1629_vm6, %v3663_v41, %v2546_v33  ;;  %v2792_v42 = vpop.f32.mrb[62].mxu1 }
 0x194   : > { %2269 = vst.msk [vmem:[%s3558_s7 + $0x40] sm:$0xf] %vm2252_vm1, %v2675_v14  ;;  %3061 = vpow2.f32 %v1792_v43  ;;  %v1794_v38 = vmul.f32 1.442695, %v1703_v61  ;;  %v1193_v11 = vpop.f32.mrb[63].mxu0  ;;  %v3054_v21 = vpop.eup %3053  ;;  %v2676_v1 = vpack.c.bf16 %v1949_v9, %v1949_v9  ;;  %v1189_v23 = vadd.f32 %v3464_v53, %v1188_v17 }
 0x195   : > { %3063 = vpow2.f32 %v1788_v18  ;;  %v1790_v54 = vmul.f32 1.442695, %v1701_v62  ;;  %v1472_v3 = vpop.f32.mrb[63].mxu1  ;;  %2272 = vst.msk [vmem:[%s3558_s7 + $0x4c] sm:$0xf] %vm2252_vm1, %v2678_v58  ;;  %v2551_v27 = vadd.f32 -1.0, %v3054_v21  ;;  %v3764_v46 = vadd.f32 %v1469_v22, %v1181_v31 }
 0x196   : > { %v3056_v37 = vpop.eup %3055  ;;  %3065 = vpow2.f32 %v1794_v38  ;;  %v1192_v41 = vadd.f32 %v3464_v53, %v1191_v13  ;;  %2270 = vst.msk [vmem:[%s3558_s7 + $0x44] sm:$0xf] %vm2252_vm1, %v2676_v1  ;;  %v3769_v25 = vadd.f32 %v2791_v55, %v1189_v23  ;;  %v3771_v2 = vadd.f32 %v1472_v3, %v1184_v30 }
 0x197   : > { %v3058_v35 = vpop.eup %3057  ;;  %v2549_v10 = vadd.f32 -1.0, %v3056_v37  ;;  %3067 = vpow2.f32 %v1790_v54  ;;  %v1954_v19 = vsel %vm1634_vm7, %v3686_v57, %v2551_v27  ;;  %vm1632_vm8 = vcmp.gt.f32.partialorder %v3689_v15, 0.0 }
 0x198   : > { %v2552_v29 = vadd.f32 -1.0, %v3058_v35  ;;  %v1704_v59 = vmin.f32 %v3764_v46, 0.0  ;;  %v2681_v50 = vpack.c.bf16 %v1954_v19, %v1954_v19  ;;  %vm1635_vm9 = vcmp.gt.f32.partialorder %v3696_v63, 0.0 }
 0x199   : > { %v1952_v51 = vsel %vm1632_vm8, %v3689_v15, %v2549_v10  ;;  %v1706_v14 = vmin.f32 %v3769_v25, 0.0  ;;  %v1196_v39 = vpop.f32.mrb[64].mxu0  ;;  %v3781_v47 = vpop.f32.mrb[64].mxu1  ;;  %v3784_v33 = vadd.f32 %v2792_v42, %v1192_v41  ;;  %v1705_v45 = vmin.f32 %v3771_v2, 0.0 }
 0x19a   : > { %v2679_v17 = vpack.c.bf16 %v1952_v51, %v1952_v51  ;;  %v1955_v57 = vsel %vm1635_vm9, %v3696_v63, %v2552_v29  ;;  %v1796_v55 = vmul.f32 1.442695, %v1704_v59  ;;  %v1198_v31 = vpop.f32.mrb[65].mxu0  ;;  %v1485_v43 = vpop.f32.mrb[65].mxu1  ;;  %2275 = vst.msk [vmem:[%s3558_s7 + $0x58] sm:$0xf] %vm2252_vm1, %v2681_v50  ;;  %v1197_v9 = vadd.f32 %v3464_v53, %v1196_v39 }
 0x19b   : > { %v3060_v61 = vpop.eup %3059  ;;  %v2682_v15 = vpack.c.bf16 %v1955_v57, %v1955_v57  ;;  %v1800_v34 = vmul.f32 1.442695, %v1706_v14  ;;  %v1199_v18 = vpop.f32.mrb[66].mxu0  ;;  %vm1633_vm10 = vcmp.gt.f32.partialorder %v3712_v49, 0.0  ;;  %v1707_v62 = vmin.f32 %v3784_v33, 0.0 }
 0x19c   : > { %v2796_v30 = vpop.f32.mrb[66].mxu1  ;;  %2273 = vst.msk [vmem:[%s3558_s7 + $0x50] sm:$0xf] %vm2252_vm1, %v2679_v17  ;;  %v2550_v63 = vadd.f32 -1.0, %v3060_v61  ;;  %3069 = vpow2.f32 %v1796_v55  ;;  %v1201_v22 = vpop.f32.mrb[67].mxu0  ;;  %v1200_v38 = vadd.f32 %v3464_v53, %v1199_v18  ;;  %vm1638_vm11 = vcmp.gt.f32.partialorder %v3729_v26, 0.0 }
 0x19d   : > { %v1488_v13 = vpop.f32.mrb[67].mxu1  ;;  %2276 = vst.msk [vmem:[%s3558_s7 + $0x5c] sm:$0xf] %vm2252_vm1, %v2682_v15  ;;  %3071 = vpow2.f32 %v1800_v34  ;;  %v1798_v58 = vmul.f32 1.442695, %v1705_v45  ;;  %v3799_v3 = vadd.f32 %v1485_v43, %v1197_v9  ;;  %vm1636_vm12 = vcmp.gt.f32.partialorder %v3731_v7, 0.0 }
 0x19e   : > { %v3062_v42 = vpop.eup %3061  ;;  %v1953_v11 = vsel %vm1633_vm10, %v3712_v49, %v2550_v63  ;;  %v1802_v21 = vmul.f32 1.442695, %v1707_v62  ;;  %v3802_v41 = vadd.f32 %v1488_v13, %v1200_v38  ;;  %vm1639_vm13 = vcmp.gt.f32.partialorder %v3736_v5, 0.0 }
 0x19f   : > { %v3064_v1 = vpop.eup %3063  ;;  %v2680_v54 = vpack.c.bf16 %v1953_v11, %v1953_v11  ;;  %v2555_v23 = vadd.f32 -1.0, %v3062_v42  ;;  %3073 = vpow2.f32 %v1798_v58  ;;  %v1708_v19 = vmin.f32 %v3799_v3, 0.0 }
 0x1a0   : > { %v3066_v37 = vpop.eup %3065  ;;  %v2553_v27 = vadd.f32 -1.0, %v3064_v1  ;;  %3075 = vpow2.f32 %v1802_v21  ;;  %vm1637_vm14 = vcmp.gt.f32.partialorder %v3738_v6, 0.0  ;;  %v1709_v31 = vmin.f32 %v3802_v41, 0.0 }
 0x1a1   : > { %v3068_v35 = vpop.eup %3067  ;;  %2274 = vst.msk [vmem:[%s3558_s7 + $0x54] sm:$0xf] %vm2252_vm1, %v2680_v54  ;;  %v1958_v49 = vsel %vm1638_vm11, %v3729_v26, %v2555_v23  ;;  %v2556_v10 = vadd.f32 -1.0, %v3066_v37  ;;  %v1204_v29 = vpop.f32.mrb[68].mxu0  ;;  %v1804_v55 = vmul.f32 1.442695, %v1708_v19 }
 0x1a2   : > { %v3809_v59 = vpop.f32.mrb[68].mxu1  ;;  %v2685_v50 = vpack.c.bf16 %v1958_v49, %v1958_v49  ;;  %v1956_v51 = vsel %vm1636_vm12, %v3731_v7, %v2553_v27  ;;  %v2554_v14 = vadd.f32 -1.0, %v3068_v35  ;;  %v1206_v39 = vpop.f32.mrb[69].mxu0  ;;  %v1205_v34 = vadd.f32 %v3464_v53, %v1204_v29 }
 0x1a3   : > { %v1501_v17 = vpop.f32.mrb[69].mxu1  ;;  %v2683_v57 = vpack.c.bf16 %v1956_v51, %v1956_v51  ;;  %v1959_v26 = vsel %vm1639_vm13, %v3736_v5, %v2556_v10  ;;  %v1207_v43 = vpop.f32.mrb[70].mxu0  ;;  %3077 = vpow2.f32 %v1804_v55  ;;  %v1806_v62 = vmul.f32 1.442695, %v1709_v31 }
 0x1a4   : > { %v3815_v61 = vpop.f32.mrb[70].mxu1  ;;  %2279 = vst.msk [vmem:[%s3558_s7 + $0x68] sm:$0xf] %vm2252_vm1, %v2685_v50  ;;  %v2686_v7 = vpack.c.bf16 %v1959_v26, %v1959_v26  ;;  %v1957_v15 = vsel %vm1637_vm14, %v3738_v6, %v2554_v14  ;;  %v1208_v45 = vadd.f32 %v3464_v53, %v1207_v43  ;;  %v1209_v18 = vpop.f32.mrb[71].mxu0  ;;  %v3827_v13 = vadd.f32 %v3781_v47, %v1205_v34 }
 0x1a5   : > { %v1504_v63 = vpop.f32.mrb[71].mxu1  ;;  %2277 = vst.msk [vmem:[%s3558_s7 + $0x60] sm:$0xf] %vm2252_vm1, %v2683_v57  ;;  %v2684_v5 = vpack.c.bf16 %v1957_v15, %v1957_v15  ;;  %3079 = vpow2.f32 %v1806_v62  ;;  %vm1640_vm15 = vcmp.gt.f32.partialorder %v3764_v46, 0.0  ;;  %vm1642_vm0 = vcmp.gt.f32.partialorder %v3769_v25, 0.0 }
 0x1a6   : > { %v3070_v22 = vpop.eup %3069  ;;  %2280 = vst.msk [vmem:[%s3558_s7 + $0x6c] sm:$0xf] %vm2252_vm1, %v2686_v7  ;;  %v3829_v58 = vadd.f32 %v2796_v30, %v1208_v45  ;;  %v1710_v42 = vmin.f32 %v3827_v13, 0.0  ;;  %vm1641_vm2 = vcmp.gt.f32.partialorder %v3771_v2, 0.0  ;;  %vm1643_vm3 = vcmp.gt.f32.partialorder %v3784_v33, 0.0 }
 0x1a7   : > { %v3072_v6 = vpop.eup %3071  ;;  %2278 = vst.msk [vmem:[%s3558_s7 + $0x64] sm:$0xf] %vm2252_vm1, %v2684_v5  ;;  %v2557_v9 = vadd.f32 -1.0, %v3070_v22  ;;  %vm1644_vm4 = vcmp.gt.f32.partialorder %v3799_v3, 0.0  ;;  %vm1645_vm5 = vcmp.gt.f32.partialorder %v3802_v41, 0.0  ;;  %vm1646_vm6 = vcmp.gt.f32.partialorder %v3827_v13, 0.0 }
 0x1a8   : > { %v2559_v38 = vadd.f32 -1.0, %v3072_v6  ;;  %v1711_v47 = vmin.f32 %v3829_v58, 0.0  ;;  %v1808_v35 = vmul.f32 1.442695, %v1710_v42  ;;  %vm1647_vm7 = vcmp.gt.f32.partialorder %v3829_v58, 0.0 }
 0x1a9   : > { %v3074_v11 = vpop.eup %3073  ;;  %v1960_v21 = vsel %vm1640_vm15, %v3764_v46, %v2557_v9  ;;  %v1212_v30 = vpop.f32.mrb[72].mxu0 }
 0x1aa   : > { %v3839_v1 = vpop.f32.mrb[72].mxu1  ;;  %v3076_v54 = vpop.eup %3075  ;;  %v1962_v23 = vsel %vm1642_vm0, %v3769_v25, %v2559_v38  ;;  %v2687_v37 = vpack.c.bf16 %v1960_v21, %v1960_v21  ;;  %v2558_v27 = vadd.f32 -1.0, %v3074_v11  ;;  %v1810_v29 = vmul.f32 1.442695, %v1711_v47 }
 0x1ab   : > { %v1214_v49 = vpop.f32.mrb[73].mxu0  ;;  %v3842_v10 = vpop.f32.mrb[73].mxu1  ;;  %v2689_v19 = vpack.c.bf16 %v1962_v23, %v1962_v23  ;;  %v2560_v46 = vadd.f32 -1.0, %v3076_v54  ;;  %v1213_v50 = vadd.f32 %v3464_v53, %v1212_v30  ;;  %3081 = vpow2.f32 %v1808_v35 }
 0x1ac   : > { %v1215_v51 = vpop.f32.mrb[74].mxu0  ;;  %v3845_v14 = vpop.f32.mrb[74].mxu1  ;;  %2281 = vst.msk [vmem:[%s3558_s7 + $0x70] sm:$0xf] %vm2252_vm1, %v2687_v37  ;;  %v1961_v25 = vsel %vm1641_vm2, %v3771_v2, %v2558_v27  ;;  %3083 = vpow2.f32 %v1810_v29  ;;  %v1261_v11 = vadd.f32 %v3464_v53, %v3403_v52  ;;  %v3890_v52 = vadd.f32 %v3464_v53, %v3407_v56 }
 0x1ad   : > { %v1216_v39 = vadd.f32 %v3464_v53, %v1215_v51  ;;  %v1217_v57 = vpop.f32.mrb[75].mxu0  ;;  %v3854_v26 = vpop.f32.mrb[75].mxu1  ;;  %2283 = vst.msk [vmem:[%s3558_s7 + $0x78] sm:$0xf] %vm2252_vm1, %v2689_v19  ;;  %v1963_v55 = vsel %vm1643_vm3, %v3784_v33, %v2560_v46  ;;  %v2688_v31 = vpack.c.bf16 %v1961_v25, %v1961_v25  ;;  %v3859_v43 = vadd.f32 %v1501_v17, %v1213_v50 }
 0x1ae   : > { %v2690_v7 = vpack.c.bf16 %v1963_v55, %v1963_v55  ;;  %v3078_v34 = vpop.eup %3077  ;;  %v1269_v35 = vadd.f32 %v3464_v53, %v3409_v60  ;;  %v3900_v19 = vadd.f32 %v3464_v53, %v3415_v4  ;;  %v3904_v46 = vadd.f32 %v3464_v53, %v3419_v8 }
 0x1af   : > { %v3861_v15 = vadd.f32 %v1504_v63, %v1216_v39  ;;  %2282 = vst.msk [vmem:[%s3558_s7 + $0x74] sm:$0xf] %vm2252_vm1, %v2688_v31  ;;  %v1712_v2 = vmin.f32 %v3859_v43, 0.0  ;;  %v2561_v45 = vadd.f32 -1.0, %v3078_v34  ;;  %v3080_v5 = vpop.eup %3079  ;;  %v3916_v50 = vadd.f32 %v3464_v53, %v3427_v16 }
 0x1b0   : > { %2284 = vst.msk [vmem:[%s3558_s7 + $0x7c] sm:$0xf] %vm2252_vm1, %v2690_v7  ;;  %v2562_v22 = vadd.f32 -1.0, %v3080_v5  ;;  %v3920_v4 = vadd.f32 %v3464_v53, %v3431_v20  ;;  %vm1648_vm8 = vcmp.gt.f32.partialorder %v3859_v43, 0.0 }
 0x1b1   : > { %v1713_v18 = vmin.f32 %v3861_v15, 0.0  ;;  %v1812_v33 = vmul.f32 1.442695, %v1712_v2  ;;  %v1220_v62 = vpop.f32.mrb[76].mxu0  ;;  %v3870_v17 = vpop.f32.mrb[76].mxu1  ;;  %v1964_v63 = vsel %vm1644_vm4, %v3799_v3, %v2561_v45  ;;  %vm1649_vm9 = vcmp.gt.f32.partialorder %v3861_v15, 0.0 }
 0x1b2   : > { %v1221_v9 = vadd.f32 %v3464_v53, %v1220_v62  ;;  %v1222_v38 = vpop.f32.mrb[77].mxu0  ;;  %v3874_v42 = vpop.f32.mrb[77].mxu1  ;;  %v2691_v21 = vpack.c.bf16 %v1964_v63, %v1964_v63  ;;  %v1965_v3 = vsel %vm1645_vm5, %v3802_v41, %v2562_v22  ;;  %v1272_v41 = vadd.f32 %v3464_v53, %v3411_v0 }
 0x1b3   : > { %v1814_v6 = vmul.f32 1.442695, %v1713_v18  ;;  %3085 = vpow2.f32 %v1812_v33  ;;  %v1223_v47 = vpop.f32.mrb[78].mxu0  ;;  %v3879_v30 = vpop.f32.mrb[78].mxu1  ;;  %v3912_v0 = vadd.f32 %v3464_v53, %v3423_v12  ;;  %v3929_v12 = vld [vmem:[%s4225_s2] ss:$0 sm:$0xff] }
 0x1b4   : > { %v3883_v54 = vadd.f32 %v3809_v59, %v1221_v9  ;;  %v1224_v23 = vadd.f32 %v3464_v53, %v1223_v47  ;;  %v1225_v37 = vpop.f32.mrb[79].mxu0  ;;  %v3886_v27 = vpop.f32.mrb[79].mxu1  ;;  %2285 = vst.msk [vmem:[%s3558_s7 + $0x80] sm:$0xf] %vm2252_vm1, %v2691_v21  ;;  %v2692_v59 = vpack.c.bf16 %v1965_v3, %v1965_v3  ;;  %v3933_v16 = vadd.f32 %v3929_v12, %v3435_v24 }
 0x1b5   : > { %3087 = vpow2.f32 %v1814_v6  ;;  %v3082_v49 = vpop.eup %3081  ;;  %v3937_v20 = vadd.f32 %v3929_v12, %v3439_v28  ;;  %v3949_v33 = vadd.f32 %v3929_v12, %v3443_v32  ;;  %v3958_v9 = vadd.f32 %v3929_v12, %v3447_v36 }
 0x1b6   : > { %v1714_v56 = vmin.f32 %v3883_v54, 0.0  ;;  %v3908_v29 = vadd.f32 %v3815_v61, %v1224_v23  ;;  %v3084_v60 = vpop.eup %3083  ;;  %2286 = vst.msk [vmem:[%s3558_s7 + $0x84] sm:$0xf] %vm2252_vm1, %v2692_v59  ;;  %v2563_v8 = vadd.f32 -1.0, %v3082_v49  ;;  %v3962_v38 = vadd.f32 %v3929_v12, %v3451_v40 }
 0x1b7   : > { %v2564_v61 = vadd.f32 -1.0, %v3084_v60  ;;  %v3972_v47 = vadd.f32 %v3929_v12, %v3455_v44  ;;  %vm1650_vm10 = vcmp.gt.f32.partialorder %v3883_v54, 0.0 }
 0x1b8   : > { %v1816_v51 = vmul.f32 1.442695, %v1714_v56  ;;  %v1715_v25 = vmin.f32 %v3908_v29, 0.0  ;;  %v1966_v53 = vsel %vm1646_vm6, %v3827_v13, %v2563_v8  ;;  %vm1651_vm11 = vcmp.gt.f32.partialorder %v3908_v29, 0.0 }
 0x1b9   : > { %v1228_v39 = vpop.f32.mrb[80].mxu0  ;;  %v2811_v57 = vpop.f32.mrb[80].mxu1  ;;  %v2693_v55 = vpack.c.bf16 %v1966_v53, %v1966_v53  ;;  %v1967_v31 = vsel %vm1647_vm7, %v3829_v58, %v2564_v61 }
 0x1ba   : > { %3089 = vpow2.f32 %v1816_v51  ;;  %v1818_v7 = vmul.f32 1.442695, %v1715_v25  ;;  %v1230_v34 = vpop.f32.mrb[81].mxu0  ;;  %v1549_v2 = vpop.f32.mrb[81].mxu1  ;;  %v2694_v24 = vpack.c.bf16 %v1967_v31, %v1967_v31  ;;  %v1229_v45 = vadd.f32 %v3929_v12, %v1228_v39 }
 0x1bb   : > { %v3943_v28 = vadd.f32 %v2811_v57, %v1269_v35  ;;  %v3945_v18 = vadd.f32 %v1549_v2, %v1261_v11  ;;  %v1231_v13 = vpop.f32.mrb[82].mxu0  ;;  %v2812_v5 = vpop.f32.mrb[82].mxu1  ;;  %2287 = vst.msk [vmem:[%s3558_s7 + $0x88] sm:$0xf] %vm2252_vm1, %v2693_v55 }
 0x1bc   : > { %3091 = vpow2.f32 %v1818_v7  ;;  %v1232_v58 = vadd.f32 %v3929_v12, %v1231_v13  ;;  %v3954_v62 = vadd.f32 %v2812_v5, %v1272_v41  ;;  %v1233_v63 = vpop.f32.mrb[83].mxu0  ;;  %v1552_v22 = vpop.f32.mrb[83].mxu1  ;;  %2288 = vst.msk [vmem:[%s3558_s7 + $0x8c] sm:$0xf] %vm2252_vm1, %v2694_v24  ;;  %v3967_v32 = vadd.f32 %v3842_v10, %v1229_v45 }
 0x1bd   : > { %v3086_v6 = vpop.eup %3085  ;;  %v1726_v11 = vmin.f32 %v3943_v28, 0.0  ;;  %v1724_v36 = vmin.f32 %v3945_v18, 0.0  ;;  %v3988_v53 = vadd.f32 %v1552_v22, %v3890_v52  ;;  %vm1662_vm12 = vcmp.gt.f32.partialorder %v3943_v28, 0.0 }
 0x1be   : > { %v2565_v3 = vadd.f32 -1.0, %v3086_v6  ;;  %v3976_v23 = vadd.f32 %v3854_v26, %v1232_v58  ;;  %v1716_v37 = vmin.f32 %v3967_v32, 0.0  ;;  %v1727_v51 = vmin.f32 %v3954_v62, 0.0 }
 0x1bf   : > { %v3088_v21 = vpop.eup %3087  ;;  %v1840_v10 = vmul.f32 1.442695, %v1726_v11  ;;  %v1836_v41 = vmul.f32 1.442695, %v1724_v36  ;;  %v1725_v45 = vmin.f32 %v3988_v53, 0.0  ;;  %vm1660_vm13 = vcmp.gt.f32.partialorder %v3945_v18, 0.0 }
 0x1c0   : > { %v2566_v40 = vadd.f32 -1.0, %v3088_v21  ;;  %v1968_v35 = vsel %vm1648_vm8, %v3859_v43, %v2565_v3  ;;  %v1717_v44 = vmin.f32 %v3976_v23, 0.0  ;;  %v1820_v56 = vmul.f32 1.442695, %v1716_v37 }
 0x1c1   : > { %v2695_v59 = vpack.c.bf16 %v1968_v35, %v1968_v35  ;;  %3093 = vpow2.f32 %v1840_v10  ;;  %v1236_v26 = vpop.f32.mrb[84].mxu0  ;;  %v2815_v60 = vpop.f32.mrb[84].mxu1  ;;  %v1842_v7 = vmul.f32 1.442695, %v1727_v51  ;;  %v1838_v22 = vmul.f32 1.442695, %v1725_v45 }
 0x1c2   : > { %v1969_v49 = vsel %vm1649_vm9, %v3861_v15, %v2566_v40  ;;  %3095 = vpow2.f32 %v1836_v41  ;;  %v1822_v61 = vmul.f32 1.442695, %v1717_v44  ;;  %v1238_v43 = vpop.f32.mrb[85].mxu0  ;;  %v1565_v25 = vpop.f32.mrb[85].mxu1  ;;  %v1237_v15 = vadd.f32 %v3929_v12, %v1236_v26 }
 0x1c3   : > { %v2696_v8 = vpack.c.bf16 %v1969_v49, %v1969_v49  ;;  %2289 = vst.msk [vmem:[%s3558_s7 + $0x90] sm:$0xf] %vm2252_vm1, %v2695_v59  ;;  %3097 = vpow2.f32 %v1820_v56  ;;  %v3992_v39 = vadd.f32 %v2815_v60, %v3912_v0  ;;  %v1239_v57 = vpop.f32.mrb[86].mxu0  ;;  %v2816_v55 = vpop.f32.mrb[86].mxu1  ;;  %v3998_v34 = vadd.f32 %v1565_v25, %v3900_v19 }
 0x1c4   : > { %v3090_v31 = vpop.eup %3089  ;;  %3099 = vpow2.f32 %v1822_v61  ;;  %v1241_v2 = vpop.f32.mrb[87].mxu0  ;;  %v4002_v0 = vadd.f32 %v3839_v1, %v1237_v15  ;;  %v1240_v13 = vadd.f32 %v3929_v12, %v1239_v57  ;;  %v4017_v40 = vadd.f32 %v2816_v55, %v3916_v50 }
 0x1c5   : > { %2290 = vst.msk [vmem:[%s3558_s7 + $0x94] sm:$0xf] %vm2252_vm1, %v2696_v8  ;;  %v1568_v52 = vpop.f32.mrb[87].mxu1  ;;  %v2567_v24 = vadd.f32 -1.0, %v3090_v31  ;;  %3101 = vpow2.f32 %v1842_v7  ;;  %v1730_v19 = vmin.f32 %v3992_v39, 0.0  ;;  %v1728_v21 = vmin.f32 %v3998_v34, 0.0 }
 0x1c6   : > { %v3092_v5 = vpop.eup %3091  ;;  %v1718_v1 = vmin.f32 %v4002_v0, 0.0  ;;  %3103 = vpow2.f32 %v1838_v22  ;;  %v4014_v36 = vadd.f32 %v3845_v14, %v1240_v13  ;;  %vm1663_vm14 = vcmp.gt.f32.partialorder %v3954_v62, 0.0 }
 0x1c7   : > { %v1970_v58 = vsel %vm1650_vm10, %v3883_v54, %v2567_v24  ;;  %v2568_v63 = vadd.f32 -1.0, %v3092_v5  ;;  %v1848_v11 = vmul.f32 1.442695, %v1730_v19  ;;  %v1844_v41 = vmul.f32 1.442695, %v1728_v21 }
 0x1c8   : > { %v2697_v6 = vpack.c.bf16 %v1970_v58, %v1970_v58  ;;  %v1824_v35 = vmul.f32 1.442695, %v1718_v1  ;;  %vm1652_vm15 = vcmp.gt.f32.partialorder %v3967_v32, 0.0  ;;  %vm1653_vm0 = vcmp.gt.f32.partialorder %v3976_v23, 0.0 }
 0x1c9   : > { %v1971_v3 = vsel %vm1651_vm11, %v3908_v29, %v2568_v63  ;;  %v1244_v54 = vpop.f32.mrb[88].mxu0  ;;  %v2819_v37 = vpop.f32.mrb[88].mxu1  ;;  %3105 = vpow2.f32 %v1848_v11  ;;  %v1719_v14 = vmin.f32 %v4014_v36, 0.0  ;;  %v1731_v50 = vmin.f32 %v4017_v40, 0.0 }
 0x1ca   : > { %2291 = vst.msk [vmem:[%s3558_s7 + $0x98] sm:$0xf] %vm2252_vm1, %v2697_v6  ;;  %v2698_v10 = vpack.c.bf16 %v1971_v3, %v1971_v3  ;;  %v1246_v44 = vpop.f32.mrb[89].mxu0  ;;  %v1581_v29 = vpop.f32.mrb[89].mxu1  ;;  %3107 = vpow2.f32 %v1824_v35  ;;  %v4031_v8 = vadd.f32 %v1568_v52, %v3904_v46  ;;  %v1245_v61 = vadd.f32 %v3929_v12, %v1244_v54 }
 0x1cb   : > { %v3094_v59 = vpop.eup %3093  ;;  %v1247_v49 = vpop.f32.mrb[90].mxu0  ;;  %3109 = vpow2.f32 %v1844_v41  ;;  %v1826_v57 = vmul.f32 1.442695, %v1719_v14  ;;  %v1850_v55 = vmul.f32 1.442695, %v1731_v50  ;;  %vm1661_vm2 = vcmp.gt.f32.partialorder %v3988_v53, 0.0 }
 0x1cc   : > { %v4026_v56 = vpop.f32.mrb[90].mxu1  ;;  %v3096_v26 = vpop.eup %3095  ;;  %2292 = vst.msk [vmem:[%s3558_s7 + $0x9c] sm:$0xf] %vm2252_vm1, %v2698_v10  ;;  %v2579_v60 = vadd.f32 -1.0, %v3094_v59  ;;  %v1729_v46 = vmin.f32 %v4031_v8, 0.0  ;;  %v4062_v11 = vadd.f32 %v2819_v37, %v3937_v20  ;;  %v4065_v21 = vadd.f32 %v1581_v29, %v3920_v4 }
 0x1cd   : > { %v1249_v51 = vpop.f32.mrb[91].mxu0  ;;  %v4034_v43 = vpop.f32.mrb[91].mxu1  ;;  %v2577_v15 = vadd.f32 -1.0, %v3096_v26  ;;  %3111 = vpow2.f32 %v1826_v57  ;;  %vm1666_vm3 = vcmp.gt.f32.partialorder %v3992_v39, 0.0  ;;  %v1248_v20 = vadd.f32 %v3929_v12, %v1247_v49 }
 0x1ce   : > { %v3098_v25 = vpop.eup %3097  ;;  %v1982_v2 = vsel %vm1662_vm12, %v3943_v28, %v2579_v60  ;;  %3113 = vpow2.f32 %v1850_v55  ;;  %v1846_v28 = vmul.f32 1.442695, %v1729_v46  ;;  %vm1664_vm4 = vcmp.gt.f32.partialorder %v3998_v34, 0.0 }
 0x1cf   : > { %v3100_v31 = vpop.eup %3099  ;;  %v2569_v7 = vadd.f32 -1.0, %v3098_v25  ;;  %v2709_v52 = vpack.c.bf16 %v1982_v2, %v1982_v2  ;;  %v1980_v24 = vsel %vm1660_vm13, %v3945_v18, %v2577_v15  ;;  %v4053_v18 = vadd.f32 %v3874_v42, %v1245_v61 }
 0x1d0   : > { %v2570_v45 = vadd.f32 -1.0, %v3100_v31  ;;  %v3102_v13 = vpop.eup %3101  ;;  %v2707_v19 = vpack.c.bf16 %v1980_v24, %v1980_v24  ;;  %3115 = vpow2.f32 %v1846_v28  ;;  %vm1654_vm5 = vcmp.gt.f32.partialorder %v4002_v0, 0.0 }
 0x1d1   : > { %v1972_v5 = vsel %vm1652_vm15, %v3967_v32, %v2569_v7  ;;  %2303 = vst.msk [vmem:[%s3558_s7 + $0xc8] sm:$0xf] %vm2252_vm1, %v2709_v52  ;;  %v2580_v22 = vadd.f32 -1.0, %v3102_v13  ;;  %v4055_v6 = vpop.f32.mrb[92].mxu0  ;;  %v4057_v1 = vpop.f32.mrb[92].mxu1  ;;  %v1720_v10 = vmin.f32 %v4053_v18, 0.0  ;;  %v4095_v51 = vadd.f32 %v3886_v27, %v1248_v20 }
 0x1d2   : > { %v2699_v58 = vpack.c.bf16 %v1972_v5, %v1972_v5  ;;  %v1973_v63 = vsel %vm1653_vm0, %v3976_v23, %v2570_v45  ;;  %2301 = vst.msk [vmem:[%s3558_s7 + $0xc0] sm:$0xf] %vm2252_vm1, %v2707_v19  ;;  %v1254_v23 = vpop.f32.mrb[93].mxu0  ;;  %v4067_v3 = vpop.f32.mrb[93].mxu1  ;;  %v1732_v49 = vmin.f32 %v4065_v21, 0.0  ;;  %v4099_v25 = vadd.f32 %v4026_v56, %v3949_v33 }
 0x1d3   : > { %v2700_v32 = vpack.c.bf16 %v1973_v63, %v1973_v63  ;;  %v3104_v42 = vpop.eup %3103  ;;  %v1983_v54 = vsel %vm1663_vm14, %v3954_v62, %v2580_v22  ;;  %v4077_v37 = vpop.f32.mrb[94].mxu0  ;;  %v1734_v62 = vmin.f32 %v4062_v11, 0.0  ;;  %v1828_v50 = vmul.f32 1.442695, %v1720_v10 }
 0x1d4   : > { %2293 = vst.msk [vmem:[%s3558_s7 + $0xa0] sm:$0xf] %vm2252_vm1, %v2699_v58  ;;  %v4079_v4 = vpop.f32.mrb[94].mxu1  ;;  %v3106_v35 = vpop.eup %3105  ;;  %v2710_v41 = vpack.c.bf16 %v1983_v54, %v1983_v54  ;;  %v2578_v44 = vadd.f32 -1.0, %v3104_v42  ;;  %vm1655_vm6 = vcmp.gt.f32.partialorder %v4014_v36, 0.0  ;;  %vm1667_vm7 = vcmp.gt.f32.partialorder %v4017_v40, 0.0 }
 0x1d5   : > { %2294 = vst.msk [vmem:[%s3558_s7 + $0xa4] sm:$0xf] %vm2252_vm1, %v2700_v32  ;;  %v1257_v29 = vpop.f32.mrb[95].mxu0  ;;  %v4085_v59 = vpop.f32.mrb[95].mxu1  ;;  %v2583_v14 = vadd.f32 -1.0, %v3106_v35  ;;  %3117 = vpow2.f32 %v1828_v50  ;;  %v1721_v33 = vmin.f32 %v4095_v51, 0.0  ;;  %v4123_v58 = vadd.f32 %v4034_v43, %v3933_v16 }
 0x1d6   : > { %v3108_v26 = vpop.eup %3107  ;;  %2304 = vst.msk [vmem:[%s3558_s7 + $0xcc] sm:$0xf] %vm2252_vm1, %v2710_v41  ;;  %v1981_v60 = vsel %vm1661_vm2, %v3988_v53, %v2578_v44  ;;  %v1856_v61 = vmul.f32 1.442695, %v1734_v62  ;;  %v1852_v53 = vmul.f32 1.442695, %v1732_v49  ;;  %v4129_v63 = vadd.f32 %v4057_v1, %v3972_v47 }
 0x1d7   : > { %v3110_v15 = vpop.eup %3109  ;;  %v2708_v57 = vpack.c.bf16 %v1981_v60, %v1981_v60  ;;  %v2571_v55 = vadd.f32 -1.0, %v3108_v26  ;;  %v1986_v31 = vsel %vm1666_vm3, %v3992_v39, %v2583_v14  ;;  %v1735_v5 = vmin.f32 %v4099_v25, 0.0 }
 0x1d8   : > { %v2713_v7 = vpack.c.bf16 %v1986_v31, %v1986_v31  ;;  %v2581_v2 = vadd.f32 -1.0, %v3110_v15  ;;  %3119 = vpow2.f32 %v1856_v61  ;;  %v3112_v46 = vpop.eup %3111  ;;  %vm1665_vm8 = vcmp.gt.f32.partialorder %v4031_v8, 0.0 }
 0x1d9   : > { %2302 = vst.msk [vmem:[%s3558_s7 + $0xc4] sm:$0xf] %vm2252_vm1, %v2708_v57  ;;  %v1974_v27 = vsel %vm1654_vm5, %v4002_v0, %v2571_v55  ;;  %v3114_v39 = vpop.eup %3113  ;;  %v2572_v24 = vadd.f32 -1.0, %v3112_v46  ;;  %3121 = vpow2.f32 %v1852_v53  ;;  %v1830_v0 = vmul.f32 1.442695, %v1721_v33 }
 0x1da   : > { %v2701_v56 = vpack.c.bf16 %v1974_v27, %v1974_v27  ;;  %2307 = vst.msk [vmem:[%s3558_s7 + $0xd8] sm:$0xf] %vm2252_vm1, %v2713_v7  ;;  %v1984_v52 = vsel %vm1664_vm4, %v3998_v34, %v2581_v2  ;;  %v2584_v13 = vadd.f32 -1.0, %v3114_v39  ;;  %v3116_v19 = vpop.eup %3115  ;;  %v1253_v34 = vadd.f32 %v3929_v12, %v4055_v6 }
 0x1db   : > { %v2711_v45 = vpack.c.bf16 %v1984_v52, %v1984_v52  ;;  %v1975_v28 = vsel %vm1655_vm6, %v4014_v36, %v2572_v24  ;;  %v2582_v36 = vadd.f32 -1.0, %v3116_v19  ;;  %3123 = vpow2.f32 %v1830_v0 }
 0x1dc   : > { %2295 = vst.msk [vmem:[%s3558_s7 + $0xa8] sm:$0xf] %vm2252_vm1, %v2701_v56  ;;  %v2702_v22 = vpack.c.bf16 %v1975_v28, %v1975_v28  ;;  %v1987_v32 = vsel %vm1667_vm7, %v4017_v40, %v2584_v13  ;;  %v1858_v16 = vmul.f32 1.442695, %v1735_v5  ;;  %v1733_v43 = vmin.f32 %v4123_v58, 0.0 }
 0x1dd   : > { %2305 = vst.msk [vmem:[%s3558_s7 + $0xd0] sm:$0xf] %vm2252_vm1, %v2711_v45  ;;  %v2714_v23 = vpack.c.bf16 %v1987_v32, %v1987_v32  ;;  %v1320_v6 = vadd.f32 %v3929_v12, %v3459_v48  ;;  %v1985_v47 = vsel %vm1665_vm8, %v4031_v8, %v2582_v36  ;;  %v4144_v1 = vadd.f32 %v3870_v17, %v1253_v34 }
 0x1de   : > { %2296 = vst.msk [vmem:[%s3558_s7 + $0xac] sm:$0xf] %vm2252_vm1, %v2702_v22  ;;  %v1738_v40 = vmin.f32 %v4129_v63, 0.0  ;;  %v2712_v42 = vpack.c.bf16 %v1985_v47, %v1985_v47  ;;  %3125 = vpow2.f32 %v1858_v16  ;;  %v1854_v54 = vmul.f32 1.442695, %v1733_v43 }
 0x1df   : > { %2308 = vst.msk [vmem:[%s3558_s7 + $0xdc] sm:$0xf] %vm2252_vm1, %v2714_v23  ;;  %v4151_v10 = vadd.f32 %v4067_v3, %v3958_v9  ;;  %v3118_v48 = vpop.eup %3117  ;;  %vm1656_vm9 = vcmp.gt.f32.partialorder %v4053_v18, 0.0  ;;  %v1722_v20 = vmin.f32 %v4144_v1, 0.0  ;;  %v1256_v17 = vadd.f32 %v3929_v12, %v4077_v37 }
 0x1e0   : > { %v1864_v8 = vmul.f32 1.442695, %v1738_v40  ;;  %2306 = vst.msk [vmem:[%s3558_s7 + $0xd4] sm:$0xf] %vm2252_vm1, %v2712_v42  ;;  %v2573_v41 = vadd.f32 -1.0, %v3118_v48  ;;  %vm1670_vm10 = vcmp.gt.f32.partialorder %v4062_v11, 0.0  ;;  %3127 = vpow2.f32 %v1854_v54 }
 0x1e1   : > { %v1736_v44 = vmin.f32 %v4151_v10, 0.0  ;;  %v1832_v3 = vmul.f32 1.442695, %v1722_v20  ;;  %v4162_v62 = vadd.f32 %v3879_v30, %v1256_v17  ;;  %v4166_v37 = vadd.f32 %v4079_v4, %v1320_v6 }
 0x1e2   : > { %v3120_v35 = vpop.eup %3119  ;;  %3129 = vpow2.f32 %v1864_v8  ;;  %v1976_v14 = vsel %vm1656_vm9, %v4053_v18, %v2573_v41  ;;  %v4170_v50 = vadd.f32 %v4085_v59, %v3962_v38  ;;  %vm1668_vm11 = vcmp.gt.f32.partialorder %v4065_v21, 0.0 }
 0x1e3   : > { %v2587_v9 = vadd.f32 -1.0, %v3120_v35  ;;  %v3122_v29 = vpop.eup %3121  ;;  %v1860_v12 = vmul.f32 1.442695, %v1736_v44  ;;  %v2703_v49 = vpack.c.bf16 %v1976_v14, %v1976_v14  ;;  %3131 = vpow2.f32 %v1832_v3 }
 0x1e4   : > { %v2585_v60 = vadd.f32 -1.0, %v3122_v29  ;;  %v1723_v30 = vmin.f32 %v4162_v62, 0.0  ;;  %v1739_v38 = vmin.f32 %v4166_v37, 0.0  ;;  %v1737_v57 = vmin.f32 %v4170_v50, 0.0 }
 0x1e5   : > { %v1990_v26 = vsel %vm1670_vm10, %v4062_v11, %v2587_v9  ;;  %3133 = vpow2.f32 %v1860_v12  ;;  %v3124_v18 = vpop.eup %3123  ;;  %2297 = vst.msk [vmem:[%s3558_s7 + $0xb0] sm:$0xf] %vm2252_vm1, %v2703_v49  ;;  %vm1657_vm12 = vcmp.gt.f32.partialorder %v4095_v51, 0.0  ;;  %vm1671_vm13 = vcmp.gt.f32.partialorder %v4099_v25, 0.0 }
 0x1e6   : > { %v2717_v61 = vpack.c.bf16 %v1990_v26, %v1990_v26  ;;  %v1988_v4 = vsel %vm1668_vm11, %v4065_v21, %v2585_v60  ;;  %v2574_v11 = vadd.f32 -1.0, %v3124_v18  ;;  %v1834_v15 = vmul.f32 1.442695, %v1723_v30 }
 0x1e7   : > { %v2715_v59 = vpack.c.bf16 %v1988_v4, %v1988_v4  ;;  %v1866_v55 = vmul.f32 1.442695, %v1739_v38  ;;  %v1862_v21 = vmul.f32 1.442695, %v1737_v57  ;;  %vm1669_vm14 = vcmp.gt.f32.partialorder %v4123_v58, 0.0 }
 0x1e8   : > { %2311 = vst.msk [vmem:[%s3558_s7 + $0xe8] sm:$0xf] %vm2252_vm1, %v2717_v61  ;;  %v3126_v31 = vpop.eup %3125  ;;  %v1977_v7 = vsel %vm1657_vm12, %v4095_v51, %v2574_v11  ;;  %3135 = vpow2.f32 %v1834_v15  ;;  %vm1674_vm15 = vcmp.gt.f32.partialorder %v4129_v63, 0.0  ;;  %vm1658_vm0 = vcmp.gt.f32.partialorder %v4144_v1, 0.0 }
 0x1e9   : > { %2309 = vst.msk [vmem:[%s3558_s7 + $0xe0] sm:$0xf] %vm2252_vm1, %v2715_v59  ;;  %v2704_v2 = vpack.c.bf16 %v1977_v7, %v1977_v7  ;;  %v2588_v53 = vadd.f32 -1.0, %v3126_v31  ;;  %3137 = vpow2.f32 %v1866_v55  ;;  %vm1672_vm2 = vcmp.gt.f32.partialorder %v4151_v10, 0.0 }
 0x1ea   : > { %v3128_v46 = vpop.eup %3127  ;;  %3139 = vpow2.f32 %v1862_v21  ;;  %vm1659_vm3 = vcmp.gt.f32.partialorder %v4162_v62, 0.0  ;;  %vm1675_vm4 = vcmp.gt.f32.partialorder %v4166_v37, 0.0  ;;  %vm1673_vm5 = vcmp.gt.f32.partialorder %v4170_v50, 0.0 }
 0x1eb   : > { %2298 = vst.msk [vmem:[%s3558_s7 + $0xb4] sm:$0xf] %vm2252_vm1, %v2704_v2  ;;  %v1991_v33 = vsel %vm1671_vm13, %v4099_v25, %v2588_v53  ;;  %v2586_v39 = vadd.f32 -1.0, %v3128_v46 }
 0x1ec   : > { %v3130_v27 = vpop.eup %3129  ;;  %v2718_v56 = vpack.c.bf16 %v1991_v33, %v1991_v33 }
 0x1ed   : > { %v2591_v51 = vadd.f32 -1.0, %v3130_v27  ;;  %v3132_v52 = vpop.eup %3131  ;;  %v1989_v24 = vsel %vm1669_vm14, %v4123_v58, %v2586_v39 }
 0x1ee   : > { %2312 = vst.msk [vmem:[%s3558_s7 + $0xec] sm:$0xf] %vm2252_vm1, %v2718_v56  ;;  %v2716_v13 = vpack.c.bf16 %v1989_v24, %v1989_v24  ;;  %v2575_v0 = vadd.f32 -1.0, %v3132_v52 }
 0x1ef   : > { %v3134_v45 = vpop.eup %3133  ;;  %v1994_v25 = vsel %vm1674_vm15, %v4129_v63, %v2591_v51 }
 0x1f0   : > { %v2721_v5 = vpack.c.bf16 %v1994_v25, %v1994_v25  ;;  %v2589_v19 = vadd.f32 -1.0, %v3134_v45  ;;  %2310 = vst.msk [vmem:[%s3558_s7 + $0xe4] sm:$0xf] %vm2252_vm1, %v2716_v13  ;;  %v1978_v28 = vsel %vm1658_vm0, %v4144_v1, %v2575_v0 }
 0x1f1   : > { %v2705_v58 = vpack.c.bf16 %v1978_v28, %v1978_v28 }
 0x1f2   : > { %2315 = vst.msk [vmem:[%s3558_s7 + $0xf8] sm:$0xf] %vm2252_vm1, %v2721_v5  ;;  %v1992_v34 = vsel %vm1672_vm2, %v4151_v10, %v2589_v19  ;;  %v3136_v22 = vpop.eup %3135 }
 0x1f3   : > { %v2719_v32 = vpack.c.bf16 %v1992_v34, %v1992_v34  ;;  %v3138_v63 = vpop.eup %3137  ;;  %2299 = vst.msk [vmem:[%s3558_s7 + $0xb8] sm:$0xf] %vm2252_vm1, %v2705_v58  ;;  %v2576_v36 = vadd.f32 -1.0, %v3136_v22 }
 0x1f4   : > { %v3140_v23 = vpop.eup %3139  ;;  %v2592_v16 = vadd.f32 -1.0, %v3138_v63 }
 0x1f5   : > { %2313 = vst.msk [vmem:[%s3558_s7 + $0xf0] sm:$0xf] %vm2252_vm1, %v2719_v32  ;;  %v1979_v43 = vsel %vm1659_vm3, %v4162_v62, %v2576_v36  ;;  %v2590_v6 = vadd.f32 -1.0, %v3140_v23 }
 0x1f6   : > { %v2706_v47 = vpack.c.bf16 %v1979_v43, %v1979_v43  ;;  %v1995_v1 = vsel %vm1675_vm4, %v4166_v37, %v2592_v16 }
 0x1f7   : > { %v2722_v40 = vpack.c.bf16 %v1995_v1, %v1995_v1  ;;  %v1993_v42 = vsel %vm1673_vm5, %v4170_v50, %v2590_v6 }
 0x1f8   : > { %2300 = vst.msk [vmem:[%s3558_s7 + $0xbc] sm:$0xf] %vm2252_vm1, %v2706_v47  ;;  %v2720_v54 = vpack.c.bf16 %v1993_v42, %v1993_v42 }
 0x1f9   : > { %2316 = vst.msk [vmem:[%s3558_s7 + $0xfc] sm:$0xf] %vm2252_vm1, %v2722_v40 }
 0x1fa   : > { %2314 = vst.msk [vmem:[%s3558_s7 + $0xf4] sm:$0xf] %vm2252_vm1, %v2720_v54 }
 0x1fb PF: > { %s13_s12 = sadd.s32 1, %s3148_s12  }
 0x1fc   : > { %p10_p4 = scmp.ge.s32.totalorder %s13_s12, 4  }
 0x1fe   :  { %12 = sbr.rel (!%p10_p4) target bundleno = 1 (0x1), region = 62 }

// kernel: _lambda_.8
= control target key start
LH: loop header
LB: loop body
LE: loop exit
PB: predicated region body
PF: predicated region fallthrough
CT: control target
= control target key end

     0   :  { %v1456_v1 = vmov 0.0   ;;  %vm1457_vm0 = vmmov 0   ;;  %vm413_vm1 = vcmask 261120   ;;  %vm987_vm3 = vcmask 257024   ;;  %s1943_s1 = inlined_call_operand.vmem [shape: bf16[288,32], index: 1, kind: input, shape index: {}]   ;;  %s1944_s0 = inlined_call_operand.vmem [shape: bf16[208,288], index: 0, kind: input, shape index: {}]   ;;  %s1945_s2 = inlined_call_operand.vmem [shape: f32[1,32], index: 2, kind: input, shape index: {}]   ;;  %s1946_s3 = inlined_call_operand.vmem [shape: bf16[208,32], index: 3, kind: output, shape index: {}]  }
   0x1   :  { %v1334_v0 = vld [vmem:[%s1943_s1 + $0x40] sm:$0xff]   ;;  %1276 = vmatprep.subr.bf16.mxu1 %v1456_v1  ;;  %1280 = vmatprep.mubr.msk.bf16.mxu1 %vm1457_vm0, %v1456_v1  ;;  %v1336_v3 = vld [vmem:[%s1943_s1 + $0x48] sm:$0xff]   ;;  %v1338_v5 = vld [vmem:[%s1943_s1 + $0x50] sm:$0xff]  }
   0x2   :  { %v1335_v2 = vld [vmem:[%s1943_s1] sm:$0xff]   ;;  %1167 = vmatprep.subr.bf16.mxu0 %v1334_v0  ;;  %v1337_v4 = vld [vmem:[%s1943_s1 + $0x8] sm:$0xff]   ;;  %v1339_v6 = vld [vmem:[%s1943_s1 + $0x10] sm:$0xff]  }
   0x3   :  { %1168 = vmatpush3.bf16.msra.mxu0 %v1335_v2  ;;  %v1340_v7 = vld [vmem:[%s1943_s1 + $0x58] sm:$0xff]   ;;  %v1342_v9 = vld [vmem:[%s1943_s1 + $0x60] sm:$0xff]   ;;  %v1344_v12 = vld [vmem:[%s1943_s1 + $0x68] sm:$0xff]  }
   0x4   :  { %1169 = vmatprep.subr.bf16.mxu0 %v1336_v3  ;;  %v1341_v8 = vld [vmem:[%s1943_s1 + $0x18] sm:$0xff]   ;;  %v1348_v10 = vld [vmem:[%s1943_s1 + $0x80] sm:$0xff]   ;;  %v1345_v13 = vld [vmem:[%s1943_s1 + $0x28] sm:$0xff]  }
   0x5   :  { %v1343_v11 = vld [vmem:[%s1943_s1 + $0x20] sm:$0xff]   ;;  %1277 = vmatpush3.bf16.msra.mxu1 %v1348_v10  ;;  %v1346_v14 = vld [vmem:[%s1943_s1 + $0x70] sm:$0xff]   ;;  %v1354_v16 = vld [vmem:[%s1943_s1 + $0x88] sm:$0xff]  }
   0x6   :  { %1278 = vmatprep.subr.bf16.mxu1 %v1456_v1  ;;  %v1353_v15 = vld [vmem:[%s1944_s0 + $0x4] ss:$12 sps:$4 sm:$0xff]   ;;  %v1355_v17 = vld [vmem:[%s1944_s0 + $0x8] ss:$12 sps:$4 sm:$0xff]   ;;  %v1349_v19 = vld [vmem:[%s1943_s1 + $0x78] sm:$0xff]  }
   0x7   :  { %1170 = vmatpush3.bf16.msra.mxu0 %v1337_v4  ;;  %485 = vmatprep.mubr.bf16.mxu0 %v1353_v15  ;;  %v1347_v18 = vld [vmem:[%s1943_s1 + $0x30] sm:$0xff]   ;;  %v1350_v20 = vld [vmem:[%s1943_s1 + $0x38] sm:$0xff]   ;;  %v1359_v21 = vld [vmem:[%s1944_s0 + $0x20] ss:$12 sps:$4 sm:$0xff]  }
   0x8   :  { %1171 = vmatprep.subr.bf16.mxu0 %v1338_v5  ;;  %v1351_v22 = vld [vmem:[%s1944_s0] ss:$12 sps:$4 sm:$0xff]   ;;  %v1356_v23 = vld [vmem:[%s1944_s0 + $0x1c] ss:$12 sps:$4 sm:$0xff]   ;;  %v1363_v24 = vld [vmem:[%s1944_s0 + $0x38] ss:$12 sps:$4 sm:$0xff]  }
   0x9   :  { %1279 = vmatpush3.bf16.msra.mxu1 %v1354_v16  ;;  %v1358_v25 = vld [vmem:[%s1944_s0 + $0x18] ss:$12 sps:$4 sm:$0xff]   ;;  %v1360_v26 = vld [vmem:[%s1944_s0 + $0x34] ss:$12 sps:$4 sm:$0xff]   ;;  %v1367_v27 = vld [vmem:[%s1944_s0 + $0x50] ss:$12 sps:$4 sm:$0xff]  }
   0xa   :  { %v1362_v28 = vld [vmem:[%s1944_s0 + $0x30] ss:$12 sps:$4 sm:$0xff]   ;;  %v1364_v29 = vld [vmem:[%s1944_s0 + $0x4c] ss:$12 sps:$4 sm:$0xff]   ;;  %v1371_v30 = vld [vmem:[%s1944_s0 + $0x68] ss:$12 sps:$4 sm:$0xff]  }
   0xb   :  { %1172 = vmatpush3.bf16.msra.mxu0 %v1339_v6  ;;  %v1366_v31 = vld [vmem:[%s1944_s0 + $0x48] ss:$12 sps:$4 sm:$0xff]   ;;  %v1368_v32 = vld [vmem:[%s1944_s0 + $0x64] ss:$12 sps:$4 sm:$0xff]   ;;  %v1375_v33 = vld [vmem:[%s1944_s0 + $0x80] ss:$12 sps:$4 sm:$0xff]  }
   0xc   :  { %1173 = vmatprep.subr.bf16.mxu0 %v1340_v7  ;;  %1281 = vmatmul.mubr.msk.bf16.vlgmr.msra.gmra.mrb[0].mxu1 %vm413_vm1, %v1355_v17  ;;  %v1370_v34 = vld [vmem:[%s1944_s0 + $0x60] ss:$12 sps:$4 sm:$0xff]   ;;  %v1372_v35 = vld [vmem:[%s1944_s0 + $0x7c] ss:$12 sps:$4 sm:$0xff]   ;;  %v1379_v36 = vld [vmem:[%s1944_s0 + $0x98] ss:$12 sps:$4 sm:$0xff]  }
   0xd   :  { %1284 = vmatprep.mubr.msk.bf16.mxu1 %vm1457_vm0, %v1456_v1  ;;  %v1374_v37 = vld [vmem:[%s1944_s0 + $0x78] ss:$12 sps:$4 sm:$0xff]   ;;  %v1376_v38 = vld [vmem:[%s1944_s0 + $0x94] ss:$12 sps:$4 sm:$0xff]   ;;  %v1383_v39 = vld [vmem:[%s1944_s0 + $0xb0] ss:$12 sps:$4 sm:$0xff]  }
   0xe   :  { %v1378_v40 = vld [vmem:[%s1944_s0 + $0x90] ss:$12 sps:$4 sm:$0xff]   ;;  %v1380_v41 = vld [vmem:[%s1944_s0 + $0xac] ss:$12 sps:$4 sm:$0xff]   ;;  %v1387_v42 = vld [vmem:[%s1944_s0 + $0xc8] ss:$12 sps:$4 sm:$0xff]  }
   0xf   :  { %1174 = vmatpush3.bf16.msra.mxu0 %v1341_v8  ;;  %v1382_v43 = vld [vmem:[%s1944_s0 + $0xa8] ss:$12 sps:$4 sm:$0xff]   ;;  %v1384_v44 = vld [vmem:[%s1944_s0 + $0xc4] ss:$12 sps:$4 sm:$0xff]   ;;  %v1391_v45 = vld [vmem:[%s1944_s0 + $0xe0] ss:$12 sps:$4 sm:$0xff]  }
  0x10   :  { %1175 = vmatprep.subr.bf16.mxu0 %v1342_v9  ;;  %v1386_v46 = vld [vmem:[%s1944_s0 + $0xc0] ss:$12 sps:$4 sm:$0xff]   ;;  %v1388_v47 = vld [vmem:[%s1944_s0 + $0xdc] ss:$12 sps:$4 sm:$0xff]   ;;  %v1395_v48 = vld [vmem:[%s1944_s0 + $0xf8] ss:$12 sps:$4 sm:$0xff]  }
  0x11   :  { %v1390_v49 = vld [vmem:[%s1944_s0 + $0xd8] ss:$12 sps:$4 sm:$0xff]   ;;  %v1392_v50 = vld [vmem:[%s1944_s0 + $0xf4] ss:$12 sps:$4 sm:$0xff]   ;;  %v1399_v51 = vld [vmem:[%s1944_s0 + $0x110] ss:$12 sps:$4 sm:$0xff]  }
  0x12   :  { %v1394_v52 = vld [vmem:[%s1944_s0 + $0xf0] ss:$12 sps:$4 sm:$0xff]   ;;  %v1396_v53 = vld [vmem:[%s1944_s0 + $0x10c] ss:$12 sps:$4 sm:$0xff]   ;;  %v1403_v54 = vld [vmem:[%s1944_s0 + $0x128] ss:$12 sps:$4 sm:$0xff]  }
  0x13   :  { %1176 = vmatpush3.bf16.msra.mxu0 %v1343_v11  ;;  %v1398_v55 = vld [vmem:[%s1944_s0 + $0x108] ss:$12 sps:$4 sm:$0xff]   ;;  %v1400_v56 = vld [vmem:[%s1944_s0 + $0x124] ss:$12 sps:$4 sm:$0xff]   ;;  %v1402_v57 = vld [vmem:[%s1944_s0 + $0x120] ss:$12 sps:$4 sm:$0xff]  }
  0x14   :  { %1177 = vmatprep.subr.bf16.mxu0 %v1344_v12  ;;  %1285 = vmatmul.mubr.msk.bf16.gmra.mrb[4].mxu1 %vm413_vm1, %v1359_v21  ;;  %v1693_v3 = vld [vmem:[%s1945_s2] ss:$0 sm:$0xff] }
  0x15   :  { %1288 = vmatprep.mubr.msk.bf16.mxu1 %vm1457_vm0, %v1456_v1 }
  0x17   :  { %1178 = vmatpush3.bf16.msra.mxu0 %v1345_v13 }
  0x18   :  { %1179 = vmatprep.subr.bf16.mxu0 %v1346_v14 }
  0x1b   :  { %1180 = vmatpush3.bf16.msra.mxu0 %v1347_v18 }
  0x1c   :  { %1181 = vmatprep.subr.bf16.mxu0 %v1349_v19  ;;  %1289 = vmatmul.mubr.msk.bf16.gmra.mrb[8].mxu1 %vm413_vm1, %v1363_v24 }
  0x1d   :  { %1292 = vmatprep.mubr.msk.bf16.mxu1 %vm1457_vm0, %v1456_v1 }
  0x1f   :  { %1182 = vmatpush3.bf16.msra.mxu0 %v1350_v20 }
  0x22   :  { %486 = vmatmul.mubr.bf16.vlgmr.msra.gmra.mrb[0].mxu0 %v1351_v22 }
  0x23   :  { %493 = vmatprep.mubr.bf16.mxu0 %v1356_v23 }
  0x24   :  { %1293 = vmatmul.mubr.msk.bf16.gmra.mrb[12].mxu1 %vm413_vm1, %v1367_v27 }
  0x25   :  { %1296 = vmatprep.mubr.msk.bf16.mxu1 %vm1457_vm0, %v1456_v1 }
  0x2a   :  { %494 = vmatmul.mubr.bf16.gmra.mrb[4].mxu0 %v1358_v25 }
  0x2b   :  { %501 = vmatprep.mubr.bf16.mxu0 %v1360_v26 }
  0x2c   :  { %1297 = vmatmul.mubr.msk.bf16.gmra.mrb[16].mxu1 %vm413_vm1, %v1371_v30 }
  0x2d   :  { %1300 = vmatprep.mubr.msk.bf16.mxu1 %vm1457_vm0, %v1456_v1 }
  0x32   :  { %502 = vmatmul.mubr.bf16.gmra.mrb[8].mxu0 %v1362_v28 }
  0x33   :  { %509 = vmatprep.mubr.bf16.mxu0 %v1364_v29 }
  0x34   :  { %1301 = vmatmul.mubr.msk.bf16.gmra.mrb[20].mxu1 %vm413_vm1, %v1375_v33 }
  0x35   :  { %1304 = vmatprep.mubr.msk.bf16.mxu1 %vm1457_vm0, %v1456_v1 }
  0x3a   :  { %510 = vmatmul.mubr.bf16.gmra.mrb[12].mxu0 %v1366_v31 }
  0x3b   :  { %517 = vmatprep.mubr.bf16.mxu0 %v1368_v32 }
  0x3c   :  { %1305 = vmatmul.mubr.msk.bf16.gmra.mrb[24].mxu1 %vm413_vm1, %v1379_v36 }
  0x3d   :  { %1308 = vmatprep.mubr.msk.bf16.mxu1 %vm1457_vm0, %v1456_v1 }
  0x42   :  { %518 = vmatmul.mubr.bf16.gmra.mrb[16].mxu0 %v1370_v34 }
  0x43   :  { %525 = vmatprep.mubr.bf16.mxu0 %v1372_v35 }
  0x44   :  { %1309 = vmatmul.mubr.msk.bf16.gmra.mrb[28].mxu1 %vm413_vm1, %v1383_v39 }
  0x45   :  { %1312 = vmatprep.mubr.msk.bf16.mxu1 %vm1457_vm0, %v1456_v1 }
  0x4a   :  { %526 = vmatmul.mubr.bf16.gmra.mrb[20].mxu0 %v1374_v37 }
  0x4b   :  { %533 = vmatprep.mubr.bf16.mxu0 %v1376_v38 }
  0x4c   :  { %1313 = vmatmul.mubr.msk.bf16.gmra.mrb[32].mxu1 %vm413_vm1, %v1387_v42 }
  0x4d   :  { %1316 = vmatprep.mubr.msk.bf16.mxu1 %vm1457_vm0, %v1456_v1 }
  0x52   :  { %534 = vmatmul.mubr.bf16.gmra.mrb[24].mxu0 %v1378_v40 }
  0x53   :  { %541 = vmatprep.mubr.bf16.mxu0 %v1380_v41 }
  0x54   :  { %1317 = vmatmul.mubr.msk.bf16.gmra.mrb[36].mxu1 %vm413_vm1, %v1391_v45 }
  0x55   :  { %1320 = vmatprep.mubr.msk.bf16.mxu1 %vm1457_vm0, %v1456_v1 }
  0x5a   :  { %542 = vmatmul.mubr.bf16.gmra.mrb[28].mxu0 %v1382_v43 }
  0x5b   :  { %549 = vmatprep.mubr.bf16.mxu0 %v1384_v44 }
  0x5c   :  { %1321 = vmatmul.mubr.msk.bf16.gmra.mrb[40].mxu1 %vm413_vm1, %v1395_v48 }
  0x5d   :  { %1324 = vmatprep.mubr.msk.bf16.mxu1 %vm1457_vm0, %v1456_v1 }
  0x62   :  { %550 = vmatmul.mubr.bf16.gmra.mrb[32].mxu0 %v1386_v46 }
  0x63   :  { %557 = vmatprep.mubr.bf16.mxu0 %v1388_v47 }
  0x64   :  { %1325 = vmatmul.mubr.msk.bf16.gmra.mrb[44].mxu1 %vm413_vm1, %v1399_v51 }
  0x65   :  { %1328 = vmatprep.mubr.msk.bf16.mxu1 %vm1457_vm0, %v1456_v1 }
  0x6a   :  { %558 = vmatmul.mubr.bf16.gmra.mrb[36].mxu0 %v1390_v49 }
  0x6b   :  { %565 = vmatprep.mubr.bf16.mxu0 %v1392_v50 }
  0x6c   :  { %1329 = vmatmul.mubr.msk.bf16.gmra.mrb[48].mxu1 %vm413_vm1, %v1403_v54 }
  0x72   :  { %566 = vmatmul.mubr.bf16.gmra.mrb[40].mxu0 %v1394_v52 }
  0x73   :  { %573 = vmatprep.mubr.bf16.mxu0 %v1396_v53 }
  0x7a   :  { %574 = vmatmul.mubr.bf16.gmra.mrb[44].mxu0 %v1398_v55 }
  0x7b   :  { %581 = vmatprep.mubr.bf16.mxu0 %v1400_v56 }
  0x82   :  { %582 = vmatmul.mubr.bf16.gmra.mrb[48].mxu0 %v1402_v57 }
  0xdf   :  { %v624_v58 = vpop.f32.mrb[0].mxu1 }
  0xe0   :  { %v1282_v59 = vpop.f32.mrb[1].mxu1 }
  0xe1   :  { %v627_v60 = vpop.f32.mrb[2].mxu1 }
  0xe2   :  { %v1283_v61 = vpop.f32.mrb[3].mxu1 }
  0xe7   :  { %v632_v62 = vpop.f32.mrb[4].mxu1 }
  0xe8   :  { %v1286_v63 = vpop.f32.mrb[5].mxu1 }
  0xe9   :  { %v635_v1 = vpop.f32.mrb[6].mxu1 }
  0xea   :  { %v1287_v4 = vpop.f32.mrb[7].mxu1 }
  0xef   :  { %v640_v12 = vpop.f32.mrb[8].mxu1 }
  0xf0   :  { %v1290_v13 = vpop.f32.mrb[9].mxu1 }
  0xf1   :  { %v643_v17 = vpop.f32.mrb[10].mxu1 }
  0xf2   :  { %v1291_v19 = vpop.f32.mrb[11].mxu1 }
  0xf5   :  { %v1183_v0 = vpop.f32.mrb[0].mxu0 }
  0xf6   :  { %v1184_v2 = vpop.f32.mrb[1].mxu0 }
  0xf7   :  { %v1185_v5 = vadd.f32 %v1184_v2, %v1183_v0  ;;  %v1186_v6 = vpop.f32.mrb[2].mxu0  ;;  %v648_v30 = vpop.f32.mrb[12].mxu1 }
  0xf8   :  { %v1187_v7 = vpop.f32.mrb[3].mxu0  ;;  %v1294_v31 = vpop.f32.mrb[13].mxu1 }
  0xf9   :  { %v488_v8 = vadd.f32 %v1185_v5, %v1693_v3  ;;  %v1188_v9 = vadd.f32 %v1187_v7, %v1186_v6  ;;  %v651_v35 = vpop.f32.mrb[14].mxu1 }
  0xfa   :  { %v1295_v37 = vpop.f32.mrb[15].mxu1 }
  0xfb   :  { %v625_v10 = vadd.f32 %v624_v58, %v488_v8  ;;  %v491_v11 = vadd.f32 %v1188_v9, %v1693_v3 }
  0xfd   :  { %v753_v14 = vmin.f32 %v625_v10, 0.0  ;;  %v628_v15 = vadd.f32 %v627_v60, %v491_v11  ;;  %v1189_v16 = vpop.f32.mrb[4].mxu0  ;;  %vm727_vm2 = vcmp.gt.f32.partialorder %v625_v10, 0.0 }
  0xfe   :  { %v1190_v18 = vpop.f32.mrb[5].mxu0 }
  0xff   :  { %v779_v20 = vmul.f32 1.442695, %v753_v14  ;;  %v754_v21 = vmin.f32 %v628_v15, 0.0  ;;  %v1191_v22 = vadd.f32 %v1190_v18, %v1189_v16  ;;  %v1192_v23 = vpop.f32.mrb[6].mxu0  ;;  %v1709_v49 = vpop.f32.mrb[16].mxu1  ;;  %vm728_vm4 = vcmp.gt.f32.partialorder %v628_v15, 0.0 }
 0x100   :  { %v1193_v24 = vpop.f32.mrb[7].mxu0  ;;  %v1298_v51 = vpop.f32.mrb[17].mxu1 }
 0x101   :  { %1404 = vpow2.f32 %v779_v20  ;;  %v781_v25 = vmul.f32 1.442695, %v754_v21  ;;  %v496_v26 = vadd.f32 %v1191_v22, %v1693_v3  ;;  %v1194_v27 = vadd.f32 %v1193_v24, %v1192_v23  ;;  %v1714_v56 = vpop.f32.mrb[18].mxu1 }
 0x102   :  { %v1299_v60 = vpop.f32.mrb[19].mxu1 }
 0x103   :  { %1406 = vpow2.f32 %v781_v25  ;;  %v1698_v28 = vadd.f32 %v632_v62, %v496_v26  ;;  %v499_v29 = vadd.f32 %v1194_v27, %v1693_v3 }
 0x105   :  { %v755_v32 = vmin.f32 %v1698_v28, 0.0  ;;  %v1702_v33 = vadd.f32 %v635_v1, %v499_v29  ;;  %v1195_v34 = vpop.f32.mrb[8].mxu0  ;;  %vm729_vm5 = vcmp.gt.f32.partialorder %v1698_v28, 0.0 }
 0x106   :  { %v1196_v36 = vpop.f32.mrb[9].mxu0 }
 0x107   :  { %v783_v38 = vmul.f32 1.442695, %v755_v32  ;;  %v756_v39 = vmin.f32 %v1702_v33, 0.0  ;;  %v1197_v40 = vadd.f32 %v1196_v36, %v1195_v34  ;;  %v1198_v41 = vpop.f32.mrb[10].mxu0  ;;  %v1727_v11 = vpop.f32.mrb[20].mxu1  ;;  %vm730_vm6 = vcmp.gt.f32.partialorder %v1702_v33, 0.0 }
 0x108   :  { %v1199_v42 = vpop.f32.mrb[11].mxu0  ;;  %v1302_v14 = vpop.f32.mrb[21].mxu1 }
 0x109   :  { %1408 = vpow2.f32 %v783_v38  ;;  %v785_v43 = vmul.f32 1.442695, %v756_v39  ;;  %v504_v44 = vadd.f32 %v1197_v40, %v1693_v3  ;;  %v1200_v45 = vadd.f32 %v1199_v42, %v1198_v41  ;;  %v667_v18 = vpop.f32.mrb[22].mxu1 }
 0x10a   :  { %v1303_v23 = vpop.f32.mrb[23].mxu1 }
 0x10b   :  { %v1405_v46 = vpop.eup %1404  ;;  %1410 = vpow2.f32 %v785_v43  ;;  %v1706_v47 = vadd.f32 %v640_v12, %v504_v44  ;;  %v507_v48 = vadd.f32 %v1200_v45, %v1693_v3 }
 0x10c   :  { %v1089_v50 = vadd.f32 -1.0, %v1405_v46 }
 0x10d   :  { %v1407_v52 = vpop.eup %1406  ;;  %v757_v53 = vmin.f32 %v1706_v47, 0.0  ;;  %v1712_v54 = vadd.f32 %v643_v17, %v507_v48  ;;  %v1201_v55 = vpop.f32.mrb[12].mxu0  ;;  %vm731_vm7 = vcmp.gt.f32.partialorder %v1706_v47, 0.0 }
 0x10e   :  { %v857_v57 = vsel %vm727_vm2, %v625_v10, %v1089_v50  ;;  %v1090_v58 = vadd.f32 -1.0, %v1407_v52  ;;  %v1202_v59 = vpop.f32.mrb[13].mxu0 }
 0x10f   :  { %v1141_v61 = vpack.c.bf16 %v857_v57, %v857_v57  ;;  %v787_v62 = vmul.f32 1.442695, %v757_v53  ;;  %v758_v63 = vmin.f32 %v1712_v54, 0.0  ;;  %v1204_v0 = vpop.f32.mrb[14].mxu0  ;;  %v1203_v2 = vadd.f32 %v1202_v59, %v1201_v55  ;;  %v672_v38 = vpop.f32.mrb[24].mxu1 }
 0x110   :  { %v858_v1 = vsel %vm728_vm4, %v628_v15, %v1090_v58  ;;  %v1205_v4 = vpop.f32.mrb[15].mxu0  ;;  %v1306_v40 = vpop.f32.mrb[25].mxu1  ;;  %vm732_vm8 = vcmp.gt.f32.partialorder %v1712_v54, 0.0 }
 0x111   :  { %988 = vst.msk [vmem:[%s1946_s3] sm:$0xf] %vm987_vm3, %v1141_v61  ;;  %v1142_v5 = vpack.c.bf16 %v858_v1, %v858_v1  ;;  %1412 = vpow2.f32 %v787_v62  ;;  %v789_v6 = vmul.f32 1.442695, %v758_v63  ;;  %v1206_v7 = vadd.f32 %v1205_v4, %v1204_v0  ;;  %v675_v45 = vpop.f32.mrb[26].mxu1 }
 0x112   :  { %v512_v8 = vadd.f32 %v1203_v2, %v1693_v3  ;;  %v1307_v50 = vpop.f32.mrb[27].mxu1 }
 0x113   :  { %v1409_v9 = vpop.eup %1408  ;;  %989 = vst.msk [vmem:[%s1946_s3 + $0x4] sm:$0xf] %vm987_vm3, %v1142_v5  ;;  %1414 = vpow2.f32 %v789_v6  ;;  %v515_v10 = vadd.f32 %v1206_v7, %v1693_v3 }
 0x114   :  { %v1091_v12 = vadd.f32 -1.0, %v1409_v9  ;;  %v1729_v13 = vadd.f32 %v648_v30, %v512_v8 }
 0x115   :  { %v1411_v15 = vpop.eup %1410  ;;  %v1732_v16 = vadd.f32 %v651_v35, %v515_v10  ;;  %v1207_v17 = vpop.f32.mrb[16].mxu0 }
 0x116   :  { %v859_v19 = vsel %vm729_vm5, %v1698_v28, %v1091_v12  ;;  %v1092_v20 = vadd.f32 -1.0, %v1411_v15  ;;  %v759_v21 = vmin.f32 %v1729_v13, 0.0  ;;  %v1208_v22 = vpop.f32.mrb[17].mxu0  ;;  %vm733_vm9 = vcmp.gt.f32.partialorder %v1729_v13, 0.0 }
 0x117   :  { %v1143_v24 = vpack.c.bf16 %v859_v19, %v859_v19  ;;  %v760_v25 = vmin.f32 %v1732_v16, 0.0  ;;  %v1209_v26 = vadd.f32 %v1208_v22, %v1207_v17  ;;  %v1210_v27 = vpop.f32.mrb[18].mxu0  ;;  %v1771_v62 = vpop.f32.mrb[28].mxu1  ;;  %vm734_vm10 = vcmp.gt.f32.partialorder %v1732_v16, 0.0 }
 0x118   :  { %v860_v29 = vsel %vm730_vm6, %v1702_v33, %v1092_v20  ;;  %v791_v30 = vmul.f32 1.442695, %v759_v21  ;;  %v1211_v31 = vpop.f32.mrb[19].mxu0  ;;  %v1310_v1 = vpop.f32.mrb[29].mxu1 }
 0x119   :  { %990 = vst.msk [vmem:[%s1946_s3 + $0x8] sm:$0xf] %vm987_vm3, %v1143_v24  ;;  %v1144_v28 = vpack.c.bf16 %v860_v29, %v860_v29  ;;  %v793_v32 = vmul.f32 1.442695, %v760_v25  ;;  %v520_v34 = vadd.f32 %v1209_v26, %v1693_v3  ;;  %v1212_v35 = vadd.f32 %v1211_v31, %v1210_v27  ;;  %v683_v7 = vpop.f32.mrb[30].mxu1 }
 0x11a   :  { %1416 = vpow2.f32 %v791_v30  ;;  %v1311_v12 = vpop.f32.mrb[31].mxu1 }
 0x11b   :  { %v1413_v36 = vpop.eup %1412  ;;  %991 = vst.msk [vmem:[%s1946_s3 + $0xc] sm:$0xf] %vm987_vm3, %v1144_v28  ;;  %1418 = vpow2.f32 %v793_v32  ;;  %v1749_v33 = vadd.f32 %v1709_v49, %v520_v34  ;;  %v523_v37 = vadd.f32 %v1212_v35, %v1693_v3 }
 0x11c   :  { %v1093_v39 = vadd.f32 -1.0, %v1413_v36 }
 0x11d   :  { %v1415_v41 = vpop.eup %1414  ;;  %v761_v42 = vmin.f32 %v1749_v33, 0.0  ;;  %v1755_v43 = vadd.f32 %v1714_v56, %v523_v37  ;;  %v1213_v44 = vpop.f32.mrb[20].mxu0  ;;  %vm735_vm11 = vcmp.gt.f32.partialorder %v1749_v33, 0.0 }
 0x11e   :  { %v861_v46 = vsel %vm731_vm7, %v1706_v47, %v1093_v39  ;;  %v1094_v48 = vadd.f32 -1.0, %v1415_v41  ;;  %v1214_v49 = vpop.f32.mrb[21].mxu0 }
 0x11f   :  { %v1145_v51 = vpack.c.bf16 %v861_v46, %v861_v46  ;;  %v795_v52 = vmul.f32 1.442695, %v761_v42  ;;  %v762_v53 = vmin.f32 %v1755_v43, 0.0  ;;  %v1216_v55 = vpop.f32.mrb[22].mxu0  ;;  %v1215_v58 = vadd.f32 %v1214_v49, %v1213_v44  ;;  %v688_v27 = vpop.f32.mrb[32].mxu1 }
 0x120   :  { %v862_v57 = vsel %vm732_vm8, %v1712_v54, %v1094_v48  ;;  %v1217_v59 = vpop.f32.mrb[23].mxu0  ;;  %v1314_v30 = vpop.f32.mrb[33].mxu1  ;;  %vm736_vm12 = vcmp.gt.f32.partialorder %v1755_v43, 0.0 }
 0x121   :  { %992 = vst.msk [vmem:[%s1946_s3 + $0x10] sm:$0xf] %vm987_vm3, %v1145_v51  ;;  %v1146_v47 = vpack.c.bf16 %v862_v57, %v862_v57  ;;  %1420 = vpow2.f32 %v795_v52  ;;  %v797_v56 = vmul.f32 1.442695, %v762_v53  ;;  %v1218_v60 = vadd.f32 %v1217_v59, %v1216_v55  ;;  %v691_v35 = vpop.f32.mrb[34].mxu1 }
 0x122   :  { %v528_v61 = vadd.f32 %v1215_v58, %v1693_v3 }
 0x123   :  { %993 = vst.msk [vmem:[%s1946_s3 + $0x14] sm:$0xf] %vm987_vm3, %v1146_v47  ;;  %1422 = vpow2.f32 %v797_v56  ;;  %v531_v54 = vadd.f32 %v1218_v60, %v1693_v3 }
 0x124   :  { %v1417_v63 = vpop.eup %1416  ;;  %v1774_v0 = vadd.f32 %v1727_v11, %v528_v61 }
 0x125   :  { %v1419_v2 = vpop.eup %1418  ;;  %v1095_v4 = vadd.f32 -1.0, %v1417_v63  ;;  %v1776_v5 = vadd.f32 %v667_v18, %v531_v54  ;;  %v1219_v6 = vpop.f32.mrb[24].mxu0 }
 0x126   :  { %v1096_v8 = vadd.f32 -1.0, %v1419_v2  ;;  %v763_v9 = vmin.f32 %v1774_v0, 0.0  ;;  %v1220_v10 = vpop.f32.mrb[25].mxu0  ;;  %vm737_vm13 = vcmp.gt.f32.partialorder %v1774_v0, 0.0 }
 0x127   :  { %v863_v14 = vsel %vm733_vm9, %v1729_v13, %v1095_v4  ;;  %v764_v11 = vmin.f32 %v1776_v5, 0.0  ;;  %v1221_v15 = vadd.f32 %v1220_v10, %v1219_v6  ;;  %v1222_v17 = vpop.f32.mrb[26].mxu0  ;;  %vm738_vm14 = vcmp.gt.f32.partialorder %v1776_v5, 0.0 }
 0x128   :  { %v1147_v19 = vpack.c.bf16 %v863_v14, %v863_v14  ;;  %v864_v18 = vsel %vm734_vm10, %v1732_v16, %v1096_v8  ;;  %v799_v20 = vmul.f32 1.442695, %v763_v9  ;;  %v1223_v21 = vpop.f32.mrb[27].mxu0 }
 0x129   :  { %v1148_v22 = vpack.c.bf16 %v864_v18, %v864_v18  ;;  %v801_v23 = vmul.f32 1.442695, %v764_v11  ;;  %v536_v24 = vadd.f32 %v1221_v15, %v1693_v3  ;;  %v1224_v25 = vadd.f32 %v1223_v21, %v1222_v17 }
 0x12a   :  { %994 = vst.msk [vmem:[%s1946_s3 + $0x18] sm:$0xf] %vm987_vm3, %v1147_v19  ;;  %1424 = vpow2.f32 %v799_v20 }
 0x12b   :  { %v1421_v13 = vpop.eup %1420  ;;  %995 = vst.msk [vmem:[%s1946_s3 + $0x1c] sm:$0xf] %vm987_vm3, %v1148_v22  ;;  %1426 = vpow2.f32 %v801_v23  ;;  %v1793_v16 = vadd.f32 %v672_v38, %v536_v24  ;;  %v539_v26 = vadd.f32 %v1224_v25, %v1693_v3  ;;  %v1315_v38 = vpop.f32.mrb[35].mxu1 }
 0x12c   :  { %v1097_v29 = vadd.f32 -1.0, %v1421_v13  ;;  %v1814_v52 = vpop.f32.mrb[36].mxu1 }
 0x12d   :  { %v1423_v31 = vpop.eup %1422  ;;  %v765_v28 = vmin.f32 %v1793_v16, 0.0  ;;  %v1798_v32 = vadd.f32 %v675_v45, %v539_v26  ;;  %v1225_v34 = vpop.f32.mrb[28].mxu0  ;;  %vm739_vm15 = vcmp.gt.f32.partialorder %v1793_v16, 0.0 }
 0x12e   :  { %v865_v36 = vsel %vm735_vm11, %v1749_v33, %v1097_v29  ;;  %v1098_v37 = vadd.f32 -1.0, %v1423_v31  ;;  %v1226_v39 = vpop.f32.mrb[29].mxu0  ;;  %v1318_v57 = vpop.f32.mrb[37].mxu1 }
 0x12f   :  { %v1149_v40 = vpack.c.bf16 %v865_v36, %v865_v36  ;;  %v803_v41 = vmul.f32 1.442695, %v765_v28  ;;  %v766_v42 = vmin.f32 %v1798_v32, 0.0  ;;  %v1228_v44 = vpop.f32.mrb[30].mxu0  ;;  %v1227_v48 = vadd.f32 %v1226_v39, %v1225_v34  ;;  %v699_v60 = vpop.f32.mrb[38].mxu1 }
 0x130   :  { %v866_v46 = vsel %vm736_vm12, %v1755_v43, %v1098_v37  ;;  %v1229_v49 = vpop.f32.mrb[31].mxu0  ;;  %v1319_v1 = vpop.f32.mrb[39].mxu1  ;;  %vm740_vm0 = vcmp.gt.f32.partialorder %v1798_v32, 0.0 }
 0x131   :  { %996 = vst.msk [vmem:[%s1946_s3 + $0x20] sm:$0xf] %vm987_vm3, %v1149_v40  ;;  %v1150_v33 = vpack.c.bf16 %v866_v46, %v866_v46  ;;  %1428 = vpow2.f32 %v803_v41  ;;  %v805_v45 = vmul.f32 1.442695, %v766_v42  ;;  %v1230_v50 = vadd.f32 %v1229_v49, %v1228_v44  ;;  %v704_v19 = vpop.f32.mrb[40].mxu1 }
 0x132   :  { %v544_v51 = vadd.f32 %v1227_v48, %v1693_v3  ;;  %v1322_v20 = vpop.f32.mrb[41].mxu1 }
 0x133   :  { %997 = vst.msk [vmem:[%s1946_s3 + $0x24] sm:$0xf] %vm987_vm3, %v1150_v33  ;;  %1430 = vpow2.f32 %v805_v45  ;;  %v547_v43 = vadd.f32 %v1230_v50, %v1693_v3  ;;  %v707_v25 = vpop.f32.mrb[42].mxu1 }
 0x134   :  { %v1425_v53 = vpop.eup %1424  ;;  %v1817_v55 = vadd.f32 %v1771_v62, %v544_v51 }
 0x135   :  { %v1427_v58 = vpop.eup %1426  ;;  %v1099_v59 = vadd.f32 -1.0, %v1425_v53  ;;  %v1819_v47 = vadd.f32 %v683_v7, %v547_v43  ;;  %v1231_v56 = vpop.f32.mrb[32].mxu0 }
 0x136   :  { %v1100_v61 = vadd.f32 -1.0, %v1427_v58  ;;  %v767_v54 = vmin.f32 %v1817_v55, 0.0  ;;  %v1232_v63 = vpop.f32.mrb[33].mxu0  ;;  %vm741_vm1 = vcmp.gt.f32.partialorder %v1817_v55, 0.0 }
 0x137   :  { %v867_v2 = vsel %vm737_vm13, %v1774_v0, %v1099_v59  ;;  %v768_v62 = vmin.f32 %v1819_v47, 0.0  ;;  %v1233_v4 = vadd.f32 %v1232_v63, %v1231_v56  ;;  %v1234_v6 = vpop.f32.mrb[34].mxu0  ;;  %vm742_vm2 = vcmp.gt.f32.partialorder %v1819_v47, 0.0 }
 0x138   :  { %v1151_v8 = vpack.c.bf16 %v867_v2, %v867_v2  ;;  %v868_v7 = vsel %vm738_vm14, %v1776_v5, %v1100_v61  ;;  %v807_v9 = vmul.f32 1.442695, %v767_v54  ;;  %v1235_v10 = vpop.f32.mrb[35].mxu0 }
 0x139   :  { %v1152_v12 = vpack.c.bf16 %v868_v7, %v868_v7  ;;  %v809_v14 = vmul.f32 1.442695, %v768_v62  ;;  %v552_v11 = vadd.f32 %v1233_v4, %v1693_v3  ;;  %v1236_v15 = vadd.f32 %v1235_v10, %v1234_v6 }
 0x13a   :  { %998 = vst.msk [vmem:[%s1946_s3 + $0x28] sm:$0xf] %vm987_vm3, %v1151_v8  ;;  %1432 = vpow2.f32 %v807_v9 }
 0x13b   :  { %v1429_v0 = vpop.eup %1428  ;;  %999 = vst.msk [vmem:[%s1946_s3 + $0x2c] sm:$0xf] %vm987_vm3, %v1152_v12  ;;  %1434 = vpow2.f32 %v809_v14  ;;  %v1836_v5 = vadd.f32 %v688_v27, %v552_v11  ;;  %v555_v17 = vadd.f32 %v1236_v15, %v1693_v3  ;;  %v1323_v27 = vpop.f32.mrb[43].mxu1 }
 0x13c   :  { %v1101_v18 = vadd.f32 -1.0, %v1429_v0  ;;  %v1857_v41 = vpop.f32.mrb[44].mxu1 }
 0x13d   :  { %v1431_v21 = vpop.eup %1430  ;;  %v769_v22 = vmin.f32 %v1836_v5, 0.0  ;;  %v1841_v23 = vadd.f32 %v691_v35, %v555_v17  ;;  %v1237_v24 = vpop.f32.mrb[36].mxu0  ;;  %vm743_vm4 = vcmp.gt.f32.partialorder %v1836_v5, 0.0 }
 0x13e   :  { %v869_v13 = vsel %vm739_vm15, %v1793_v16, %v1101_v18  ;;  %v1102_v26 = vadd.f32 -1.0, %v1431_v21  ;;  %v1238_v29 = vpop.f32.mrb[37].mxu0  ;;  %v1326_v46 = vpop.f32.mrb[45].mxu1 }
 0x13f   :  { %v1153_v30 = vpack.c.bf16 %v869_v13, %v869_v13  ;;  %v811_v31 = vmul.f32 1.442695, %v769_v22  ;;  %v770_v28 = vmin.f32 %v1841_v23, 0.0  ;;  %v1240_v34 = vpop.f32.mrb[38].mxu0  ;;  %v1239_v37 = vadd.f32 %v1238_v29, %v1237_v24  ;;  %v715_v50 = vpop.f32.mrb[46].mxu1 }
 0x140   :  { %v870_v36 = vsel %vm740_vm0, %v1798_v32, %v1102_v26  ;;  %v1241_v39 = vpop.f32.mrb[39].mxu0  ;;  %v1327_v57 = vpop.f32.mrb[47].mxu1  ;;  %vm744_vm5 = vcmp.gt.f32.partialorder %v1841_v23, 0.0 }
 0x141   :  { %1000 = vst.msk [vmem:[%s1946_s3 + $0x30] sm:$0xf] %vm987_vm3, %v1153_v30  ;;  %v1154_v16 = vpack.c.bf16 %v870_v36, %v870_v36  ;;  %1436 = vpow2.f32 %v811_v31  ;;  %v813_v35 = vmul.f32 1.442695, %v770_v28  ;;  %v1242_v38 = vadd.f32 %v1241_v39, %v1240_v34  ;;  %v720_v8 = vpop.f32.mrb[48].mxu1 }
 0x142   :  { %v560_v40 = vadd.f32 %v1239_v37, %v1693_v3  ;;  %v1330_v9 = vpop.f32.mrb[49].mxu1 }
 0x143   :  { %1001 = vst.msk [vmem:[%s1946_s3 + $0x34] sm:$0xf] %vm987_vm3, %v1154_v16  ;;  %1438 = vpow2.f32 %v813_v35  ;;  %v563_v32 = vadd.f32 %v1242_v38, %v1693_v3  ;;  %v723_v15 = vpop.f32.mrb[50].mxu1 }
 0x144   :  { %v1433_v42 = vpop.eup %1432  ;;  %v1860_v44 = vadd.f32 %v1814_v52, %v560_v40 }
 0x145   :  { %v1435_v48 = vpop.eup %1434  ;;  %v1103_v49 = vadd.f32 -1.0, %v1433_v42  ;;  %v1862_v33 = vadd.f32 %v699_v60, %v563_v32  ;;  %v1243_v45 = vpop.f32.mrb[40].mxu0 }
 0x146   :  { %v1104_v51 = vadd.f32 -1.0, %v1435_v48  ;;  %v771_v43 = vmin.f32 %v1860_v44, 0.0  ;;  %v1244_v53 = vpop.f32.mrb[41].mxu0  ;;  %vm745_vm6 = vcmp.gt.f32.partialorder %v1860_v44, 0.0 }
 0x147   :  { %v871_v58 = vsel %vm741_vm1, %v1817_v55, %v1103_v49  ;;  %v772_v52 = vmin.f32 %v1862_v33, 0.0  ;;  %v1245_v59 = vadd.f32 %v1244_v53, %v1243_v45  ;;  %v1246_v56 = vpop.f32.mrb[42].mxu0  ;;  %vm746_vm7 = vcmp.gt.f32.partialorder %v1862_v33, 0.0 }
 0x148   :  { %v1155_v61 = vpack.c.bf16 %v871_v58, %v871_v58  ;;  %v872_v60 = vsel %vm742_vm2, %v1819_v47, %v1104_v51  ;;  %v815_v54 = vmul.f32 1.442695, %v771_v43  ;;  %v1247_v63 = vpop.f32.mrb[43].mxu0 }
 0x149   :  { %v1156_v1 = vpack.c.bf16 %v872_v60, %v872_v60  ;;  %v817_v2 = vmul.f32 1.442695, %v772_v52  ;;  %v568_v62 = vadd.f32 %v1245_v59, %v1693_v3  ;;  %v1248_v4 = vadd.f32 %v1247_v63, %v1246_v56 }
 0x14a   :  { %1002 = vst.msk [vmem:[%s1946_s3 + $0x38] sm:$0xf] %vm987_vm3, %v1155_v61  ;;  %1440 = vpow2.f32 %v815_v54 }
 0x14b   :  { %v1437_v55 = vpop.eup %1436  ;;  %1003 = vst.msk [vmem:[%s1946_s3 + $0x3c] sm:$0xf] %vm987_vm3, %v1156_v1  ;;  %1442 = vpow2.f32 %v817_v2  ;;  %v1879_v47 = vadd.f32 %v704_v19, %v568_v62  ;;  %v571_v6 = vadd.f32 %v1248_v4, %v1693_v3  ;;  %v1331_v19 = vpop.f32.mrb[51].mxu1 }
 0x14c   :  { %v1105_v7 = vadd.f32 -1.0, %v1437_v55 }
 0x14d   :  { %v1439_v10 = vpop.eup %1438  ;;  %v773_v12 = vmin.f32 %v1879_v47, 0.0  ;;  %v1884_v14 = vadd.f32 %v707_v25, %v571_v6  ;;  %v1249_v11 = vpop.f32.mrb[44].mxu0  ;;  %vm747_vm8 = vcmp.gt.f32.partialorder %v1879_v47, 0.0 }
 0x14e   :  { %v873_v0 = vsel %vm743_vm4, %v1836_v5, %v1105_v7  ;;  %v1106_v17 = vadd.f32 -1.0, %v1439_v10  ;;  %v1250_v18 = vpop.f32.mrb[45].mxu0 }
 0x14f   :  { %v1157_v20 = vpack.c.bf16 %v873_v0, %v873_v0  ;;  %v819_v21 = vmul.f32 1.442695, %v773_v12  ;;  %v774_v22 = vmin.f32 %v1884_v14, 0.0  ;;  %v1252_v24 = vpop.f32.mrb[46].mxu0  ;;  %v1251_v26 = vadd.f32 %v1250_v18, %v1249_v11 }
 0x150   :  { %v874_v13 = vsel %vm744_vm5, %v1841_v23, %v1106_v17  ;;  %v1253_v29 = vpop.f32.mrb[47].mxu0  ;;  %vm748_vm9 = vcmp.gt.f32.partialorder %v1884_v14, 0.0 }
 0x151   :  { %1004 = vst.msk [vmem:[%s1946_s3 + $0x40] sm:$0xf] %vm987_vm3, %v1157_v20  ;;  %v1158_v5 = vpack.c.bf16 %v874_v13, %v874_v13  ;;  %1444 = vpow2.f32 %v819_v21  ;;  %v821_v25 = vmul.f32 1.442695, %v774_v22  ;;  %v1254_v27 = vadd.f32 %v1253_v29, %v1252_v24 }
 0x152   :  { %v576_v30 = vadd.f32 %v1251_v26, %v1693_v3 }
 0x153   :  { %1005 = vst.msk [vmem:[%s1946_s3 + $0x44] sm:$0xf] %vm987_vm3, %v1158_v5  ;;  %1446 = vpow2.f32 %v821_v25  ;;  %v579_v23 = vadd.f32 %v1254_v27, %v1693_v3 }
 0x154   :  { %v1441_v31 = vpop.eup %1440  ;;  %v713_v28 = vadd.f32 %v1857_v41, %v576_v30 }
 0x155   :  { %v1443_v34 = vpop.eup %1442  ;;  %v1107_v36 = vadd.f32 -1.0, %v1441_v31  ;;  %v716_v37 = vadd.f32 %v715_v50, %v579_v23  ;;  %v1255_v39 = vpop.f32.mrb[48].mxu0 }
 0x156   :  { %v1108_v16 = vadd.f32 -1.0, %v1443_v34  ;;  %v775_v35 = vmin.f32 %v713_v28, 0.0  ;;  %v1256_v38 = vpop.f32.mrb[49].mxu0  ;;  %vm749_vm10 = vcmp.gt.f32.partialorder %v713_v28, 0.0 }
 0x157   :  { %v875_v40 = vsel %vm745_vm6, %v1860_v44, %v1107_v36  ;;  %v776_v32 = vmin.f32 %v716_v37, 0.0  ;;  %v1257_v42 = vadd.f32 %v1256_v38, %v1255_v39  ;;  %v1258_v46 = vpop.f32.mrb[50].mxu0  ;;  %vm750_vm11 = vcmp.gt.f32.partialorder %v716_v37, 0.0 }
 0x158   :  { %v1159_v48 = vpack.c.bf16 %v875_v40, %v875_v40  ;;  %v876_v49 = vsel %vm746_vm7, %v1862_v33, %v1108_v16  ;;  %v823_v41 = vmul.f32 1.442695, %v775_v35  ;;  %v1259_v45 = vpop.f32.mrb[51].mxu0 }
 0x159   :  { %v1160_v51 = vpack.c.bf16 %v876_v49, %v876_v49  ;;  %v825_v50 = vmul.f32 1.442695, %v776_v32  ;;  %v584_v43 = vadd.f32 %v1257_v42, %v1693_v3  ;;  %v1260_v53 = vadd.f32 %v1259_v45, %v1258_v46 }
 0x15a   :  { %1006 = vst.msk [vmem:[%s1946_s3 + $0x48] sm:$0xf] %vm987_vm3, %v1159_v48  ;;  %1448 = vpow2.f32 %v823_v41 }
 0x15b   :  { %v1445_v44 = vpop.eup %1444  ;;  %1007 = vst.msk [vmem:[%s1946_s3 + $0x4c] sm:$0xf] %vm987_vm3, %v1160_v51  ;;  %1450 = vpow2.f32 %v825_v50  ;;  %v721_v33 = vadd.f32 %v720_v8, %v584_v43  ;;  %v587_v57 = vadd.f32 %v1260_v53, %v1693_v3 }
 0x15c   :  { %v1109_v58 = vadd.f32 -1.0, %v1445_v44 }
 0x15d   :  { %v1447_v52 = vpop.eup %1446  ;;  %v777_v59 = vmin.f32 %v721_v33, 0.0  ;;  %v724_v56 = vadd.f32 %v723_v15, %v587_v57  ;;  %vm751_vm12 = vcmp.gt.f32.partialorder %v721_v33, 0.0 }
 0x15e   :  { %v877_v61 = vsel %vm747_vm8, %v1879_v47, %v1109_v58  ;;  %v1110_v60 = vadd.f32 -1.0, %v1447_v52 }
 0x15f   :  { %v1161_v54 = vpack.c.bf16 %v877_v61, %v877_v61  ;;  %v827_v63 = vmul.f32 1.442695, %v777_v59  ;;  %v778_v1 = vmin.f32 %v724_v56, 0.0  ;;  %vm752_vm13 = vcmp.gt.f32.partialorder %v724_v56, 0.0 }
 0x160   :  { %v878_v2 = vsel %vm748_vm9, %v1884_v14, %v1110_v60 }
 0x161   :  { %1008 = vst.msk [vmem:[%s1946_s3 + $0x50] sm:$0xf] %vm987_vm3, %v1161_v54  ;;  %v1162_v3 = vpack.c.bf16 %v878_v2, %v878_v2  ;;  %1452 = vpow2.f32 %v827_v63  ;;  %v829_v62 = vmul.f32 1.442695, %v778_v1 }
 0x163   :  { %1009 = vst.msk [vmem:[%s1946_s3 + $0x54] sm:$0xf] %vm987_vm3, %v1162_v3  ;;  %1454 = vpow2.f32 %v829_v62 }
 0x164   :  { %v1449_v4 = vpop.eup %1448 }
 0x165   :  { %v1451_v55 = vpop.eup %1450  ;;  %v1111_v47 = vadd.f32 -1.0, %v1449_v4 }
 0x166   :  { %v1112_v6 = vadd.f32 -1.0, %v1451_v55 }
 0x167   :  { %v879_v8 = vsel %vm749_vm10, %v713_v28, %v1111_v47 }
 0x168   :  { %v1163_v7 = vpack.c.bf16 %v879_v8, %v879_v8  ;;  %v880_v9 = vsel %vm750_vm11, %v716_v37, %v1112_v6 }
 0x169   :  { %v1164_v10 = vpack.c.bf16 %v880_v9, %v880_v9 }
 0x16a   :  { %1010 = vst.msk [vmem:[%s1946_s3 + $0x58] sm:$0xf] %vm987_vm3, %v1163_v7 }
 0x16b   :  { %v1453_v12 = vpop.eup %1452  ;;  %1011 = vst.msk [vmem:[%s1946_s3 + $0x5c] sm:$0xf] %vm987_vm3, %v1164_v10 }
 0x16c   :  { %v1113_v14 = vadd.f32 -1.0, %v1453_v12 }
 0x16d   :  { %v1455_v11 = vpop.eup %1454 }
 0x16e   :  { %v881_v15 = vsel %vm751_vm12, %v721_v33, %v1113_v14  ;;  %v1114_v0 = vadd.f32 -1.0, %v1455_v11 }
 0x16f   :  { %v1165_v17 = vpack.c.bf16 %v881_v15, %v881_v15 }
 0x170   :  { %v882_v18 = vsel %vm752_vm13, %v724_v56, %v1114_v0 }
 0x171   :  { %1012 = vst.msk [vmem:[%s1946_s3 + $0x60] sm:$0xf] %vm987_vm3, %v1165_v17  ;;  %v1166_v19 = vpack.c.bf16 %v882_v18, %v882_v18 }
 0x173   :  { %1013 = vst.msk [vmem:[%s1946_s3 + $0x64] sm:$0xf] %vm987_vm3, %v1166_v19 }

// kernel: _lambda_.9
= control target key start
LH: loop header
LB: loop body
LE: loop exit
PB: predicated region body
PF: predicated region fallthrough
CT: control target
= control target key end

     0   :  { %v744_v1 = vmov 0.0   ;;  %vm745_vm0 = vmmov 0   ;;  %vm261_vm1 = vcmask 261120   ;;  %vm523_vm3 = vcmask 257024   ;;  %s957_s1 = inlined_call_operand.vmem [shape: bf16[288,32], index: 1, kind: input, shape index: {}]   ;;  %s958_s0 = inlined_call_operand.vmem [shape: bf16[80,288], index: 0, kind: input, shape index: {}]   ;;  %s959_s2 = inlined_call_operand.vmem [shape: f32[1,32], index: 2, kind: input, shape index: {}]   ;;  %s960_s3 = inlined_call_operand.vmem [shape: bf16[80,32], index: 3, kind: output, shape index: {}]  }
   0x1   :  { %v686_v0 = vld [vmem:[%s957_s1 + $0x40] sm:$0xff]   ;;  %660 = vmatprep.subr.bf16.mxu1 %v744_v1  ;;  %664 = vmatprep.mubr.msk.bf16.mxu1 %vm745_vm0, %v744_v1  ;;  %v688_v3 = vld [vmem:[%s957_s1 + $0x48] sm:$0xff]   ;;  %v690_v5 = vld [vmem:[%s957_s1 + $0x50] sm:$0xff]  }
   0x2   :  { %v687_v2 = vld [vmem:[%s957_s1] sm:$0xff]   ;;  %607 = vmatprep.subr.bf16.mxu0 %v686_v0  ;;  %v689_v4 = vld [vmem:[%s957_s1 + $0x8] sm:$0xff]   ;;  %v691_v6 = vld [vmem:[%s957_s1 + $0x10] sm:$0xff]  }
   0x3   :  { %608 = vmatpush3.bf16.msra.mxu0 %v687_v2  ;;  %v692_v7 = vld [vmem:[%s957_s1 + $0x58] sm:$0xff]   ;;  %v694_v9 = vld [vmem:[%s957_s1 + $0x60] sm:$0xff]   ;;  %v696_v12 = vld [vmem:[%s957_s1 + $0x68] sm:$0xff]  }
   0x4   :  { %609 = vmatprep.subr.bf16.mxu0 %v688_v3  ;;  %v693_v8 = vld [vmem:[%s957_s1 + $0x18] sm:$0xff]   ;;  %v700_v10 = vld [vmem:[%s957_s1 + $0x80] sm:$0xff]   ;;  %v697_v13 = vld [vmem:[%s957_s1 + $0x28] sm:$0xff]  }
   0x5   :  { %v695_v11 = vld [vmem:[%s957_s1 + $0x20] sm:$0xff]   ;;  %661 = vmatpush3.bf16.msra.mxu1 %v700_v10  ;;  %v698_v14 = vld [vmem:[%s957_s1 + $0x70] sm:$0xff]   ;;  %v706_v16 = vld [vmem:[%s957_s1 + $0x88] sm:$0xff]  }
   0x6   :  { %662 = vmatprep.subr.bf16.mxu1 %v744_v1  ;;  %v705_v15 = vld [vmem:[%s958_s0 + $0x4] ss:$12 sps:$4 sm:$0xff]   ;;  %v707_v17 = vld [vmem:[%s958_s0 + $0x8] ss:$12 sps:$4 sm:$0xff]   ;;  %v701_v19 = vld [vmem:[%s957_s1 + $0x78] sm:$0xff]  }
   0x7   :  { %610 = vmatpush3.bf16.msra.mxu0 %v689_v4  ;;  %309 = vmatprep.mubr.bf16.mxu0 %v705_v15  ;;  %v699_v18 = vld [vmem:[%s957_s1 + $0x30] sm:$0xff]   ;;  %v702_v20 = vld [vmem:[%s957_s1 + $0x38] sm:$0xff]   ;;  %v711_v21 = vld [vmem:[%s958_s0 + $0x20] ss:$12 sps:$4 sm:$0xff]  }
   0x8   :  { %611 = vmatprep.subr.bf16.mxu0 %v690_v5  ;;  %v703_v22 = vld [vmem:[%s958_s0] ss:$12 sps:$4 sm:$0xff]   ;;  %v708_v23 = vld [vmem:[%s958_s0 + $0x1c] ss:$12 sps:$4 sm:$0xff]   ;;  %v715_v24 = vld [vmem:[%s958_s0 + $0x38] ss:$12 sps:$4 sm:$0xff]  }
   0x9   :  { %663 = vmatpush3.bf16.msra.mxu1 %v706_v16  ;;  %v710_v25 = vld [vmem:[%s958_s0 + $0x18] ss:$12 sps:$4 sm:$0xff]   ;;  %v712_v26 = vld [vmem:[%s958_s0 + $0x34] ss:$12 sps:$4 sm:$0xff]   ;;  %v719_v27 = vld [vmem:[%s958_s0 + $0x50] ss:$12 sps:$4 sm:$0xff]  }
   0xa   :  { %v714_v28 = vld [vmem:[%s958_s0 + $0x30] ss:$12 sps:$4 sm:$0xff]   ;;  %v716_v29 = vld [vmem:[%s958_s0 + $0x4c] ss:$12 sps:$4 sm:$0xff]   ;;  %v723_v30 = vld [vmem:[%s958_s0 + $0x68] ss:$12 sps:$4 sm:$0xff]  }
   0xb   :  { %612 = vmatpush3.bf16.msra.mxu0 %v691_v6  ;;  %v718_v31 = vld [vmem:[%s958_s0 + $0x48] ss:$12 sps:$4 sm:$0xff]   ;;  %v720_v32 = vld [vmem:[%s958_s0 + $0x64] ss:$12 sps:$4 sm:$0xff]   ;;  %v722_v33 = vld [vmem:[%s958_s0 + $0x60] ss:$12 sps:$4 sm:$0xff]  }
   0xc   :  { %613 = vmatprep.subr.bf16.mxu0 %v692_v7  ;;  %665 = vmatmul.mubr.msk.bf16.vlgmr.msra.gmra.mrb[0].mxu1 %vm261_vm1, %v707_v17  ;;  %v885_v43 = vld [vmem:[%s959_s2] ss:$0 sm:$0xff] }
   0xd   :  { %668 = vmatprep.mubr.msk.bf16.mxu1 %vm745_vm0, %v744_v1 }
   0xf   :  { %614 = vmatpush3.bf16.msra.mxu0 %v693_v8 }
  0x10   :  { %615 = vmatprep.subr.bf16.mxu0 %v694_v9 }
  0x13   :  { %616 = vmatpush3.bf16.msra.mxu0 %v695_v11 }
  0x14   :  { %617 = vmatprep.subr.bf16.mxu0 %v696_v12  ;;  %669 = vmatmul.mubr.msk.bf16.gmra.mrb[4].mxu1 %vm261_vm1, %v711_v21 }
  0x15   :  { %672 = vmatprep.mubr.msk.bf16.mxu1 %vm745_vm0, %v744_v1 }
  0x17   :  { %618 = vmatpush3.bf16.msra.mxu0 %v697_v13 }
  0x18   :  { %619 = vmatprep.subr.bf16.mxu0 %v698_v14 }
  0x1b   :  { %620 = vmatpush3.bf16.msra.mxu0 %v699_v18 }
  0x1c   :  { %621 = vmatprep.subr.bf16.mxu0 %v701_v19  ;;  %673 = vmatmul.mubr.msk.bf16.gmra.mrb[8].mxu1 %vm261_vm1, %v715_v24 }
  0x1d   :  { %676 = vmatprep.mubr.msk.bf16.mxu1 %vm745_vm0, %v744_v1 }
  0x1f   :  { %622 = vmatpush3.bf16.msra.mxu0 %v702_v20 }
  0x22   :  { %310 = vmatmul.mubr.bf16.vlgmr.msra.gmra.mrb[0].mxu0 %v703_v22 }
  0x23   :  { %317 = vmatprep.mubr.bf16.mxu0 %v708_v23 }
  0x24   :  { %677 = vmatmul.mubr.msk.bf16.gmra.mrb[12].mxu1 %vm261_vm1, %v719_v27 }
  0x25   :  { %680 = vmatprep.mubr.msk.bf16.mxu1 %vm745_vm0, %v744_v1 }
  0x2a   :  { %318 = vmatmul.mubr.bf16.gmra.mrb[4].mxu0 %v710_v25 }
  0x2b   :  { %325 = vmatprep.mubr.bf16.mxu0 %v712_v26 }
  0x2c   :  { %681 = vmatmul.mubr.msk.bf16.gmra.mrb[16].mxu1 %vm261_vm1, %v723_v30 }
  0x32   :  { %326 = vmatmul.mubr.bf16.gmra.mrb[8].mxu0 %v714_v28 }
  0x33   :  { %333 = vmatprep.mubr.bf16.mxu0 %v716_v29 }
  0x3a   :  { %334 = vmatmul.mubr.bf16.gmra.mrb[12].mxu0 %v718_v31 }
  0x3b   :  { %341 = vmatprep.mubr.bf16.mxu0 %v720_v32 }
  0x42   :  { %342 = vmatmul.mubr.bf16.gmra.mrb[16].mxu0 %v722_v33 }
  0xdf   :  { %v384_v34 = vpop.f32.mrb[0].mxu1 }
  0xe0   :  { %v666_v35 = vpop.f32.mrb[1].mxu1 }
  0xe1   :  { %v387_v36 = vpop.f32.mrb[2].mxu1 }
  0xe2   :  { %v667_v37 = vpop.f32.mrb[3].mxu1 }
  0xe7   :  { %v392_v38 = vpop.f32.mrb[4].mxu1 }
  0xe8   :  { %v670_v39 = vpop.f32.mrb[5].mxu1 }
  0xe9   :  { %v395_v41 = vpop.f32.mrb[6].mxu1 }
  0xea   :  { %v671_v44 = vpop.f32.mrb[7].mxu1 }
  0xef   :  { %v400_v52 = vpop.f32.mrb[8].mxu1 }
  0xf0   :  { %v674_v53 = vpop.f32.mrb[9].mxu1 }
  0xf1   :  { %v403_v57 = vpop.f32.mrb[10].mxu1 }
  0xf2   :  { %v675_v59 = vpop.f32.mrb[11].mxu1 }
  0xf5   :  { %v623_v40 = vpop.f32.mrb[0].mxu0 }
  0xf6   :  { %v624_v42 = vpop.f32.mrb[1].mxu0 }
  0xf7   :  { %v625_v45 = vadd.f32 %v624_v42, %v623_v40  ;;  %v626_v46 = vpop.f32.mrb[2].mxu0  ;;  %v408_v6 = vpop.f32.mrb[12].mxu1 }
  0xf8   :  { %v627_v47 = vpop.f32.mrb[3].mxu0  ;;  %v678_v7 = vpop.f32.mrb[13].mxu1 }
  0xf9   :  { %v312_v48 = vadd.f32 %v625_v45, %v885_v43  ;;  %v628_v49 = vadd.f32 %v627_v47, %v626_v46  ;;  %v411_v11 = vpop.f32.mrb[14].mxu1 }
  0xfa   :  { %v679_v13 = vpop.f32.mrb[15].mxu1 }
  0xfb   :  { %v385_v50 = vadd.f32 %v384_v34, %v312_v48  ;;  %v315_v51 = vadd.f32 %v628_v49, %v885_v43 }
  0xfd   :  { %v433_v54 = vmin.f32 %v385_v50, 0.0  ;;  %v388_v55 = vadd.f32 %v387_v36, %v315_v51  ;;  %v629_v56 = vpop.f32.mrb[4].mxu0  ;;  %vm423_vm2 = vcmp.gt.f32.partialorder %v385_v50, 0.0 }
  0xfe   :  { %v630_v58 = vpop.f32.mrb[5].mxu0 }
  0xff   :  { %v443_v60 = vmul.f32 1.442695, %v433_v54  ;;  %v434_v61 = vmin.f32 %v388_v55, 0.0  ;;  %v631_v62 = vadd.f32 %v630_v58, %v629_v56  ;;  %v632_v63 = vpop.f32.mrb[6].mxu0  ;;  %v416_v25 = vpop.f32.mrb[16].mxu1  ;;  %vm424_vm4 = vcmp.gt.f32.partialorder %v388_v55, 0.0 }
 0x100   :  { %v633_v0 = vpop.f32.mrb[7].mxu0  ;;  %v682_v27 = vpop.f32.mrb[17].mxu1 }
 0x101   :  { %724 = vpow2.f32 %v443_v60  ;;  %v445_v1 = vmul.f32 1.442695, %v434_v61  ;;  %v320_v2 = vadd.f32 %v631_v62, %v885_v43  ;;  %v634_v3 = vadd.f32 %v633_v0, %v632_v63  ;;  %v419_v32 = vpop.f32.mrb[18].mxu1 }
 0x102   :  { %v683_v36 = vpop.f32.mrb[19].mxu1 }
 0x103   :  { %726 = vpow2.f32 %v445_v1  ;;  %v890_v4 = vadd.f32 %v392_v38, %v320_v2  ;;  %v323_v5 = vadd.f32 %v634_v3, %v885_v43 }
 0x105   :  { %v435_v8 = vmin.f32 %v890_v4, 0.0  ;;  %v894_v9 = vadd.f32 %v395_v41, %v323_v5  ;;  %v635_v10 = vpop.f32.mrb[8].mxu0  ;;  %vm425_vm5 = vcmp.gt.f32.partialorder %v890_v4, 0.0 }
 0x106   :  { %v636_v12 = vpop.f32.mrb[9].mxu0 }
 0x107   :  { %v447_v14 = vmul.f32 1.442695, %v435_v8  ;;  %v436_v15 = vmin.f32 %v894_v9, 0.0  ;;  %v637_v16 = vadd.f32 %v636_v12, %v635_v10  ;;  %v638_v17 = vpop.f32.mrb[10].mxu0  ;;  %vm426_vm6 = vcmp.gt.f32.partialorder %v894_v9, 0.0 }
 0x108   :  { %v639_v18 = vpop.f32.mrb[11].mxu0 }
 0x109   :  { %728 = vpow2.f32 %v447_v14  ;;  %v449_v19 = vmul.f32 1.442695, %v436_v15  ;;  %v328_v20 = vadd.f32 %v637_v16, %v885_v43  ;;  %v640_v21 = vadd.f32 %v639_v18, %v638_v17 }
 0x10b   :  { %v725_v22 = vpop.eup %724  ;;  %730 = vpow2.f32 %v449_v19  ;;  %v898_v23 = vadd.f32 %v400_v52, %v328_v20  ;;  %v331_v24 = vadd.f32 %v640_v21, %v885_v43 }
 0x10c   :  { %v577_v26 = vadd.f32 -1.0, %v725_v22 }
 0x10d   :  { %v727_v28 = vpop.eup %726  ;;  %v437_v29 = vmin.f32 %v898_v23, 0.0  ;;  %v902_v30 = vadd.f32 %v403_v57, %v331_v24  ;;  %v641_v31 = vpop.f32.mrb[12].mxu0  ;;  %vm427_vm7 = vcmp.gt.f32.partialorder %v898_v23, 0.0 }
 0x10e   :  { %v473_v33 = vsel %vm423_vm2, %v385_v50, %v577_v26  ;;  %v578_v34 = vadd.f32 -1.0, %v727_v28  ;;  %v642_v35 = vpop.f32.mrb[13].mxu0 }
 0x10f   :  { %v597_v37 = vpack.c.bf16 %v473_v33, %v473_v33  ;;  %v451_v38 = vmul.f32 1.442695, %v437_v29  ;;  %v438_v39 = vmin.f32 %v902_v30, 0.0  ;;  %v644_v40 = vpop.f32.mrb[14].mxu0  ;;  %v643_v42 = vadd.f32 %v642_v35, %v641_v31 }
 0x110   :  { %v474_v41 = vsel %vm424_vm4, %v388_v55, %v578_v34  ;;  %v645_v44 = vpop.f32.mrb[15].mxu0  ;;  %vm428_vm8 = vcmp.gt.f32.partialorder %v902_v30, 0.0 }
 0x111   :  { %524 = vst.msk [vmem:[%s960_s3] sm:$0xf] %vm523_vm3, %v597_v37  ;;  %v598_v45 = vpack.c.bf16 %v474_v41, %v474_v41  ;;  %732 = vpow2.f32 %v451_v38  ;;  %v453_v46 = vmul.f32 1.442695, %v438_v39  ;;  %v646_v47 = vadd.f32 %v645_v44, %v644_v40 }
 0x112   :  { %v336_v48 = vadd.f32 %v643_v42, %v885_v43 }
 0x113   :  { %v729_v49 = vpop.eup %728  ;;  %525 = vst.msk [vmem:[%s960_s3 + $0x4] sm:$0xf] %vm523_vm3, %v598_v45  ;;  %734 = vpow2.f32 %v453_v46  ;;  %v339_v50 = vadd.f32 %v646_v47, %v885_v43 }
 0x114   :  { %v579_v51 = vadd.f32 -1.0, %v729_v49  ;;  %v409_v52 = vadd.f32 %v408_v6, %v336_v48 }
 0x115   :  { %v731_v53 = vpop.eup %730  ;;  %v412_v54 = vadd.f32 %v411_v11, %v339_v50  ;;  %v647_v55 = vpop.f32.mrb[16].mxu0 }
 0x116   :  { %v475_v56 = vsel %vm425_vm5, %v890_v4, %v579_v51  ;;  %v580_v57 = vadd.f32 -1.0, %v731_v53  ;;  %v439_v58 = vmin.f32 %v409_v52, 0.0  ;;  %v648_v59 = vpop.f32.mrb[17].mxu0  ;;  %vm429_vm9 = vcmp.gt.f32.partialorder %v409_v52, 0.0 }
 0x117   :  { %v599_v60 = vpack.c.bf16 %v475_v56, %v475_v56  ;;  %v440_v61 = vmin.f32 %v412_v54, 0.0  ;;  %v649_v62 = vadd.f32 %v648_v59, %v647_v55  ;;  %v650_v63 = vpop.f32.mrb[18].mxu0  ;;  %vm430_vm10 = vcmp.gt.f32.partialorder %v412_v54, 0.0 }
 0x118   :  { %v476_v0 = vsel %vm426_vm6, %v894_v9, %v580_v57  ;;  %v455_v1 = vmul.f32 1.442695, %v439_v58  ;;  %v651_v2 = vpop.f32.mrb[19].mxu0 }
 0x119   :  { %526 = vst.msk [vmem:[%s960_s3 + $0x8] sm:$0xf] %vm523_vm3, %v599_v60  ;;  %v600_v3 = vpack.c.bf16 %v476_v0, %v476_v0  ;;  %v457_v4 = vmul.f32 1.442695, %v440_v61  ;;  %v344_v5 = vadd.f32 %v649_v62, %v885_v43  ;;  %v652_v6 = vadd.f32 %v651_v2, %v650_v63 }
 0x11a   :  { %736 = vpow2.f32 %v455_v1 }
 0x11b   :  { %v733_v7 = vpop.eup %732  ;;  %527 = vst.msk [vmem:[%s960_s3 + $0xc] sm:$0xf] %vm523_vm3, %v600_v3  ;;  %738 = vpow2.f32 %v457_v4  ;;  %v417_v8 = vadd.f32 %v416_v25, %v344_v5  ;;  %v347_v9 = vadd.f32 %v652_v6, %v885_v43 }
 0x11c   :  { %v581_v10 = vadd.f32 -1.0, %v733_v7 }
 0x11d   :  { %v735_v11 = vpop.eup %734  ;;  %v441_v12 = vmin.f32 %v417_v8, 0.0  ;;  %v420_v13 = vadd.f32 %v419_v32, %v347_v9  ;;  %vm431_vm11 = vcmp.gt.f32.partialorder %v417_v8, 0.0 }
 0x11e   :  { %v477_v14 = vsel %vm427_vm7, %v898_v23, %v581_v10  ;;  %v582_v15 = vadd.f32 -1.0, %v735_v11 }
 0x11f   :  { %v601_v16 = vpack.c.bf16 %v477_v14, %v477_v14  ;;  %v459_v17 = vmul.f32 1.442695, %v441_v12  ;;  %v442_v18 = vmin.f32 %v420_v13, 0.0  ;;  %vm432_vm12 = vcmp.gt.f32.partialorder %v420_v13, 0.0 }
 0x120   :  { %v478_v19 = vsel %vm428_vm8, %v902_v30, %v582_v15 }
 0x121   :  { %528 = vst.msk [vmem:[%s960_s3 + $0x10] sm:$0xf] %vm523_vm3, %v601_v16  ;;  %v602_v43 = vpack.c.bf16 %v478_v19, %v478_v19  ;;  %740 = vpow2.f32 %v459_v17  ;;  %v461_v20 = vmul.f32 1.442695, %v442_v18 }
 0x123   :  { %529 = vst.msk [vmem:[%s960_s3 + $0x14] sm:$0xf] %vm523_vm3, %v602_v43  ;;  %742 = vpow2.f32 %v461_v20 }
 0x124   :  { %v737_v21 = vpop.eup %736 }
 0x125   :  { %v739_v22 = vpop.eup %738  ;;  %v583_v23 = vadd.f32 -1.0, %v737_v21 }
 0x126   :  { %v584_v24 = vadd.f32 -1.0, %v739_v22 }
 0x127   :  { %v479_v25 = vsel %vm429_vm9, %v409_v52, %v583_v23 }
 0x128   :  { %v603_v26 = vpack.c.bf16 %v479_v25, %v479_v25  ;;  %v480_v27 = vsel %vm430_vm10, %v412_v54, %v584_v24 }
 0x129   :  { %v604_v28 = vpack.c.bf16 %v480_v27, %v480_v27 }
 0x12a   :  { %530 = vst.msk [vmem:[%s960_s3 + $0x18] sm:$0xf] %vm523_vm3, %v603_v26 }
 0x12b   :  { %v741_v29 = vpop.eup %740  ;;  %531 = vst.msk [vmem:[%s960_s3 + $0x1c] sm:$0xf] %vm523_vm3, %v604_v28 }
 0x12c   :  { %v585_v30 = vadd.f32 -1.0, %v741_v29 }
 0x12d   :  { %v743_v31 = vpop.eup %742 }
 0x12e   :  { %v481_v32 = vsel %vm431_vm11, %v417_v8, %v585_v30  ;;  %v586_v33 = vadd.f32 -1.0, %v743_v31 }
 0x12f   :  { %v605_v34 = vpack.c.bf16 %v481_v32, %v481_v32 }
 0x130   :  { %v482_v35 = vsel %vm432_vm12, %v420_v13, %v586_v33 }
 0x131   :  { %532 = vst.msk [vmem:[%s960_s3 + $0x20] sm:$0xf] %vm523_vm3, %v605_v34  ;;  %v606_v36 = vpack.c.bf16 %v482_v35, %v482_v35 }
 0x133   :  { %533 = vst.msk [vmem:[%s960_s3 + $0x24] sm:$0xf] %vm523_vm3, %v606_v36 }

// kernel: _lambda_.10
= control target key start
LH: loop header
LB: loop body
LE: loop exit
PB: predicated region body
PF: predicated region fallthrough
CT: control target
= control target key end

     0   :  { %vm940_vm0 = vcmask 261120   ;;  %s2035_s1 = inlined_call_operand.vmem [shape: bf16[288,1024], index: 1, kind: input, shape index: {}]   ;;  %s2036_s0 = inlined_call_operand.vmem [shape: bf16[16,288], index: 0, kind: input, shape index: {}]   ;;  %s2037_s2 = inlined_call_operand.vmem [shape: f32[1,1024], index: 2, kind: input, shape index: {}]   ;;  %s2038_s3 = inlined_call_operand.vmem [shape: f32[16,1024], index: 3, kind: output, shape index: {}]  }
   0x1   :  { %v19_v0 = vld [vmem:[%s2035_s1] sm:$0xff]  ;;  %v20_v2 = vld [vmem:[%s2035_s1 + $0x8] sm:$0xff] }
   0x2   :  { %v23_v1 = vld [vmem:[%s2035_s1 + $0x20] sm:$0xff]  ;;  %v24_v4 = vld [vmem:[%s2035_s1 + $0x28] sm:$0xff] }
   0x3   :  { %v1312_v3 = vcombine.high %v19_v0, %v23_v1  ;;  %v1311_v5 = vcombine.low %v19_v0, %v23_v1  ;;  %v27_v6 = vld [vmem:[%s2035_s1 + $0x40] sm:$0xff]  ;;  %v1314_v8 = vcombine.high %v20_v2, %v24_v4  ;;  %v1313_v9 = vcombine.low %v20_v2, %v24_v4  ;;  %v28_v11 = vld [vmem:[%s2035_s1 + $0x48] sm:$0xff] }
   0x4   :  { %v31_v7 = vld [vmem:[%s2035_s1 + $0x60] sm:$0xff]  ;;  %v32_v12 = vld [vmem:[%s2035_s1 + $0x68] sm:$0xff] }
   0x5   :  { %v1320_v10 = vcombine.high %v27_v6, %v31_v7  ;;  %v35_v13 = vld [vmem:[%s2035_s1 + $0x80] sm:$0xff]  ;;  %944 = vmatprep.subr.bf16.mxu0 %v1312_v3  ;;  %v1322_v14 = vcombine.high %v28_v11, %v32_v12  ;;  %v36_v16 = vld [vmem:[%s2035_s1 + $0x88] sm:$0xff]  ;;  %1030 = vmatprep.subr.bf16.mxu1 %v1314_v8  ;;  %v1319_v18 = vcombine.low %v27_v6, %v31_v7 }
   0x6   :  { %v39_v15 = vld [vmem:[%s2035_s1 + $0xa0] sm:$0xff]  ;;  %v40_v17 = vld [vmem:[%s2035_s1 + $0xa8] sm:$0xff]  ;;  %945 = vmatpush1.bf16.msra.mxu0 %v1311_v5  ;;  %1031 = vmatpush1.bf16.msra.mxu1 %v1313_v9  ;;  %v1321_v19 = vcombine.low %v28_v11, %v32_v12 }
   0x7   :  { %946 = vmatprep.subr.bf16.mxu0 %v1320_v10  ;;  %v1328_v20 = vcombine.high %v35_v13, %v39_v15  ;;  %1032 = vmatprep.subr.bf16.mxu1 %v1322_v14  ;;  %v1330_v21 = vcombine.high %v36_v16, %v40_v17  ;;  %v43_v22 = vld [vmem:[%s2035_s1 + $0xc0] sm:$0xff]  ;;  %v44_v24 = vld [vmem:[%s2035_s1 + $0xc8] sm:$0xff]  ;;  %v1327_v26 = vcombine.low %v35_v13, %v39_v15 }
   0x8   :  { %v47_v23 = vld [vmem:[%s2035_s1 + $0xe0] sm:$0xff]  ;;  %v48_v25 = vld [vmem:[%s2035_s1 + $0xe8] sm:$0xff]  ;;  %v1329_v27 = vcombine.low %v36_v16, %v40_v17 }
   0x9   :  { %v1336_v28 = vcombine.high %v43_v22, %v47_v23  ;;  %v1338_v29 = vcombine.high %v44_v24, %v48_v25  ;;  %v51_v30 = vld [vmem:[%s2035_s1 + $0x100] sm:$0xff]  ;;  %v52_v32 = vld [vmem:[%s2035_s1 + $0x108] sm:$0xff]  ;;  %v1335_v34 = vcombine.low %v43_v22, %v47_v23  ;;  %v1337_v35 = vcombine.low %v44_v24, %v48_v25 }
   0xa   :  { %947 = vmatpush1.bf16.msra.mxu0 %v1319_v18  ;;  %1033 = vmatpush1.bf16.msra.mxu1 %v1321_v19  ;;  %v55_v31 = vld [vmem:[%s2035_s1 + $0x120] sm:$0xff]  ;;  %v56_v33 = vld [vmem:[%s2035_s1 + $0x128] sm:$0xff] }
   0xb   :  { %948 = vmatprep.subr.bf16.mxu0 %v1328_v20  ;;  %1034 = vmatprep.subr.bf16.mxu1 %v1330_v21  ;;  %v1344_v36 = vcombine.high %v51_v30, %v55_v31  ;;  %v1346_v37 = vcombine.high %v52_v32, %v56_v33  ;;  %v59_v38 = vld [vmem:[%s2035_s1 + $0x140] sm:$0xff]  ;;  %v60_v40 = vld [vmem:[%s2035_s1 + $0x148] sm:$0xff]  ;;  %v1343_v42 = vcombine.low %v51_v30, %v55_v31 }
   0xc   :  { %v63_v39 = vld [vmem:[%s2035_s1 + $0x160] sm:$0xff]  ;;  %v64_v41 = vld [vmem:[%s2035_s1 + $0x168] sm:$0xff]  ;;  %v1345_v43 = vcombine.low %v52_v32, %v56_v33 }
   0xd   :  { %v1352_v44 = vcombine.high %v59_v38, %v63_v39  ;;  %v1354_v45 = vcombine.high %v60_v40, %v64_v41  ;;  %v67_v46 = vld [vmem:[%s2035_s1 + $0x180] sm:$0xff]  ;;  %v68_v48 = vld [vmem:[%s2035_s1 + $0x188] sm:$0xff]  ;;  %v1351_v50 = vcombine.low %v59_v38, %v63_v39  ;;  %v1353_v51 = vcombine.low %v60_v40, %v64_v41 }
   0xe   :  { %949 = vmatpush1.bf16.msra.mxu0 %v1327_v26  ;;  %1035 = vmatpush1.bf16.msra.mxu1 %v1329_v27  ;;  %v71_v47 = vld [vmem:[%s2035_s1 + $0x1a0] sm:$0xff]  ;;  %v72_v49 = vld [vmem:[%s2035_s1 + $0x1a8] sm:$0xff] }
   0xf   :  { %950 = vmatprep.subr.bf16.mxu0 %v1336_v28  ;;  %1036 = vmatprep.subr.bf16.mxu1 %v1338_v29  ;;  %v1360_v52 = vcombine.high %v67_v46, %v71_v47  ;;  %v1362_v53 = vcombine.high %v68_v48, %v72_v49  ;;  %v75_v54 = vld [vmem:[%s2035_s1 + $0x1c0] sm:$0xff]  ;;  %v76_v57 = vld [vmem:[%s2035_s1 + $0x1c8] sm:$0xff]  ;;  %v1359_v59 = vcombine.low %v67_v46, %v71_v47 }
  0x10   :  { %v79_v55 = vld [vmem:[%s2035_s1 + $0x1e0] sm:$0xff]  ;;  %v80_v58 = vld [vmem:[%s2035_s1 + $0x1e8] sm:$0xff]  ;;  %v1361_v60 = vcombine.low %v68_v48, %v72_v49 }
  0x11   :  { %v1610_v56 = vld [vmem:[%s2036_s0 + $0x4] ss:$12 sps:$4 sm:$0xff]   ;;  %v1368_v61 = vcombine.high %v75_v54, %v79_v55  ;;  %v1370_v62 = vcombine.high %v76_v57, %v80_v58  ;;  %v84_v1 = vld [vmem:[%s2035_s1 + $0x208] sm:$0xff]  ;;  %v1367_v3 = vcombine.low %v75_v54, %v79_v55  ;;  %v1369_v4 = vcombine.low %v76_v57, %v80_v58 }
  0x12   :  { %951 = vmatpush1.bf16.msra.mxu0 %v1335_v34  ;;  %1037 = vmatpush1.bf16.msra.mxu1 %v1337_v35  ;;  %v83_v63 = vld [vmem:[%s2035_s1 + $0x200] sm:$0xff]  ;;  %v88_v2 = vld [vmem:[%s2035_s1 + $0x228] sm:$0xff] }
  0x13   :  { %952 = vmatprep.subr.bf16.mxu0 %v1344_v36  ;;  %1038 = vmatprep.subr.bf16.mxu1 %v1346_v37  ;;  %v87_v0 = vld [vmem:[%s2035_s1 + $0x220] sm:$0xff]  ;;  %v1378_v6 = vcombine.high %v84_v1, %v88_v2  ;;  %v92_v9 = vld [vmem:[%s2035_s1 + $0x248] sm:$0xff]  ;;  %v1377_v12 = vcombine.low %v84_v1, %v88_v2 }
  0x14   :  { %976 = vmatprep.mubr.bf16.mxu0 %v1610_v56  ;;  %1062 = vmatprep.mubr.bf16.mxu1 %v1610_v56  ;;  %v1376_v5 = vcombine.high %v83_v63, %v87_v0  ;;  %v91_v7 = vld [vmem:[%s2035_s1 + $0x240] sm:$0xff]  ;;  %v96_v10 = vld [vmem:[%s2035_s1 + $0x268] sm:$0xff]  ;;  %v1375_v11 = vcombine.low %v83_v63, %v87_v0 }
  0x15   :  { %v95_v8 = vld [vmem:[%s2035_s1 + $0x260] sm:$0xff]  ;;  %v1386_v14 = vcombine.high %v92_v9, %v96_v10  ;;  %v100_v17 = vld [vmem:[%s2035_s1 + $0x288] sm:$0xff]  ;;  %v1385_v20 = vcombine.low %v92_v9, %v96_v10 }
  0x16   :  { %953 = vmatpush1.bf16.msra.mxu0 %v1343_v42  ;;  %1039 = vmatpush1.bf16.msra.mxu1 %v1345_v43  ;;  %v1384_v13 = vcombine.high %v91_v7, %v95_v8  ;;  %v99_v15 = vld [vmem:[%s2035_s1 + $0x280] sm:$0xff]  ;;  %v104_v18 = vld [vmem:[%s2035_s1 + $0x2a8] sm:$0xff]  ;;  %v1383_v19 = vcombine.low %v91_v7, %v95_v8 }
  0x17   :  { %954 = vmatprep.subr.bf16.mxu0 %v1352_v44  ;;  %1040 = vmatprep.subr.bf16.mxu1 %v1354_v45  ;;  %v103_v16 = vld [vmem:[%s2035_s1 + $0x2a0] sm:$0xff]  ;;  %v1394_v22 = vcombine.high %v100_v17, %v104_v18  ;;  %v108_v25 = vld [vmem:[%s2035_s1 + $0x2c8] sm:$0xff]  ;;  %v1393_v28 = vcombine.low %v100_v17, %v104_v18  ;;  %v21_v17 = vld [vmem:[%s2035_s1 + $0x10] sm:$0xff] }
  0x18   :  { %v1392_v21 = vcombine.high %v99_v15, %v103_v16  ;;  %v107_v23 = vld [vmem:[%s2035_s1 + $0x2c0] sm:$0xff]  ;;  %v112_v26 = vld [vmem:[%s2035_s1 + $0x2e8] sm:$0xff]  ;;  %v1391_v27 = vcombine.low %v99_v15, %v103_v16  ;;  %v25_v18 = vld [vmem:[%s2035_s1 + $0x30] sm:$0xff] }
  0x19   :  { %v111_v24 = vld [vmem:[%s2035_s1 + $0x2e0] sm:$0xff]  ;;  %v1402_v30 = vcombine.high %v108_v25, %v112_v26  ;;  %v116_v33 = vld [vmem:[%s2035_s1 + $0x308] sm:$0xff]  ;;  %v1401_v36 = vcombine.low %v108_v25, %v112_v26  ;;  %v29_v26 = vld [vmem:[%s2035_s1 + $0x50] sm:$0xff] }
  0x1a   :  { %955 = vmatpush1.bf16.msra.mxu0 %v1351_v50  ;;  %1041 = vmatpush1.bf16.msra.mxu1 %v1353_v51  ;;  %v1400_v29 = vcombine.high %v107_v23, %v111_v24  ;;  %v115_v31 = vld [vmem:[%s2035_s1 + $0x300] sm:$0xff]  ;;  %v120_v34 = vld [vmem:[%s2035_s1 + $0x328] sm:$0xff]  ;;  %v1399_v35 = vcombine.low %v107_v23, %v111_v24  ;;  %v1316_v23 = vcombine.high %v21_v17, %v25_v18  ;;  %v1496_v24 = vmov 0  }
  0x1b   :  { %956 = vmatprep.subr.bf16.mxu0 %v1360_v52  ;;  %1042 = vmatprep.subr.bf16.mxu1 %v1362_v53  ;;  %v119_v32 = vld [vmem:[%s2035_s1 + $0x320] sm:$0xff]  ;;  %v1410_v38 = vcombine.high %v116_v33, %v120_v34  ;;  %v124_v41 = vld [vmem:[%s2035_s1 + $0x348] sm:$0xff]  ;;  %v1409_v44 = vcombine.low %v116_v33, %v120_v34 }
  0x1c   :  { %v1408_v37 = vcombine.high %v115_v31, %v119_v32  ;;  %v123_v39 = vld [vmem:[%s2035_s1 + $0x340] sm:$0xff]  ;;  %v128_v42 = vld [vmem:[%s2035_s1 + $0x368] sm:$0xff]  ;;  %v1407_v43 = vcombine.low %v115_v31, %v119_v32  ;;  %v1315_v31 = vcombine.low %v21_v17, %v25_v18 }
  0x1d   :  { %v127_v40 = vld [vmem:[%s2035_s1 + $0x360] sm:$0xff]  ;;  %v1418_v46 = vcombine.high %v124_v41, %v128_v42  ;;  %v132_v49 = vld [vmem:[%s2035_s1 + $0x388] sm:$0xff]  ;;  %v1417_v52 = vcombine.low %v124_v41, %v128_v42 }
  0x1e   :  { %957 = vmatpush1.bf16.msra.mxu0 %v1359_v59  ;;  %1043 = vmatpush1.bf16.msra.mxu1 %v1361_v60  ;;  %v1416_v45 = vcombine.high %v123_v39, %v127_v40  ;;  %v131_v47 = vld [vmem:[%s2035_s1 + $0x380] sm:$0xff]  ;;  %v136_v50 = vld [vmem:[%s2035_s1 + $0x3a8] sm:$0xff]  ;;  %v1415_v51 = vcombine.low %v123_v39, %v127_v40 }
  0x1f   :  { %958 = vmatprep.subr.bf16.mxu0 %v1368_v61  ;;  %1044 = vmatprep.subr.bf16.mxu1 %v1370_v62  ;;  %v135_v48 = vld [vmem:[%s2035_s1 + $0x3a0] sm:$0xff]  ;;  %v1426_v54 = vcombine.high %v132_v49, %v136_v50  ;;  %v140_v58 = vld [vmem:[%s2035_s1 + $0x3c8] sm:$0xff]  ;;  %v1425_v61 = vcombine.low %v132_v49, %v136_v50 }
  0x20   :  { %v1424_v53 = vcombine.high %v131_v47, %v135_v48  ;;  %v139_v55 = vld [vmem:[%s2035_s1 + $0x3c0] sm:$0xff]  ;;  %v144_v59 = vld [vmem:[%s2035_s1 + $0x3e8] sm:$0xff]  ;;  %v1423_v60 = vcombine.low %v131_v47, %v135_v48 }
  0x21   :  { %v143_v57 = vld [vmem:[%s2035_s1 + $0x3e0] sm:$0xff]  ;;  %v1434_v63 = vcombine.high %v140_v58, %v144_v59  ;;  %v148_v2 = vld [vmem:[%s2035_s1 + $0x408] sm:$0xff] }
  0x22   :  { %959 = vmatpush1.bf16.msra.mxu0 %v1367_v3  ;;  %1045 = vmatpush1.bf16.msra.mxu1 %v1369_v4  ;;  %v1432_v62 = vcombine.high %v139_v55, %v143_v57  ;;  %v147_v0 = vld [vmem:[%s2035_s1 + $0x400] sm:$0xff]  ;;  %v152_v3 = vld [vmem:[%s2035_s1 + $0x428] sm:$0xff]  ;;  %v1431_v4 = vcombine.low %v139_v55, %v143_v57 }
  0x23   :  { %960 = vmatprep.subr.bf16.mxu0 %v1376_v5  ;;  %1046 = vmatprep.subr.bf16.mxu1 %v1378_v6  ;;  %v151_v1 = vld [vmem:[%s2035_s1 + $0x420] sm:$0xff]  ;;  %v1433_v5 = vcombine.low %v140_v58, %v144_v59  ;;  %v1442_v7 = vcombine.high %v148_v2, %v152_v3  ;;  %v61_v59 = vld [vmem:[%s2035_s1 + $0x150] sm:$0xff] }
  0x24   :  { %v1440_v6 = vcombine.high %v147_v0, %v151_v1  ;;  %v155_v8 = vld [vmem:[%s2035_s1 + $0x440] sm:$0xff] }
  0x25   :  { %v159_v9 = vld [vmem:[%s2035_s1 + $0x460] sm:$0xff] }
  0x26   :  { %961 = vmatpush1.bf16.msra.mxu0 %v1375_v11  ;;  %1047 = vmatpush1.bf16.msra.mxu1 %v1377_v12  ;;  %v1737_v10 = vld [vmem:[%s2036_s0] ss:$12 sps:$4 sm:$0xff]   ;;  %v1448_v15 = vcombine.high %v155_v8, %v159_v9 }
  0x27   :  { %962 = vmatprep.subr.bf16.mxu0 %v1384_v13  ;;  %1048 = vmatprep.subr.bf16.mxu1 %v1386_v14  ;;  %v156_v11 = vld [vmem:[%s2035_s1 + $0x448] sm:$0xff]  ;;  %v1439_v13 = vcombine.low %v147_v0, %v151_v1  ;;  %v1441_v14 = vcombine.low %v148_v2, %v152_v3  ;;  %v69_v3 = vld [vmem:[%s2035_s1 + $0x190] sm:$0xff] }
  0x28   :  { %v160_v12 = vld [vmem:[%s2035_s1 + $0x468] sm:$0xff] }
  0x29   :  { %v1450_v16 = vcombine.high %v156_v11, %v160_v12 }
  0x2a   :  { %963 = vmatpush1.bf16.msra.mxu0 %v1383_v19  ;;  %1049 = vmatpush1.bf16.msra.mxu1 %v1385_v20  ;;  %v22_v19 = vld [vmem:[%s2035_s1 + $0x18] sm:$0xff] }
  0x2b   :  { %964 = vmatprep.subr.bf16.mxu0 %v1392_v21  ;;  %1050 = vmatprep.subr.bf16.mxu1 %v1394_v22  ;;  %v26_v20 = vld [vmem:[%s2035_s1 + $0x38] sm:$0xff]  ;;  %v1447_v21 = vcombine.low %v155_v8, %v159_v9  ;;  %v1449_v22 = vcombine.low %v156_v11, %v160_v12  ;;  %v77_v12 = vld [vmem:[%s2035_s1 + $0x1d0] sm:$0xff] }
  0x2c   :  { %v1318_v25 = vcombine.high %v22_v19, %v26_v20  ;;  %v1317_v32 = vcombine.low %v22_v19, %v26_v20  ;;  %v85_v20 = vld [vmem:[%s2035_s1 + $0x210] sm:$0xff] }
  0x2e   :  { %965 = vmatpush1.bf16.msra.mxu0 %v1391_v27  ;;  %1051 = vmatpush1.bf16.msra.mxu1 %v1393_v28  ;;  %v33_v27 = vld [vmem:[%s2035_s1 + $0x70] sm:$0xff] }
  0x2f   :  { %966 = vmatprep.subr.bf16.mxu0 %v1400_v29  ;;  %1052 = vmatprep.subr.bf16.mxu1 %v1402_v30  ;;  %v1770_v28 = vld [vmem:[%s2036_s0 + $0x8] ss:$12 sps:$4 sm:$0xff]   ;;  %v30_v29 = vld [vmem:[%s2035_s1 + $0x58] sm:$0xff]  ;;  %v1324_v33 = vcombine.high %v29_v26, %v33_v27  ;;  %v1323_v39 = vcombine.low %v29_v26, %v33_v27 }
  0x30   :  { %v34_v30 = vld [vmem:[%s2035_s1 + $0x78] sm:$0xff] }
  0x31   :  { %v1326_v34 = vcombine.high %v30_v29, %v34_v30  ;;  %v1325_v40 = vcombine.low %v30_v29, %v34_v30  ;;  %v93_v30 = vld [vmem:[%s2035_s1 + $0x250] sm:$0xff] }
  0x32   :  { %967 = vmatpush1.bf16.msra.mxu0 %v1399_v35  ;;  %1053 = vmatpush1.bf16.msra.mxu1 %v1401_v36  ;;  %v37_v35 = vld [vmem:[%s2035_s1 + $0x90] sm:$0xff] }
  0x33   :  { %968 = vmatprep.subr.bf16.mxu0 %v1408_v37  ;;  %1054 = vmatprep.subr.bf16.mxu1 %v1410_v38  ;;  %v41_v36 = vld [vmem:[%s2035_s1 + $0xb0] sm:$0xff]  ;;  %v38_v37 = vld [vmem:[%s2035_s1 + $0x98] sm:$0xff] }
  0x34   :  { %v42_v38 = vld [vmem:[%s2035_s1 + $0xb8] sm:$0xff]  ;;  %v1332_v41 = vcombine.high %v37_v35, %v41_v36  ;;  %v1331_v47 = vcombine.low %v37_v35, %v41_v36 }
  0x35   :  { %v1334_v42 = vcombine.high %v38_v37, %v42_v38  ;;  %v1333_v48 = vcombine.low %v38_v37, %v42_v38  ;;  %v101_v38 = vld [vmem:[%s2035_s1 + $0x290] sm:$0xff] }
  0x36   :  { %969 = vmatpush1.bf16.msra.mxu0 %v1407_v43  ;;  %1055 = vmatpush1.bf16.msra.mxu1 %v1409_v44  ;;  %v45_v43 = vld [vmem:[%s2035_s1 + $0xd0] sm:$0xff] }
  0x37   :  { %970 = vmatprep.subr.bf16.mxu0 %v1416_v45  ;;  %1056 = vmatprep.subr.bf16.mxu1 %v1418_v46  ;;  %v49_v44 = vld [vmem:[%s2035_s1 + $0xf0] sm:$0xff]  ;;  %v46_v45 = vld [vmem:[%s2035_s1 + $0xd8] sm:$0xff] }
  0x38   :  { %v50_v46 = vld [vmem:[%s2035_s1 + $0xf8] sm:$0xff]  ;;  %v1340_v49 = vcombine.high %v45_v43, %v49_v44 }
  0x39   :  { %v1342_v50 = vcombine.high %v46_v45, %v50_v46  ;;  %v1341_v55 = vcombine.low %v46_v45, %v50_v46  ;;  %v109_v46 = vld [vmem:[%s2035_s1 + $0x2d0] sm:$0xff] }
  0x3a   :  { %971 = vmatpush1.bf16.msra.mxu0 %v1415_v51  ;;  %1057 = vmatpush1.bf16.msra.mxu1 %v1417_v52  ;;  %v53_v51 = vld [vmem:[%s2035_s1 + $0x110] sm:$0xff] }
  0x3b   :  { %972 = vmatprep.subr.bf16.mxu0 %v1424_v53  ;;  %1058 = vmatprep.subr.bf16.mxu1 %v1426_v54  ;;  %v57_v52 = vld [vmem:[%s2035_s1 + $0x130] sm:$0xff]  ;;  %v58_v53 = vld [vmem:[%s2035_s1 + $0x138] sm:$0xff]  ;;  %v1339_v54 = vcombine.low %v45_v43, %v49_v44 }
  0x3c   :  { %v1348_v57 = vcombine.high %v53_v51, %v57_v52 }
  0x3e   :  { %973 = vmatpush1.bf16.msra.mxu0 %v1423_v60  ;;  %1059 = vmatpush1.bf16.msra.mxu1 %v1425_v61  ;;  %v65_v60 = vld [vmem:[%s2035_s1 + $0x170] sm:$0xff]  ;;  %v62_v61 = vld [vmem:[%s2035_s1 + $0x158] sm:$0xff] }
  0x3f   :  { %974 = vmatprep.subr.bf16.mxu0 %v1432_v62  ;;  %1060 = vmatprep.subr.bf16.mxu1 %v1434_v63  ;;  %v66_v62 = vld [vmem:[%s2035_s1 + $0x178] sm:$0xff]  ;;  %v1347_v63 = vcombine.low %v53_v51, %v57_v52  ;;  %v1356_v1 = vcombine.high %v61_v59, %v65_v60 }
  0x40   :  { %v1358_v2 = vcombine.high %v62_v61, %v66_v62  ;;  %v1357_v8 = vcombine.low %v62_v61, %v66_v62  ;;  %v125_v62 = vld [vmem:[%s2035_s1 + $0x350] sm:$0xff] }
  0x42   :  { %975 = vmatpush1.bf16.msra.mxu0 %v1431_v4  ;;  %1061 = vmatpush1.bf16.msra.mxu1 %v1433_v5  ;;  %v73_v4 = vld [vmem:[%s2035_s1 + $0x1b0] sm:$0xff]  ;;  %v70_v5 = vld [vmem:[%s2035_s1 + $0x198] sm:$0xff] }
  0x43   :  { %987 = vmatprep.subr.bf16.mxu0 %v1440_v6  ;;  %1073 = vmatprep.subr.bf16.mxu1 %v1442_v7  ;;  %v74_v6 = vld [vmem:[%s2035_s1 + $0x1b8] sm:$0xff]  ;;  %v1355_v7 = vcombine.low %v61_v59, %v65_v60  ;;  %v1364_v9 = vcombine.high %v69_v3, %v73_v4 }
  0x44   :  { %v1366_v11 = vcombine.high %v70_v5, %v74_v6  ;;  %v1365_v17 = vcombine.low %v70_v5, %v74_v6  ;;  %v133_v6 = vld [vmem:[%s2035_s1 + $0x390] sm:$0xff] }
  0x45   :  { %977 = vmatmul.mubr.bf16.vlgmr.msra.gmra.mrb[0].mxu0 %v1737_v10  ;;  %1063 = vmatmul.mubr.bf16.vlgmr.msra.gmra.mrb[0].mxu1 %v1737_v10 }
  0x46   :  { %988 = vmatpush1.bf16.msra.mxu0 %v1439_v13  ;;  %1074 = vmatpush1.bf16.msra.mxu1 %v1441_v14  ;;  %v81_v13 = vld [vmem:[%s2035_s1 + $0x1f0] sm:$0xff]  ;;  %v78_v14 = vld [vmem:[%s2035_s1 + $0x1d8] sm:$0xff] }
  0x47   :  { %989 = vmatprep.subr.bf16.mxu0 %v1448_v15  ;;  %1075 = vmatprep.subr.bf16.mxu1 %v1450_v16  ;;  %v82_v15 = vld [vmem:[%s2035_s1 + $0x1f8] sm:$0xff]  ;;  %v1363_v16 = vcombine.low %v69_v3, %v73_v4  ;;  %v1372_v18 = vcombine.high %v77_v12, %v81_v13 }
  0x48   :  { %1019 = vmatprep.mubr.bf16.mxu0 %v1496_v24  ;;  %1105 = vmatprep.mubr.bf16.mxu1 %v1496_v24  ;;  %v1374_v19 = vcombine.high %v78_v14, %v82_v15  ;;  %v1373_v26 = vcombine.low %v78_v14, %v82_v15  ;;  %v141_v15 = vld [vmem:[%s2035_s1 + $0x3d0] sm:$0xff] }
  0x4a   :  { %990 = vmatpush1.bf16.msra.mxu0 %v1447_v21  ;;  %1076 = vmatpush1.bf16.msra.mxu1 %v1449_v22  ;;  %v89_v21 = vld [vmem:[%s2035_s1 + $0x230] sm:$0xff]  ;;  %v86_v22 = vld [vmem:[%s2035_s1 + $0x218] sm:$0xff] }
  0x4b   :  { %1116 = vmatprep.subr.bf16.mxu0 %v1316_v23  ;;  %1202 = vmatprep.subr.bf16.mxu1 %v1318_v25  ;;  %v90_v23 = vld [vmem:[%s2035_s1 + $0x238] sm:$0xff]  ;;  %v1371_v25 = vcombine.low %v77_v12, %v81_v13  ;;  %v1380_v27 = vcombine.high %v85_v20, %v89_v21 }
  0x4c   :  { %v1382_v29 = vcombine.high %v86_v22, %v90_v23  ;;  %v1381_v35 = vcombine.low %v86_v22, %v90_v23  ;;  %v149_v23 = vld [vmem:[%s2035_s1 + $0x410] sm:$0xff] }
  0x51   :  { %1455 = vmatmul.mubr.msk.bf16.vlgmr.msra.gmra.mrb[0].mxu0 %vm940_vm0, %v1770_v28  ;;  %1456 = vmatmul.mubr.msk.bf16.vlgmr.msra.gmra.mrb[0].mxu1 %vm940_vm0, %v1770_v28 }
  0x52   :  { %1117 = vmatpush1.bf16.msra.mxu0 %v1315_v31  ;;  %1203 = vmatpush1.bf16.msra.mxu1 %v1317_v32  ;;  %v97_v31 = vld [vmem:[%s2035_s1 + $0x270] sm:$0xff]  ;;  %v94_v32 = vld [vmem:[%s2035_s1 + $0x258] sm:$0xff] }
  0x53   :  { %1118 = vmatprep.subr.bf16.mxu0 %v1324_v33  ;;  %1204 = vmatprep.subr.bf16.mxu1 %v1326_v34  ;;  %v98_v33 = vld [vmem:[%s2035_s1 + $0x278] sm:$0xff]  ;;  %v1379_v34 = vcombine.low %v85_v20, %v89_v21  ;;  %v1388_v36 = vcombine.high %v93_v30, %v97_v31 }
  0x54   :  { %1148 = vmatprep.mubr.bf16.mxu0 %v1610_v56  ;;  %1234 = vmatprep.mubr.bf16.mxu1 %v1610_v56  ;;  %v54_v56 = vld [vmem:[%s2035_s1 + $0x118] sm:$0xff]  ;;  %v1390_v37 = vcombine.high %v94_v32, %v98_v33  ;;  %v1389_v43 = vcombine.low %v94_v32, %v98_v33  ;;  %v157_v33 = vld [vmem:[%s2035_s1 + $0x450] sm:$0xff] }
  0x55   :  { %v1350_v58 = vcombine.high %v54_v56, %v58_v53  ;;  %v1349_v0 = vcombine.low %v54_v56, %v58_v53  ;;  %v117_v53 = vld [vmem:[%s2035_s1 + $0x310] sm:$0xff] }
  0x56   :  { %1119 = vmatpush1.bf16.msra.mxu0 %v1323_v39  ;;  %1205 = vmatpush1.bf16.msra.mxu1 %v1325_v40  ;;  %v105_v39 = vld [vmem:[%s2035_s1 + $0x2b0] sm:$0xff]  ;;  %v102_v40 = vld [vmem:[%s2035_s1 + $0x298] sm:$0xff] }
  0x57   :  { %1120 = vmatprep.subr.bf16.mxu0 %v1332_v41  ;;  %1206 = vmatprep.subr.bf16.mxu1 %v1334_v42  ;;  %v106_v41 = vld [vmem:[%s2035_s1 + $0x2b8] sm:$0xff]  ;;  %v1387_v42 = vcombine.low %v93_v30, %v97_v31  ;;  %v1396_v44 = vcombine.high %v101_v38, %v105_v39 }
  0x58   :  { %v1398_v45 = vcombine.high %v102_v40, %v106_v41  ;;  %v1397_v51 = vcombine.low %v102_v40, %v106_v41 }
  0x5a   :  { %1121 = vmatpush1.bf16.msra.mxu0 %v1331_v47  ;;  %1207 = vmatpush1.bf16.msra.mxu1 %v1333_v48  ;;  %v113_v47 = vld [vmem:[%s2035_s1 + $0x2f0] sm:$0xff]  ;;  %v110_v48 = vld [vmem:[%s2035_s1 + $0x2d8] sm:$0xff] }
  0x5b   :  { %1122 = vmatprep.subr.bf16.mxu0 %v1340_v49  ;;  %1208 = vmatprep.subr.bf16.mxu1 %v1342_v50  ;;  %v114_v49 = vld [vmem:[%s2035_s1 + $0x2f8] sm:$0xff]  ;;  %v1395_v50 = vcombine.low %v101_v38, %v105_v39  ;;  %v1404_v52 = vcombine.high %v109_v46, %v113_v47 }
  0x5c   :  { %v1406_v56 = vcombine.high %v110_v48, %v114_v49  ;;  %v1405_v59 = vcombine.low %v110_v48, %v114_v49 }
  0x5e   :  { %1123 = vmatpush1.bf16.msra.mxu0 %v1339_v54  ;;  %1209 = vmatpush1.bf16.msra.mxu1 %v1341_v55  ;;  %v121_v54 = vld [vmem:[%s2035_s1 + $0x330] sm:$0xff]  ;;  %v118_v55 = vld [vmem:[%s2035_s1 + $0x318] sm:$0xff] }
  0x5f   :  { %1124 = vmatprep.subr.bf16.mxu0 %v1348_v57  ;;  %1210 = vmatprep.subr.bf16.mxu1 %v1350_v58  ;;  %v122_v57 = vld [vmem:[%s2035_s1 + $0x338] sm:$0xff]  ;;  %v1403_v58 = vcombine.low %v109_v46, %v113_v47  ;;  %v1412_v60 = vcombine.high %v117_v53, %v121_v54 }
  0x60   :  { %v1414_v61 = vcombine.high %v118_v55, %v122_v57  ;;  %v1413_v3 = vcombine.low %v118_v55, %v122_v57 }
  0x62   :  { %1125 = vmatpush1.bf16.msra.mxu0 %v1347_v63  ;;  %1211 = vmatpush1.bf16.msra.mxu1 %v1349_v0  ;;  %v129_v63 = vld [vmem:[%s2035_s1 + $0x370] sm:$0xff]  ;;  %v126_v0 = vld [vmem:[%s2035_s1 + $0x358] sm:$0xff] }
  0x63   :  { %1126 = vmatprep.subr.bf16.mxu0 %v1356_v1  ;;  %1212 = vmatprep.subr.bf16.mxu1 %v1358_v2  ;;  %v130_v1 = vld [vmem:[%s2035_s1 + $0x378] sm:$0xff]  ;;  %v1411_v2 = vcombine.low %v117_v53, %v121_v54  ;;  %v1420_v4 = vcombine.high %v125_v62, %v129_v63 }
  0x64   :  { %v1422_v5 = vcombine.high %v126_v0, %v130_v1  ;;  %v1421_v12 = vcombine.low %v126_v0, %v130_v1 }
  0x66   :  { %1127 = vmatpush1.bf16.msra.mxu0 %v1355_v7  ;;  %1213 = vmatpush1.bf16.msra.mxu1 %v1357_v8  ;;  %v137_v7 = vld [vmem:[%s2035_s1 + $0x3b0] sm:$0xff]  ;;  %v134_v8 = vld [vmem:[%s2035_s1 + $0x398] sm:$0xff] }
  0x67   :  { %1128 = vmatprep.subr.bf16.mxu0 %v1364_v9  ;;  %1214 = vmatprep.subr.bf16.mxu1 %v1366_v11  ;;  %v138_v9 = vld [vmem:[%s2035_s1 + $0x3b8] sm:$0xff]  ;;  %v1419_v11 = vcombine.low %v125_v62, %v129_v63  ;;  %v1428_v13 = vcombine.high %v133_v6, %v137_v7 }
  0x68   :  { %v1430_v14 = vcombine.high %v134_v8, %v138_v9  ;;  %v1429_v20 = vcombine.low %v134_v8, %v138_v9 }
  0x6a   :  { %1129 = vmatpush1.bf16.msra.mxu0 %v1363_v16  ;;  %1215 = vmatpush1.bf16.msra.mxu1 %v1365_v17  ;;  %v145_v16 = vld [vmem:[%s2035_s1 + $0x3f0] sm:$0xff]  ;;  %v142_v17 = vld [vmem:[%s2035_s1 + $0x3d8] sm:$0xff] }
  0x6b   :  { %1130 = vmatprep.subr.bf16.mxu0 %v1372_v18  ;;  %1216 = vmatprep.subr.bf16.mxu1 %v1374_v19  ;;  %v146_v18 = vld [vmem:[%s2035_s1 + $0x3f8] sm:$0xff]  ;;  %v1427_v19 = vcombine.low %v133_v6, %v137_v7  ;;  %v1436_v21 = vcombine.high %v141_v15, %v145_v16 }
  0x6c   :  { %v1438_v22 = vcombine.high %v142_v17, %v146_v18  ;;  %v1437_v30 = vcombine.low %v142_v17, %v146_v18 }
  0x6e   :  { %1131 = vmatpush1.bf16.msra.mxu0 %v1371_v25  ;;  %1217 = vmatpush1.bf16.msra.mxu1 %v1373_v26  ;;  %v153_v25 = vld [vmem:[%s2035_s1 + $0x430] sm:$0xff]  ;;  %v150_v26 = vld [vmem:[%s2035_s1 + $0x418] sm:$0xff] }
  0x6f   :  { %1132 = vmatprep.subr.bf16.mxu0 %v1380_v27  ;;  %1218 = vmatprep.subr.bf16.mxu1 %v1382_v29  ;;  %v154_v27 = vld [vmem:[%s2035_s1 + $0x438] sm:$0xff]  ;;  %v1435_v29 = vcombine.low %v141_v15, %v145_v16  ;;  %v1444_v31 = vcombine.high %v149_v23, %v153_v25 }
  0x70   :  { %v1446_v32 = vcombine.high %v150_v26, %v154_v27  ;;  %v1445_v38 = vcombine.low %v150_v26, %v154_v27 }
  0x72   :  { %1133 = vmatpush1.bf16.msra.mxu0 %v1379_v34  ;;  %1219 = vmatpush1.bf16.msra.mxu1 %v1381_v35  ;;  %v161_v34 = vld [vmem:[%s2035_s1 + $0x470] sm:$0xff]  ;;  %v158_v35 = vld [vmem:[%s2035_s1 + $0x458] sm:$0xff] }
  0x73   :  { %1134 = vmatprep.subr.bf16.mxu0 %v1388_v36  ;;  %1220 = vmatprep.subr.bf16.mxu1 %v1390_v37  ;;  %v162_v36 = vld [vmem:[%s2035_s1 + $0x478] sm:$0xff]  ;;  %v1443_v37 = vcombine.low %v149_v23, %v153_v25  ;;  %v1452_v39 = vcombine.high %v157_v33, %v161_v34  ;;  %v1451_v41 = vcombine.low %v157_v33, %v161_v34 }
  0x74   :  { %v1454_v40 = vcombine.high %v158_v35, %v162_v36 }
  0x76   :  { %1135 = vmatpush1.bf16.msra.mxu0 %v1387_v42  ;;  %1221 = vmatpush1.bf16.msra.mxu1 %v1389_v43  ;;  %v1453_v42 = vcombine.low %v158_v35, %v162_v36  ;;  %v165_v43 = vlaneseq }
  0x77   :  { %1136 = vmatprep.subr.bf16.mxu0 %v1396_v44  ;;  %1222 = vmatprep.subr.bf16.mxu1 %v1398_v45  ;;  %v163_v45 = vld [vmem:[%s2037_s2] sm:$0xff] }
  0x7a   :  { %1137 = vmatpush1.bf16.msra.mxu0 %v1395_v50  ;;  %1223 = vmatpush1.bf16.msra.mxu1 %v1397_v51 }
  0x7b   :  { %1138 = vmatprep.subr.bf16.mxu0 %v1404_v52  ;;  %1224 = vmatprep.subr.bf16.mxu1 %v1406_v56 }
  0x7e   :  { %1139 = vmatpush1.bf16.msra.mxu0 %v1403_v58  ;;  %1225 = vmatpush1.bf16.msra.mxu1 %v1405_v59 }
  0x7f   :  { %1140 = vmatprep.subr.bf16.mxu0 %v1412_v60  ;;  %1226 = vmatprep.subr.bf16.mxu1 %v1414_v61 }
  0x82   :  { %1141 = vmatpush1.bf16.msra.mxu0 %v1411_v2  ;;  %1227 = vmatpush1.bf16.msra.mxu1 %v1413_v3 }
  0x83   :  { %1142 = vmatprep.subr.bf16.mxu0 %v1420_v4  ;;  %1228 = vmatprep.subr.bf16.mxu1 %v1422_v5 }
  0x86   :  { %1143 = vmatpush1.bf16.msra.mxu0 %v1419_v11  ;;  %1229 = vmatpush1.bf16.msra.mxu1 %v1421_v12 }
  0x87   :  { %1144 = vmatprep.subr.bf16.mxu0 %v1428_v13  ;;  %1230 = vmatprep.subr.bf16.mxu1 %v1430_v14 }
  0x8a   :  { %1145 = vmatpush1.bf16.msra.mxu0 %v1427_v19  ;;  %1231 = vmatpush1.bf16.msra.mxu1 %v1429_v20 }
  0x8b   :  { %1146 = vmatprep.subr.bf16.mxu0 %v1436_v21  ;;  %1232 = vmatprep.subr.bf16.mxu1 %v1438_v22 }
  0x8e   :  { %1147 = vmatpush1.bf16.msra.mxu0 %v1435_v29  ;;  %1233 = vmatpush1.bf16.msra.mxu1 %v1437_v30 }
  0x8f   :  { %1159 = vmatprep.subr.bf16.mxu0 %v1444_v31  ;;  %1245 = vmatprep.subr.bf16.mxu1 %v1446_v32 }
  0x91   :  { %1149 = vmatmul.mubr.bf16.vlgmr.msra.gmra.mrb[4].mxu0 %v1737_v10  ;;  %1235 = vmatmul.mubr.bf16.vlgmr.msra.gmra.mrb[4].mxu1 %v1737_v10  ;;  %v166_v10 = vshrl.u32 %v165_v43, 7 }
  0x92   :  { %1160 = vmatpush1.bf16.msra.mxu0 %v1443_v37  ;;  %1246 = vmatpush1.bf16.msra.mxu1 %v1445_v38 }
  0x93   :  { %1161 = vmatprep.subr.bf16.mxu0 %v1452_v39  ;;  %1247 = vmatprep.subr.bf16.mxu1 %v1454_v40  ;;  %v167_v44 = vsub.s32 0, %v166_v10  ;;  %v175_v46 = vsub.s32 2, %v166_v10  ;;  %v171_v47 = vsub.s32 1, %v166_v10  ;;  %v179_v48 = vsub.s32 3, %v166_v10 }
  0x94   :  { %1191 = vmatprep.mubr.bf16.mxu0 %v1496_v24  ;;  %1277 = vmatprep.mubr.bf16.mxu1 %v1496_v24  ;;  %v183_v3 = vsub.s32 4, %v166_v10  ;;  %v191_v4 = vsub.s32 6, %v166_v10  ;;  %v187_v5 = vsub.s32 5, %v166_v10  ;;  %v195_v6 = vsub.s32 7, %v166_v10 }
  0x95   :  { %v168_v49 = vrot.slane %v163_v45, %v167_v44  ;;  %v176_v24 = vrot.slane %v163_v45, %v175_v46  ;;  %v172_v50 = vrot.slane %v163_v45, %v171_v47  ;;  %v180_v51 = vrot.slane %v163_v45, %v179_v48 }
  0x96   :  { %1162 = vmatpush1.bf16.msra.mxu0 %v1451_v41  ;;  %1248 = vmatpush1.bf16.msra.mxu1 %v1453_v42  ;;  %v184_v7 = vrot.slane %v163_v45, %v183_v3  ;;  %v192_v8 = vrot.slane %v163_v45, %v191_v4  ;;  %v188_v9 = vrot.slane %v163_v45, %v187_v5 }
  0x97   :  { %v196_v11 = vrot.slane %v163_v45, %v195_v6 }
  0x9d   :  { %1457 = vmatmul.mubr.msk.bf16.vlgmr.msra.gmra.mrb[4].mxu0 %vm940_vm0, %v1770_v28  ;;  %1458 = vmatmul.mubr.msk.bf16.vlgmr.msra.gmra.mrb[4].mxu1 %vm940_vm0, %v1770_v28 }
 0x124   :  { %v1021_v52 = vpop.f32.mrb[0].mxu0  ;;  %v1107_v53 = vpop.f32.mrb[0].mxu1 }
 0x125   :  { %v1459_v56 = vadd.f32 %v1021_v52, %v168_v49  ;;  %v1023_v54 = vpop.f32.mrb[1].mxu0  ;;  %v1463_v55 = vadd.f32 %v1107_v53, %v176_v24  ;;  %v1109_v57 = vpop.f32.mrb[1].mxu1 }
 0x126   :  { %v1460_v28 = vadd.f32 %v1023_v54, %v172_v50  ;;  %v1025_v58 = vpop.f32.mrb[2].mxu0  ;;  %v1464_v59 = vadd.f32 %v1109_v57, %v180_v51  ;;  %v1111_v61 = vpop.f32.mrb[2].mxu1 }
 0x127   :  { %1288 = vst [vmem:[%s2038_s3] sm:$0xff] %v1459_v56  ;;  %v1461_v60 = vadd.f32 %v1025_v58, %v168_v49  ;;  %v1027_v62 = vpop.f32.mrb[3].mxu0  ;;  %1290 = vst [vmem:[%s2038_s3 + $0x10] sm:$0xff] %v1463_v55  ;;  %v1465_v63 = vadd.f32 %v1111_v61, %v176_v24  ;;  %v1113_v1 = vpop.f32.mrb[3].mxu1 }
 0x128   :  { %1289 = vst [vmem:[%s2038_s3 + $0x8] sm:$0xff] %v1460_v28  ;;  %v1462_v0 = vadd.f32 %v1027_v62, %v172_v50  ;;  %1291 = vst [vmem:[%s2038_s3 + $0x18] sm:$0xff] %v1464_v59  ;;  %v1466_v2 = vadd.f32 %v1113_v1, %v180_v51 }
 0x129   :  { %1296 = vst [vmem:[%s2038_s3 + $0x40] sm:$0xff] %v1461_v60  ;;  %1298 = vst [vmem:[%s2038_s3 + $0x50] sm:$0xff] %v1465_v63 }
 0x12a   :  { %1297 = vst [vmem:[%s2038_s3 + $0x48] sm:$0xff] %v1462_v0  ;;  %1299 = vst [vmem:[%s2038_s3 + $0x58] sm:$0xff] %v1466_v2 }
 0x170   :  { %v1193_v12 = vpop.f32.mrb[4].mxu0  ;;  %v1279_v14 = vpop.f32.mrb[4].mxu1 }
 0x171   :  { %v1467_v13 = vadd.f32 %v1193_v12, %v184_v7  ;;  %v1195_v15 = vpop.f32.mrb[5].mxu0  ;;  %v1471_v16 = vadd.f32 %v1279_v14, %v192_v8  ;;  %v1281_v18 = vpop.f32.mrb[5].mxu1 }
 0x172   :  { %v1468_v17 = vadd.f32 %v1195_v15, %v188_v9  ;;  %v1197_v19 = vpop.f32.mrb[6].mxu0  ;;  %v1472_v20 = vadd.f32 %v1281_v18, %v196_v11  ;;  %v1283_v22 = vpop.f32.mrb[6].mxu1 }
 0x173   :  { %1292 = vst [vmem:[%s2038_s3 + $0x20] sm:$0xff] %v1467_v13  ;;  %v1469_v21 = vadd.f32 %v1197_v19, %v184_v7  ;;  %v1199_v23 = vpop.f32.mrb[7].mxu0  ;;  %1294 = vst [vmem:[%s2038_s3 + $0x30] sm:$0xff] %v1471_v16  ;;  %v1473_v25 = vadd.f32 %v1283_v22, %v192_v8  ;;  %v1285_v27 = vpop.f32.mrb[7].mxu1 }
 0x174   :  { %1293 = vst [vmem:[%s2038_s3 + $0x28] sm:$0xff] %v1468_v17  ;;  %v1470_v26 = vadd.f32 %v1199_v23, %v188_v9  ;;  %1295 = vst [vmem:[%s2038_s3 + $0x38] sm:$0xff] %v1472_v20  ;;  %v1474_v29 = vadd.f32 %v1285_v27, %v196_v11 }
 0x175   :  { %1300 = vst [vmem:[%s2038_s3 + $0x60] sm:$0xff] %v1469_v21  ;;  %1302 = vst [vmem:[%s2038_s3 + $0x70] sm:$0xff] %v1473_v25 }
 0x176   :  { %1301 = vst [vmem:[%s2038_s3 + $0x68] sm:$0xff] %v1470_v26  ;;  %1303 = vst [vmem:[%s2038_s3 + $0x78] sm:$0xff] %v1474_v29 }

// kernel: squeeze.1
= control target key start
LH: loop header
LB: loop body
LE: loop exit
PB: predicated region body
PF: predicated region fallthrough
CT: control target
= control target key end

     0   :  { %s37_s8 = smov 122   ;;  %vm7_vm0 = vcmask 15360   ;;  %s38_s9 = smov 124   ;;  %s55_s0 = inlined_call_operand.vmem [shape: f32[8], index: 0, kind: input, shape index: {}]   ;;  %s56_s1 = inlined_call_operand.vmem [shape: f32[4,2], index: 1, kind: output, shape index: {}]  }
   0x1   :  { %v4_v0 = vld [vmem:[%s55_s0] sm:$0x1]  ;;  %s36_s0 = smov 126  }
   0x2   :  { %5 = vst [vmem:[#allocation1] sm:$0x1] %v4_v0 }
   0x9   :  { %v9_v1 = vld [vmem:[#allocation1] sm:$0x1]  }
   0xa   :  { %v21_v2 = vld [vmem:[#allocation1] sm:$0x1]   ;;  %10 = vrot.lane.b32.xlu0 %v9_v1, %s36_s0 }
   0xb   :  { %22 = vrot.lane.b32.xlu1 %v21_v2, %s37_s8  ;;  %v6_v3 = vld [vmem:[#allocation1] sm:$0x1]  }
   0xc   :  { %v15_v4 = vld [vmem:[#allocation1] sm:$0x1]   ;;  %8 = vst.msk [vmem:[#allocation0] sm:$0x1] %vm7_vm0, %v6_v3  }
   0xe   :  { %16 = vrot.lane.b32.xlu0 %v15_v4, %s38_s9 }
  0x7c   :  { %v11_v5 = vpop.permute.xlu0 %10  }
  0x7d   :  { %v23_v6 = vpop.permute.xlu1 %22   ;;  %14 = vst.msk [vmem:[#allocation0 + $0x1] sm:$0x1] %vm7_vm0, %v11_v5  }
  0x7e   :  { %26 = vst.msk [vmem:[#allocation0 + $0x3] sm:$0x1] %vm7_vm0, %v23_v6  }
  0x80   :  { %v17_v7 = vpop.permute.xlu0 %16  }
  0x81   :  { %20 = vst.msk [vmem:[#allocation0 + $0x2] sm:$0x1] %vm7_vm0, %v17_v7  }
  0x88   :  { %v30_v8 = vld [vmem:[#allocation0] sm:$0xf] }
  0x89   :  { %32 = vst [vmem:[%s56_s1] sm:$0xf] %v30_v8 }

// kernel: _lambda_.11
= control target key start
LH: loop header
LB: loop body
LE: loop exit
PB: predicated region body
PF: predicated region fallthrough
CT: control target
= control target key end

     0   :  { %17 = vsyncpa [#allocation7], 0  ;;  %s5905_s0 = inlined_call_operand.vmem [shape: f32[4,2,1], index: 0, kind: input, shape index: {}]   ;;  %s5906_s1 = inlined_call_operand.vmem [shape: f32[4,2,1024], index: 1, kind: input, shape index: {}]   ;;  %s5907_s2 = inlined_call_operand.vmem [shape: f32[2,2,256], index: 2, kind: input, shape index: {}]   ;;  %s5908_s3 = inlined_call_operand.vmem [shape: f32[2,2,256], index: 3, kind: input, shape index: {}]   ;;  %s5909_s4 = inlined_call_operand.vmem [shape: bf16[256,1024], index: 4, kind: input, shape index: {}]   ;;  %s5910_s5 = inlined_call_operand.vmem [shape: bf16[512,1024], index: 5, kind: input, shape index: {}]   ;;  %s5911_s6 = inlined_call_operand.vmem [shape: f32[1,1024], index: 6, kind: input, shape index: {}]   ;;  %s5912_s7 = inlined_call_operand.vmem [shape: bf16[256,7], index: 7, kind: input, shape index: {}]   ;;  %s5913_s8 = inlined_call_operand.vmem [shape: f32[1,7], index: 8, kind: input, shape index: {}]   ;;  %s5914_s9 = inlined_call_operand.vmem [shape: f32[4,2,7], index: 9, kind: output, shape index: {0}]   ;;  %s5915_s10 = inlined_call_operand.hbm [shape: f32[2,2,256], index: 10, kind: output, shape index: {1}]   ;;  %s5916_s11 = inlined_call_operand.hbm [shape: f32[2,2,256], index: 11, kind: output, shape index: {2}]  }
   0x1   :  { %18 = vsyncpa [#allocation9], 0  ;;  %s4488_s17 = smov 0  }
   0x2 LB: > { %s4494_s18 = sadd.s32 4294967295, %s4419_s17   ;;  %p3787_p0 = scmp.ge.s32.totalorder %s4419_s17, 1  ;;  %s4419_s17 = sphi %s4488_s17, %s24_s17  }
   0x3   : > { %p343_p1 = scmp.lt.s32.totalorder %s4419_s17, 5 }
   0x5   : > { %p344_p2 = pnand %p3787_p0, %p343_p1 }
   0x6   : > { %p386_p3 = scmp.lt.s32.totalorder (!%p344_p2), %s4494_s18, 3  ;;  %p3792_p4 = scmp.ne.s32.totalorder (!%p344_p2), %s4494_s18, 0 }
   0x7   : > { %347 = sbr.rel (%p344_p2) target bundleno = 1194 (0x4aa), region = 56 }
   0xe   : > { %s387_s19 = scalar_select %p386_p3, %s4494_s18, 3 }
   0xf   : > { %403 = sbr.rel (%p3792_p4) target bundleno = 22 (0x16), region = 60  ;;  %v404_v0 = vld [vmem:[%s5907_s2] sm:$0xf] (!%p3792_p4)  ;;  %v3793_v2 = vld [vmem:[%s5907_s2 + $0x4] sm:$0xf] (!%p3792_p4) }
  0x10   : > { %s3788_s20 = sshll.u32 %s387_s19, 1  ;;  %s4214_s21 = sshll.u32 %s387_s19, 4  ;;  %v406_v1 = vld [vmem:[%s5908_s3] sm:$0xf] (!%p3792_p4)  ;;  %405 = vst [vmem:[#allocation2] sm:$0xf] (!%p3792_p4), %v404_v0 }
  0x11   : > { %s389_s24 = scalar_lea.vmem %s5905_s0, %s3788_s20  ;;  %s4506_s27 = scalar_lea.vmem %s5906_s1, %s4214_s21  ;;  %407 = vst [vmem:[#allocation3] sm:$0xf] (!%p3792_p4), %v406_v1  ;;  %410 = vst [vmem:[#allocation4] sm:$0xf] (!%p3792_p4), %v3793_v2  ;;  %v3794_v3 = vld [vmem:[%s5908_s3 + $0x4] sm:$0xf] (!%p3792_p4) }
  0x12   : > { %s4511_s30 = scalar_lea.vmem %s5914_s9, %s3788_s20  ;;  %413 = vst [vmem:[#allocation5] sm:$0xf] (!%p3792_p4), %v3794_v3 }
  0x16 PF: > { %v414_v4 = vld [vmem:[%s389_s24] sm:$0x3]  ;;  %v4421_v7 = vmov 0   ;;  %v445_v9 = vld [vmem:[%s5909_s4 + $0x8] sm:$0xff]  ;;  %v4625_v0 = vld [vmem:[%s5909_s4 + $0x10] sm:$0xff]  ;;  %vm3652_vm0 = vcmask 50176  }
  0x17   : > { %v444_v5 = vld [vmem:[%s5909_s4] sm:$0xff]  ;;  %4288 = vset.pattern.permute.xlu0 %v4421_v7  ;;  %v449_v10 = vld [vmem:[%s5909_s4 + $0x28] sm:$0xff]  ;;  %v4630_v1 = vld [vmem:[%s5909_s4 + $0x30] sm:$0xff]  ;;  %p4207_p5 = scmp.ne.s32.totalorder %s4494_s18, 3 }
  0x18   : > { %v448_v6 = vld [vmem:[%s5909_s4 + $0x20] sm:$0xff]  ;;  %420 = vperm.xlu0 %4288, %v414_v4   ;;  %v3798_v13 = vcombine.high %v445_v9, %v449_v10  ;;  %v3797_v14 = vcombine.low %v445_v9, %v449_v10  ;;  %v453_v16 = vld [vmem:[%s5909_s4 + $0x48] sm:$0xff]  ;;  %v4635_v2 = vld [vmem:[%s5909_s4 + $0x18] sm:$0xff]  ;;  %v3799_v4 = vcombine.low %v4625_v0, %v4630_v1 }
  0x19   : > { %v3796_v8 = vcombine.high %v444_v5, %v448_v6  ;;  %v3795_v11 = vcombine.low %v444_v5, %v448_v6  ;;  %v452_v12 = vld [vmem:[%s5909_s4 + $0x40] sm:$0xff]  ;;  %v457_v17 = vld [vmem:[%s5909_s4 + $0x68] sm:$0xff]  ;;  %v4642_v5 = vld [vmem:[%s5909_s4 + $0x38] sm:$0xff] }
  0x1a   : > { %v456_v15 = vld [vmem:[%s5909_s4 + $0x60] sm:$0xff]  ;;  %v3806_v19 = vcombine.high %v453_v16, %v457_v17  ;;  %v461_v22 = vld [vmem:[%s5909_s4 + $0x88] sm:$0xff]  ;;  %1253 = vmatprep.subr.bf16.mxu1 %v3798_v13  ;;  %v3805_v25 = vcombine.low %v453_v16, %v457_v17 }
  0x1b   : > { %1212 = vmatprep.subr.bf16.mxu0 %v3796_v8  ;;  %v3804_v18 = vcombine.high %v452_v12, %v456_v15  ;;  %v460_v20 = vld [vmem:[%s5909_s4 + $0x80] sm:$0xff]  ;;  %v3803_v23 = vcombine.low %v452_v12, %v456_v15  ;;  %v465_v24 = vld [vmem:[%s5909_s4 + $0xa8] sm:$0xff]  ;;  %1254 = vmatpush1.bf16.msra.mxu1 %v3797_v14  ;;  %v3801_v8 = vcombine.low %v4635_v2, %v4642_v5 }
  0x1c   : > { %v464_v21 = vld [vmem:[%s5909_s4 + $0xa0] sm:$0xff]  ;;  %1213 = vmatpush1.bf16.msra.mxu0 %v3795_v11  ;;  %1255 = vmatprep.subr.bf16.mxu1 %v3806_v19  ;;  %v3814_v27 = vcombine.high %v461_v22, %v465_v24  ;;  %v469_v30 = vld [vmem:[%s5909_s4 + $0xc8] sm:$0xff]  ;;  %v3813_v33 = vcombine.low %v461_v22, %v465_v24 }
  0x1d   : > { %1214 = vmatprep.subr.bf16.mxu0 %v3804_v18  ;;  %v3812_v26 = vcombine.high %v460_v20, %v464_v21  ;;  %v468_v28 = vld [vmem:[%s5909_s4 + $0xc0] sm:$0xff]  ;;  %v473_v31 = vld [vmem:[%s5909_s4 + $0xe8] sm:$0xff]  ;;  %v3811_v32 = vcombine.low %v460_v20, %v464_v21 }
  0x1e   : > { %v472_v29 = vld [vmem:[%s5909_s4 + $0xe0] sm:$0xff]  ;;  %v3822_v35 = vcombine.high %v469_v30, %v473_v31  ;;  %v477_v38 = vld [vmem:[%s5909_s4 + $0x108] sm:$0xff]  ;;  %v3821_v41 = vcombine.low %v469_v30, %v473_v31 }
  0x1f   : > { %1256 = vmatpush1.bf16.msra.mxu1 %v3805_v25  ;;  %v3820_v34 = vcombine.high %v468_v28, %v472_v29  ;;  %v476_v36 = vld [vmem:[%s5909_s4 + $0x100] sm:$0xff]  ;;  %v481_v39 = vld [vmem:[%s5909_s4 + $0x128] sm:$0xff]  ;;  %v3819_v40 = vcombine.low %v468_v28, %v472_v29 }
  0x20   : > { %1215 = vmatpush1.bf16.msra.mxu0 %v3803_v23  ;;  %1257 = vmatprep.subr.bf16.mxu1 %v3814_v27  ;;  %v480_v37 = vld [vmem:[%s5909_s4 + $0x120] sm:$0xff]  ;;  %v3830_v43 = vcombine.high %v477_v38, %v481_v39  ;;  %v485_v46 = vld [vmem:[%s5909_s4 + $0x148] sm:$0xff]  ;;  %v3829_v49 = vcombine.low %v477_v38, %v481_v39 }
  0x21   : > { %1216 = vmatprep.subr.bf16.mxu0 %v3812_v26  ;;  %v3828_v42 = vcombine.high %v476_v36, %v480_v37  ;;  %v484_v44 = vld [vmem:[%s5909_s4 + $0x140] sm:$0xff]  ;;  %v489_v47 = vld [vmem:[%s5909_s4 + $0x168] sm:$0xff]  ;;  %v3827_v48 = vcombine.low %v476_v36, %v480_v37 }
  0x22   : > { %v488_v45 = vld [vmem:[%s5909_s4 + $0x160] sm:$0xff]  ;;  %v3838_v51 = vcombine.high %v485_v46, %v489_v47  ;;  %v493_v54 = vld [vmem:[%s5909_s4 + $0x188] sm:$0xff]  ;;  %v3837_v57 = vcombine.low %v485_v46, %v489_v47 }
  0x23   : > { %1258 = vmatpush1.bf16.msra.mxu1 %v3813_v33  ;;  %v3836_v50 = vcombine.high %v484_v44, %v488_v45  ;;  %v492_v52 = vld [vmem:[%s5909_s4 + $0x180] sm:$0xff]  ;;  %v497_v55 = vld [vmem:[%s5909_s4 + $0x1a8] sm:$0xff]  ;;  %v3835_v56 = vcombine.low %v484_v44, %v488_v45 }
  0x24   : > { %1217 = vmatpush1.bf16.msra.mxu0 %v3811_v32  ;;  %1259 = vmatprep.subr.bf16.mxu1 %v3822_v35  ;;  %v496_v53 = vld [vmem:[%s5909_s4 + $0x1a0] sm:$0xff]  ;;  %v3846_v60 = vcombine.high %v493_v54, %v497_v55  ;;  %v501_v62 = vld [vmem:[%s5909_s4 + $0x1c8] sm:$0xff]  ;;  %v3845_v6 = vcombine.low %v493_v54, %v497_v55 }
  0x25   : > { %1218 = vmatprep.subr.bf16.mxu0 %v3820_v34  ;;  %v3844_v58 = vcombine.high %v492_v52, %v496_v53  ;;  %v500_v59 = vld [vmem:[%s5909_s4 + $0x1c0] sm:$0xff]  ;;  %v505_v63 = vld [vmem:[%s5909_s4 + $0x1e8] sm:$0xff]  ;;  %v3843_v3 = vcombine.low %v492_v52, %v496_v53 }
  0x26   : > { %v504_v61 = vld [vmem:[%s5909_s4 + $0x1e0] sm:$0xff]  ;;  %v3854_v9 = vcombine.high %v501_v62, %v505_v63  ;;  %v509_v12 = vld [vmem:[%s5909_s4 + $0x208] sm:$0xff]  ;;  %v3853_v15 = vcombine.low %v501_v62, %v505_v63 }
  0x27   : > { %1260 = vmatpush1.bf16.msra.mxu1 %v3821_v41  ;;  %v3852_v7 = vcombine.high %v500_v59, %v504_v61  ;;  %v508_v10 = vld [vmem:[%s5909_s4 + $0x200] sm:$0xff]  ;;  %v513_v13 = vld [vmem:[%s5909_s4 + $0x228] sm:$0xff]  ;;  %v3851_v14 = vcombine.low %v500_v59, %v504_v61 }
  0x28   : > { %1219 = vmatpush1.bf16.msra.mxu0 %v3819_v40  ;;  %1261 = vmatprep.subr.bf16.mxu1 %v3830_v43  ;;  %v512_v11 = vld [vmem:[%s5909_s4 + $0x220] sm:$0xff]  ;;  %v3862_v17 = vcombine.high %v509_v12, %v513_v13  ;;  %v517_v20 = vld [vmem:[%s5909_s4 + $0x248] sm:$0xff]  ;;  %v3861_v23 = vcombine.low %v509_v12, %v513_v13 }
  0x29   : > { %1220 = vmatprep.subr.bf16.mxu0 %v3828_v42  ;;  %v3860_v16 = vcombine.high %v508_v10, %v512_v11  ;;  %v516_v18 = vld [vmem:[%s5909_s4 + $0x240] sm:$0xff]  ;;  %v521_v21 = vld [vmem:[%s5909_s4 + $0x268] sm:$0xff]  ;;  %v3859_v22 = vcombine.low %v508_v10, %v512_v11 }
  0x2a   : > { %v520_v19 = vld [vmem:[%s5909_s4 + $0x260] sm:$0xff]  ;;  %v3870_v25 = vcombine.high %v517_v20, %v521_v21  ;;  %v525_v28 = vld [vmem:[%s5909_s4 + $0x288] sm:$0xff]  ;;  %v3869_v31 = vcombine.low %v517_v20, %v521_v21  ;;  %v4422_v20 = vmov 269488144  }
  0x2b   : > { %1262 = vmatpush1.bf16.msra.mxu1 %v3829_v49  ;;  %v3868_v24 = vcombine.high %v516_v18, %v520_v19  ;;  %v524_v26 = vld [vmem:[%s5909_s4 + $0x280] sm:$0xff]  ;;  %v529_v29 = vld [vmem:[%s5909_s4 + $0x2a8] sm:$0xff]  ;;  %v3867_v30 = vcombine.low %v516_v18, %v520_v19  ;;  %v3800_v18 = vcombine.high %v4625_v0, %v4630_v1  ;;  %v3802_v19 = vcombine.high %v4635_v2, %v4642_v5  ;;  %v474_v0 = vld [vmem:[%s5909_s4 + $0xf0] sm:$0xff] }
  0x2c   : > { %1221 = vmatpush1.bf16.msra.mxu0 %v3827_v48  ;;  %1263 = vmatprep.subr.bf16.mxu1 %v3838_v51  ;;  %v528_v27 = vld [vmem:[%s5909_s4 + $0x2a0] sm:$0xff]  ;;  %v3878_v33 = vcombine.high %v525_v28, %v529_v29  ;;  %v533_v36 = vld [vmem:[%s5909_s4 + $0x2c8] sm:$0xff]  ;;  %v3877_v39 = vcombine.low %v525_v28, %v529_v29  ;;  %v423_v21 = vunpack.c.l.s4 %v4422_v20  ;;  %v471_v1 = vld [vmem:[%s5909_s4 + $0xd8] sm:$0xff] }
  0x2d   : > { %1222 = vmatprep.subr.bf16.mxu0 %v3836_v50  ;;  %v3876_v32 = vcombine.high %v524_v26, %v528_v27  ;;  %v532_v34 = vld [vmem:[%s5909_s4 + $0x2c0] sm:$0xff]  ;;  %v537_v37 = vld [vmem:[%s5909_s4 + $0x2e8] sm:$0xff]  ;;  %v3875_v38 = vcombine.low %v524_v26, %v528_v27  ;;  %v475_v2 = vld [vmem:[%s5909_s4 + $0xf8] sm:$0xff] }
  0x2e   : > { %v536_v35 = vld [vmem:[%s5909_s4 + $0x2e0] sm:$0xff]  ;;  %v3886_v41 = vcombine.high %v533_v36, %v537_v37  ;;  %v541_v44 = vld [vmem:[%s5909_s4 + $0x308] sm:$0xff]  ;;  %v3885_v47 = vcombine.low %v533_v36, %v537_v37  ;;  %v454_v36 = vld [vmem:[%s5909_s4 + $0x50] sm:$0xff] }
  0x2f   : > { %1264 = vmatpush1.bf16.msra.mxu1 %v3837_v57  ;;  %v3884_v40 = vcombine.high %v532_v34, %v536_v35  ;;  %v540_v42 = vld [vmem:[%s5909_s4 + $0x300] sm:$0xff]  ;;  %v545_v45 = vld [vmem:[%s5909_s4 + $0x328] sm:$0xff]  ;;  %v3883_v46 = vcombine.low %v532_v34, %v536_v35  ;;  %v458_v37 = vld [vmem:[%s5909_s4 + $0x70] sm:$0xff] }
  0x30   : > { %1223 = vmatpush1.bf16.msra.mxu0 %v3835_v56  ;;  %1265 = vmatprep.subr.bf16.mxu1 %v3846_v60  ;;  %v544_v43 = vld [vmem:[%s5909_s4 + $0x320] sm:$0xff]  ;;  %v3894_v49 = vcombine.high %v541_v44, %v545_v45  ;;  %v549_v52 = vld [vmem:[%s5909_s4 + $0x348] sm:$0xff]  ;;  %v3893_v55 = vcombine.low %v541_v44, %v545_v45  ;;  %v466_v45 = vld [vmem:[%s5909_s4 + $0xb0] sm:$0xff] }
  0x31   : > { %1224 = vmatprep.subr.bf16.mxu0 %v3844_v58  ;;  %v3892_v48 = vcombine.high %v540_v42, %v544_v43  ;;  %v548_v50 = vld [vmem:[%s5909_s4 + $0x340] sm:$0xff]  ;;  %v553_v53 = vld [vmem:[%s5909_s4 + $0x368] sm:$0xff]  ;;  %v3891_v54 = vcombine.low %v540_v42, %v544_v43  ;;  %v462_v42 = vld [vmem:[%s5909_s4 + $0x90] sm:$0xff]  ;;  %v3808_v43 = vcombine.high %v454_v36, %v458_v37 }
  0x32   : > { %v552_v51 = vld [vmem:[%s5909_s4 + $0x360] sm:$0xff]  ;;  %v3902_v57 = vcombine.high %v549_v52, %v553_v53  ;;  %v557_v60 = vld [vmem:[%s5909_s4 + $0x388] sm:$0xff]  ;;  %v3901_v63 = vcombine.low %v549_v52, %v553_v53  ;;  %v470_v52 = vld [vmem:[%s5909_s4 + $0xd0] sm:$0xff]  ;;  %v3826_v53 = vcombine.high %v471_v1, %v475_v2 }
  0x33   : > { %1266 = vmatpush1.bf16.msra.mxu1 %v3845_v6  ;;  %v3900_v56 = vcombine.high %v548_v50, %v552_v51  ;;  %v556_v58 = vld [vmem:[%s5909_s4 + $0x380] sm:$0xff]  ;;  %v561_v61 = vld [vmem:[%s5909_s4 + $0x3a8] sm:$0xff]  ;;  %v3899_v62 = vcombine.low %v548_v50, %v552_v51  ;;  %v3816_v50 = vcombine.high %v462_v42, %v466_v45  ;;  %v502_v20 = vld [vmem:[%s5909_s4 + $0x1d0] sm:$0xff] }
  0x34   : > { %1225 = vmatpush1.bf16.msra.mxu0 %v3843_v3  ;;  %1267 = vmatprep.subr.bf16.mxu1 %v3854_v9  ;;  %v560_v59 = vld [vmem:[%s5909_s4 + $0x3a0] sm:$0xff]  ;;  %v3910_v6 = vcombine.high %v557_v60, %v561_v61  ;;  %v565_v10 = vld [vmem:[%s5909_s4 + $0x3c8] sm:$0xff]  ;;  %v3909_v13 = vcombine.low %v557_v60, %v561_v61 }
  0x35   : > { %1226 = vmatprep.subr.bf16.mxu0 %v3852_v7  ;;  %v3908_v3 = vcombine.high %v556_v58, %v560_v59  ;;  %v564_v7 = vld [vmem:[%s5909_s4 + $0x3c0] sm:$0xff]  ;;  %v569_v11 = vld [vmem:[%s5909_s4 + $0x3e8] sm:$0xff]  ;;  %v3907_v12 = vcombine.low %v556_v58, %v560_v59  ;;  %v3823_v58 = vcombine.low %v470_v52, %v474_v0  ;;  %v3825_v59 = vcombine.low %v471_v1, %v475_v2 }
  0x36   : > { %v568_v9 = vld [vmem:[%s5909_s4 + $0x3e0] sm:$0xff] }
  0x37   : > { %1268 = vmatpush1.bf16.msra.mxu1 %v3853_v15  ;;  %v3918_v15 = vcombine.high %v565_v10, %v569_v11  ;;  %v417_v29 = vld [vmem:[#allocation2] sm:$0xf] }
  0x38   : > { %1227 = vmatpush1.bf16.msra.mxu0 %v3851_v14  ;;  %1269 = vmatprep.subr.bf16.mxu1 %v3862_v17  ;;  %v3916_v14 = vcombine.high %v564_v7, %v568_v9  ;;  %v3917_v17 = vcombine.low %v565_v10, %v569_v11 }
  0x39   : > { %1228 = vmatprep.subr.bf16.mxu0 %v3860_v16  ;;  %v3915_v16 = vcombine.low %v564_v7, %v568_v9 }
  0x3b   : > { %1270 = vmatpush1.bf16.msra.mxu1 %v3861_v23  ;;  %v424_v23 = vunpack.c.0.s8 %v423_v21  ;;  %v506_v21 = vld [vmem:[%s5909_s4 + $0x1f0] sm:$0xff] }
  0x3c   : > { %1229 = vmatpush1.bf16.msra.mxu0 %v3859_v22  ;;  %1271 = vmatprep.subr.bf16.mxu1 %v3870_v25  ;;  %v425_v22 = vlaneseq  ;;  %v4423_v25 = vmov 1983009808  }
  0x3d   : > { %1230 = vmatprep.subr.bf16.mxu0 %v3868_v24  ;;  %v433_v26 = vunpack.c.l.s4 %v4423_v25 }
  0x3e   : > { %v4746_v24 = vshrl.u32 %v425_v22, 7  ;;  %v503_v22 = vld [vmem:[%s5909_s4 + $0x1d8] sm:$0xff] }
  0x3f   : > { %1272 = vmatpush1.bf16.msra.mxu1 %v3869_v31  ;;  %v434_v28 = vunpack.c.0.s8 %v433_v26 }
  0x40   : > { %1231 = vmatpush1.bf16.msra.mxu0 %v3867_v30  ;;  %1273 = vmatprep.subr.bf16.mxu1 %v3878_v33  ;;  %v427_v27 = vsub.s32 %v424_v23, %v4746_v24  ;;  %v507_v23 = vld [vmem:[%s5909_s4 + $0x1f8] sm:$0xff] }
  0x41   : > { %1232 = vmatprep.subr.bf16.mxu0 %v3876_v32  ;;  %v4750_v31 = vsub.s32 %v434_v28, %v4746_v24  ;;  %v3858_v28 = vcombine.high %v503_v22, %v507_v23 }
  0x43   : > { %1274 = vmatpush1.bf16.msra.mxu1 %v3877_v39  ;;  %v459_v39 = vld [vmem:[%s5909_s4 + $0x78] sm:$0xff] }
  0x44   : > { %1233 = vmatpush1.bf16.msra.mxu0 %v3875_v38  ;;  %1275 = vmatprep.subr.bf16.mxu1 %v3886_v41  ;;  %v455_v38 = vld [vmem:[%s5909_s4 + $0x58] sm:$0xff] }
  0x45   : > { %1234 = vmatprep.subr.bf16.mxu0 %v3884_v40  ;;  %v3810_v44 = vcombine.high %v455_v38, %v459_v39 }
  0x47   : > { %1276 = vmatpush1.bf16.msra.mxu1 %v3885_v47  ;;  %v467_v47 = vld [vmem:[%s5909_s4 + $0xb8] sm:$0xff] }
  0x48   : > { %1235 = vmatpush1.bf16.msra.mxu0 %v3883_v46  ;;  %1277 = vmatprep.subr.bf16.mxu1 %v3894_v49  ;;  %v463_v46 = vld [vmem:[%s5909_s4 + $0x98] sm:$0xff]  ;;  %v3809_v49 = vcombine.low %v455_v38, %v459_v39  ;;  %v518_v39 = vld [vmem:[%s5909_s4 + $0x250] sm:$0xff] }
  0x49   : > { %1236 = vmatprep.subr.bf16.mxu0 %v3892_v48  ;;  %v3807_v48 = vcombine.low %v454_v36, %v458_v37  ;;  %v3818_v51 = vcombine.high %v463_v46, %v467_v47  ;;  %v3817_v5 = vcombine.low %v463_v46, %v467_v47  ;;  %v3857_v36 = vcombine.low %v503_v22, %v507_v23 }
  0x4b   : > { %1278 = vmatpush1.bf16.msra.mxu1 %v3893_v55  ;;  %v482_v55 = vld [vmem:[%s5909_s4 + $0x130] sm:$0xff] }
  0x4c   : > { %1237 = vmatpush1.bf16.msra.mxu0 %v3891_v54  ;;  %1279 = vmatprep.subr.bf16.mxu1 %v3902_v57  ;;  %v478_v54 = vld [vmem:[%s5909_s4 + $0x110] sm:$0xff]  ;;  %v483_v57 = vld [vmem:[%s5909_s4 + $0x138] sm:$0xff] }
  0x4d   : > { %1238 = vmatprep.subr.bf16.mxu0 %v3900_v56  ;;  %v479_v56 = vld [vmem:[%s5909_s4 + $0x118] sm:$0xff]  ;;  %v3832_v60 = vcombine.high %v478_v54, %v482_v55  ;;  %v3831_v7 = vcombine.low %v478_v54, %v482_v55 }
  0x4e   : > { %v3834_v61 = vcombine.high %v479_v56, %v483_v57  ;;  %v3833_v9 = vcombine.low %v479_v56, %v483_v57 }
  0x4f   : > { %1280 = vmatpush1.bf16.msra.mxu1 %v3901_v63  ;;  %v490_v63 = vld [vmem:[%s5909_s4 + $0x170] sm:$0xff] }
  0x50   : > { %1239 = vmatpush1.bf16.msra.mxu0 %v3899_v62  ;;  %1281 = vmatprep.subr.bf16.mxu1 %v3910_v6  ;;  %v486_v62 = vld [vmem:[%s5909_s4 + $0x150] sm:$0xff]  ;;  %v491_v6 = vld [vmem:[%s5909_s4 + $0x178] sm:$0xff] }
  0x51   : > { %1240 = vmatprep.subr.bf16.mxu0 %v3908_v3  ;;  %v487_v3 = vld [vmem:[%s5909_s4 + $0x158] sm:$0xff]  ;;  %v3840_v10 = vcombine.high %v486_v62, %v490_v63 }
  0x52   : > { %v3842_v11 = vcombine.high %v487_v3, %v491_v6 }
  0x53   : > { %1282 = vmatpush1.bf16.msra.mxu1 %v3909_v13  ;;  %v498_v13 = vld [vmem:[%s5909_s4 + $0x1b0] sm:$0xff] }
  0x54   : > { %1241 = vmatpush1.bf16.msra.mxu0 %v3907_v12  ;;  %1283 = vmatprep.subr.bf16.mxu1 %v3918_v15  ;;  %v494_v12 = vld [vmem:[%s5909_s4 + $0x190] sm:$0xff]  ;;  %v499_v15 = vld [vmem:[%s5909_s4 + $0x1b8] sm:$0xff] }
  0x55   : > { %1242 = vmatprep.subr.bf16.mxu0 %v3916_v14  ;;  %v495_v14 = vld [vmem:[%s5909_s4 + $0x198] sm:$0xff]  ;;  %v3847_v25 = vcombine.low %v494_v12, %v498_v13 }
  0x56   : > { %v3849_v26 = vcombine.low %v495_v14, %v499_v15 }
  0x57   : > { %1284 = vmatpush1.bf16.msra.mxu1 %v3917_v17  ;;  %v3841_v17 = vcombine.low %v487_v3, %v491_v6 }
  0x58   : > { %1243 = vmatpush1.bf16.msra.mxu0 %v3915_v16  ;;  %1335 = vmatprep.subr.bf16.mxu1 %v3802_v19  ;;  %v3839_v16 = vcombine.low %v486_v62, %v490_v63  ;;  %v3850_v19 = vcombine.high %v495_v14, %v499_v15 }
  0x59   : > { %1294 = vmatprep.subr.bf16.mxu0 %v3800_v18  ;;  %v3848_v18 = vcombine.high %v494_v12, %v498_v13 }
  0x97   : > { %v421_v30 = vpop.permute.xlu0 %420 }
  0x98   : > { %v4752_v32 = vrot.slane %v421_v30, %v427_v27  ;;  %v3856_v27 = vcombine.high %v502_v20, %v506_v21  ;;  %v514_v30 = vld [vmem:[%s5909_s4 + $0x230] sm:$0xff] }
  0x9a   : > { %v430_v33 = vmul.f32 %v4752_v32, %v417_v29  ;;  %v510_v29 = vld [vmem:[%s5909_s4 + $0x210] sm:$0xff] }
  0x9b   : > { %v3864_v37 = vcombine.high %v510_v29, %v514_v30 }
  0x9c   : > { %v438_v34 = vrot.slane %v430_v33, %v4750_v31  ;;  %v511_v33 = vld [vmem:[%s5909_s4 + $0x218] sm:$0xff] }
  0x9e   : > { %v439_v35 = vcombine.high %v438_v34, %v438_v34  ;;  %v4768_v41 = vpack.c.bf16 %v438_v34, %v438_v34  ;;  %v515_v34 = vld [vmem:[%s5909_s4 + $0x238] sm:$0xff] }
  0x9f   : > { %v3866_v38 = vcombine.high %v511_v33, %v515_v34 }
  0xa0   : > { %v443_v40 = vpack.c.bf16 %v439_v35, %v439_v35  ;;  %v3855_v35 = vcombine.low %v502_v20, %v506_v21 }
  0xa2   : > { %1244 = vmatprep.mubr.bf16.mxu0 %v443_v40  ;;  %1285 = vmatprep.mubr.bf16.mxu1 %v443_v40 }
  0xa3   : > { %1245 = vmatmul.mubr.bf16.vlgmr.msra.gmra.mrb[0].mxu0 %v4768_v41  ;;  %1286 = vmatmul.mubr.bf16.vlgmr.msra.gmra.mrb[0].mxu1 %v4768_v41 }
  0xa4   : > { %1295 = vmatpush1.bf16.msra.mxu0 %v3799_v4  ;;  %1336 = vmatpush1.bf16.msra.mxu1 %v3801_v8  ;;  %v3815_v4 = vcombine.low %v462_v42, %v466_v45  ;;  %v3824_v8 = vcombine.high %v470_v52, %v474_v0  ;;  %v519_v42 = vld [vmem:[%s5909_s4 + $0x258] sm:$0xff]  ;;  %v3865_v45 = vcombine.low %v511_v33, %v515_v34 }
  0xa5   : > { %1326 = vmatprep.mubr.bf16.mxu0 %v443_v40  ;;  %1367 = vmatprep.mubr.bf16.mxu1 %v443_v40  ;;  %v522_v40 = vld [vmem:[%s5909_s4 + $0x270] sm:$0xff] }
  0xa6   : > { %1296 = vmatprep.subr.bf16.mxu0 %v3808_v43  ;;  %1337 = vmatprep.subr.bf16.mxu1 %v3810_v44  ;;  %v523_v43 = vld [vmem:[%s5909_s4 + $0x278] sm:$0xff]  ;;  %v3863_v44 = vcombine.low %v510_v29, %v514_v30  ;;  %v3872_v46 = vcombine.high %v518_v39, %v522_v40  ;;  %v3871_v52 = vcombine.low %v518_v39, %v522_v40  ;;  %v1485_v39 = vld [vmem:[%s5910_s5 + $0x8] sm:$0xff] }
  0xa7   : > { %v3874_v47 = vcombine.high %v519_v42, %v523_v43  ;;  %v3873_v0 = vcombine.low %v519_v42, %v523_v43  ;;  %v1489_v43 = vld [vmem:[%s5910_s5 + $0x28] sm:$0xff] }
  0xa8   : > { %1297 = vmatpush1.bf16.msra.mxu0 %v3807_v48  ;;  %1338 = vmatpush1.bf16.msra.mxu1 %v3809_v49  ;;  %v526_v48 = vld [vmem:[%s5909_s4 + $0x290] sm:$0xff] }
  0xa9   : > { %1298 = vmatprep.subr.bf16.mxu0 %v3816_v50  ;;  %1339 = vmatprep.subr.bf16.mxu1 %v3818_v51  ;;  %v530_v49 = vld [vmem:[%s5909_s4 + $0x2b0] sm:$0xff]  ;;  %v527_v50 = vld [vmem:[%s5909_s4 + $0x298] sm:$0xff] }
  0xaa   : > { %v531_v51 = vld [vmem:[%s5909_s4 + $0x2b8] sm:$0xff]  ;;  %v3880_v1 = vcombine.high %v526_v48, %v530_v49  ;;  %v3879_v54 = vcombine.low %v526_v48, %v530_v49  ;;  %v1493_v48 = vld [vmem:[%s5910_s5 + $0x48] sm:$0xff] }
  0xab   : > { %v3882_v2 = vcombine.high %v527_v50, %v531_v51  ;;  %v3881_v55 = vcombine.low %v527_v50, %v531_v51  ;;  %v1497_v49 = vld [vmem:[%s5910_s5 + $0x68] sm:$0xff]  ;;  %v1500_v50 = vld [vmem:[%s5910_s5 + $0x80] sm:$0xff] }
  0xac   : > { %1299 = vmatpush1.bf16.msra.mxu0 %v3815_v4  ;;  %1340 = vmatpush1.bf16.msra.mxu1 %v3817_v5  ;;  %v534_v4 = vld [vmem:[%s5909_s4 + $0x2d0] sm:$0xff]  ;;  %v3937_v51 = vcombine.high %v1493_v48, %v1497_v49 }
  0xad   : > { %1300 = vmatprep.subr.bf16.mxu0 %v3824_v8  ;;  %1341 = vmatprep.subr.bf16.mxu1 %v3826_v53  ;;  %v538_v5 = vld [vmem:[%s5909_s4 + $0x2f0] sm:$0xff]  ;;  %v535_v8 = vld [vmem:[%s5909_s4 + $0x2d8] sm:$0xff] }
  0xae   : > { %v539_v53 = vld [vmem:[%s5909_s4 + $0x2f8] sm:$0xff]  ;;  %v3888_v56 = vcombine.high %v534_v4, %v538_v5  ;;  %v3887_v62 = vcombine.low %v534_v4, %v538_v5  ;;  %v3936_v4 = vcombine.low %v1493_v48, %v1497_v49  ;;  %v1556_v48 = vld [vmem:[%s5910_s5 + $0x240] sm:$0xff] }
  0xaf   : > { %v3890_v57 = vcombine.high %v535_v8, %v539_v53  ;;  %v3889_v63 = vcombine.low %v535_v8, %v539_v53  ;;  %v1508_v53 = vld [vmem:[%s5910_s5 + $0xc0] sm:$0xff] }
  0xb0   : > { %1301 = vmatpush1.bf16.msra.mxu0 %v3823_v58  ;;  %1342 = vmatpush1.bf16.msra.mxu1 %v3825_v59  ;;  %v542_v58 = vld [vmem:[%s5909_s4 + $0x310] sm:$0xff]  ;;  %v1560_v49 = vld [vmem:[%s5910_s5 + $0x260] sm:$0xff] }
  0xb1   : > { %1302 = vmatprep.subr.bf16.mxu0 %v3832_v60  ;;  %1343 = vmatprep.subr.bf16.mxu1 %v3834_v61  ;;  %v546_v59 = vld [vmem:[%s5909_s4 + $0x330] sm:$0xff]  ;;  %v543_v60 = vld [vmem:[%s5909_s4 + $0x318] sm:$0xff] }
  0xb2   : > { %v547_v61 = vld [vmem:[%s5909_s4 + $0x338] sm:$0xff]  ;;  %v3896_v3 = vcombine.high %v542_v58, %v546_v59  ;;  %v3895_v12 = vcombine.low %v542_v58, %v546_v59 }
  0xb3   : > { %v3898_v6 = vcombine.high %v543_v60, %v547_v61  ;;  %v3897_v13 = vcombine.low %v543_v60, %v547_v61  ;;  %v1516_v61 = vld [vmem:[%s5910_s5 + $0x100] sm:$0xff] }
  0xb4   : > { %1303 = vmatpush1.bf16.msra.mxu0 %v3831_v7  ;;  %1344 = vmatpush1.bf16.msra.mxu1 %v3833_v9  ;;  %v550_v7 = vld [vmem:[%s5909_s4 + $0x350] sm:$0xff] }
  0xb5   : > { %1304 = vmatprep.subr.bf16.mxu0 %v3840_v10  ;;  %1345 = vmatprep.subr.bf16.mxu1 %v3842_v11  ;;  %v554_v9 = vld [vmem:[%s5909_s4 + $0x370] sm:$0xff]  ;;  %v551_v10 = vld [vmem:[%s5909_s4 + $0x358] sm:$0xff] }
  0xb6   : > { %v555_v11 = vld [vmem:[%s5909_s4 + $0x378] sm:$0xff]  ;;  %v3904_v14 = vcombine.high %v550_v7, %v554_v9  ;;  %v3903_v20 = vcombine.low %v550_v7, %v554_v9 }
  0xb7   : > { %v3906_v15 = vcombine.high %v551_v10, %v555_v11  ;;  %v3905_v21 = vcombine.low %v551_v10, %v555_v11 }
  0xb8   : > { %1305 = vmatpush1.bf16.msra.mxu0 %v3839_v16  ;;  %1346 = vmatpush1.bf16.msra.mxu1 %v3841_v17  ;;  %v558_v16 = vld [vmem:[%s5909_s4 + $0x390] sm:$0xff] }
  0xb9   : > { %1306 = vmatprep.subr.bf16.mxu0 %v3848_v18  ;;  %1347 = vmatprep.subr.bf16.mxu1 %v3850_v19  ;;  %v562_v17 = vld [vmem:[%s5909_s4 + $0x3b0] sm:$0xff]  ;;  %v559_v18 = vld [vmem:[%s5909_s4 + $0x398] sm:$0xff] }
  0xba   : > { %v563_v19 = vld [vmem:[%s5909_s4 + $0x3b8] sm:$0xff]  ;;  %v3912_v22 = vcombine.high %v558_v16, %v562_v17  ;;  %v3911_v29 = vcombine.low %v558_v16, %v562_v17  ;;  %v1529_v17 = vld [vmem:[%s5910_s5 + $0x168] sm:$0xff] }
  0xbb   : > { %v3914_v23 = vcombine.high %v559_v18, %v563_v19  ;;  %v3913_v30 = vcombine.low %v559_v18, %v563_v19 }
  0xbc   : > { %1307 = vmatpush1.bf16.msra.mxu0 %v3847_v25  ;;  %1348 = vmatpush1.bf16.msra.mxu1 %v3849_v26  ;;  %v566_v25 = vld [vmem:[%s5909_s4 + $0x3d0] sm:$0xff] }
  0xbd   : > { %1308 = vmatprep.subr.bf16.mxu0 %v3856_v27  ;;  %1349 = vmatprep.subr.bf16.mxu1 %v3858_v28  ;;  %v570_v26 = vld [vmem:[%s5909_s4 + $0x3f0] sm:$0xff]  ;;  %v567_v27 = vld [vmem:[%s5909_s4 + $0x3d8] sm:$0xff] }
  0xbe   : > { %v571_v28 = vld [vmem:[%s5909_s4 + $0x3f8] sm:$0xff]  ;;  %v3920_v33 = vcombine.high %v566_v25, %v570_v26 }
  0xbf   : > { %v3922_v34 = vcombine.high %v567_v27, %v571_v28 }
  0xc0   : > { %1309 = vmatpush1.bf16.msra.mxu0 %v3855_v35  ;;  %1350 = vmatpush1.bf16.msra.mxu1 %v3857_v36  ;;  %v3919_v35 = vcombine.low %v566_v25, %v570_v26  ;;  %v3921_v36 = vcombine.low %v567_v27, %v571_v28  ;;  %v1537_v26 = vld [vmem:[%s5910_s5 + $0x1a8] sm:$0xff] }
  0xc1   : > { %1310 = vmatprep.subr.bf16.mxu0 %v3864_v37  ;;  %1351 = vmatprep.subr.bf16.mxu1 %v3866_v38  ;;  %v1484_v37 = vld [vmem:[%s5910_s5] sm:$0xff] }
  0xc2   : > { %v1488_v38 = vld [vmem:[%s5910_s5 + $0x20] sm:$0xff] }
  0xc3   : > { %v3926_v40 = vcombine.low %v1484_v37, %v1488_v38  ;;  %v3927_v42 = vcombine.high %v1484_v37, %v1488_v38 }
  0xc4   : > { %1311 = vmatpush1.bf16.msra.mxu0 %v3863_v44  ;;  %1352 = vmatpush1.bf16.msra.mxu1 %v3865_v45  ;;  %v1496_v44 = vld [vmem:[%s5910_s5 + $0x60] sm:$0xff]  ;;  %v3928_v45 = vcombine.low %v1485_v39, %v1489_v43 }
  0xc5   : > { %1312 = vmatprep.subr.bf16.mxu0 %v3872_v46  ;;  %1353 = vmatprep.subr.bf16.mxu1 %v3874_v47  ;;  %v3929_v46 = vcombine.high %v1485_v39, %v1489_v43  ;;  %v1549_v43 = vld [vmem:[%s5910_s5 + $0x208] sm:$0xff] }
  0xc8   : > { %1313 = vmatpush1.bf16.msra.mxu0 %v3871_v52  ;;  %1354 = vmatpush1.bf16.msra.mxu1 %v3873_v0  ;;  %v1504_v52 = vld [vmem:[%s5910_s5 + $0xa0] sm:$0xff]  ;;  %v1501_v0 = vld [vmem:[%s5910_s5 + $0x88] sm:$0xff] }
  0xc9   : > { %1314 = vmatprep.subr.bf16.mxu0 %v3880_v1  ;;  %1355 = vmatprep.subr.bf16.mxu1 %v3882_v2  ;;  %v1505_v1 = vld [vmem:[%s5910_s5 + $0xa8] sm:$0xff]  ;;  %v3943_v5 = vcombine.high %v1500_v50, %v1504_v52 }
  0xca   : > { %v3945_v8 = vcombine.high %v1501_v0, %v1505_v1  ;;  %v3944_v58 = vcombine.low %v1501_v0, %v1505_v1  ;;  %v3998_v0 = vcombine.low %v1556_v48, %v1560_v49 }
  0xcc   : > { %1315 = vmatpush1.bf16.msra.mxu0 %v3879_v54  ;;  %1356 = vmatpush1.bf16.msra.mxu1 %v3881_v55  ;;  %v1512_v54 = vld [vmem:[%s5910_s5 + $0xe0] sm:$0xff]  ;;  %v1509_v55 = vld [vmem:[%s5910_s5 + $0xc8] sm:$0xff] }
  0xcd   : > { %1316 = vmatprep.subr.bf16.mxu0 %v3888_v56  ;;  %1357 = vmatprep.subr.bf16.mxu1 %v3890_v57  ;;  %v1513_v56 = vld [vmem:[%s5910_s5 + $0xe8] sm:$0xff]  ;;  %v3942_v57 = vcombine.low %v1500_v50, %v1504_v52  ;;  %v3951_v59 = vcombine.high %v1508_v53, %v1512_v54 }
  0xce   : > { %v3953_v60 = vcombine.high %v1509_v55, %v1513_v56  ;;  %v3952_v7 = vcombine.low %v1509_v55, %v1513_v56  ;;  %v1557_v50 = vld [vmem:[%s5910_s5 + $0x248] sm:$0xff] }
  0xcf   : > { %v1561_v52 = vld [vmem:[%s5910_s5 + $0x268] sm:$0xff] }
  0xd0   : > { %1317 = vmatpush1.bf16.msra.mxu0 %v3887_v62  ;;  %1358 = vmatpush1.bf16.msra.mxu1 %v3889_v63  ;;  %v1520_v62 = vld [vmem:[%s5910_s5 + $0x120] sm:$0xff]  ;;  %v1517_v63 = vld [vmem:[%s5910_s5 + $0x108] sm:$0xff]  ;;  %v4000_v1 = vcombine.low %v1557_v50, %v1561_v52 }
  0xd1   : > { %1318 = vmatprep.subr.bf16.mxu0 %v3896_v3  ;;  %1359 = vmatprep.subr.bf16.mxu1 %v3898_v6  ;;  %v1521_v3 = vld [vmem:[%s5910_s5 + $0x128] sm:$0xff]  ;;  %v3950_v6 = vcombine.low %v1508_v53, %v1512_v54  ;;  %v3959_v9 = vcombine.high %v1516_v61, %v1520_v62  ;;  %v3958_v11 = vcombine.low %v1516_v61, %v1520_v62 }
  0xd2   : > { %v3961_v10 = vcombine.high %v1517_v63, %v1521_v3  ;;  %v1569_v54 = vld [vmem:[%s5910_s5 + $0x2a8] sm:$0xff] }
  0xd3   : > { %v1577_v62 = vld [vmem:[%s5910_s5 + $0x2e8] sm:$0xff] }
  0xd4   : > { %1319 = vmatpush1.bf16.msra.mxu0 %v3895_v12  ;;  %1360 = vmatpush1.bf16.msra.mxu1 %v3897_v13  ;;  %v3960_v12 = vcombine.low %v1517_v63, %v1521_v3  ;;  %v1524_v13 = vld [vmem:[%s5910_s5 + $0x140] sm:$0xff] }
  0xd5   : > { %1320 = vmatprep.subr.bf16.mxu0 %v3904_v14  ;;  %1361 = vmatprep.subr.bf16.mxu1 %v3906_v15  ;;  %v1528_v14 = vld [vmem:[%s5910_s5 + $0x160] sm:$0xff]  ;;  %v1525_v15 = vld [vmem:[%s5910_s5 + $0x148] sm:$0xff] }
  0xd6   : > { %v3967_v16 = vcombine.high %v1524_v13, %v1528_v14  ;;  %v3966_v18 = vcombine.low %v1524_v13, %v1528_v14  ;;  %v3968_v19 = vcombine.low %v1525_v15, %v1529_v17  ;;  %v1585_v13 = vld [vmem:[%s5910_s5 + $0x328] sm:$0xff]  ;;  %v1588_v14 = vld [vmem:[%s5910_s5 + $0x340] sm:$0xff] }
  0xd8   : > { %1321 = vmatpush1.bf16.msra.mxu0 %v3903_v20  ;;  %1362 = vmatpush1.bf16.msra.mxu1 %v3905_v21  ;;  %v3969_v20 = vcombine.high %v1525_v15, %v1529_v17  ;;  %v1532_v21 = vld [vmem:[%s5910_s5 + $0x180] sm:$0xff] }
  0xd9   : > { %1322 = vmatprep.subr.bf16.mxu0 %v3912_v22  ;;  %1363 = vmatprep.subr.bf16.mxu1 %v3914_v23  ;;  %v1536_v22 = vld [vmem:[%s5910_s5 + $0x1a0] sm:$0xff]  ;;  %v1533_v23 = vld [vmem:[%s5910_s5 + $0x188] sm:$0xff] }
  0xda   : > { %v3975_v25 = vcombine.high %v1532_v21, %v1536_v22  ;;  %v3974_v27 = vcombine.low %v1532_v21, %v1536_v22  ;;  %v3976_v28 = vcombine.low %v1533_v23, %v1537_v26  ;;  %v1592_v15 = vld [vmem:[%s5910_s5 + $0x360] sm:$0xff] }
  0xdb   : > { %v1596_v21 = vld [vmem:[%s5910_s5 + $0x380] sm:$0xff] }
  0xdc   : > { %1323 = vmatpush1.bf16.msra.mxu0 %v3911_v29  ;;  %1364 = vmatpush1.bf16.msra.mxu1 %v3913_v30  ;;  %v3977_v29 = vcombine.high %v1533_v23, %v1537_v26  ;;  %v1540_v30 = vld [vmem:[%s5910_s5 + $0x1c0] sm:$0xff]  ;;  %v1601_v26 = vld [vmem:[%s5910_s5 + $0x3a8] sm:$0xff] }
  0xdd   : > { %1324 = vmatprep.subr.bf16.mxu0 %v3920_v33  ;;  %1365 = vmatprep.subr.bf16.mxu1 %v3922_v34  ;;  %v1544_v33 = vld [vmem:[%s5910_s5 + $0x1e0] sm:$0xff]  ;;  %v1541_v34 = vld [vmem:[%s5910_s5 + $0x1c8] sm:$0xff] }
  0xde   : > { %v3982_v37 = vcombine.low %v1540_v30, %v1544_v33  ;;  %v1600_v23 = vld [vmem:[%s5910_s5 + $0x3a0] sm:$0xff] }
  0xe0   : > { %1325 = vmatpush1.bf16.msra.mxu0 %v3919_v35  ;;  %1366 = vmatpush1.bf16.msra.mxu1 %v3921_v36  ;;  %v3983_v35 = vcombine.high %v1540_v30, %v1544_v33  ;;  %v1545_v36 = vld [vmem:[%s5910_s5 + $0x1e8] sm:$0xff]  ;;  %v1604_v33 = vld [vmem:[%s5910_s5 + $0x3c0] sm:$0xff] }
  0xe1   : > { %3062 = vmatprep.subr.bf16.mxu0 %v3927_v42  ;;  %3144 = vmatprep.subr.bf16.mxu1 %v3929_v46  ;;  %v3984_v38 = vcombine.low %v1541_v34, %v1545_v36  ;;  %v3985_v39 = vcombine.high %v1541_v34, %v1545_v36  ;;  %v1552_v42 = vld [vmem:[%s5910_s5 + $0x220] sm:$0xff]  ;;  %v1609_v36 = vld [vmem:[%s5910_s5 + $0x3e8] sm:$0xff] }
  0xe2   : > { %v1608_v34 = vld [vmem:[%s5910_s5 + $0x3e0] sm:$0xff] }
  0xe3   : > { %1327 = vmatmul.mubr.bf16.vlgmr.msra.gmra.mrb[4].mxu0 %v4768_v41  ;;  %1368 = vmatmul.mubr.bf16.vlgmr.msra.gmra.mrb[4].mxu1 %v4768_v41  ;;  %v1492_v41 = vld [vmem:[%s5910_s5 + $0x40] sm:$0xff] }
  0xe4   : > { %v3935_v47 = vcombine.high %v1492_v41, %v1496_v44  ;;  %3063 = vmatpush1.bf16.msra.mxu0 %v3926_v40  ;;  %v3934_v2 = vcombine.low %v1492_v41, %v1496_v44  ;;  %3145 = vmatpush1.bf16.msra.mxu1 %v3928_v45  ;;  %v1548_v40 = vld [vmem:[%s5910_s5 + $0x200] sm:$0xff]  ;;  %v1553_v44 = vld [vmem:[%s5910_s5 + $0x228] sm:$0xff] }
  0xe5   : > { %3146 = vmatprep.subr.bf16.mxu1 %v3937_v51  ;;  %v3991_v41 = vcombine.high %v1548_v40, %v1552_v42  ;;  %v3990_v45 = vcombine.low %v1548_v40, %v1552_v42  ;;  %v3992_v46 = vcombine.low %v1549_v43, %v1553_v44  ;;  %v3999_v51 = vcombine.high %v1556_v48, %v1560_v49 }
  0xe6   : > { %3064 = vmatprep.subr.bf16.mxu0 %v3935_v47  ;;  %v3993_v47 = vcombine.high %v1549_v43, %v1553_v44  ;;  %v4046_v42 = vcombine.low %v1604_v33, %v1608_v34  ;;  %v5148_v44 = vld [vmem:[%s5910_s5 + $0x420] sm:$0xff] }
  0xe8   : > { %3065 = vmatpush1.bf16.msra.mxu0 %v3934_v2  ;;  %3147 = vmatpush1.bf16.msra.mxu1 %v3936_v4  ;;  %v4001_v2 = vcombine.high %v1557_v50, %v1561_v52  ;;  %v1564_v4 = vld [vmem:[%s5910_s5 + $0x280] sm:$0xff] }
  0xe9   : > { %3066 = vmatprep.subr.bf16.mxu0 %v3943_v5  ;;  %3148 = vmatprep.subr.bf16.mxu1 %v3945_v8  ;;  %v1568_v5 = vld [vmem:[%s5910_s5 + $0x2a0] sm:$0xff]  ;;  %v1565_v8 = vld [vmem:[%s5910_s5 + $0x288] sm:$0xff] }
  0xea   : > { %v4007_v53 = vcombine.high %v1564_v4, %v1568_v5  ;;  %v4006_v55 = vcombine.low %v1564_v4, %v1568_v5  ;;  %v4008_v56 = vcombine.low %v1565_v8, %v1569_v54 }
  0xec   : > { %3067 = vmatpush1.bf16.msra.mxu0 %v3942_v57  ;;  %3149 = vmatpush1.bf16.msra.mxu1 %v3944_v58  ;;  %v4009_v57 = vcombine.high %v1565_v8, %v1569_v54  ;;  %v1572_v58 = vld [vmem:[%s5910_s5 + $0x2c0] sm:$0xff] }
  0xed   : > { %3068 = vmatprep.subr.bf16.mxu0 %v3951_v59  ;;  %3150 = vmatprep.subr.bf16.mxu1 %v3953_v60  ;;  %v1576_v59 = vld [vmem:[%s5910_s5 + $0x2e0] sm:$0xff]  ;;  %v1573_v60 = vld [vmem:[%s5910_s5 + $0x2c8] sm:$0xff] }
  0xee   : > { %v4015_v61 = vcombine.high %v1572_v58, %v1576_v59  ;;  %v4014_v63 = vcombine.low %v1572_v58, %v1576_v59  ;;  %v4016_v3 = vcombine.low %v1573_v60, %v1577_v62 }
  0xf0   : > { %3069 = vmatpush1.bf16.msra.mxu0 %v3950_v6  ;;  %3151 = vmatpush1.bf16.msra.mxu1 %v3952_v7  ;;  %v4017_v6 = vcombine.high %v1573_v60, %v1577_v62  ;;  %v1580_v7 = vld [vmem:[%s5910_s5 + $0x300] sm:$0xff] }
  0xf1   : > { %3070 = vmatprep.subr.bf16.mxu0 %v3959_v9  ;;  %3152 = vmatprep.subr.bf16.mxu1 %v3961_v10  ;;  %v1584_v9 = vld [vmem:[%s5910_s5 + $0x320] sm:$0xff]  ;;  %v1581_v10 = vld [vmem:[%s5910_s5 + $0x308] sm:$0xff] }
  0xf2   : > { %v4025_v17 = vcombine.high %v1581_v10, %v1585_v13 }
  0xf4   : > { %3071 = vmatpush1.bf16.msra.mxu0 %v3958_v11  ;;  %3153 = vmatpush1.bf16.msra.mxu1 %v3960_v12  ;;  %v4022_v11 = vcombine.low %v1580_v7, %v1584_v9  ;;  %v4023_v12 = vcombine.high %v1580_v7, %v1584_v9 }
  0xf5   : > { %3072 = vmatprep.subr.bf16.mxu0 %v3967_v16  ;;  %3154 = vmatprep.subr.bf16.mxu1 %v3969_v20  ;;  %v4024_v16 = vcombine.low %v1581_v10, %v1585_v13  ;;  %v1593_v20 = vld [vmem:[%s5910_s5 + $0x368] sm:$0xff] }
  0xf8   : > { %3073 = vmatpush1.bf16.msra.mxu0 %v3966_v18  ;;  %3155 = vmatpush1.bf16.msra.mxu1 %v3968_v19  ;;  %v4031_v18 = vcombine.high %v1588_v14, %v1592_v15  ;;  %v1589_v19 = vld [vmem:[%s5910_s5 + $0x348] sm:$0xff] }
  0xf9   : > { %3074 = vmatprep.subr.bf16.mxu0 %v3975_v25  ;;  %3156 = vmatprep.subr.bf16.mxu1 %v3977_v29  ;;  %v4033_v22 = vcombine.high %v1589_v19, %v1593_v20  ;;  %v1597_v25 = vld [vmem:[%s5910_s5 + $0x388] sm:$0xff]  ;;  %v4039_v29 = vcombine.high %v1596_v21, %v1600_v23 }
  0xfa   : > { %v4041_v30 = vcombine.high %v1597_v25, %v1601_v26 }
  0xfc   : > { %3075 = vmatpush1.bf16.msra.mxu0 %v3974_v27  ;;  %3157 = vmatpush1.bf16.msra.mxu1 %v3976_v28  ;;  %v4030_v27 = vcombine.low %v1588_v14, %v1592_v15  ;;  %v4032_v28 = vcombine.low %v1589_v19, %v1593_v20 }
  0xfd   : > { %3076 = vmatprep.subr.bf16.mxu0 %v3983_v35  ;;  %3158 = vmatprep.subr.bf16.mxu1 %v3985_v39  ;;  %v1605_v35 = vld [vmem:[%s5910_s5 + $0x3c8] sm:$0xff]  ;;  %v4047_v39 = vcombine.high %v1604_v33, %v1608_v34 }
  0xfe   : > { %v4049_v40 = vcombine.high %v1605_v35, %v1609_v36  ;;  %v4048_v43 = vcombine.low %v1605_v35, %v1609_v36 }
 0x100   : > { %3077 = vmatpush1.bf16.msra.mxu0 %v3982_v37  ;;  %3159 = vmatpush1.bf16.msra.mxu1 %v3984_v38  ;;  %v4038_v37 = vcombine.low %v1596_v21, %v1600_v23  ;;  %v4040_v38 = vcombine.low %v1597_v25, %v1601_v26  ;;  %v416_v26 = vld [vmem:[%s4506_s27 + $0x8] sm:$0xff] }
 0x101   : > { %3078 = vmatprep.subr.bf16.mxu0 %v3991_v41  ;;  %3160 = vmatprep.subr.bf16.mxu1 %v3993_v47  ;;  %v5143_v41 = vld [vmem:[%s5910_s5 + $0x400] sm:$0xff]  ;;  %v5160_v47 = vld [vmem:[%s5910_s5 + $0x428] sm:$0xff] }
 0x102   : > { %v4054_v48 = vcombine.low %v5143_v41, %v5148_v44 }
 0x104   : > { %3079 = vmatpush1.bf16.msra.mxu0 %v3990_v45  ;;  %3161 = vmatpush1.bf16.msra.mxu1 %v3992_v46  ;;  %v5153_v45 = vld [vmem:[%s5910_s5 + $0x408] sm:$0xff]  ;;  %v4055_v46 = vcombine.high %v5143_v41, %v5148_v44  ;;  %v1640_v41 = vld [vmem:[%s5910_s5 + $0x4e0] sm:$0xff] }
 0x105   : > { %3080 = vmatprep.subr.bf16.mxu0 %v3999_v51  ;;  %3162 = vmatprep.subr.bf16.mxu1 %v4001_v2  ;;  %v4056_v49 = vcombine.low %v5153_v45, %v5160_v47  ;;  %v4057_v50 = vcombine.high %v5153_v45, %v5160_v47  ;;  %v1637_v44 = vld [vmem:[%s5910_s5 + $0x4c8] sm:$0xff] }
 0x106   : > { %v1641_v45 = vld [vmem:[%s5910_s5 + $0x4e8] sm:$0xff] }
 0x108   : > { %3081 = vmatpush1.bf16.msra.mxu0 %v3998_v0  ;;  %3163 = vmatpush1.bf16.msra.mxu1 %v4000_v1 }
 0x109   : > { %3082 = vmatprep.subr.bf16.mxu0 %v4007_v53  ;;  %3164 = vmatprep.subr.bf16.mxu1 %v4009_v57  ;;  %v415_v57 = vld [vmem:[%s4506_s27] sm:$0xff] }
 0x10c   : > { %3083 = vmatpush1.bf16.msra.mxu0 %v4006_v55  ;;  %3165 = vmatpush1.bf16.msra.mxu1 %v4008_v56 }
 0x10d   : > { %3084 = vmatprep.subr.bf16.mxu0 %v4015_v61  ;;  %3166 = vmatprep.subr.bf16.mxu1 %v4017_v6 }
 0x110   : > { %3085 = vmatpush1.bf16.msra.mxu0 %v4014_v63  ;;  %3167 = vmatpush1.bf16.msra.mxu1 %v4016_v3  ;;  %v1422_v3 = vld [vmem:[#allocation3] sm:$0xf] }
 0x111   : > { %3086 = vmatprep.subr.bf16.mxu0 %v4023_v12  ;;  %3168 = vmatprep.subr.bf16.mxu1 %v4025_v17  ;;  %v1423_v6 = vmul.f32 %v1422_v3, %v4752_v32 }
 0x114   : > { %3087 = vmatpush1.bf16.msra.mxu0 %v4022_v11  ;;  %3169 = vmatpush1.bf16.msra.mxu1 %v4024_v16 }
 0x115   : > { %3088 = vmatprep.subr.bf16.mxu0 %v4031_v18  ;;  %3170 = vmatprep.subr.bf16.mxu1 %v4033_v22 }
 0x118   : > { %3089 = vmatpush1.bf16.msra.mxu0 %v4030_v27  ;;  %3171 = vmatpush1.bf16.msra.mxu1 %v4032_v28 }
 0x119   : > { %3090 = vmatprep.subr.bf16.mxu0 %v4039_v29  ;;  %3172 = vmatprep.subr.bf16.mxu1 %v4041_v30 }
 0x11c   : > { %3091 = vmatpush1.bf16.msra.mxu0 %v4038_v37  ;;  %3173 = vmatpush1.bf16.msra.mxu1 %v4040_v38 }
 0x11d   : > { %3092 = vmatprep.subr.bf16.mxu0 %v4047_v39  ;;  %3174 = vmatprep.subr.bf16.mxu1 %v4049_v40  ;;  %v1469_v39 = vld [vmem:[#allocation4] sm:$0xf] }
 0x11e   : > { %v1470_v40 = vmul.f32 %v1469_v39, %v4752_v32  ;;  %v1673_v39 = vld [vmem:[%s5910_s5 + $0x5e8] sm:$0xff] }
 0x120   : > { %3093 = vmatpush1.bf16.msra.mxu0 %v4046_v42  ;;  %3175 = vmatpush1.bf16.msra.mxu1 %v4048_v43 }
 0x121   : > { %3103 = vmatprep.subr.bf16.mxu0 %v4055_v46  ;;  %3185 = vmatprep.subr.bf16.mxu1 %v4057_v50  ;;  %v5177_v50 = vrot.slane %v1470_v40, %v4750_v31 }
 0x176   : > { %v1246_v51 = vpop.f32.mrb[0].mxu0  ;;  %v1287_v52 = vpop.f32.mrb[0].mxu1 }
 0x177   : > { %v1248_v0 = vpop.f32.mrb[1].mxu0  ;;  %v1289_v1 = vpop.f32.mrb[1].mxu1 }
 0x178   : > { %v1384_v2 = vcombine.low %v1246_v51, %v1248_v0  ;;  %v1385_v4 = vcombine.low %v1287_v52, %v1289_v1  ;;  %v1250_v5 = vpop.f32.mrb[2].mxu0  ;;  %v1291_v8 = vpop.f32.mrb[2].mxu1  ;;  %v1620_v0 = vld [vmem:[%s5910_s5 + $0x440] sm:$0xff]  ;;  %v1479_v1 = vcombine.high %v5177_v50, %v5177_v50 }
 0x179   : > { %v1251_v53 = vpop.f32.mrb[3].mxu0  ;;  %v1292_v54 = vpop.f32.mrb[3].mxu1  ;;  %v1625_v5 = vld [vmem:[%s5910_s5 + $0x468] sm:$0xff] }
 0x17a   : > { %v1392_v55 = vrot.slane %v1384_v2, %v4750_v31  ;;  %v1399_v56 = vrot.slane %v1385_v4, %v4750_v31  ;;  %v1624_v2 = vld [vmem:[%s5910_s5 + $0x460] sm:$0xff]  ;;  %v1621_v4 = vld [vmem:[%s5910_s5 + $0x448] sm:$0xff] }
 0x17b   : > { %v1628_v54 = vld [vmem:[%s5910_s5 + $0x480] sm:$0xff] }
 0x17c   : > { %v1400_v58 = vcombine.low %v1392_v55, %v1399_v56  ;;  %v4063_v55 = vcombine.high %v1620_v0, %v1624_v2  ;;  %v4065_v56 = vcombine.high %v1621_v4, %v1625_v5 }
 0x17e   : > { %v1420_v59 = vadd.f32 %v1400_v58, %v415_v57  ;;  %v1632_v57 = vld [vmem:[%s5910_s5 + $0x4a0] sm:$0xff]  ;;  %v1629_v58 = vld [vmem:[%s5910_s5 + $0x488] sm:$0xff] }
 0x17f   : > { %v4070_v47 = vcombine.low %v1628_v54, %v1632_v57 }
 0x180   : > { %v1431_v60 = vrot.slane %v1420_v59, 4  ;;  %v3923_v10 = vmul.f32 -1.442695, %v1420_v59  ;;  %v1633_v59 = vld [vmem:[%s5910_s5 + $0x4a8] sm:$0xff] }
 0x181   : > { %v4073_v3 = vcombine.high %v1629_v58, %v1633_v59 }
 0x182   : > { %v3924_v61 = vmul.f32 -1.442695, %v1431_v60  ;;  %v5214_v60 = vpack.c.bf16 %v1479_v1, %v1479_v1  ;;  %v1681_v1 = vld [vmem:[%s5910_s5 + $0x628] sm:$0xff] }
 0x184   : > { %4305 = vpow2.f32 %v3924_v61  ;;  %v4062_v61 = vcombine.low %v1620_v0, %v1624_v2  ;;  %v1677_v0 = vld [vmem:[%s5910_s5 + $0x608] sm:$0xff] }
 0x18e   : > { %v4306_v62 = vpop.eup %4305 }
 0x18f   : > { %v1436_v63 = vadd.f32 1.0, %v4306_v62  ;;  %v4064_v62 = vcombine.low %v1621_v4, %v1625_v5 }
 0x191   : > { %4307 = vrcp.f32 %v1436_v63  ;;  %v4071_v63 = vcombine.high %v1628_v54, %v1632_v57  ;;  %v4121_v54 = vcombine.high %v1677_v0, %v1681_v1  ;;  %v1685_v57 = vld [vmem:[%s5910_s5 + $0x648] sm:$0xff] }
 0x192   : > { %4309 = vpow2.f32 %v3923_v10  ;;  %v1648_v10 = vld [vmem:[%s5910_s5 + $0x520] sm:$0xff] }
 0x19b   : > { %v4308_v7 = vpop.eup %4307 }
 0x19c   : > { %v1449_v9 = vmul.f32 %v4308_v7, %v1423_v6  ;;  %v4310_v15 = vpop.eup %4309  ;;  %v1636_v6 = vld [vmem:[%s5910_s5 + $0x4c0] sm:$0xff]  ;;  %v4081_v7 = vcombine.high %v1637_v44, %v1641_v45 }
 0x19d   : > { %v1427_v25 = vadd.f32 1.0, %v4310_v15 }
 0x19f   : > { %4311 = vrcp.f32 %v1427_v25 }
 0x1a9   : > { %v4312_v33 = vpop.eup %4311 }
 0x1b6   : > { %v1328_v11 = vpop.f32.mrb[4].mxu0  ;;  %v1369_v12 = vpop.f32.mrb[4].mxu1 }
 0x1b7   : > { %v1330_v13 = vpop.f32.mrb[5].mxu0  ;;  %v1371_v14 = vpop.f32.mrb[5].mxu1 }
 0x1b8   : > { %v1401_v16 = vcombine.low %v1328_v11, %v1330_v13  ;;  %v1402_v17 = vcombine.low %v1369_v12, %v1371_v14  ;;  %v1332_v18 = vpop.f32.mrb[6].mxu0  ;;  %v1373_v19 = vpop.f32.mrb[6].mxu1  ;;  %v1645_v11 = vld [vmem:[%s5910_s5 + $0x508] sm:$0xff]  ;;  %v4078_v13 = vcombine.low %v1636_v6, %v1640_v41  ;;  %v4080_v14 = vcombine.low %v1637_v44, %v1641_v45 }
 0x1b9   : > { %v1333_v20 = vpop.f32.mrb[7].mxu0  ;;  %v1374_v21 = vpop.f32.mrb[7].mxu1  ;;  %v1649_v12 = vld [vmem:[%s5910_s5 + $0x528] sm:$0xff]  ;;  %v1656_v18 = vld [vmem:[%s5910_s5 + $0x560] sm:$0xff] }
 0x1ba   : > { %v1409_v22 = vrot.slane %v1401_v16, %v4750_v31  ;;  %v1416_v23 = vrot.slane %v1402_v17, %v4750_v31  ;;  %v4089_v16 = vcombine.high %v1645_v11, %v1649_v12  ;;  %v1652_v17 = vld [vmem:[%s5910_s5 + $0x540] sm:$0xff]  ;;  %v1653_v19 = vld [vmem:[%s5910_s5 + $0x548] sm:$0xff] }
 0x1bb   : > { %v1657_v20 = vld [vmem:[%s5910_s5 + $0x568] sm:$0xff] }
 0x1bc   : > { %v1417_v27 = vcombine.low %v1409_v22, %v1416_v23  ;;  %v4088_v22 = vcombine.low %v1645_v11, %v1649_v12  ;;  %v4095_v23 = vcombine.high %v1652_v17, %v1656_v18  ;;  %v4097_v25 = vcombine.high %v1653_v19, %v1657_v20  ;;  %v1697_v44 = vld [vmem:[%s5910_s5 + $0x6a8] sm:$0xff] }
 0x1bd   : > { %v1705_v11 = vld [vmem:[%s5910_s5 + $0x6e8] sm:$0xff] }
 0x1be   : > { %v1421_v28 = vadd.f32 %v1417_v27, %v416_v26  ;;  %v1660_v26 = vld [vmem:[%s5910_s5 + $0x580] sm:$0xff] }
 0x1bf   : > { %v1664_v27 = vld [vmem:[%s5910_s5 + $0x5a0] sm:$0xff] }
 0x1c0   : > { %4313 = vtanh.f32 %v1421_v28  ;;  %v1441_v29 = vrot.slane %v1421_v28, 4  ;;  %v1661_v28 = vld [vmem:[%s5910_s5 + $0x588] sm:$0xff]  ;;  %v4102_v40 = vcombine.low %v1660_v26, %v1664_v27 }
 0x1c2   : > { %v3925_v30 = vmul.f32 -1.442695, %v1441_v29  ;;  %v1665_v29 = vld [vmem:[%s5910_s5 + $0x5a8] sm:$0xff] }
 0x1c4   : > { %4315 = vpow2.f32 %v3925_v30  ;;  %v4094_v30 = vcombine.low %v1652_v17, %v1656_v18  ;;  %v1712_v17 = vld [vmem:[%s5910_s5 + $0x720] sm:$0xff]  ;;  %v1709_v18 = vld [vmem:[%s5910_s5 + $0x708] sm:$0xff] }
 0x1ca   : > { %v4314_v34 = vpop.eup %4313 }
 0x1cb   : > { %v1450_v35 = vmul.f32 %v4314_v34, %v4312_v33  ;;  %v4096_v33 = vcombine.low %v1653_v19, %v1657_v20  ;;  %v4103_v34 = vcombine.high %v1660_v26, %v1664_v27  ;;  %v1713_v19 = vld [vmem:[%s5910_s5 + $0x728] sm:$0xff]  ;;  %v1720_v26 = vld [vmem:[%s5910_s5 + $0x760] sm:$0xff] }
 0x1cc   : > { %v1717_v27 = vld [vmem:[%s5910_s5 + $0x748] sm:$0xff] }
 0x1cd   : > { %v1451_v36 = vadd.f32 %v1450_v35, %v1449_v9  ;;  %v1644_v9 = vld [vmem:[%s5910_s5 + $0x500] sm:$0xff]  ;;  %v4105_v35 = vcombine.high %v1661_v28, %v1665_v29 }
 0x1ce   : > { %v4316_v37 = vpop.eup %4315  ;;  %v4087_v15 = vcombine.high %v1644_v9, %v1648_v10  ;;  %v4086_v21 = vcombine.low %v1644_v9, %v1648_v10  ;;  %v1704_v9 = vld [vmem:[%s5910_s5 + $0x6e0] sm:$0xff]  ;;  %v1701_v10 = vld [vmem:[%s5910_s5 + $0x6c8] sm:$0xff] }
 0x1cf   : > { %v1446_v38 = vadd.f32 1.0, %v4316_v37  ;;  %1455 = vst [vmem:[#allocation3] sm:$0xf] %v1451_v36  ;;  %4317 = vtanh.f32 %v1451_v36  ;;  %v1668_v36 = vld [vmem:[%s5910_s5 + $0x5c0] sm:$0xff] }
 0x1d0   : > { %v1672_v37 = vld [vmem:[%s5910_s5 + $0x5e0] sm:$0xff] }
 0x1d1   : > { %4319 = vrcp.f32 %v1446_v38  ;;  %v1669_v38 = vld [vmem:[%s5910_s5 + $0x5c8] sm:$0xff]  ;;  %v4110_v2 = vcombine.low %v1668_v36, %v1672_v37 }
 0x1d2   : > { %v4112_v4 = vcombine.low %v1669_v38, %v1673_v39 }
 0x1d9   : > { %v4318_v42 = vpop.eup %4317 }
 0x1db   : > { %v4320_v43 = vpop.eup %4319 }
 0x1dc   : > { %v1453_v46 = vmul.f32 %v4320_v43, %v4318_v42  ;;  %v4104_v42 = vcombine.low %v1661_v28, %v1665_v29  ;;  %v4111_v43 = vcombine.high %v1668_v36, %v1672_v37  ;;  %v1721_v28 = vld [vmem:[%s5910_s5 + $0x768] sm:$0xff]  ;;  %v1728_v36 = vld [vmem:[%s5910_s5 + $0x7a0] sm:$0xff] }
 0x1dd   : > { %v1725_v37 = vld [vmem:[%s5910_s5 + $0x788] sm:$0xff] }
 0x1de   : > { %1454 = vst [vmem:[#allocation2] sm:$0xf] %v1453_v46  ;;  %v1463_v51 = vrot.slane %v1453_v46, %v4750_v31  ;;  %v4113_v46 = vcombine.high %v1669_v38, %v1673_v39  ;;  %v1729_v38 = vld [vmem:[%s5910_s5 + $0x7a8] sm:$0xff] }
 0x1e0   : > { %v1464_v52 = vcombine.high %v1463_v51, %v1463_v51  ;;  %v5196_v53 = vpack.c.bf16 %v1463_v51, %v1463_v51  ;;  %v1676_v51 = vld [vmem:[%s5910_s5 + $0x600] sm:$0xff] }
 0x1e2   : > { %v5194_v8 = vpack.c.bf16 %v1464_v52, %v1464_v52  ;;  %v1680_v52 = vld [vmem:[%s5910_s5 + $0x620] sm:$0xff] }
 0x1e3   : > { %v4119_v5 = vcombine.high %v1676_v51, %v1680_v52 }
 0x1e4   : > { %3094 = vmatprep.mubr.bf16.mxu0 %v5194_v8  ;;  %3176 = vmatprep.mubr.bf16.mxu1 %v5194_v8 }
 0x1e5   : > { %3095 = vmatmul.mubr.bf16.vlgmr.msra.gmra.mrb[8].mxu0 %v5196_v53  ;;  %3177 = vmatmul.mubr.bf16.vlgmr.msra.gmra.mrb[8].mxu1 %v5196_v53 }
 0x1e6   : > { %3104 = vmatpush1.bf16.msra.mxu0 %v4054_v48  ;;  %3186 = vmatpush1.bf16.msra.mxu1 %v4056_v49  ;;  %v4072_v48 = vcombine.low %v1629_v58, %v1633_v59  ;;  %v4079_v49 = vcombine.high %v1636_v6, %v1640_v41  ;;  %v1689_v58 = vld [vmem:[%s5910_s5 + $0x668] sm:$0xff]  ;;  %v4118_v59 = vcombine.low %v1676_v51, %v1680_v52  ;;  %v1696_v6 = vld [vmem:[%s5910_s5 + $0x6a0] sm:$0xff] }
 0x1e7   : > { %3135 = vmatprep.mubr.bf16.mxu0 %v5214_v60  ;;  %3217 = vmatprep.mubr.bf16.mxu1 %v5214_v60  ;;  %v1693_v41 = vld [vmem:[%s5910_s5 + $0x688] sm:$0xff]  ;;  %v1736_v51 = vld [vmem:[%s5910_s5 + $0x7e0] sm:$0xff] }
 0x1e8   : > { %3105 = vmatprep.subr.bf16.mxu0 %v4063_v55  ;;  %3187 = vmatprep.subr.bf16.mxu1 %v4065_v56  ;;  %v1684_v55 = vld [vmem:[%s5910_s5 + $0x640] sm:$0xff]  ;;  %v1733_v52 = vld [vmem:[%s5910_s5 + $0x7c8] sm:$0xff] }
 0x1e9   : > { %v1688_v56 = vld [vmem:[%s5910_s5 + $0x660] sm:$0xff] }
 0x1ea   : > { %3106 = vmatpush1.bf16.msra.mxu0 %v4062_v61  ;;  %3188 = vmatpush1.bf16.msra.mxu1 %v4064_v62  ;;  %v4120_v61 = vcombine.low %v1677_v0, %v1681_v1  ;;  %v4127_v62 = vcombine.high %v1684_v55, %v1688_v56  ;;  %v4126_v45 = vcombine.low %v1684_v55, %v1688_v56  ;;  %v1737_v0 = vld [vmem:[%s5910_s5 + $0x7e8] sm:$0xff]  ;;  %v1490_v55 = vld [vmem:[%s5910_s5 + $0x30] sm:$0xff]  ;;  %v1487_v56 = vld [vmem:[%s5910_s5 + $0x18] sm:$0xff] }
 0x1eb   : > { %3107 = vmatprep.subr.bf16.mxu0 %v4071_v63  ;;  %3189 = vmatprep.subr.bf16.mxu1 %v4073_v3  ;;  %v4129_v63 = vcombine.high %v1685_v57, %v1689_v58  ;;  %v1692_v3 = vld [vmem:[%s5910_s5 + $0x680] sm:$0xff] }
 0x1ec   : > { %v4134_v12 = vcombine.low %v1692_v3, %v1696_v6 }
 0x1ee   : > { %3108 = vmatpush1.bf16.msra.mxu0 %v4070_v47  ;;  %3190 = vmatpush1.bf16.msra.mxu1 %v4072_v48  ;;  %v4128_v47 = vcombine.low %v1685_v57, %v1689_v58  ;;  %v4135_v48 = vcombine.high %v1692_v3, %v1696_v6  ;;  %v1491_v57 = vld [vmem:[%s5910_s5 + $0x38] sm:$0xff]  ;;  %v1498_v3 = vld [vmem:[%s5910_s5 + $0x70] sm:$0xff] }
 0x1ef   : > { %3109 = vmatprep.subr.bf16.mxu0 %v4079_v49  ;;  %3191 = vmatprep.subr.bf16.mxu1 %v4081_v7  ;;  %v4137_v49 = vcombine.high %v1693_v41, %v1697_v44  ;;  %v1700_v7 = vld [vmem:[%s5910_s5 + $0x6c0] sm:$0xff]  ;;  %v1495_v6 = vld [vmem:[%s5910_s5 + $0x58] sm:$0xff] }
 0x1f0   : > { %v4142_v20 = vcombine.low %v1700_v7, %v1704_v9 }
 0x1f2   : > { %3110 = vmatpush1.bf16.msra.mxu0 %v4078_v13  ;;  %3192 = vmatpush1.bf16.msra.mxu1 %v4080_v14  ;;  %v4136_v13 = vcombine.low %v1693_v41, %v1697_v44  ;;  %v4143_v14 = vcombine.high %v1700_v7, %v1704_v9  ;;  %v1499_v41 = vld [vmem:[%s5910_s5 + $0x78] sm:$0xff]  ;;  %v1502_v7 = vld [vmem:[%s5910_s5 + $0x90] sm:$0xff] }
 0x1f3   : > { %3111 = vmatprep.subr.bf16.mxu0 %v4087_v15  ;;  %3193 = vmatprep.subr.bf16.mxu1 %v4089_v16  ;;  %v4145_v15 = vcombine.high %v1701_v10, %v1705_v11  ;;  %v1708_v16 = vld [vmem:[%s5910_s5 + $0x700] sm:$0xff]  ;;  %v1506_v9 = vld [vmem:[%s5910_s5 + $0xb0] sm:$0xff] }
 0x1f4   : > { %v4150_v29 = vcombine.low %v1708_v16, %v1712_v17 }
 0x1f6   : > { %3112 = vmatpush1.bf16.msra.mxu0 %v4086_v21  ;;  %3194 = vmatpush1.bf16.msra.mxu1 %v4088_v22  ;;  %v4144_v21 = vcombine.low %v1701_v10, %v1705_v11  ;;  %v4151_v22 = vcombine.high %v1708_v16, %v1712_v17  ;;  %v1507_v10 = vld [vmem:[%s5910_s5 + $0xb8] sm:$0xff]  ;;  %v1514_v16 = vld [vmem:[%s5910_s5 + $0xf0] sm:$0xff] }
 0x1f7   : > { %3113 = vmatprep.subr.bf16.mxu0 %v4095_v23  ;;  %3195 = vmatprep.subr.bf16.mxu1 %v4097_v25  ;;  %v4153_v23 = vcombine.high %v1709_v18, %v1713_v19  ;;  %v1716_v25 = vld [vmem:[%s5910_s5 + $0x740] sm:$0xff]  ;;  %v1511_v17 = vld [vmem:[%s5910_s5 + $0xd8] sm:$0xff] }
 0x1f8   : > { %v4158_v39 = vcombine.low %v1716_v25, %v1720_v26 }
 0x1fa   : > { %3114 = vmatpush1.bf16.msra.mxu0 %v4094_v30  ;;  %3196 = vmatpush1.bf16.msra.mxu1 %v4096_v33  ;;  %v4152_v30 = vcombine.low %v1709_v18, %v1713_v19  ;;  %v4159_v33 = vcombine.high %v1716_v25, %v1720_v26  ;;  %v3946_v18 = vcombine.low %v1502_v7, %v1506_v9  ;;  %v1519_v25 = vld [vmem:[%s5910_s5 + $0x118] sm:$0xff] }
 0x1fb   : > { %3115 = vmatprep.subr.bf16.mxu0 %v4103_v34  ;;  %3197 = vmatprep.subr.bf16.mxu1 %v4105_v35  ;;  %v4161_v34 = vcombine.high %v1717_v27, %v1721_v28  ;;  %v1724_v35 = vld [vmem:[%s5910_s5 + $0x780] sm:$0xff]  ;;  %v1523_v26 = vld [vmem:[%s5910_s5 + $0x138] sm:$0xff] }
 0x1fc   : > { %v4166_v1 = vcombine.low %v1724_v35, %v1728_v36 }
 0x1fe   : > { %3116 = vmatpush1.bf16.msra.mxu0 %v4102_v40  ;;  %3198 = vmatpush1.bf16.msra.mxu1 %v4104_v42  ;;  %v4160_v40 = vcombine.low %v1717_v27, %v1721_v28  ;;  %v4167_v42 = vcombine.high %v1724_v35, %v1728_v36  ;;  %v1527_v35 = vld [vmem:[%s5910_s5 + $0x158] sm:$0xff] }
 0x1ff   : > { %3117 = vmatprep.subr.bf16.mxu0 %v4111_v43  ;;  %3199 = vmatprep.subr.bf16.mxu1 %v4113_v46  ;;  %v4169_v43 = vcombine.high %v1725_v37, %v1729_v38  ;;  %v1732_v46 = vld [vmem:[%s5910_s5 + $0x7c0] sm:$0xff]  ;;  %v1531_v36 = vld [vmem:[%s5910_s5 + $0x178] sm:$0xff] }
 0x200   : > { %v4174_v58 = vcombine.low %v1732_v46, %v1736_v51 }
 0x202   : > { %3118 = vmatpush1.bf16.msra.mxu0 %v4110_v2  ;;  %3200 = vmatpush1.bf16.msra.mxu1 %v4112_v4  ;;  %v4168_v2 = vcombine.low %v1725_v37, %v1729_v38  ;;  %v4175_v4 = vcombine.high %v1732_v46, %v1736_v51  ;;  %v3964_v38 = vcombine.low %v1519_v25, %v1523_v26  ;;  %v1535_v46 = vld [vmem:[%s5910_s5 + $0x198] sm:$0xff] }
 0x203   : > { %3119 = vmatprep.subr.bf16.mxu0 %v4119_v5  ;;  %3201 = vmatprep.subr.bf16.mxu1 %v4121_v54  ;;  %v4177_v5 = vcombine.high %v1733_v52, %v1737_v0  ;;  %v1486_v54 = vld [vmem:[%s5910_s5 + $0x10] sm:$0xff]  ;;  %v1539_v51 = vld [vmem:[%s5910_s5 + $0x1b8] sm:$0xff] }
 0x204   : > { %v3930_v44 = vcombine.low %v1486_v54, %v1490_v55 }
 0x206   : > { %3120 = vmatpush1.bf16.msra.mxu0 %v4118_v59  ;;  %3202 = vmatpush1.bf16.msra.mxu1 %v4120_v61  ;;  %v4176_v59 = vcombine.low %v1733_v52, %v1737_v0  ;;  %v3931_v61 = vcombine.high %v1486_v54, %v1490_v55  ;;  %v3972_v0 = vcombine.low %v1527_v35, %v1531_v36  ;;  %v1543_v54 = vld [vmem:[%s5910_s5 + $0x1d8] sm:$0xff] }
 0x207   : > { %3121 = vmatprep.subr.bf16.mxu0 %v4127_v62  ;;  %3203 = vmatprep.subr.bf16.mxu1 %v4129_v63  ;;  %v3933_v62 = vcombine.high %v1487_v56, %v1491_v57  ;;  %v1494_v63 = vld [vmem:[%s5910_s5 + $0x50] sm:$0xff]  ;;  %v1547_v55 = vld [vmem:[%s5910_s5 + $0x1f8] sm:$0xff] }
 0x208   : > { %v3938_v11 = vcombine.low %v1494_v63, %v1498_v3 }
 0x20a   : > { %3122 = vmatpush1.bf16.msra.mxu0 %v4126_v45  ;;  %3204 = vmatpush1.bf16.msra.mxu1 %v4128_v47  ;;  %v5406_v45 = vpack.c.bf16 %v5177_v50, %v5177_v50  ;;  %v3932_v47 = vcombine.low %v1487_v56, %v1491_v57  ;;  %v1503_v50 = vld [vmem:[%s5910_s5 + $0x98] sm:$0xff]  ;;  %v3980_v57 = vcombine.low %v1535_v46, %v1539_v51 }
 0x20b   : > { %3123 = vmatprep.subr.bf16.mxu0 %v4135_v48  ;;  %3205 = vmatprep.subr.bf16.mxu1 %v4137_v49  ;;  %v3939_v48 = vcombine.high %v1494_v63, %v1498_v3  ;;  %v3941_v49 = vcombine.high %v1495_v6, %v1499_v41  ;;  %v3948_v19 = vcombine.low %v1503_v50, %v1507_v10  ;;  %v1551_v63 = vld [vmem:[%s5910_s5 + $0x218] sm:$0xff] }
 0x20c   : > { %v1555_v3 = vld [vmem:[%s5910_s5 + $0x238] sm:$0xff] }
 0x20e   : > { %3124 = vmatpush1.bf16.msra.mxu0 %v4134_v12  ;;  %3206 = vmatpush1.bf16.msra.mxu1 %v4136_v13  ;;  %v3940_v12 = vcombine.low %v1495_v6, %v1499_v41  ;;  %v3947_v13 = vcombine.high %v1502_v7, %v1506_v9  ;;  %v3988_v41 = vcombine.low %v1543_v54, %v1547_v55  ;;  %v1559_v7 = vld [vmem:[%s5910_s5 + $0x258] sm:$0xff] }
 0x20f   : > { %3125 = vmatprep.subr.bf16.mxu0 %v4143_v14  ;;  %3207 = vmatprep.subr.bf16.mxu1 %v4145_v15  ;;  %v3949_v14 = vcombine.high %v1503_v50, %v1507_v10  ;;  %v1510_v15 = vld [vmem:[%s5910_s5 + $0xd0] sm:$0xff]  ;;  %v1563_v9 = vld [vmem:[%s5910_s5 + $0x278] sm:$0xff]  ;;  %v3996_v10 = vcombine.low %v1551_v63, %v1555_v3 }
 0x210   : > { %v3954_v27 = vcombine.low %v1510_v15, %v1514_v16 }
 0x212   : > { %3126 = vmatpush1.bf16.msra.mxu0 %v4142_v20  ;;  %3208 = vmatpush1.bf16.msra.mxu1 %v4144_v21  ;;  %v3955_v20 = vcombine.high %v1510_v15, %v1514_v16  ;;  %v1567_v15 = vld [vmem:[%s5910_s5 + $0x298] sm:$0xff] }
 0x213   : > { %3127 = vmatprep.subr.bf16.mxu0 %v4151_v22  ;;  %3209 = vmatprep.subr.bf16.mxu1 %v4153_v23  ;;  %v1518_v22 = vld [vmem:[%s5910_s5 + $0x110] sm:$0xff]  ;;  %v1571_v16 = vld [vmem:[%s5910_s5 + $0x2b8] sm:$0xff] }
 0x214   : > { %v1522_v23 = vld [vmem:[%s5910_s5 + $0x130] sm:$0xff] }
 0x215   : > { %v3962_v37 = vcombine.low %v1518_v22, %v1522_v23 }
 0x216   : > { %3128 = vmatpush1.bf16.msra.mxu0 %v4150_v29  ;;  %3210 = vmatpush1.bf16.msra.mxu1 %v4152_v30  ;;  %v3963_v29 = vcombine.high %v1518_v22, %v1522_v23  ;;  %v3965_v30 = vcombine.high %v1519_v25, %v1523_v26  ;;  %v1575_v22 = vld [vmem:[%s5910_s5 + $0x2d8] sm:$0xff]  ;;  %v4012_v26 = vcombine.low %v1567_v15, %v1571_v16 }
 0x217   : > { %3129 = vmatprep.subr.bf16.mxu0 %v4159_v33  ;;  %3211 = vmatprep.subr.bf16.mxu1 %v4161_v34  ;;  %v1526_v33 = vld [vmem:[%s5910_s5 + $0x150] sm:$0xff]  ;;  %v1579_v23 = vld [vmem:[%s5910_s5 + $0x2f8] sm:$0xff] }
 0x218   : > { %v1530_v34 = vld [vmem:[%s5910_s5 + $0x170] sm:$0xff] }
 0x219   : > { %v3970_v52 = vcombine.low %v1526_v33, %v1530_v34 }
 0x21a   : > { %3130 = vmatpush1.bf16.msra.mxu0 %v4158_v39  ;;  %3212 = vmatpush1.bf16.msra.mxu1 %v4160_v40  ;;  %v3971_v39 = vcombine.high %v1526_v33, %v1530_v34  ;;  %v3973_v40 = vcombine.high %v1527_v35, %v1531_v36  ;;  %v1583_v33 = vld [vmem:[%s5910_s5 + $0x318] sm:$0xff]  ;;  %v4020_v36 = vcombine.low %v1575_v22, %v1579_v23 }
 0x21b   : > { %3131 = vmatprep.subr.bf16.mxu0 %v4167_v42  ;;  %3213 = vmatprep.subr.bf16.mxu1 %v4169_v43  ;;  %v1534_v42 = vld [vmem:[%s5910_s5 + $0x190] sm:$0xff]  ;;  %v1587_v34 = vld [vmem:[%s5910_s5 + $0x338] sm:$0xff] }
 0x21c   : > { %v1538_v43 = vld [vmem:[%s5910_s5 + $0x1b0] sm:$0xff] }
 0x21d   : > { %v3978_v56 = vcombine.low %v1534_v42, %v1538_v43 }
 0x21e   : > { %3132 = vmatpush1.bf16.msra.mxu0 %v4166_v1  ;;  %3214 = vmatpush1.bf16.msra.mxu1 %v4168_v2  ;;  %v3979_v1 = vcombine.high %v1534_v42, %v1538_v43  ;;  %v3981_v2 = vcombine.high %v1535_v46, %v1539_v51  ;;  %v1591_v42 = vld [vmem:[%s5910_s5 + $0x358] sm:$0xff]  ;;  %v4028_v51 = vcombine.low %v1583_v33, %v1587_v34 }
 0x21f   : > { %3133 = vmatprep.subr.bf16.mxu0 %v4175_v4  ;;  %3215 = vmatprep.subr.bf16.mxu1 %v4177_v5  ;;  %v1542_v4 = vld [vmem:[%s5910_s5 + $0x1d0] sm:$0xff]  ;;  %v1595_v43 = vld [vmem:[%s5910_s5 + $0x378] sm:$0xff] }
 0x220   : > { %v1546_v5 = vld [vmem:[%s5910_s5 + $0x1f0] sm:$0xff] }
 0x221   : > { %v3986_v6 = vcombine.low %v1542_v4, %v1546_v5 }
 0x222   : > { %3134 = vmatpush1.bf16.msra.mxu0 %v4174_v58  ;;  %3216 = vmatpush1.bf16.msra.mxu1 %v4176_v59  ;;  %v3987_v58 = vcombine.high %v1542_v4, %v1546_v5  ;;  %v3989_v59 = vcombine.high %v1543_v54, %v1547_v55  ;;  %v1599_v4 = vld [vmem:[%s5910_s5 + $0x398] sm:$0xff]  ;;  %v4036_v55 = vcombine.low %v1591_v42, %v1595_v43 }
 0x223   : > { %3226 = vmatprep.subr.bf16.mxu0 %v3931_v61  ;;  %3308 = vmatprep.subr.bf16.mxu1 %v3933_v62  ;;  %v1550_v61 = vld [vmem:[%s5910_s5 + $0x210] sm:$0xff]  ;;  %v1603_v5 = vld [vmem:[%s5910_s5 + $0x3b8] sm:$0xff] }
 0x224   : > { %v1554_v62 = vld [vmem:[%s5910_s5 + $0x230] sm:$0xff] }
 0x225   : > { %3136 = vmatmul.mubr.bf16.vlgmr.msra.gmra.mrb[8].mxu0 %v5406_v45  ;;  %3218 = vmatmul.mubr.bf16.vlgmr.msra.gmra.mrb[8].mxu1 %v5406_v45  ;;  %v3994_v50 = vcombine.low %v1550_v61, %v1554_v62 }
 0x226   : > { %3227 = vmatpush1.bf16.msra.mxu0 %v3930_v44  ;;  %3258 = vmatprep.mubr.bf16.mxu0 %v5194_v8  ;;  %v3995_v44 = vcombine.high %v1550_v61, %v1554_v62  ;;  %v1607_v61 = vld [vmem:[%s5910_s5 + $0x3d8] sm:$0xff] }
 0x227   : > { %3309 = vmatpush1.bf16.msra.mxu1 %v3932_v47  ;;  %3340 = vmatprep.mubr.bf16.mxu1 %v5194_v8  ;;  %v1515_v8 = vld [vmem:[%s5910_s5 + $0xf8] sm:$0xff]  ;;  %v3997_v47 = vcombine.high %v1551_v63, %v1555_v3  ;;  %v4044_v3 = vcombine.low %v1599_v4, %v1603_v5 }
 0x228   : > { %3228 = vmatprep.subr.bf16.mxu0 %v3939_v48  ;;  %3310 = vmatprep.subr.bf16.mxu1 %v3941_v49  ;;  %v3957_v21 = vcombine.high %v1511_v17, %v1515_v8  ;;  %v3956_v28 = vcombine.low %v1511_v17, %v1515_v8  ;;  %v1558_v48 = vld [vmem:[%s5910_s5 + $0x250] sm:$0xff]  ;;  %v4004_v8 = vcombine.low %v1559_v7, %v1563_v9  ;;  %v1611_v62 = vld [vmem:[%s5910_s5 + $0x3f8] sm:$0xff] }
 0x229   : > { %v1562_v49 = vld [vmem:[%s5910_s5 + $0x270] sm:$0xff] }
 0x22a   : > { %3229 = vmatpush1.bf16.msra.mxu0 %v3938_v11  ;;  %v4003_v11 = vcombine.high %v1558_v48, %v1562_v49  ;;  %v4002_v17 = vcombine.low %v1558_v48, %v1562_v49  ;;  %v1615_v48 = vld [vmem:[%s5910_s5 + $0x418] sm:$0xff] }
 0x22b   : > { %3311 = vmatpush1.bf16.msra.mxu1 %v3940_v12  ;;  %3230 = vmatprep.subr.bf16.mxu0 %v3947_v13  ;;  %v4005_v12 = vcombine.high %v1559_v7, %v1563_v9  ;;  %v1566_v13 = vld [vmem:[%s5910_s5 + $0x290] sm:$0xff]  ;;  %v1619_v49 = vld [vmem:[%s5910_s5 + $0x438] sm:$0xff]  ;;  %v4052_v9 = vcombine.low %v1607_v61, %v1611_v62 }
 0x22c   : > { %3312 = vmatprep.subr.bf16.mxu1 %v3949_v14  ;;  %v1570_v14 = vld [vmem:[%s5910_s5 + $0x2b0] sm:$0xff] }
 0x22d   : > { %v4010_v25 = vcombine.low %v1566_v13, %v1570_v14 }
 0x22e   : > { %3231 = vmatpush1.bf16.msra.mxu0 %v3946_v18  ;;  %v4011_v18 = vcombine.high %v1566_v13, %v1570_v14  ;;  %v1623_v14 = vld [vmem:[%s5910_s5 + $0x458] sm:$0xff] }
 0x22f   : > { %3313 = vmatpush1.bf16.msra.mxu1 %v3948_v19  ;;  %3232 = vmatprep.subr.bf16.mxu0 %v3955_v20  ;;  %v4013_v19 = vcombine.high %v1567_v15, %v1571_v16  ;;  %v1574_v20 = vld [vmem:[%s5910_s5 + $0x2d0] sm:$0xff]  ;;  %v1627_v15 = vld [vmem:[%s5910_s5 + $0x478] sm:$0xff]  ;;  %v4060_v16 = vcombine.low %v1615_v48, %v1619_v49 }
 0x230   : > { %3314 = vmatprep.subr.bf16.mxu1 %v3957_v21  ;;  %v1578_v21 = vld [vmem:[%s5910_s5 + $0x2f0] sm:$0xff] }
 0x231   : > { %v4018_v35 = vcombine.low %v1574_v20, %v1578_v21 }
 0x232   : > { %3233 = vmatpush1.bf16.msra.mxu0 %v3954_v27  ;;  %v4019_v27 = vcombine.high %v1574_v20, %v1578_v21  ;;  %v1631_v20 = vld [vmem:[%s5910_s5 + $0x498] sm:$0xff] }
 0x233   : > { %3315 = vmatpush1.bf16.msra.mxu1 %v3956_v28  ;;  %3234 = vmatprep.subr.bf16.mxu0 %v3963_v29  ;;  %v4021_v28 = vcombine.high %v1575_v22, %v1579_v23  ;;  %v1582_v29 = vld [vmem:[%s5910_s5 + $0x310] sm:$0xff]  ;;  %v1635_v21 = vld [vmem:[%s5910_s5 + $0x4b8] sm:$0xff]  ;;  %v4068_v23 = vcombine.low %v1623_v14, %v1627_v15 }
 0x234   : > { %3316 = vmatprep.subr.bf16.mxu1 %v3965_v30  ;;  %v1586_v30 = vld [vmem:[%s5910_s5 + $0x330] sm:$0xff] }
 0x235   : > { %v4026_v46 = vcombine.low %v1582_v29, %v1586_v30 }
 0x236   : > { %3235 = vmatpush1.bf16.msra.mxu0 %v3962_v37  ;;  %v4027_v37 = vcombine.high %v1582_v29, %v1586_v30  ;;  %v1643_v29 = vld [vmem:[%s5910_s5 + $0x4f8] sm:$0xff]  ;;  %v4076_v30 = vcombine.low %v1631_v20, %v1635_v21 }
 0x237   : > { %3317 = vmatpush1.bf16.msra.mxu1 %v3964_v38  ;;  %3236 = vmatprep.subr.bf16.mxu0 %v3971_v39  ;;  %v4029_v38 = vcombine.high %v1583_v33, %v1587_v34  ;;  %v1590_v39 = vld [vmem:[%s5910_s5 + $0x350] sm:$0xff] }
 0x238   : > { %3318 = vmatprep.subr.bf16.mxu1 %v3973_v40  ;;  %v1594_v40 = vld [vmem:[%s5910_s5 + $0x370] sm:$0xff] }
 0x239   : > { %v4034_v54 = vcombine.low %v1590_v39, %v1594_v40 }
 0x23a   : > { %3237 = vmatpush1.bf16.msra.mxu0 %v3970_v52  ;;  %v4035_v52 = vcombine.high %v1590_v39, %v1594_v40 }
 0x23b   : > { %3319 = vmatpush1.bf16.msra.mxu1 %v3972_v0  ;;  %3238 = vmatprep.subr.bf16.mxu0 %v3979_v1  ;;  %v4037_v0 = vcombine.high %v1591_v42, %v1595_v43  ;;  %v1598_v1 = vld [vmem:[%s5910_s5 + $0x390] sm:$0xff] }
 0x23c   : > { %3320 = vmatprep.subr.bf16.mxu1 %v3981_v2  ;;  %v1602_v2 = vld [vmem:[%s5910_s5 + $0x3b0] sm:$0xff] }
 0x23d   : > { %v4042_v63 = vcombine.low %v1598_v1, %v1602_v2 }
 0x23e   : > { %3239 = vmatpush1.bf16.msra.mxu0 %v3978_v56  ;;  %v4043_v56 = vcombine.high %v1598_v1, %v1602_v2 }
 0x23f   : > { %3321 = vmatpush1.bf16.msra.mxu1 %v3980_v57  ;;  %3240 = vmatprep.subr.bf16.mxu0 %v3987_v58  ;;  %v4045_v57 = vcombine.high %v1599_v4, %v1603_v5  ;;  %v1606_v58 = vld [vmem:[%s5910_s5 + $0x3d0] sm:$0xff] }
 0x240   : > { %3322 = vmatprep.subr.bf16.mxu1 %v3989_v59  ;;  %v1610_v59 = vld [vmem:[%s5910_s5 + $0x3f0] sm:$0xff] }
 0x241   : > { %v4050_v7 = vcombine.low %v1606_v58, %v1610_v59 }
 0x242   : > { %3241 = vmatpush1.bf16.msra.mxu0 %v3986_v6  ;;  %v4051_v6 = vcombine.high %v1606_v58, %v1610_v59 }
 0x243   : > { %3323 = vmatpush1.bf16.msra.mxu1 %v3988_v41  ;;  %3242 = vmatprep.subr.bf16.mxu0 %v3995_v44  ;;  %v4053_v41 = vcombine.high %v1607_v61, %v1611_v62  ;;  %v1614_v44 = vld [vmem:[%s5910_s5 + $0x410] sm:$0xff] }
 0x244   : > { %3324 = vmatprep.subr.bf16.mxu1 %v3997_v47  ;;  %v1618_v47 = vld [vmem:[%s5910_s5 + $0x430] sm:$0xff] }
 0x245   : > { %v4058_v13 = vcombine.low %v1614_v44, %v1618_v47 }
 0x246   : > { %3243 = vmatpush1.bf16.msra.mxu0 %v3994_v50  ;;  %v4059_v50 = vcombine.high %v1614_v44, %v1618_v47 }
 0x247   : > { %3325 = vmatpush1.bf16.msra.mxu1 %v3996_v10  ;;  %3244 = vmatprep.subr.bf16.mxu0 %v4003_v11  ;;  %v4061_v10 = vcombine.high %v1615_v48, %v1619_v49  ;;  %v1622_v11 = vld [vmem:[%s5910_s5 + $0x450] sm:$0xff] }
 0x248   : > { %3326 = vmatprep.subr.bf16.mxu1 %v4005_v12  ;;  %v1626_v12 = vld [vmem:[%s5910_s5 + $0x470] sm:$0xff] }
 0x249   : > { %v4066_v22 = vcombine.low %v1622_v11, %v1626_v12 }
 0x24a   : > { %3245 = vmatpush1.bf16.msra.mxu0 %v4002_v17  ;;  %v4067_v17 = vcombine.high %v1622_v11, %v1626_v12 }
 0x24b   : > { %3327 = vmatpush1.bf16.msra.mxu1 %v4004_v8  ;;  %3246 = vmatprep.subr.bf16.mxu0 %v4011_v18  ;;  %v1630_v8 = vld [vmem:[%s5910_s5 + $0x490] sm:$0xff] }
 0x24c   : > { %3328 = vmatprep.subr.bf16.mxu1 %v4013_v19  ;;  %v1634_v18 = vld [vmem:[%s5910_s5 + $0x4b0] sm:$0xff]  ;;  %v4069_v19 = vcombine.high %v1623_v14, %v1627_v15 }
 0x24d   : > { %v1686_v15 = vld [vmem:[%s5910_s5 + $0x650] sm:$0xff] }
 0x24e   : > { %3247 = vmatpush1.bf16.msra.mxu0 %v4010_v25  ;;  %v4075_v25 = vcombine.high %v1630_v8, %v1634_v18 }
 0x24f   : > { %3329 = vmatpush1.bf16.msra.mxu1 %v4012_v26  ;;  %3248 = vmatprep.subr.bf16.mxu0 %v4019_v27  ;;  %v4077_v26 = vcombine.high %v1631_v20, %v1635_v21  ;;  %v1638_v27 = vld [vmem:[%s5910_s5 + $0x4d0] sm:$0xff] }
 0x250   : > { %3330 = vmatprep.subr.bf16.mxu1 %v4021_v28  ;;  %v1642_v28 = vld [vmem:[%s5910_s5 + $0x4f0] sm:$0xff] }
 0x251   : > { %v4083_v33 = vcombine.high %v1638_v27, %v1642_v28  ;;  %v4082_v39 = vcombine.low %v1638_v27, %v1642_v28 }
 0x252   : > { %3249 = vmatpush1.bf16.msra.mxu0 %v4018_v35  ;;  %v1646_v35 = vld [vmem:[%s5910_s5 + $0x510] sm:$0xff] }
 0x253   : > { %3331 = vmatpush1.bf16.msra.mxu1 %v4020_v36  ;;  %3250 = vmatprep.subr.bf16.mxu0 %v4027_v37  ;;  %v1650_v36 = vld [vmem:[%s5910_s5 + $0x530] sm:$0xff]  ;;  %v1647_v37 = vld [vmem:[%s5910_s5 + $0x518] sm:$0xff] }
 0x254   : > { %3332 = vmatprep.subr.bf16.mxu1 %v4029_v38  ;;  %v1651_v38 = vld [vmem:[%s5910_s5 + $0x538] sm:$0xff]  ;;  %v4091_v42 = vcombine.high %v1646_v35, %v1650_v36  ;;  %v4090_v1 = vcombine.low %v1646_v35, %v1650_v36 }
 0x255   : > { %v4093_v43 = vcombine.high %v1647_v37, %v1651_v38  ;;  %v4092_v2 = vcombine.low %v1647_v37, %v1651_v38 }
 0x256   : > { %3251 = vmatpush1.bf16.msra.mxu0 %v4026_v46  ;;  %v1654_v46 = vld [vmem:[%s5910_s5 + $0x550] sm:$0xff] }
 0x257   : > { %3333 = vmatpush1.bf16.msra.mxu1 %v4028_v51  ;;  %3252 = vmatprep.subr.bf16.mxu0 %v4035_v52  ;;  %v1658_v51 = vld [vmem:[%s5910_s5 + $0x570] sm:$0xff]  ;;  %v1655_v52 = vld [vmem:[%s5910_s5 + $0x558] sm:$0xff] }
 0x258   : > { %3334 = vmatprep.subr.bf16.mxu1 %v4037_v0  ;;  %v1659_v0 = vld [vmem:[%s5910_s5 + $0x578] sm:$0xff]  ;;  %v4099_v4 = vcombine.high %v1654_v46, %v1658_v51  ;;  %v4098_v58 = vcombine.low %v1654_v46, %v1658_v51 }
 0x259   : > { %v4101_v5 = vcombine.high %v1655_v52, %v1659_v0  ;;  %v4100_v59 = vcombine.low %v1655_v52, %v1659_v0 }
 0x25a   : > { %3253 = vmatpush1.bf16.msra.mxu0 %v4034_v54  ;;  %v1662_v54 = vld [vmem:[%s5910_s5 + $0x590] sm:$0xff] }
 0x25b   : > { %3335 = vmatpush1.bf16.msra.mxu1 %v4036_v55  ;;  %3254 = vmatprep.subr.bf16.mxu0 %v4043_v56  ;;  %v1666_v55 = vld [vmem:[%s5910_s5 + $0x5b0] sm:$0xff]  ;;  %v1663_v56 = vld [vmem:[%s5910_s5 + $0x598] sm:$0xff] }
 0x25c   : > { %3336 = vmatprep.subr.bf16.mxu1 %v4045_v57  ;;  %v1667_v57 = vld [vmem:[%s5910_s5 + $0x5b8] sm:$0xff]  ;;  %v4107_v61 = vcombine.high %v1662_v54, %v1666_v55  ;;  %v4106_v44 = vcombine.low %v1662_v54, %v1666_v55 }
 0x25d   : > { %v4109_v62 = vcombine.high %v1663_v56, %v1667_v57  ;;  %v4108_v47 = vcombine.low %v1663_v56, %v1667_v57 }
 0x25e   : > { %3255 = vmatpush1.bf16.msra.mxu0 %v4042_v63  ;;  %v1670_v63 = vld [vmem:[%s5910_s5 + $0x5d0] sm:$0xff] }
 0x25f   : > { %3337 = vmatpush1.bf16.msra.mxu1 %v4044_v3  ;;  %3256 = vmatprep.subr.bf16.mxu0 %v4051_v6  ;;  %v1674_v3 = vld [vmem:[%s5910_s5 + $0x5f0] sm:$0xff]  ;;  %v1671_v6 = vld [vmem:[%s5910_s5 + $0x5d8] sm:$0xff] }
 0x260   : > { %3338 = vmatprep.subr.bf16.mxu1 %v4053_v41  ;;  %v1675_v41 = vld [vmem:[%s5910_s5 + $0x5f8] sm:$0xff]  ;;  %v4115_v48 = vcombine.high %v1670_v63, %v1674_v3  ;;  %v4114_v11 = vcombine.low %v1670_v63, %v1674_v3 }
 0x261   : > { %v4117_v49 = vcombine.high %v1671_v6, %v1675_v41  ;;  %v4116_v12 = vcombine.low %v1671_v6, %v1675_v41 }
 0x262   : > { %3257 = vmatpush1.bf16.msra.mxu0 %v4050_v7  ;;  %v1678_v7 = vld [vmem:[%s5910_s5 + $0x610] sm:$0xff] }
 0x263   : > { %3339 = vmatpush1.bf16.msra.mxu1 %v4052_v9  ;;  %3267 = vmatprep.subr.bf16.mxu0 %v4059_v50  ;;  %v1682_v9 = vld [vmem:[%s5910_s5 + $0x630] sm:$0xff]  ;;  %v1679_v50 = vld [vmem:[%s5910_s5 + $0x618] sm:$0xff] }
 0x264   : > { %3349 = vmatprep.subr.bf16.mxu1 %v4061_v10  ;;  %v1683_v10 = vld [vmem:[%s5910_s5 + $0x638] sm:$0xff] }
 0x265   : > { %3259 = vmatmul.mubr.bf16.vlgmr.msra.gmra.mrb[12].mxu0 %v5196_v53  ;;  %v4125_v14 = vcombine.high %v1679_v50, %v1683_v10 }
 0x266   : > { %3341 = vmatmul.mubr.bf16.vlgmr.msra.gmra.mrb[12].mxu1 %v5196_v53  ;;  %3268 = vmatpush1.bf16.msra.mxu0 %v4058_v13  ;;  %v1639_v53 = vld [vmem:[%s5910_s5 + $0x4d8] sm:$0xff]  ;;  %v4123_v13 = vcombine.high %v1678_v7, %v1682_v9 }
 0x267   : > { %3299 = vmatprep.mubr.bf16.mxu0 %v5214_v60  ;;  %3350 = vmatpush1.bf16.msra.mxu1 %v4060_v16  ;;  %v4085_v34 = vcombine.high %v1639_v53, %v1643_v29  ;;  %v4084_v40 = vcombine.low %v1639_v53, %v1643_v29  ;;  %v1690_v16 = vld [vmem:[%s5910_s5 + $0x670] sm:$0xff] }
 0x268   : > { %3381 = vmatprep.mubr.bf16.mxu1 %v5214_v60  ;;  %3269 = vmatprep.subr.bf16.mxu0 %v4067_v17  ;;  %v4074_v60 = vcombine.low %v1630_v8, %v1634_v18  ;;  %v1687_v17 = vld [vmem:[%s5910_s5 + $0x658] sm:$0xff]  ;;  %v4122_v18 = vcombine.low %v1678_v7, %v1682_v9  ;;  %v4131_v20 = vcombine.high %v1686_v15, %v1690_v16 }
 0x269   : > { %3351 = vmatprep.subr.bf16.mxu1 %v4069_v19  ;;  %v1691_v8 = vld [vmem:[%s5910_s5 + $0x678] sm:$0xff]  ;;  %v4124_v19 = vcombine.low %v1679_v50, %v1683_v10  ;;  %v4130_v27 = vcombine.low %v1686_v15, %v1690_v16  ;;  %v1756_v15 = vsub.s32 3, %v4746_v24 }
 0x26a   : > { %3270 = vmatpush1.bf16.msra.mxu0 %v4066_v22  ;;  %v4133_v21 = vcombine.high %v1687_v17, %v1691_v8  ;;  %v1694_v22 = vld [vmem:[%s5910_s5 + $0x690] sm:$0xff]  ;;  %v4132_v28 = vcombine.low %v1687_v17, %v1691_v8 }
 0x26b   : > { %3352 = vmatpush1.bf16.msra.mxu1 %v4068_v23  ;;  %3271 = vmatprep.subr.bf16.mxu0 %v4075_v25  ;;  %v1698_v23 = vld [vmem:[%s5910_s5 + $0x6b0] sm:$0xff]  ;;  %v1695_v25 = vld [vmem:[%s5910_s5 + $0x698] sm:$0xff] }
 0x26c   : > { %3353 = vmatprep.subr.bf16.mxu1 %v4077_v26  ;;  %v1699_v26 = vld [vmem:[%s5910_s5 + $0x6b8] sm:$0xff]  ;;  %v4139_v53 = vcombine.high %v1694_v22, %v1698_v23  ;;  %v4138_v35 = vcombine.low %v1694_v22, %v1698_v23 }
 0x26d   : > { %v4141_v29 = vcombine.high %v1695_v25, %v1699_v26  ;;  %v4140_v36 = vcombine.low %v1695_v25, %v1699_v26 }
 0x26e   : > { %3272 = vmatpush1.bf16.msra.mxu0 %v4074_v60  ;;  %v1702_v60 = vld [vmem:[%s5910_s5 + $0x6d0] sm:$0xff] }
 0x26f   : > { %3354 = vmatpush1.bf16.msra.mxu1 %v4076_v30  ;;  %3273 = vmatprep.subr.bf16.mxu0 %v4083_v33  ;;  %v1706_v30 = vld [vmem:[%s5910_s5 + $0x6f0] sm:$0xff]  ;;  %v1703_v33 = vld [vmem:[%s5910_s5 + $0x6d8] sm:$0xff] }
 0x270   : > { %3355 = vmatprep.subr.bf16.mxu1 %v4085_v34  ;;  %v1707_v34 = vld [vmem:[%s5910_s5 + $0x6f8] sm:$0xff]  ;;  %v4147_v37 = vcombine.high %v1702_v60, %v1706_v30  ;;  %v4146_v46 = vcombine.low %v1702_v60, %v1706_v30  ;;  %v4291_v60 = vld [vmem:[%s5912_s7 + $0x48] sm:$0xff]  }
 0x271   : > { %v4149_v38 = vcombine.high %v1703_v33, %v1707_v34  ;;  %v4148_v51 = vcombine.low %v1703_v33, %v1707_v34  ;;  %v4292_v30 = vld [vmem:[%s5912_s7 + $0x8] sm:$0xff]   ;;  %v4293_v33 = vld [vmem:[%s5912_s7 + $0x50] sm:$0xff]  }
 0x272   : > { %3274 = vmatpush1.bf16.msra.mxu0 %v4082_v39  ;;  %v1710_v39 = vld [vmem:[%s5910_s5 + $0x710] sm:$0xff] }
 0x273   : > { %3356 = vmatpush1.bf16.msra.mxu1 %v4084_v40  ;;  %3275 = vmatprep.subr.bf16.mxu0 %v4091_v42  ;;  %v1714_v40 = vld [vmem:[%s5910_s5 + $0x730] sm:$0xff]  ;;  %v1711_v42 = vld [vmem:[%s5910_s5 + $0x718] sm:$0xff] }
 0x274   : > { %3357 = vmatprep.subr.bf16.mxu1 %v4093_v43  ;;  %v1715_v43 = vld [vmem:[%s5910_s5 + $0x738] sm:$0xff]  ;;  %v4155_v52 = vcombine.high %v1710_v39, %v1714_v40  ;;  %v4154_v54 = vcombine.low %v1710_v39, %v1714_v40  ;;  %v4294_v34 = vld [vmem:[%s5912_s7 + $0x10] sm:$0xff]   ;;  %v3390_v40 = vld [vmem:[#allocation5] sm:$0xf] }
 0x275   : > { %v4157_v0 = vcombine.high %v1711_v42, %v1715_v43  ;;  %v4156_v55 = vcombine.low %v1711_v42, %v1715_v43  ;;  %v4297_v43 = vld [vmem:[%s5912_s7 + $0x60] sm:$0xff]  }
 0x276   : > { %3276 = vmatpush1.bf16.msra.mxu0 %v4090_v1  ;;  %v1718_v1 = vld [vmem:[%s5910_s5 + $0x750] sm:$0xff] }
 0x277   : > { %3358 = vmatpush1.bf16.msra.mxu1 %v4092_v2  ;;  %3277 = vmatprep.subr.bf16.mxu0 %v4099_v4  ;;  %v1722_v2 = vld [vmem:[%s5910_s5 + $0x770] sm:$0xff]  ;;  %v1719_v4 = vld [vmem:[%s5910_s5 + $0x758] sm:$0xff] }
 0x278   : > { %3359 = vmatprep.subr.bf16.mxu1 %v4101_v5  ;;  %v1723_v5 = vld [vmem:[%s5910_s5 + $0x778] sm:$0xff]  ;;  %v4163_v56 = vcombine.high %v1718_v1, %v1722_v2  ;;  %v4162_v63 = vcombine.low %v1718_v1, %v1722_v2  ;;  %v4301_v1 = vld [vmem:[%s5912_s7 + $0x70] sm:$0xff]  }
 0x279   : > { %v4165_v57 = vcombine.high %v1719_v4, %v1723_v5  ;;  %v4164_v3 = vcombine.low %v1719_v4, %v1723_v5  ;;  %v4302_v4 = vld [vmem:[%s5912_s7 + $0x30] sm:$0xff]  }
 0x27a   : > { %3278 = vmatpush1.bf16.msra.mxu0 %v4098_v58  ;;  %v1726_v58 = vld [vmem:[%s5910_s5 + $0x790] sm:$0xff] }
 0x27b   : > { %3360 = vmatpush1.bf16.msra.mxu1 %v4100_v59  ;;  %3279 = vmatprep.subr.bf16.mxu0 %v4107_v61  ;;  %v1730_v59 = vld [vmem:[%s5910_s5 + $0x7b0] sm:$0xff]  ;;  %v1727_v61 = vld [vmem:[%s5910_s5 + $0x798] sm:$0xff] }
 0x27c   : > { %3361 = vmatprep.subr.bf16.mxu1 %v4109_v62  ;;  %v1731_v62 = vld [vmem:[%s5910_s5 + $0x7b8] sm:$0xff]  ;;  %v4171_v6 = vcombine.high %v1726_v58, %v1730_v59  ;;  %v4170_v7 = vcombine.low %v1726_v58, %v1730_v59  ;;  %v1744_v58 = vsub.s32 0, %v4746_v24  ;;  %v1748_v59 = vsub.s32 1, %v4746_v24 }
 0x27d   : > { %v4173_v41 = vcombine.high %v1727_v61, %v1731_v62  ;;  %v4172_v9 = vcombine.low %v1727_v61, %v1731_v62 }
 0x27e   : > { %3280 = vmatpush1.bf16.msra.mxu0 %v4106_v44  ;;  %v1734_v44 = vld [vmem:[%s5910_s5 + $0x7d0] sm:$0xff] }
 0x27f   : > { %3362 = vmatpush1.bf16.msra.mxu1 %v4108_v47  ;;  %3281 = vmatprep.subr.bf16.mxu0 %v4115_v48  ;;  %v1738_v47 = vld [vmem:[%s5910_s5 + $0x7f0] sm:$0xff]  ;;  %v1735_v48 = vld [vmem:[%s5910_s5 + $0x7d8] sm:$0xff] }
 0x280   : > { %3363 = vmatprep.subr.bf16.mxu1 %v4117_v49  ;;  %v1739_v49 = vld [vmem:[%s5910_s5 + $0x7f8] sm:$0xff]  ;;  %v4179_v50 = vcombine.high %v1734_v44, %v1738_v47 }
 0x281   : > { %v4181_v10 = vcombine.high %v1735_v48, %v1739_v49 }
 0x282   : > { %3282 = vmatpush1.bf16.msra.mxu0 %v4114_v11  ;;  %v4178_v11 = vcombine.low %v1734_v44, %v1738_v47  ;;  %v1760_v44 = vsub.s32 4, %v4746_v24 }
 0x283   : > { %3364 = vmatpush1.bf16.msra.mxu1 %v4116_v12  ;;  %3283 = vmatprep.subr.bf16.mxu0 %v4123_v13  ;;  %v4180_v12 = vcombine.low %v1735_v48, %v1739_v49  ;;  %v1752_v13 = vsub.s32 2, %v4746_v24  ;;  %v1768_v48 = vsub.s32 6, %v4746_v24  ;;  %v1764_v49 = vsub.s32 5, %v4746_v24 }
 0x284   : > { %3365 = vmatprep.subr.bf16.mxu1 %v4125_v14  ;;  %v5782_v14 = vld [vmem:[%s5911_s6] sm:$0xff] }
 0x285   : > { %v1753_v16 = vrot.slane %v5782_v14, %v1752_v13  ;;  %v1757_v17 = vrot.slane %v5782_v14, %v1756_v15  ;;  %v1745_v61 = vrot.slane %v5782_v14, %v1744_v58  ;;  %v1749_v62 = vrot.slane %v5782_v14, %v1748_v59  ;;  %v3663_v59 = vld [vmem:[#allocation3] sm:$0xf] (!%p4207_p5) }
 0x286   : > { %3284 = vmatpush1.bf16.msra.mxu0 %v4122_v18  ;;  %v1765_v13 = vrot.slane %v5782_v14, %v1764_v49  ;;  %3664 = vst [vmem:[#allocation8] sm:$0xf] (!%p4207_p5), %v3663_v59 }
 0x287   : > { %3366 = vmatpush1.bf16.msra.mxu1 %v4124_v19  ;;  %3285 = vmatprep.subr.bf16.mxu0 %v4131_v20 }
 0x288   : > { %3367 = vmatprep.subr.bf16.mxu1 %v4133_v21 }
 0x28a   : > { %3286 = vmatpush1.bf16.msra.mxu0 %v4130_v27 }
 0x28b   : > { %3368 = vmatpush1.bf16.msra.mxu1 %v4132_v28  ;;  %3287 = vmatprep.subr.bf16.mxu0 %v4139_v53  ;;  %v4289_v53 = vld [vmem:[%s5912_s7 + $0x40] sm:$0xff]  }
 0x28c   : > { %3369 = vmatprep.subr.bf16.mxu1 %v4141_v29  ;;  %v4290_v29 = vld [vmem:[%s5912_s7] sm:$0xff]  }
 0x28e   : > { %3288 = vmatpush1.bf16.msra.mxu0 %v4138_v35  ;;  %v4295_v35 = vld [vmem:[%s5912_s7 + $0x58] sm:$0xff]  }
 0x28f   : > { %3370 = vmatpush1.bf16.msra.mxu1 %v4140_v36  ;;  %3289 = vmatprep.subr.bf16.mxu0 %v4147_v37  ;;  %v4296_v37 = vld [vmem:[%s5912_s7 + $0x18] sm:$0xff]  }
 0x290   : > { %3371 = vmatprep.subr.bf16.mxu1 %v4149_v38 }
 0x292   : > { %3290 = vmatpush1.bf16.msra.mxu0 %v4146_v46  ;;  %v4298_v46 = vld [vmem:[%s5912_s7 + $0x20] sm:$0xff]  }
 0x293   : > { %3372 = vmatpush1.bf16.msra.mxu1 %v4148_v51  ;;  %3291 = vmatprep.subr.bf16.mxu0 %v4155_v52  ;;  %v4299_v51 = vld [vmem:[%s5912_s7 + $0x68] sm:$0xff]   ;;  %v3391_v52 = vmul.f32 %v3390_v40, %v4752_v32  ;;  %v4303_v32 = vld [vmem:[%s5912_s7 + $0x78] sm:$0xff]  }
 0x294   : > { %3373 = vmatprep.subr.bf16.mxu1 %v4157_v0  ;;  %v4300_v0 = vld [vmem:[%s5912_s7 + $0x28] sm:$0xff]  }
 0x295   : > { %v3437_v2 = vrot.slane %v3391_v52, %v4750_v31 }
 0x296   : > { %3292 = vmatpush1.bf16.msra.mxu0 %v4154_v54 }
 0x297   : > { %3374 = vmatpush1.bf16.msra.mxu1 %v4156_v55  ;;  %3293 = vmatprep.subr.bf16.mxu0 %v4163_v56  ;;  %v3438_v54 = vcombine.high %v3437_v2, %v3437_v2 }
 0x298   : > { %3375 = vmatprep.subr.bf16.mxu1 %v4165_v57  ;;  %v4304_v57 = vld [vmem:[%s5912_s7 + $0x38] sm:$0xff]  }
 0x29a   : > { %3294 = vmatpush1.bf16.msra.mxu0 %v4162_v63 }
 0x29b   : > { %3376 = vmatpush1.bf16.msra.mxu1 %v4164_v3  ;;  %3295 = vmatprep.subr.bf16.mxu0 %v4171_v6 }
 0x29c   : > { %3377 = vmatprep.subr.bf16.mxu1 %v4173_v41 }
 0x29e   : > { %3296 = vmatpush1.bf16.msra.mxu0 %v4170_v7 }
 0x29f   : > { %3378 = vmatpush1.bf16.msra.mxu1 %v4172_v9  ;;  %3297 = vmatprep.subr.bf16.mxu0 %v4179_v50  ;;  %v1772_v9 = vsub.s32 7, %v4746_v24 }
 0x2a0   : > { %3379 = vmatprep.subr.bf16.mxu1 %v4181_v10  ;;  %v1761_v10 = vrot.slane %v5782_v14, %v1760_v44 }
 0x2a1   : > { %v1773_v15 = vrot.slane %v5782_v14, %v1772_v9 }
 0x2a2   : > { %3298 = vmatpush1.bf16.msra.mxu0 %v4178_v11 }
 0x2a3   : > { %3380 = vmatpush1.bf16.msra.mxu1 %v4180_v12  ;;  %4215 = vmatprep.subr.bf16.mxu0 %v4289_v53  ;;  %v1769_v12 = vrot.slane %v5782_v14, %v1768_v48 }
 0x2a5   : > { %3300 = vmatmul.mubr.bf16.vlgmr.msra.gmra.mrb[12].mxu0 %v5406_v45 }
 0x2a6   : > { %3382 = vmatmul.mubr.bf16.vlgmr.msra.gmra.mrb[12].mxu1 %v5406_v45  ;;  %4216 = vmatpush3.bf16.msra.mxu0 %v4290_v29 }
 0x2a7   : > { %4217 = vmatprep.subr.bf16.mxu0 %v4291_v60 }
 0x2aa   : > { %4218 = vmatpush3.bf16.msra.mxu0 %v4292_v30 }
 0x2ab   : > { %4219 = vmatprep.subr.bf16.mxu0 %v4293_v33 }
 0x2ae   : > { %4220 = vmatpush3.bf16.msra.mxu0 %v4294_v34 }
 0x2af   : > { %4221 = vmatprep.subr.bf16.mxu0 %v4295_v35 }
 0x2b2   : > { %4222 = vmatpush3.bf16.msra.mxu0 %v4296_v37 }
 0x2b3   : > { %4223 = vmatprep.subr.bf16.mxu0 %v4297_v43 }
 0x2b6   : > { %4224 = vmatpush3.bf16.msra.mxu0 %v4298_v46 }
 0x2b7   : > { %4225 = vmatprep.subr.bf16.mxu0 %v4299_v51 }
 0x2ba   : > { %4226 = vmatpush3.bf16.msra.mxu0 %v4300_v0 }
 0x2bb   : > { %4227 = vmatprep.subr.bf16.mxu0 %v4301_v1 }
 0x2be   : > { %4228 = vmatpush3.bf16.msra.mxu0 %v4302_v4 }
 0x2bf   : > { %4229 = vmatprep.subr.bf16.mxu0 %v4303_v32  ;;  %v4190_v32 = vld [vmem:[%s5913_s8] ss:$0 sm:$0xff] }
 0x2c2   : > { %4230 = vmatpush3.bf16.msra.mxu0 %v4304_v57 }
 0x2f8   : > { %v5787_v8 = vpop.f32.mrb[8].mxu0  ;;  %v3219_v18 = vpop.f32.mrb[8].mxu1 }
 0x2f9   : > { %v4239_v19 = vadd.f32 %v3219_v18, %v1753_v16  ;;  %v3139_v20 = vpop.f32.mrb[9].mxu0  ;;  %v3221_v21 = vpop.f32.mrb[9].mxu1  ;;  %v4237_v63 = vadd.f32 %v5787_v8, %v1745_v61 }
 0x2fa   : > { %v4240_v45 = vadd.f32 %v3221_v21, %v1757_v17  ;;  %v3141_v22 = vpop.f32.mrb[10].mxu0  ;;  %v3223_v23 = vpop.f32.mrb[10].mxu1  ;;  %v4238_v3 = vadd.f32 %v3139_v20, %v1749_v62 }
 0x2fb   : > { %v4184_v25 = vmul.f32 -1.442695, %v4239_v19  ;;  %v3142_v26 = vpop.f32.mrb[11].mxu0  ;;  %v3224_v27 = vpop.f32.mrb[11].mxu1  ;;  %v4182_v6 = vmul.f32 -1.442695, %v4237_v63 }
 0x2fc   : > { %v4185_v28 = vmul.f32 -1.442695, %v4240_v45  ;;  %v4183_v41 = vmul.f32 -1.442695, %v4238_v3 }
 0x2fd   : > { %4321 = vpow2.f32 %v4184_v25 }
 0x2fe   : > { %4323 = vpow2.f32 %v4185_v28 }
 0x307   : > { %v4322_v36 = vpop.eup %4321 }
 0x308   : > { %v3410_v38 = vadd.f32 1.0, %v4322_v36  ;;  %v4324_v39 = vpop.eup %4323 }
 0x309   : > { %v3411_v42 = vadd.f32 1.0, %v4324_v39 }
 0x30a   : > { %4325 = vrcp.f32 %v3410_v38 }
 0x30b   : > { %4327 = vrcp.f32 %v3411_v42 }
 0x30c   : > { %4329 = vpow2.f32 %v4182_v6 }
 0x30d   : > { %4331 = vpow2.f32 %v4183_v41 }
 0x314   : > { %v4326_v5 = vpop.eup %4325 }
 0x315   : > { %v3441_v55 = vmul.f32 %v4326_v5, %v3437_v2  ;;  %v4328_v56 = vpop.eup %4327 }
 0x316   : > { %v3442_v31 = vmul.f32 %v4328_v56, %v3438_v54  ;;  %v4330_v47 = vpop.eup %4329 }
 0x317   : > { %v4332_v7 = vpop.eup %4331  ;;  %v3398_v50 = vadd.f32 1.0, %v4330_v47 }
 0x318   : > { %v3399_v11 = vadd.f32 1.0, %v4332_v7 }
 0x319   : > { %4333 = vrcp.f32 %v3398_v50 }
 0x31a   : > { %4335 = vrcp.f32 %v3399_v11 }
 0x323   : > { %v4334_v14 = vpop.eup %4333 }
 0x324   : > { %v4336_v28 = vpop.eup %4335 }
 0x378   : > { %v3301_v16 = vpop.f32.mrb[12].mxu0 }
 0x379   : > { %v4241_v17 = vadd.f32 %v3301_v16, %v1761_v10  ;;  %v3383_v8 = vpop.f32.mrb[12].mxu1  ;;  %v3303_v18 = vpop.f32.mrb[13].mxu0 }
 0x37a   : > { %v4243_v19 = vadd.f32 %v3383_v8, %v1769_v12  ;;  %v4242_v20 = vadd.f32 %v3303_v18, %v1765_v13  ;;  %v3385_v21 = vpop.f32.mrb[13].mxu1  ;;  %v3305_v24 = vpop.f32.mrb[14].mxu0 }
 0x37b   : > { %4337 = vtanh.f32 %v4241_v17  ;;  %v4244_v45 = vadd.f32 %v3385_v21, %v1773_v15  ;;  %v3387_v22 = vpop.f32.mrb[14].mxu1  ;;  %v3306_v23 = vpop.f32.mrb[15].mxu0 }
 0x37c   : > { %v4186_v25 = vmul.f32 -1.442695, %v4243_v19  ;;  %4339 = vtanh.f32 %v4242_v20  ;;  %v3388_v26 = vpop.f32.mrb[15].mxu1 }
 0x37d   : > { %v4187_v27 = vmul.f32 -1.442695, %v4244_v45 }
 0x37e   : > { %4341 = vpow2.f32 %v4186_v25 }
 0x37f   : > { %4343 = vpow2.f32 %v4187_v27 }
 0x385   : > { %v4338_v53 = vpop.eup %4337 }
 0x386   : > { %v4340_v29 = vpop.eup %4339  ;;  %v3443_v60 = vmul.f32 %v4338_v53, %v4334_v14 }
 0x387   : > { %v3444_v30 = vmul.f32 %v4340_v29, %v4336_v28 }
 0x388   : > { %v4342_v33 = vpop.eup %4341  ;;  %v3445_v34 = vadd.f32 %v3443_v60, %v3441_v55 }
 0x389   : > { %v4344_v35 = vpop.eup %4343  ;;  %v3424_v36 = vadd.f32 1.0, %v4342_v33  ;;  %v3446_v37 = vadd.f32 %v3444_v30, %v3442_v31  ;;  %v3658_v31 = vld [vmem:[#allocation2] sm:$0xf] (!%p4207_p5) }
 0x38a   : > { %4345 = vtanh.f32 %v3445_v34  ;;  %v3425_v38 = vadd.f32 1.0, %v4344_v35  ;;  %3659 = vst [vmem:[#allocation6] sm:$0xf] (!%p4207_p5), %v3658_v31 }
 0x38b   : > { %4347 = vrcp.f32 %v3424_v36  ;;  %v3465_v39 = vcombine.low %v3445_v34, %v3446_v37 }
 0x38c   : > { %4349 = vtanh.f32 %v3446_v37 }
 0x38d   : > { %4189 = vst.sshfl [vmem:[#allocation5] sm:$0x33 pattern:$0x76325410] %v3465_v39  ;;  %4351 = vrcp.f32 %v3425_v38 }
 0x394   : > { %v4346_v40 = vpop.eup %4345  ;;  %v3665_v61 = vld [vmem:[#allocation5] sm:$0xf] (!%p4207_p5) }
 0x395   : > { %v4348_v42 = vpop.eup %4347  ;;  %3667 = vst [vmem:[#allocation8 + $0x4] sm:$0xf] (!%p4207_p5), %v3665_v61 }
 0x396   : > { %v4350_v43 = vpop.eup %4349  ;;  %v3449_v46 = vmul.f32 %v4348_v42, %v4346_v40 }
 0x397   : > { %v4352_v51 = vpop.eup %4351 }
 0x398   : > { %v3450_v52 = vmul.f32 %v4352_v51, %v4350_v43  ;;  %v3475_v2 = vpack.c.bf16 %v3449_v46, %v3449_v46 }
 0x39a   : > { %v3453_v0 = vcombine.low %v3449_v46, %v3450_v52  ;;  %v3476_v1 = vpack.c.bf16 %v3450_v52, %v3450_v52 }
 0x39c   : > { %4188 = vst.sshfl [vmem:[#allocation4] sm:$0x33 pattern:$0x76325410] %v3453_v0  ;;  %3644 = vmatprep.mubr.bf16.mxu0 %v3476_v1 }
 0x39d   : > { %3645 = vmatmul.mubr.bf16.vlgmr.msra.gmra.mrb[16].mxu0 %v3475_v2 }
 0x3a3   : > { %v3660_v58 = vld [vmem:[#allocation4] sm:$0xf] (!%p4207_p5) }
 0x3a4   : > { %3662 = vst [vmem:[#allocation6 + $0x4] sm:$0xf] (!%p4207_p5), %v3660_v58 }
 0x470   : > { %v4231_v4 = vpop.f32.mrb[16].mxu0  ;;  %3657 = sbr.rel (%p4207_p5) target bundleno = 1143 (0x477), region = 64 }
 0x471   : > { %v4232_v5 = vpop.f32.mrb[17].mxu0 }
 0x472   : > { %v4233_v54 = vadd.f32 %v4232_v5, %v4231_v4  ;;  %v4234_v55 = vpop.f32.mrb[18].mxu0 }
 0x473   : > { %v4235_v56 = vpop.f32.mrb[19].mxu0 }
 0x474   : > { %v3647_v57 = vadd.f32 %v4233_v54, %v4190_v32 }
 0x476   : > { %3653 = vst.msk [vmem:[%s4511_s30] sm:$0x3] %vm3652_vm0, %v3647_v57 }
 0x477 PF: > { %p4269_p6 = scmp.eq.s32.totalorder %s4494_s18, 3  ;;  %s4424_s20 = smov [#allocation6]  }
 0x478   : > { %s3681_s21 = sshll.u32 %s4424_s20, 4  ;;  %s3682_s21 = int_to_ptr.vmem [resolvable:$true] %s3681_s21 }
 0x479   : > { %s4353_s22 = scalar_lea.vmem %s3682_s21, 128  ;;  %p4360_p10 = scmp.lt.s32.totalorder %s3682_s21, %s3682_s21 }
 0x47a   : > { %p4354_p7 = scmp.ne.s32.totalorder %s3682_s21, %s4353_s22  ;;  %p4361_p11 = scmp.lt.s32.totalorder %s4353_s22, %s4353_s22 }
 0x47c   : > { %p4355_p8 = pnand %p4354_p7, %p4269_p6  ;;  %p4362_p12 = por %p4361_p11, %p4360_p10 }
 0x47e   : > { %p4356_p9 = pneg %p4355_p8 }
 0x480   : > { %p4363_p13 = pnand %p4362_p12, %p4356_p9 }
 0x482   : > { %4366 = shalt.err (!%p4363_p13)
}
 0x483   : > { %s4367_s27 = scalar_lea.hbm %s5915_s10, 128 }
 0x484   : > { %p4368_p0 = scmp.ne.s32.totalorder %s5915_s10, %s4367_s27  ;;  %p4373_p3 = scmp.lt.u32.totalorder %s4367_s27, %s5915_s10 }
 0x486   : > { %p4369_p1 = pnand %p4368_p0, %p4269_p6 }
 0x488   : > { %p4370_p2 = pneg %p4369_p1 }
 0x48a   : > { %p4375_p4 = pnand %p4373_p3, %p4370_p2 }
 0x48c   : > { %4378 = shalt.err (!%p4375_p4)
}
 0x48d   : > { %s4425_s12 = smov 64   ;;  %s4426_s13 = smov 4  }
 0x48e   : > { %4262 = dma.vmem_to_hbm [thread:$0]  (%p4269_p6), %s3682_s21, 128, %s5915_s10, [#allocation7], %s4425_s12, %s4425_s12, %s4426_s13  }
 0x48f   : > { %s4427_s15 = smov [#allocation8]  }
 0x490   : > { %s3694_s16 = sshll.u32 %s4427_s15, 4  ;;  %s3695_s16 = int_to_ptr.vmem [resolvable:$true] %s3694_s16 }
 0x491   : > { %s4379_s19 = scalar_lea.vmem %s3695_s16, 128  ;;  %p4386_p9 = scmp.lt.s32.totalorder %s3695_s16, %s3695_s16 }
 0x492   : > { %p4380_p5 = scmp.ne.s32.totalorder %s3695_s16, %s4379_s19  ;;  %p4387_p10 = scmp.lt.s32.totalorder %s4379_s19, %s4379_s19 }
 0x494   : > { %p4381_p7 = pnand %p4380_p5, %p4269_p6  ;;  %p4388_p11 = por %p4387_p10, %p4386_p9 }
 0x496   : > { %p4382_p8 = pneg %p4381_p7 }
 0x498   : > { %p4389_p12 = pnand %p4388_p11, %p4382_p8 }
 0x49a   : > { %4392 = shalt.err (!%p4389_p12)
}
 0x49b   : > { %s4393_s30 = scalar_lea.hbm %s5916_s11, 128 }
 0x49c   : > { %p4394_p13 = scmp.ne.s32.totalorder %s5916_s11, %s4393_s30  ;;  %p4399_p2 = scmp.lt.u32.totalorder %s4393_s30, %s5916_s11 }
 0x49e   : > { %p4395_p0 = pnand %p4394_p13, %p4269_p6 }
 0x4a0   : > { %p4396_p1 = pneg %p4395_p0 }
 0x4a2   : > { %p4401_p3 = pnand %p4399_p2, %p4396_p1 }
 0x4a4   : > { %4404 = shalt.err (!%p4401_p3)
}
 0x4a5   : > { %4264 = dma.vmem_to_hbm [thread:$0]  (%p4269_p6), %s3695_s16, 128, %s5916_s11, [#allocation9], %s4425_s12, %s4425_s12, %s4426_s13  }
 0x4a6   : > { %4410 = dma.done.wait (%p4269_p6), [#allocation7], 128  }
 0x4a7   : > { %4412 = vsyncadd (%p4269_p6), [#allocation7], 4294967168 }
 0x4a8   : > { %4414 = dma.done.wait (%p4269_p6), [#allocation9], 128  }
 0x4a9   : > { %4416 = vsyncadd (%p4269_p6), [#allocation9], 4294967168 }
 0x4aa PF: > { %s24_s17 = sadd.s32 1, %s4419_s17  }
 0x4ab   : > { %p21_p4 = scmp.ge.s32.totalorder %s24_s17, 6  }
 0x4ad   :  { %23 = sbr.rel (!%p21_p4) target bundleno = 2 (0x2), region = 118 }
 0x4b4   :  { %3721 = vsyncpa [#allocation7], 1 }
 0x4b5   :  { %3723 = vsyncpa [#allocation7 + $0x1], 1 }
 0x4b6   :  { %3724 = vsyncpa [#allocation9], 1 }

</bundles_post_ra>
